<compile_context>
chip_gen: v5e
topology: v5e:2x2
jax: 0.10.0
libtpu: 0.0.40
codegen_flags: <defaults>
</compile_context>

<pallas_src>
import numpy as np
import jax
import jax.numpy as jnp
from jax.experimental import pallas as pl
from jax.experimental.pallas import tpu as pltpu

EPS = 1e-5      # nn.InstanceNorm2d default (affine=False, biased variance)
ALPHA = 0.1     # LeakyReLU negative slope used by ConvInsBlock / ResBlock


# ----------------------------------------------------------------------------
# In-kernel helpers (matmuls + elementwise + sublane reductions only: no
# reshapes / transposes / strided slices inside the kernels).
# ----------------------------------------------------------------------------

def _conv_mm(x16, rsel_ref, w_ref, b_ref):
    """3x3 conv as 3 accumulating (row-select @ x) @ W_tap matmuls (bf16 in, f32 acc).

    x16:      (Hp, Wp*Cin)          bf16  padded input, flat (w, c) lanes
    rsel_ref: (3, Ho, Hp)           bf16  row selection per kernel row (stride baked in)
    w_ref:    (3, Wp*Cin, Wo*Cout)  bf16  per-kernel-row weights, column taps baked in
    b_ref:    (1, Wo*Cout)          f32
    returns   (Ho, Wo*Cout)         f32
    """
    acc = None
    for di in range(3):
        rows = jnp.dot(rsel_ref[di], x16,
                       preferred_element_type=jnp.float32).astype(jnp.bfloat16)
        term = jnp.dot(rows, w_ref[di], preferred_element_type=jnp.float32)
        acc = term if acc is None else acc + term
    return acc + b_ref[...]


def _in_lrelu(d, p, inv_count):
    """InstanceNorm2d (no affine, biased var) + LeakyReLU on the flat layout.

    Single-pass statistics (sum & sum-of-squares), broadcast back to the
    (w, c) lane layout with one 0/1 channel-grouping matmul
    p[w*C+c, w'*C+c'] = [c == c'], so no in-kernel reshapes are needed.
    """
    cs = jnp.sum(d, axis=0, keepdims=True)             # (1, Wo*C)
    css = jnp.sum(d * d, axis=0, keepdims=True)
    mean = jnp.dot(cs, p, preferred_element_type=jnp.float32) * inv_count
    ex2 = jnp.dot(css, p, preferred_element_type=jnp.float32) * inv_count
    var = jnp.maximum(ex2 - mean * mean, 0.0)
    y = (d - mean) * jax.lax.rsqrt(var + EPS)           # rsqrt -> EUP
    return jnp.where(y >= 0, y, ALPHA * y)


def _make_conv_ins_kernel(inv_count):
    # ConvInsBlock: conv(3x3, s=1, p=1) + bias -> InstanceNorm -> LeakyReLU
    def kernel(xp_ref, rsel_ref, wd_ref, bd_ref, p_ref, o_ref):
        x16 = xp_ref[0].astype(jnp.bfloat16)
        d = _conv_mm(x16, rsel_ref, wd_ref, bd_ref)
        o_ref[0] = _in_lrelu(d, p_ref[...], inv_count)
    return kernel


def _make_stage_kernel(inv_count):
    # One encoder stage: conv(3x3, s=2, p=1) then ResBlock, fully fused.
    def kernel(xp_ref, rsel_ref, wd_ref, bd_ref, p_ref,
               shift_ref, wr_ref, br_ref, o_ref):
        p = p_ref[...]
        x16 = xp_ref[0].astype(jnp.bfloat16)
        # down conv -> d is also the residual branch (no norm yet)
        d = _conv_mm(x16, rsel_ref, wd_ref, bd_ref)                     # (Ho, Wo*C) f32
        # ResBlock.block: IN + LeakyReLU + conv(3x3, s=1, p=1)
        z16 = _in_lrelu(d, p, inv_count).astype(jnp.bfloat16)
        y = jnp.dot(z16, wr_ref[1], preferred_element_type=jnp.float32)
        zd = jnp.dot(shift_ref[0], z16,                                  # z shifted down a row
                     preferred_element_type=jnp.float32).astype(jnp.bfloat16)
        y = y + jnp.dot(zd, wr_ref[0], preferred_element_type=jnp.float32)
        zu = jnp.dot(shift_ref[1], z16,                                  # z shifted up a row
                     preferred_element_type=jnp.float32).astype(jnp.bfloat16)
        y = y + jnp.dot(zu, wr_ref[2], preferred_element_type=jnp.float32)
        y = y + br_ref[...] + d                                          # bias + residual add
        # ResBlock.actout: IN + LeakyReLU
        o_ref[0] = _in_lrelu(y, p, inv_count)
    return kernel


# ----------------------------------------------------------------------------
# Host-side constant / weight-matrix builders (tiny; run in XLA outside kernels)
# ----------------------------------------------------------------------------

def _row_select(Ho, Hp, stride):
    """(3, Ho, Hp) 0/1 matrices; R[di] @ x picks padded input row stride*i + di."""
    R = np.zeros((3, Ho, Hp), np.float32)
    i = np.arange(Ho)
    for di in range(3):
        R[di, i, stride * i + di] = 1.0
    return jnp.asarray(R, jnp.bfloat16)


def _tap_weights(w, Wo, in_cols, stride, offset):
    """Bake the 3 column taps + stride + zero padding into block-sparse matrices.

    w: (3, 3, Cin, Cout) -> (3, in_cols*Cin, Wo*Cout) bf16 with
    W[di][r*Cin+ci, j*Cout+co] = w[di, dj, ci, co] iff r == stride*j + dj + offset.
    """
    Cin, Cout = int(w.shape[2]), int(w.shape[3])
    S = np.zeros((in_cols, 3, Wo), np.float32)
    j = np.arange(Wo)
    for dj in range(3):
        cols = stride * j + dj + offset
        ok = (cols >= 0) & (cols < in_cols)
        S[cols[ok], dj, j[ok]] = 1.0
    wt = jnp.einsum("rkj,ikcd->ircjd", jnp.asarray(S), w)
    return wt.reshape(3, in_cols * Cin, Wo * Cout).astype(jnp.bfloat16)


def _chan_group(C, Wo):
    """(Wo*C, Wo*C) 0/1 matrix grouping flat (w, c) lanes by channel."""
    return jnp.asarray(np.tile(np.eye(C, dtype=np.float32), (Wo, Wo)))


def _flat_bias(b, Wo):
    return jnp.tile(b.astype(jnp.float32), Wo)[None, :]


# ----------------------------------------------------------------------------
# Fused pallas_call wrappers
# ----------------------------------------------------------------------------

def _fused_conv_ins_block(x_flat, H, W, Cin, w, b):
    """ConvInsBlock: conv(3x3, s=1, p=1) + InstanceNorm + LeakyReLU in one call."""
    N = x_flat.shape[0]
    Cout = int(w.shape[3])
    Hp, Wp, Ho, Wo = H + 2, W + 2, H, W
    KC, WoC = Wp * Cin, Wo * Cout

    xp = jnp.pad(x_flat, ((0, 0), (1, 1), (Cin, Cin)))
    rsel = _row_select(Ho, Hp, 1)
    wd = _tap_weights(w, Wo, Wp, 1, 0)
    bd = _flat_bias(b, Wo)
    P = _chan_group(Cout, Wo)

    kernel = _make_conv_ins_kernel(1.0 / (Ho * Wo))
    flops = 2 * N * (3 * Ho * Hp * KC + 3 * Ho * KC * WoC + 2 * WoC * WoC)
    bytes_accessed = (4 * N * (Hp * KC + Ho * WoC)
                      + 2 * (rsel.size + wd.size) + 4 * (bd.size + P.size))

    return pl.pallas_call(
        kernel,
        out_shape=jax.ShapeDtypeStruct((N, Ho, WoC), jnp.float32),
        grid=(N,),
        in_specs=[
            pl.BlockSpec((1, Hp, KC), lambda n: (n, 0, 0)),
            pl.BlockSpec((3, Ho, Hp), lambda n: (0, 0, 0)),
            pl.BlockSpec((3, KC, WoC), lambda n: (0, 0, 0)),
            pl.BlockSpec((1, WoC), lambda n: (0, 0)),
            pl.BlockSpec((WoC, WoC), lambda n: (0, 0)),
        ],
        out_specs=pl.BlockSpec((1, Ho, WoC), lambda n: (n, 0, 0)),
        compiler_params=pltpu.CompilerParams(dimension_semantics=("parallel",)),
        cost_estimate=pl.CostEstimate(flops=int(flops),
                                      transcendentals=int(N * WoC),
                                      bytes_accessed=int(bytes_accessed)),
    )(xp, rsel, wd, bd, P)


def _fused_down_res_stage(x_flat, H, W, Cin, p_down, p_res):
    """One encoder stage: conv(3x3, s=2, p=1) -> ResBlock, fused in one call."""
    N = x_flat.shape[0]
    Cout = int(p_down["w"].shape[3])
    Hp, Wp = H + 2, W + 2
    Ho, Wo = (H - 1) // 2 + 1, (W - 1) // 2 + 1
    KC, WoC = Wp * Cin, Wo * Cout

    xp = jnp.pad(x_flat, ((0, 0), (1, 1), (Cin, Cin)))
    rsel = _row_select(Ho, Hp, 2)
    wd = _tap_weights(p_down["w"], Wo, Wp, 2, 0)
    bd = _flat_bias(p_down["b"], Wo)
    P = _chan_group(Cout, Wo)
    shift = jnp.asarray(np.stack([np.eye(Ho, k=-1, dtype=np.float32),
                                  np.eye(Ho, k=1, dtype=np.float32)]), jnp.bfloat16)
    wr = _tap_weights(p_res["w"], Wo, Wo, 1, -1)   # pad-1 boundaries baked in
    br = _flat_bias(p_res["b"], Wo)

    kernel = _make_stage_kernel(1.0 / (Ho * Wo))
    flops = 2 * N * (3 * Ho * Hp * KC + 3 * Ho * KC * WoC          # down conv
                     + 2 * Ho * Ho * WoC + 3 * Ho * WoC * WoC      # res conv
                     + 4 * WoC * WoC)                              # IN stats
    bytes_accessed = (4 * N * (Hp * KC + Ho * WoC)
                      + 2 * (rsel.size + wd.size + wr.size + shift.size)
                      + 4 * (bd.size + br.size + P.size))

    out = pl.pallas_call(
        kernel,
        out_shape=jax.ShapeDtypeStruct((N, Ho, WoC), jnp.float32),
        grid=(N,),
        in_specs=[
            pl.BlockSpec((1, Hp, KC), lambda n: (n, 0, 0)),
            pl.BlockSpec((3, Ho, Hp), lambda n: (0, 0, 0)),
            pl.BlockSpec((3, KC, WoC), lambda n: (0, 0, 0)),
            pl.BlockSpec((1, WoC), lambda n: (0, 0)),
            pl.BlockSpec((WoC, WoC), lambda n: (0, 0)),
            pl.BlockSpec((2, Ho, Ho), lambda n: (0, 0, 0)),
            pl.BlockSpec((3, WoC, WoC), lambda n: (0, 0, 0)),
            pl.BlockSpec((1, WoC), lambda n: (0, 0)),
        ],
        out_specs=pl.BlockSpec((1, Ho, WoC), lambda n: (n, 0, 0)),
        compiler_params=pltpu.CompilerParams(dimension_semantics=("parallel",)),
        cost_estimate=pl.CostEstimate(flops=int(flops),
                                      transcendentals=int(2 * N * WoC),
                                      bytes_accessed=int(bytes_accessed)),
    )(xp, rsel, wd, bd, P, shift, wr, br)
    return out, Ho, Wo


# ----------------------------------------------------------------------------
# Model: Encoder(in_channel=1, first_out_channel=16)
# ----------------------------------------------------------------------------

def init_params(key, in_channel=1, c=16):
    def conv_p(k_, ksz, cin, cout):
        kw, kb = jax.random.split(k_)
        fan_in = ksz * ksz * cin
        w = jax.random.normal(kw, (ksz, ksz, cin, cout), jnp.float32) * (2.0 / fan_in) ** 0.5
        b = jax.random.normal(kb, (cout,), jnp.float32) * 0.01
        return {"w": w, "b": b}

    keys = jax.random.split(key, 7)
    return {
        "conv0": conv_p(keys[0], 3, in_channel, c),
        "down1": conv_p(keys[1], 3, c, 2 * c),
        "res1":  conv_p(keys[2], 3, 2 * c, 2 * c),
        "down2": conv_p(keys[3], 3, 2 * c, 4 * c),
        "res2":  conv_p(keys[4], 3, 4 * c, 4 * c),
        "down3": conv_p(keys[5], 3, 4 * c, 8 * c),
        "res3":  conv_p(keys[6], 3, 8 * c, 8 * c),
    }


def encoder_forward(params, x_nchw):
    N, Cin, H, W = x_nchw.shape
    x = jnp.transpose(x_nchw, (0, 2, 3, 1)).reshape(N, H, W * Cin)   # NCHW -> flat NHWC

    C0 = int(params["conv0"]["w"].shape[3])
    out0 = _fused_conv_ins_block(x, H, W, Cin, params["conv0"]["w"], params["conv0"]["b"])

    out1, H1, W1 = _fused_down_res_stage(out0, H, W, C0, params["down1"], params["res1"])
    C1 = int(params["down1"]["w"].shape[3])
    out2, H2, W2 = _fused_down_res_stage(out1, H1, W1, C1, params["down2"], params["res2"])
    C2 = int(params["down2"]["w"].shape[3])
    out3, H3, W3 = _fused_down_res_stage(out2, H2, W2, C2, params["down3"], params["res3"])
    C3 = int(params["down3"]["w"].shape[3])

    def to_nchw(o_flat, Ho, Wo, C):
        return jnp.transpose(o_flat.reshape(N, Ho, Wo, C), (0, 3, 1, 2))

    return [to_nchw(out0, H, W, C0), to_nchw(out1, H1, W1, C1),
            to_nchw(out2, H2, W2, C2), to_nchw(out3, H3, W3, C3)]


# ----------------------------------------------------------------------------
# Pure-JAX reference (no Pallas) for a loose numerical sanity check
# ----------------------------------------------------------------------------

def _reference_forward(params, x_nchw):
    def conv(x, p, stride):
        y = jax.lax.conv_general_dilated(
            x, p["w"], window_strides=(stride, stride), padding=((1, 1), (1, 1)),
            dimension_numbers=("NHWC", "HWIO", "NHWC"))
        return y + p["b"]

    def in_lrelu(x):
        m = jnp.mean(x, axis=(1, 2), keepdims=True)
        v = jnp.mean(jnp.square(x - m), axis=(1, 2), keepdims=True)
        y = (x - m) * jax.lax.rsqrt(v + EPS)
        return jnp.where(y >= 0, y, ALPHA * y)

    x = jnp.transpose(x_nchw, (0, 2, 3, 1))
    cur = in_lrelu(conv(x, params["conv0"], 1))
    outs = [cur]
    for dk, rk in (("down1", "res1"), ("down2", "res2"), ("down3", "res3")):
        d = conv(cur, params[dk], 2)
        cur = in_lrelu(conv(in_lrelu(d), params[rk], 1) + d)
        outs.append(cur)
    return [jnp.transpose(o, (0, 3, 1, 2)) for o in outs]


if __name__ == "__main__":
    key = jax.random.PRNGKey(0)
    kp, kx = jax.random.split(key)
    params = init_params(kp, in_channel=1, c=16)
    x = jax.random.normal(kx, (2, 1, 16, 16), jnp.float32)   # NCHW, like PyTorch

    outs = jax.block_until_ready(jax.jit(encoder_forward)(params, x))

    expected = [(2, 16, 16, 16), (2, 32, 8, 8), (2, 64, 4, 4), (2, 128, 2, 2)]
    assert all(tuple(o.shape) == e for o, e in zip(outs, expected)), [o.shape for o in outs]
    assert all(o.dtype == jnp.float32 for o in outs)

    # loose check vs the pure-JAX reference (kernel matmul operands are bf16)
    refs = jax.block_until_ready(jax.jit(_reference_forward)(params, x))
    max_err = max(float(jnp.max(jnp.abs(o - r))) for o, r in zip(outs, refs))
    assert max_err < 0.5, f"max abs error vs reference too large: {max_err}"

    print("KERNEL_OK")
</pallas_src>

<mosaic_0001>
module attributes {stable_mosaic.version = 11 : i64} {
  func.func @kernel(%arg0: i32, %arg1: memref<1x18x18xf32, #tpu.memory_space<vmem>>, %arg2: memref<3x16x18xbf16, #tpu.memory_space<vmem>>, %arg3: memref<3x18x256xbf16, #tpu.memory_space<vmem>>, %arg4: memref<1x256xf32, #tpu.memory_space<vmem>>, %arg5: memref<256x256xf32, #tpu.memory_space<vmem>>, %arg6: memref<1x16x256xf32, #tpu.memory_space<vmem>>) attributes {dimension_semantics = [#tpu.dimension_semantics<parallel>], iteration_bounds = array<i64: 2>, scalar_prefetch = 0 : i64, scratch_operands = 0 : i64, tpu.core_type = #tpu.core_type<tc>, window_params = [{transform_indices = @transform_0, window_bounds = array<i64: 1, 18, 18>}, {pipeline_mode = #tpu.pipeline_mode<synchronous>, transform_indices = @transform_1, window_bounds = array<i64: 3, 16, 18>}, {pipeline_mode = #tpu.pipeline_mode<synchronous>, transform_indices = @transform_2, window_bounds = array<i64: 3, 18, 256>}, {pipeline_mode = #tpu.pipeline_mode<synchronous>, transform_indices = @transform_3, window_bounds = array<i64: 1, 256>}, {pipeline_mode = #tpu.pipeline_mode<synchronous>, transform_indices = @transform_4, window_bounds = array<i64: 256, 256>}, {transform_indices = @transform_5, window_bounds = array<i64: 1, 16, 256>}]} {
    %c0 = arith.constant 0 : index
    %c0_0 = arith.constant 0 : index
    %c0_1 = arith.constant 0 : index
    %0 = vector.load %arg1[%c0, %c0_0, %c0_1] : memref<1x18x18xf32, #tpu.memory_space<vmem>>, vector<1x18x18xf32>
    %1 = vector.shape_cast %0 : vector<1x18x18xf32> to vector<18x18xf32>
    %2 = arith.truncf %1 : vector<18x18xf32> to vector<18x18xbf16>
    %c0_2 = arith.constant 0 : index
    %c0_3 = arith.constant 0 : index
    %c0_4 = arith.constant 0 : index
    %3 = vector.load %arg2[%c0_2, %c0_3, %c0_4] : memref<3x16x18xbf16, #tpu.memory_space<vmem>>, vector<1x16x18xbf16>
    %4 = vector.shape_cast %3 : vector<1x16x18xbf16> to vector<16x18xbf16>
    %cst = arith.constant dense<0.000000e+00> : vector<16x18xf32>
    %5 = tpu.matmul %4, %2, %cst {dimension_numbers = #tpu.dot_dimension_numbers<[1], [0], [0], [1], [0, 0, 1, 1], [], []>} : vector<16x18xbf16>, vector<18x18xbf16>, vector<16x18xf32> -> vector<16x18xf32>
    %6 = arith.truncf %5 : vector<16x18xf32> to vector<16x18xbf16>
    %c0_5 = arith.constant 0 : index
    %c0_6 = arith.constant 0 : index
    %c0_7 = arith.constant 0 : index
    %7 = vector.load %arg3[%c0_5, %c0_6, %c0_7] : memref<3x18x256xbf16, #tpu.memory_space<vmem>>, vector<1x18x256xbf16>
    %8 = vector.shape_cast %7 : vector<1x18x256xbf16> to vector<18x256xbf16>
    %cst_8 = arith.constant dense<0.000000e+00> : vector<16x256xf32>
    %9 = tpu.matmul %6, %8, %cst_8 {dimension_numbers = #tpu.dot_dimension_numbers<[1], [0], [0], [1], [0, 0, 1, 1], [], []>} : vector<16x18xbf16>, vector<18x256xbf16>, vector<16x256xf32> -> vector<16x256xf32>
    %c1 = arith.constant 1 : index
    %c0_9 = arith.constant 0 : index
    %c0_10 = arith.constant 0 : index
    %10 = vector.load %arg2[%c1, %c0_9, %c0_10] : memref<3x16x18xbf16, #tpu.memory_space<vmem>>, vector<1x16x18xbf16>
    %11 = vector.shape_cast %10 : vector<1x16x18xbf16> to vector<16x18xbf16>
    %cst_11 = arith.constant dense<0.000000e+00> : vector<16x18xf32>
    %12 = tpu.matmul %11, %2, %cst_11 {dimension_numbers = #tpu.dot_dimension_numbers<[1], [0], [0], [1], [0, 0, 1, 1], [], []>} : vector<16x18xbf16>, vector<18x18xbf16>, vector<16x18xf32> -> vector<16x18xf32>
    %13 = arith.truncf %12 : vector<16x18xf32> to vector<16x18xbf16>
    %c1_12 = arith.constant 1 : index
    %c0_13 = arith.constant 0 : index
    %c0_14 = arith.constant 0 : index
    %14 = vector.load %arg3[%c1_12, %c0_13, %c0_14] : memref<3x18x256xbf16, #tpu.memory_space<vmem>>, vector<1x18x256xbf16>
    %15 = vector.shape_cast %14 : vector<1x18x256xbf16> to vector<18x256xbf16>
    %cst_15 = arith.constant dense<0.000000e+00> : vector<16x256xf32>
    %16 = tpu.matmul %13, %15, %cst_15 {dimension_numbers = #tpu.dot_dimension_numbers<[1], [0], [0], [1], [0, 0, 1, 1], [], []>} : vector<16x18xbf16>, vector<18x256xbf16>, vector<16x256xf32> -> vector<16x256xf32>
    %17 = arith.addf %9, %16 : vector<16x256xf32>
    %c2 = arith.constant 2 : index
    %c0_16 = arith.constant 0 : index
    %c0_17 = arith.constant 0 : index
    %18 = vector.load %arg2[%c2, %c0_16, %c0_17] : memref<3x16x18xbf16, #tpu.memory_space<vmem>>, vector<1x16x18xbf16>
    %19 = vector.shape_cast %18 : vector<1x16x18xbf16> to vector<16x18xbf16>
    %cst_18 = arith.constant dense<0.000000e+00> : vector<16x18xf32>
    %20 = tpu.matmul %19, %2, %cst_18 {dimension_numbers = #tpu.dot_dimension_numbers<[1], [0], [0], [1], [0, 0, 1, 1], [], []>} : vector<16x18xbf16>, vector<18x18xbf16>, vector<16x18xf32> -> vector<16x18xf32>
    %21 = arith.truncf %20 : vector<16x18xf32> to vector<16x18xbf16>
    %c2_19 = arith.constant 2 : index
    %c0_20 = arith.constant 0 : index
    %c0_21 = arith.constant 0 : index
    %22 = vector.load %arg3[%c2_19, %c0_20, %c0_21] : memref<3x18x256xbf16, #tpu.memory_space<vmem>>, vector<1x18x256xbf16>
    %23 = vector.shape_cast %22 : vector<1x18x256xbf16> to vector<18x256xbf16>
    %cst_22 = arith.constant dense<0.000000e+00> : vector<16x256xf32>
    %24 = tpu.matmul %21, %23, %cst_22 {dimension_numbers = #tpu.dot_dimension_numbers<[1], [0], [0], [1], [0, 0, 1, 1], [], []>} : vector<16x18xbf16>, vector<18x256xbf16>, vector<16x256xf32> -> vector<16x256xf32>
    %25 = arith.addf %17, %24 : vector<16x256xf32>
    %c0_23 = arith.constant 0 : index
    %c0_24 = arith.constant 0 : index
    %26 = vector.load %arg4[%c0_23, %c0_24] : memref<1x256xf32, #tpu.memory_space<vmem>>, vector<1x256xf32>
    %27 = vector.broadcast %26 : vector<1x256xf32> to vector<16x256xf32>
    %28 = arith.addf %25, %27 : vector<16x256xf32>
    %c0_25 = arith.constant 0 : index
    %c0_26 = arith.constant 0 : index
    %29 = vector.load %arg5[%c0_25, %c0_26] : memref<256x256xf32, #tpu.memory_space<vmem>>, vector<256x256xf32>
    %cst_27 = arith.constant dense<0.000000e+00> : vector<256xf32>
    %30 = vector.multi_reduction <add>, %28, %cst_27 [0] : vector<16x256xf32> to vector<256xf32>
    %31 = vector.shape_cast %30 : vector<256xf32> to vector<1x256xf32>
    %32 = arith.mulf %28, %28 : vector<16x256xf32>
    %cst_28 = arith.constant dense<0.000000e+00> : vector<256xf32>
    %33 = vector.multi_reduction <add>, %32, %cst_28 [0] : vector<16x256xf32> to vector<256xf32>
    %34 = vector.shape_cast %33 : vector<256xf32> to vector<1x256xf32>
    %cst_29 = arith.constant dense<0.000000e+00> : vector<1x256xf32>
    %35 = tpu.matmul %31, %29, %cst_29 {dimension_numbers = #tpu.dot_dimension_numbers<[1], [0], [0], [1], [0, 0, 1, 1], [], []>} : vector<1x256xf32>, vector<256x256xf32>, vector<1x256xf32> -> vector<1x256xf32>
    %cst_30 = arith.constant 3.906250e-03 : f32
    %36 = vector.broadcast %cst_30 : f32 to vector<1x256xf32>
    %37 = arith.mulf %35, %36 : vector<1x256xf32>
    %cst_31 = arith.constant dense<0.000000e+00> : vector<1x256xf32>
    %38 = tpu.matmul %34, %29, %cst_31 {dimension_numbers = #tpu.dot_dimension_numbers<[1], [0], [0], [1], [0, 0, 1, 1], [], []>} : vector<1x256xf32>, vector<256x256xf32>, vector<1x256xf32> -> vector<1x256xf32>
    %cst_32 = arith.constant 3.906250e-03 : f32
    %39 = vector.broadcast %cst_32 : f32 to vector<1x256xf32>
    %40 = arith.mulf %38, %39 : vector<1x256xf32>
    %41 = arith.mulf %37, %37 : vector<1x256xf32>
    %42 = arith.subf %40, %41 : vector<1x256xf32>
    %cst_33 = arith.constant 0.000000e+00 : f32
    %43 = vector.broadcast %cst_33 : f32 to vector<1x256xf32>
    %44 = arith.maximumf %42, %43 : vector<1x256xf32>
    %45 = vector.broadcast %37 : vector<1x256xf32> to vector<16x256xf32>
    %46 = arith.subf %28, %45 : vector<16x256xf32>
    %cst_34 = arith.constant 9.99999974E-6 : f32
    %47 = vector.broadcast %cst_34 : f32 to vector<1x256xf32>
    %48 = arith.addf %44, %47 : vector<1x256xf32>
    %49 = math.rsqrt %48 : vector<1x256xf32>
    %50 = vector.broadcast %49 : vector<1x256xf32> to vector<16x256xf32>
    %51 = arith.mulf %46, %50 : vector<16x256xf32>
    %cst_35 = arith.constant 0.000000e+00 : f32
    %52 = vector.broadcast %cst_35 : f32 to vector<16x256xf32>
    %53 = arith.cmpf oge, %51, %52 : vector<16x256xf32>
    %cst_36 = arith.constant 1.000000e-01 : f32
    %54 = vector.broadcast %cst_36 : f32 to vector<16x256xf32>
    %55 = arith.mulf %54, %51 : vector<16x256xf32>
    %56 = arith.select %53, %51, %55 : vector<16x256xi1>, vector<16x256xf32>
    %c0_37 = arith.constant 0 : index
    %c0_38 = arith.constant 0 : index
    %c0_39 = arith.constant 0 : index
    %57 = vector.load %arg6[%c0_37, %c0_38, %c0_39] : memref<1x16x256xf32, #tpu.memory_space<vmem>>, vector<1x16x256xf32>
    %58 = vector.shape_cast %57 : vector<1x16x256xf32> to vector<16x256xf32>
    %59 = vector.shape_cast %56 : vector<16x256xf32> to vector<1x16x256xf32>
    tpu.vector_store %arg6[%c0_37, %c0_38, %c0_39], %59 {strides = array<i32>} : memref<1x16x256xf32, #tpu.memory_space<vmem>>, vector<1x16x256xf32>,
    return
  }
  func.func @transform_0(%arg0: i32) -> (i32, i32, i32) {
    %c0_i32 = arith.constant 0 : i32
    %c0_i32_0 = arith.constant 0 : i32
    %c0_i32_1 = arith.constant 0 : i32
    return %arg0, %c0_i32, %c0_i32_0 : i32, i32, i32
  }
  func.func @transform_1(%arg0: i32) -> (i32, i32, i32) {
    %c0_i32 = arith.constant 0 : i32
    %c0_i32_0 = arith.constant 0 : i32
    %c0_i32_1 = arith.constant 0 : i32
    %c0_i32_2 = arith.constant 0 : i32
    return %c0_i32, %c0_i32_0, %c0_i32_1 : i32, i32, i32
  }
  func.func @transform_2(%arg0: i32) -> (i32, i32, i32) {
    %c0_i32 = arith.constant 0 : i32
    %c0_i32_0 = arith.constant 0 : i32
    %c0_i32_1 = arith.constant 0 : i32
    %c0_i32_2 = arith.constant 0 : i32
    return %c0_i32, %c0_i32_0, %c0_i32_1 : i32, i32, i32
  }
  func.func @transform_3(%arg0: i32) -> (i32, i32) {
    %c0_i32 = arith.constant 0 : i32
    %c0_i32_0 = arith.constant 0 : i32
    %c0_i32_1 = arith.constant 0 : i32
    return %c0_i32, %c0_i32_0 : i32, i32
  }
  func.func @transform_4(%arg0: i32) -> (i32, i32) {
    %c0_i32 = arith.constant 0 : i32
    %c0_i32_0 = arith.constant 0 : i32
    %c0_i32_1 = arith.constant 0 : i32
    return %c0_i32, %c0_i32_0 : i32, i32
  }
  func.func @transform_5(%arg0: i32) -> (i32, i32, i32) {
    %c0_i32 = arith.constant 0 : i32
    %c0_i32_0 = arith.constant 0 : i32
    %c0_i32_1 = arith.constant 0 : i32
    return %arg0, %c0_i32, %c0_i32_0 : i32, i32, i32
  }
}

module attributes {stable_mosaic.version = 11 : i64} {
  func.func @kernel(%arg0: i32, %arg1: memref<1x18x288xf32, #tpu.memory_space<vmem>>, %arg2: memref<3x8x18xbf16, #tpu.memory_space<vmem>>, %arg3: memref<3x288x256xbf16, #tpu.memory_space<vmem>>, %arg4: memref<1x256xf32, #tpu.memory_space<vmem>>, %arg5: memref<256x256xf32, #tpu.memory_space<vmem>>, %arg6: memref<2x8x8xbf16, #tpu.memory_space<vmem>>, %arg7: memref<3x256x256xbf16, #tpu.memory_space<vmem>>, %arg8: memref<1x256xf32, #tpu.memory_space<vmem>>, %arg9: memref<1x8x256xf32, #tpu.memory_space<vmem>>) attributes {dimension_semantics = [#tpu.dimension_semantics<parallel>], iteration_bounds = array<i64: 2>, scalar_prefetch = 0 : i64, scratch_operands = 0 : i64, tpu.core_type = #tpu.core_type<tc>, window_params = [{transform_indices = @transform_0, window_bounds = array<i64: 1, 18, 288>}, {pipeline_mode = #tpu.pipeline_mode<synchronous>, transform_indices = @transform_1, window_bounds = array<i64: 3, 8, 18>}, {pipeline_mode = #tpu.pipeline_mode<synchronous>, transform_indices = @transform_2, window_bounds = array<i64: 3, 288, 256>}, {pipeline_mode = #tpu.pipeline_mode<synchronous>, transform_indices = @transform_3, window_bounds = array<i64: 1, 256>}, {pipeline_mode = #tpu.pipeline_mode<synchronous>, transform_indices = @transform_4, window_bounds = array<i64: 256, 256>}, {pipeline_mode = #tpu.pipeline_mode<synchronous>, transform_indices = @transform_5, window_bounds = array<i64: 2, 8, 8>}, {pipeline_mode = #tpu.pipeline_mode<synchronous>, transform_indices = @transform_6, window_bounds = array<i64: 3, 256, 256>}, {pipeline_mode = #tpu.pipeline_mode<synchronous>, transform_indices = @transform_7, window_bounds = array<i64: 1, 256>}, {transform_indices = @transform_8, window_bounds = array<i64: 1, 8, 256>}]} {
    %c0 = arith.constant 0 : index
    %c0_0 = arith.constant 0 : index
    %0 = vector.load %arg5[%c0, %c0_0] : memref<256x256xf32, #tpu.memory_space<vmem>>, vector<256x256xf32>
    %c0_1 = arith.constant 0 : index
    %c0_2 = arith.constant 0 : index
    %c0_3 = arith.constant 0 : index
    %1 = vector.load %arg1[%c0_1, %c0_2, %c0_3] : memref<1x18x288xf32, #tpu.memory_space<vmem>>, vector<1x18x288xf32>
    %2 = vector.shape_cast %1 : vector<1x18x288xf32> to vector<18x288xf32>
    %3 = arith.truncf %2 : vector<18x288xf32> to vector<18x288xbf16>
    %c0_4 = arith.constant 0 : index
    %c0_5 = arith.constant 0 : index
    %c0_6 = arith.constant 0 : index
    %4 = vector.load %arg2[%c0_4, %c0_5, %c0_6] : memref<3x8x18xbf16, #tpu.memory_space<vmem>>, vector<1x8x18xbf16>
    %5 = vector.shape_cast %4 : vector<1x8x18xbf16> to vector<8x18xbf16>
    %cst = arith.constant dense<0.000000e+00> : vector<8x288xf32>
    %6 = tpu.matmul %5, %3, %cst {dimension_numbers = #tpu.dot_dimension_numbers<[1], [0], [0], [1], [0, 0, 1, 1], [], []>} : vector<8x18xbf16>, vector<18x288xbf16>, vector<8x288xf32> -> vector<8x288xf32>
    %7 = arith.truncf %6 : vector<8x288xf32> to vector<8x288xbf16>
    %c0_7 = arith.constant 0 : index
    %c0_8 = arith.constant 0 : index
    %c0_9 = arith.constant 0 : index
    %8 = vector.load %arg3[%c0_7, %c0_8, %c0_9] : memref<3x288x256xbf16, #tpu.memory_space<vmem>>, vector<1x288x256xbf16>
    %9 = vector.shape_cast %8 : vector<1x288x256xbf16> to vector<288x256xbf16>
    %cst_10 = arith.constant dense<0.000000e+00> : vector<8x256xf32>
    %10 = tpu.matmul %7, %9, %cst_10 {dimension_numbers = #tpu.dot_dimension_numbers<[1], [0], [0], [1], [0, 0, 1, 1], [], []>} : vector<8x288xbf16>, vector<288x256xbf16>, vector<8x256xf32> -> vector<8x256xf32>
    %c1 = arith.constant 1 : index
    %c0_11 = arith.constant 0 : index
    %c0_12 = arith.constant 0 : index
    %11 = vector.load %arg2[%c1, %c0_11, %c0_12] : memref<3x8x18xbf16, #tpu.memory_space<vmem>>, vector<1x8x18xbf16>
    %12 = vector.shape_cast %11 : vector<1x8x18xbf16> to vector<8x18xbf16>
    %cst_13 = arith.constant dense<0.000000e+00> : vector<8x288xf32>
    %13 = tpu.matmul %12, %3, %cst_13 {dimension_numbers = #tpu.dot_dimension_numbers<[1], [0], [0], [1], [0, 0, 1, 1], [], []>} : vector<8x18xbf16>, vector<18x288xbf16>, vector<8x288xf32> -> vector<8x288xf32>
    %14 = arith.truncf %13 : vector<8x288xf32> to vector<8x288xbf16>
    %c1_14 = arith.constant 1 : index
    %c0_15 = arith.constant 0 : index
    %c0_16 = arith.constant 0 : index
    %15 = vector.load %arg3[%c1_14, %c0_15, %c0_16] : memref<3x288x256xbf16, #tpu.memory_space<vmem>>, vector<1x288x256xbf16>
    %16 = vector.shape_cast %15 : vector<1x288x256xbf16> to vector<288x256xbf16>
    %cst_17 = arith.constant dense<0.000000e+00> : vector<8x256xf32>
    %17 = tpu.matmul %14, %16, %cst_17 {dimension_numbers = #tpu.dot_dimension_numbers<[1], [0], [0], [1], [0, 0, 1, 1], [], []>} : vector<8x288xbf16>, vector<288x256xbf16>, vector<8x256xf32> -> vector<8x256xf32>
    %18 = arith.addf %10, %17 : vector<8x256xf32>
    %c2 = arith.constant 2 : index
    %c0_18 = arith.constant 0 : index
    %c0_19 = arith.constant 0 : index
    %19 = vector.load %arg2[%c2, %c0_18, %c0_19] : memref<3x8x18xbf16, #tpu.memory_space<vmem>>, vector<1x8x18xbf16>
    %20 = vector.shape_cast %19 : vector<1x8x18xbf16> to vector<8x18xbf16>
    %cst_20 = arith.constant dense<0.000000e+00> : vector<8x288xf32>
    %21 = tpu.matmul %20, %3, %cst_20 {dimension_numbers = #tpu.dot_dimension_numbers<[1], [0], [0], [1], [0, 0, 1, 1], [], []>} : vector<8x18xbf16>, vector<18x288xbf16>, vector<8x288xf32> -> vector<8x288xf32>
    %22 = arith.truncf %21 : vector<8x288xf32> to vector<8x288xbf16>
    %c2_21 = arith.constant 2 : index
    %c0_22 = arith.constant 0 : index
    %c0_23 = arith.constant 0 : index
    %23 = vector.load %arg3[%c2_21, %c0_22, %c0_23] : memref<3x288x256xbf16, #tpu.memory_space<vmem>>, vector<1x288x256xbf16>
    %24 = vector.shape_cast %23 : vector<1x288x256xbf16> to vector<288x256xbf16>
    %cst_24 = arith.constant dense<0.000000e+00> : vector<8x256xf32>
    %25 = tpu.matmul %22, %24, %cst_24 {dimension_numbers = #tpu.dot_dimension_numbers<[1], [0], [0], [1], [0, 0, 1, 1], [], []>} : vector<8x288xbf16>, vector<288x256xbf16>, vector<8x256xf32> -> vector<8x256xf32>
    %26 = arith.addf %18, %25 : vector<8x256xf32>
    %c0_25 = arith.constant 0 : index
    %c0_26 = arith.constant 0 : index
    %27 = vector.load %arg4[%c0_25, %c0_26] : memref<1x256xf32, #tpu.memory_space<vmem>>, vector<1x256xf32>
    %28 = vector.broadcast %27 : vector<1x256xf32> to vector<8x256xf32>
    %29 = arith.addf %26, %28 : vector<8x256xf32>
    %cst_27 = arith.constant dense<0.000000e+00> : vector<256xf32>
    %30 = vector.multi_reduction <add>, %29, %cst_27 [0] : vector<8x256xf32> to vector<256xf32>
    %31 = vector.shape_cast %30 : vector<256xf32> to vector<1x256xf32>
    %32 = arith.mulf %29, %29 : vector<8x256xf32>
    %cst_28 = arith.constant dense<0.000000e+00> : vector<256xf32>
    %33 = vector.multi_reduction <add>, %32, %cst_28 [0] : vector<8x256xf32> to vector<256xf32>
    %34 = vector.shape_cast %33 : vector<256xf32> to vector<1x256xf32>
    %cst_29 = arith.constant dense<0.000000e+00> : vector<1x256xf32>
    %35 = tpu.matmul %31, %0, %cst_29 {dimension_numbers = #tpu.dot_dimension_numbers<[1], [0], [0], [1], [0, 0, 1, 1], [], []>} : vector<1x256xf32>, vector<256x256xf32>, vector<1x256xf32> -> vector<1x256xf32>
    %cst_30 = arith.constant 1.562500e-02 : f32
    %36 = vector.broadcast %cst_30 : f32 to vector<1x256xf32>
    %37 = arith.mulf %35, %36 : vector<1x256xf32>
    %cst_31 = arith.constant dense<0.000000e+00> : vector<1x256xf32>
    %38 = tpu.matmul %34, %0, %cst_31 {dimension_numbers = #tpu.dot_dimension_numbers<[1], [0], [0], [1], [0, 0, 1, 1], [], []>} : vector<1x256xf32>, vector<256x256xf32>, vector<1x256xf32> -> vector<1x256xf32>
    %cst_32 = arith.constant 1.562500e-02 : f32
    %39 = vector.broadcast %cst_32 : f32 to vector<1x256xf32>
    %40 = arith.mulf %38, %39 : vector<1x256xf32>
    %41 = arith.mulf %37, %37 : vector<1x256xf32>
    %42 = arith.subf %40, %41 : vector<1x256xf32>
    %cst_33 = arith.constant 0.000000e+00 : f32
    %43 = vector.broadcast %cst_33 : f32 to vector<1x256xf32>
    %44 = arith.maximumf %42, %43 : vector<1x256xf32>
    %45 = vector.broadcast %37 : vector<1x256xf32> to vector<8x256xf32>
    %46 = arith.subf %29, %45 : vector<8x256xf32>
    %cst_34 = arith.constant 9.99999974E-6 : f32
    %47 = vector.broadcast %cst_34 : f32 to vector<1x256xf32>
    %48 = arith.addf %44, %47 : vector<1x256xf32>
    %49 = math.rsqrt %48 : vector<1x256xf32>
    %50 = vector.broadcast %49 : vector<1x256xf32> to vector<8x256xf32>
    %51 = arith.mulf %46, %50 : vector<8x256xf32>
    %cst_35 = arith.constant 0.000000e+00 : f32
    %52 = vector.broadcast %cst_35 : f32 to vector<8x256xf32>
    %53 = arith.cmpf oge, %51, %52 : vector<8x256xf32>
    %cst_36 = arith.constant 1.000000e-01 : f32
    %54 = vector.broadcast %cst_36 : f32 to vector<8x256xf32>
    %55 = arith.mulf %54, %51 : vector<8x256xf32>
    %56 = arith.select %53, %51, %55 : vector<8x256xi1>, vector<8x256xf32>
    %57 = arith.truncf %56 : vector<8x256xf32> to vector<8x256xbf16>
    %c1_37 = arith.constant 1 : index
    %c0_38 = arith.constant 0 : index
    %c0_39 = arith.constant 0 : index
    %58 = vector.load %arg7[%c1_37, %c0_38, %c0_39] : memref<3x256x256xbf16, #tpu.memory_space<vmem>>, vector<1x256x256xbf16>
    %59 = vector.shape_cast %58 : vector<1x256x256xbf16> to vector<256x256xbf16>
    %cst_40 = arith.constant dense<0.000000e+00> : vector<8x256xf32>
    %60 = tpu.matmul %57, %59, %cst_40 {dimension_numbers = #tpu.dot_dimension_numbers<[1], [0], [0], [1], [0, 0, 1, 1], [], []>} : vector<8x256xbf16>, vector<256x256xbf16>, vector<8x256xf32> -> vector<8x256xf32>
    %c0_41 = arith.constant 0 : index
    %c0_42 = arith.constant 0 : index
    %c0_43 = arith.constant 0 : index
    %61 = vector.load %arg6[%c0_41, %c0_42, %c0_43] : memref<2x8x8xbf16, #tpu.memory_space<vmem>>, vector<1x8x8xbf16>
    %62 = vector.shape_cast %61 : vector<1x8x8xbf16> to vector<8x8xbf16>
    %cst_44 = arith.constant dense<0.000000e+00> : vector<8x256xf32>
    %63 = tpu.matmul %62, %57, %cst_44 {dimension_numbers = #tpu.dot_dimension_numbers<[1], [0], [0], [1], [0, 0, 1, 1], [], []>} : vector<8x8xbf16>, vector<8x256xbf16>, vector<8x256xf32> -> vector<8x256xf32>
    %64 = arith.truncf %63 : vector<8x256xf32> to vector<8x256xbf16>
    %c0_45 = arith.constant 0 : index
    %c0_46 = arith.constant 0 : index
    %c0_47 = arith.constant 0 : index
    %65 = vector.load %arg7[%c0_45, %c0_46, %c0_47] : memref<3x256x256xbf16, #tpu.memory_space<vmem>>, vector<1x256x256xbf16>
    %66 = vector.shape_cast %65 : vector<1x256x256xbf16> to vector<256x256xbf16>
    %cst_48 = arith.constant dense<0.000000e+00> : vector<8x256xf32>
    %67 = tpu.matmul %64, %66, %cst_48 {dimension_numbers = #tpu.dot_dimension_numbers<[1], [0], [0], [1], [0, 0, 1, 1], [], []>} : vector<8x256xbf16>, vector<256x256xbf16>, vector<8x256xf32> -> vector<8x256xf32>
    %68 = arith.addf %60, %67 : vector<8x256xf32>
    %c1_49 = arith.constant 1 : index
    %c0_50 = arith.constant 0 : index
    %c0_51 = arith.constant 0 : index
    %69 = vector.load %arg6[%c1_49, %c0_50, %c0_51] : memref<2x8x8xbf16, #tpu.memory_space<vmem>>, vector<1x8x8xbf16>
    %70 = vector.shape_cast %69 : vector<1x8x8xbf16> to vector<8x8xbf16>
    %cst_52 = arith.constant dense<0.000000e+00> : vector<8x256xf32>
    %71 = tpu.matmul %70, %57, %cst_52 {dimension_numbers = #tpu.dot_dimension_numbers<[1], [0], [0], [1], [0, 0, 1, 1], [], []>} : vector<8x8xbf16>, vector<8x256xbf16>, vector<8x256xf32> -> vector<8x256xf32>
    %72 = arith.truncf %71 : vector<8x256xf32> to vector<8x256xbf16>
    %c2_53 = arith.constant 2 : index
    %c0_54 = arith.constant 0 : index
    %c0_55 = arith.constant 0 : index
    %73 = vector.load %arg7[%c2_53, %c0_54, %c0_55] : memref<3x256x256xbf16, #tpu.memory_space<vmem>>, vector<1x256x256xbf16>
    %74 = vector.shape_cast %73 : vector<1x256x256xbf16> to vector<256x256xbf16>
    %cst_56 = arith.constant dense<0.000000e+00> : vector<8x256xf32>
    %75 = tpu.matmul %72, %74, %cst_56 {dimension_numbers = #tpu.dot_dimension_numbers<[1], [0], [0], [1], [0, 0, 1, 1], [], []>} : vector<8x256xbf16>, vector<256x256xbf16>, vector<8x256xf32> -> vector<8x256xf32>
    %76 = arith.addf %68, %75 : vector<8x256xf32>
    %c0_57 = arith.constant 0 : index
    %c0_58 = arith.constant 0 : index
    %77 = vector.load %arg8[%c0_57, %c0_58] : memref<1x256xf32, #tpu.memory_space<vmem>>, vector<1x256xf32>
    %78 = vector.broadcast %77 : vector<1x256xf32> to vector<8x256xf32>
    %79 = arith.addf %76, %78 : vector<8x256xf32>
    %80 = arith.addf %79, %29 : vector<8x256xf32>
    %cst_59 = arith.constant dense<0.000000e+00> : vector<256xf32>
    %81 = vector.multi_reduction <add>, %80, %cst_59 [0] : vector<8x256xf32> to vector<256xf32>
    %82 = vector.shape_cast %81 : vector<256xf32> to vector<1x256xf32>
    %83 = arith.mulf %80, %80 : vector<8x256xf32>
    %cst_60 = arith.constant dense<0.000000e+00> : vector<256xf32>
    %84 = vector.multi_reduction <add>, %83, %cst_60 [0] : vector<8x256xf32> to vector<256xf32>
    %85 = vector.shape_cast %84 : vector<256xf32> to vector<1x256xf32>
    %cst_61 = arith.constant dense<0.000000e+00> : vector<1x256xf32>
    %86 = tpu.matmul %82, %0, %cst_61 {dimension_numbers = #tpu.dot_dimension_numbers<[1], [0], [0], [1], [0, 0, 1, 1], [], []>} : vector<1x256xf32>, vector<256x256xf32>, vector<1x256xf32> -> vector<1x256xf32>
    %cst_62 = arith.constant 1.562500e-02 : f32
    %87 = vector.broadcast %cst_62 : f32 to vector<1x256xf32>
    %88 = arith.mulf %86, %87 : vector<1x256xf32>
    %cst_63 = arith.constant dense<0.000000e+00> : vector<1x256xf32>
    %89 = tpu.matmul %85, %0, %cst_63 {dimension_numbers = #tpu.dot_dimension_numbers<[1], [0], [0], [1], [0, 0, 1, 1], [], []>} : vector<1x256xf32>, vector<256x256xf32>, vector<1x256xf32> -> vector<1x256xf32>
    %cst_64 = arith.constant 1.562500e-02 : f32
    %90 = vector.broadcast %cst_64 : f32 to vector<1x256xf32>
    %91 = arith.mulf %89, %90 : vector<1x256xf32>
    %92 = arith.mulf %88, %88 : vector<1x256xf32>
    %93 = arith.subf %91, %92 : vector<1x256xf32>
    %cst_65 = arith.constant 0.000000e+00 : f32
    %94 = vector.broadcast %cst_65 : f32 to vector<1x256xf32>
    %95 = arith.maximumf %93, %94 : vector<1x256xf32>
    %96 = vector.broadcast %88 : vector<1x256xf32> to vector<8x256xf32>
    %97 = arith.subf %80, %96 : vector<8x256xf32>
    %cst_66 = arith.constant 9.99999974E-6 : f32
    %98 = vector.broadcast %cst_66 : f32 to vector<1x256xf32>
    %99 = arith.addf %95, %98 : vector<1x256xf32>
    %100 = math.rsqrt %99 : vector<1x256xf32>
    %101 = vector.broadcast %100 : vector<1x256xf32> to vector<8x256xf32>
    %102 = arith.mulf %97, %101 : vector<8x256xf32>
    %cst_67 = arith.constant 0.000000e+00 : f32
    %103 = vector.broadcast %cst_67 : f32 to vector<8x256xf32>
    %104 = arith.cmpf oge, %102, %103 : vector<8x256xf32>
    %cst_68 = arith.constant 1.000000e-01 : f32
    %105 = vector.broadcast %cst_68 : f32 to vector<8x256xf32>
    %106 = arith.mulf %105, %102 : vector<8x256xf32>
    %107 = arith.select %104, %102, %106 : vector<8x256xi1>, vector<8x256xf32>
    %c0_69 = arith.constant 0 : index
    %c0_70 = arith.constant 0 : index
    %c0_71 = arith.constant 0 : index
    %108 = vector.load %arg9[%c0_69, %c0_70, %c0_71] : memref<1x8x256xf32, #tpu.memory_space<vmem>>, vector<1x8x256xf32>
    %109 = vector.shape_cast %108 : vector<1x8x256xf32> to vector<8x256xf32>
    %110 = vector.shape_cast %107 : vector<8x256xf32> to vector<1x8x256xf32>
    tpu.vector_store %arg9[%c0_69, %c0_70, %c0_71], %110 {strides = array<i32>} : memref<1x8x256xf32, #tpu.memory_space<vmem>>, vector<1x8x256xf32>,
    return
  }
  func.func @transform_0(%arg0: i32) -> (i32, i32, i32) {
    %c0_i32 = arith.constant 0 : i32
    %c0_i32_0 = arith.constant 0 : i32
    %c0_i32_1 = arith.constant 0 : i32
    return %arg0, %c0_i32, %c0_i32_0 : i32, i32, i32
  }
  func.func @transform_1(%arg0: i32) -> (i32, i32, i32) {
    %c0_i32 = arith.constant 0 : i32
    %c0_i32_0 = arith.constant 0 : i32
    %c0_i32_1 = arith.constant 0 : i32
    %c0_i32_2 = arith.constant 0 : i32
    return %c0_i32, %c0_i32_0, %c0_i32_1 : i32, i32, i32
  }
  func.func @transform_2(%arg0: i32) -> (i32, i32, i32) {
    %c0_i32 = arith.constant 0 : i32
    %c0_i32_0 = arith.constant 0 : i32
    %c0_i32_1 = arith.constant 0 : i32
    %c0_i32_2 = arith.constant 0 : i32
    return %c0_i32, %c0_i32_0, %c0_i32_1 : i32, i32, i32
  }
  func.func @transform_3(%arg0: i32) -> (i32, i32) {
    %c0_i32 = arith.constant 0 : i32
    %c0_i32_0 = arith.constant 0 : i32
    %c0_i32_1 = arith.constant 0 : i32
    return %c0_i32, %c0_i32_0 : i32, i32
  }
  func.func @transform_4(%arg0: i32) -> (i32, i32) {
    %c0_i32 = arith.constant 0 : i32
    %c0_i32_0 = arith.constant 0 : i32
    %c0_i32_1 = arith.constant 0 : i32
    return %c0_i32, %c0_i32_0 : i32, i32
  }
  func.func @transform_5(%arg0: i32) -> (i32, i32, i32) {
    %c0_i32 = arith.constant 0 : i32
    %c0_i32_0 = arith.constant 0 : i32
    %c0_i32_1 = arith.constant 0 : i32
    %c0_i32_2 = arith.constant 0 : i32
    return %c0_i32, %c0_i32_0, %c0_i32_1 : i32, i32, i32
  }
  func.func @transform_6(%arg0: i32) -> (i32, i32, i32) {
    %c0_i32 = arith.constant 0 : i32
    %c0_i32_0 = arith.constant 0 : i32
    %c0_i32_1 = arith.constant 0 : i32
    %c0_i32_2 = arith.constant 0 : i32
    return %c0_i32, %c0_i32_0, %c0_i32_1 : i32, i32, i32
  }
  func.func @transform_7(%arg0: i32) -> (i32, i32) {
    %c0_i32 = arith.constant 0 : i32
    %c0_i32_0 = arith.constant 0 : i32
    %c0_i32_1 = arith.constant 0 : i32
    return %c0_i32, %c0_i32_0 : i32, i32
  }
  func.func @transform_8(%arg0: i32) -> (i32, i32, i32) {
    %c0_i32 = arith.constant 0 : i32
    %c0_i32_0 = arith.constant 0 : i32
    %c0_i32_1 = arith.constant 0 : i32
    return %arg0, %c0_i32, %c0_i32_0 : i32, i32, i32
  }
}

module attributes {stable_mosaic.version = 11 : i64} {
  func.func @kernel(%arg0: i32, %arg1: memref<1x10x320xf32, #tpu.memory_space<vmem>>, %arg2: memref<3x4x10xbf16, #tpu.memory_space<vmem>>, %arg3: memref<3x320x256xbf16, #tpu.memory_space<vmem>>, %arg4: memref<1x256xf32, #tpu.memory_space<vmem>>, %arg5: memref<256x256xf32, #tpu.memory_space<vmem>>, %arg6: memref<2x4x4xbf16, #tpu.memory_space<vmem>>, %arg7: memref<3x256x256xbf16, #tpu.memory_space<vmem>>, %arg8: memref<1x256xf32, #tpu.memory_space<vmem>>, %arg9: memref<1x4x256xf32, #tpu.memory_space<vmem>>) attributes {dimension_semantics = [#tpu.dimension_semantics<parallel>], iteration_bounds = array<i64: 2>, scalar_prefetch = 0 : i64, scratch_operands = 0 : i64, tpu.core_type = #tpu.core_type<tc>, window_params = [{transform_indices = @transform_0, window_bounds = array<i64: 1, 10, 320>}, {pipeline_mode = #tpu.pipeline_mode<synchronous>, transform_indices = @transform_1, window_bounds = array<i64: 3, 4, 10>}, {pipeline_mode = #tpu.pipeline_mode<synchronous>, transform_indices = @transform_2, window_bounds = array<i64: 3, 320, 256>}, {pipeline_mode = #tpu.pipeline_mode<synchronous>, transform_indices = @transform_3, window_bounds = array<i64: 1, 256>}, {pipeline_mode = #tpu.pipeline_mode<synchronous>, transform_indices = @transform_4, window_bounds = array<i64: 256, 256>}, {pipeline_mode = #tpu.pipeline_mode<synchronous>, transform_indices = @transform_5, window_bounds = array<i64: 2, 4, 4>}, {pipeline_mode = #tpu.pipeline_mode<synchronous>, transform_indices = @transform_6, window_bounds = array<i64: 3, 256, 256>}, {pipeline_mode = #tpu.pipeline_mode<synchronous>, transform_indices = @transform_7, window_bounds = array<i64: 1, 256>}, {transform_indices = @transform_8, window_bounds = array<i64: 1, 4, 256>}]} {
    %c0 = arith.constant 0 : index
    %c0_0 = arith.constant 0 : index
    %0 = vector.load %arg5[%c0, %c0_0] : memref<256x256xf32, #tpu.memory_space<vmem>>, vector<256x256xf32>
    %c0_1 = arith.constant 0 : index
    %c0_2 = arith.constant 0 : index
    %c0_3 = arith.constant 0 : index
    %1 = vector.load %arg1[%c0_1, %c0_2, %c0_3] : memref<1x10x320xf32, #tpu.memory_space<vmem>>, vector<1x10x320xf32>
    %2 = vector.shape_cast %1 : vector<1x10x320xf32> to vector<10x320xf32>
    %3 = arith.truncf %2 : vector<10x320xf32> to vector<10x320xbf16>
    %c0_4 = arith.constant 0 : index
    %c0_5 = arith.constant 0 : index
    %c0_6 = arith.constant 0 : index
    %4 = vector.load %arg2[%c0_4, %c0_5, %c0_6] : memref<3x4x10xbf16, #tpu.memory_space<vmem>>, vector<1x4x10xbf16>
    %5 = vector.shape_cast %4 : vector<1x4x10xbf16> to vector<4x10xbf16>
    %cst = arith.constant dense<0.000000e+00> : vector<4x320xf32>
    %6 = tpu.matmul %5, %3, %cst {dimension_numbers = #tpu.dot_dimension_numbers<[1], [0], [0], [1], [0, 0, 1, 1], [], []>} : vector<4x10xbf16>, vector<10x320xbf16>, vector<4x320xf32> -> vector<4x320xf32>
    %7 = arith.truncf %6 : vector<4x320xf32> to vector<4x320xbf16>
    %c0_7 = arith.constant 0 : index
    %c0_8 = arith.constant 0 : index
    %c0_9 = arith.constant 0 : index
    %8 = vector.load %arg3[%c0_7, %c0_8, %c0_9] : memref<3x320x256xbf16, #tpu.memory_space<vmem>>, vector<1x320x256xbf16>
    %9 = vector.shape_cast %8 : vector<1x320x256xbf16> to vector<320x256xbf16>
    %cst_10 = arith.constant dense<0.000000e+00> : vector<4x256xf32>
    %10 = tpu.matmul %7, %9, %cst_10 {dimension_numbers = #tpu.dot_dimension_numbers<[1], [0], [0], [1], [0, 0, 1, 1], [], []>} : vector<4x320xbf16>, vector<320x256xbf16>, vector<4x256xf32> -> vector<4x256xf32>
    %c1 = arith.constant 1 : index
    %c0_11 = arith.constant 0 : index
    %c0_12 = arith.constant 0 : index
    %11 = vector.load %arg2[%c1, %c0_11, %c0_12] : memref<3x4x10xbf16, #tpu.memory_space<vmem>>, vector<1x4x10xbf16>
    %12 = vector.shape_cast %11 : vector<1x4x10xbf16> to vector<4x10xbf16>
    %cst_13 = arith.constant dense<0.000000e+00> : vector<4x320xf32>
    %13 = tpu.matmul %12, %3, %cst_13 {dimension_numbers = #tpu.dot_dimension_numbers<[1], [0], [0], [1], [0, 0, 1, 1], [], []>} : vector<4x10xbf16>, vector<10x320xbf16>, vector<4x320xf32> -> vector<4x320xf32>
    %14 = arith.truncf %13 : vector<4x320xf32> to vector<4x320xbf16>
    %c1_14 = arith.constant 1 : index
    %c0_15 = arith.constant 0 : index
    %c0_16 = arith.constant 0 : index
    %15 = vector.load %arg3[%c1_14, %c0_15, %c0_16] : memref<3x320x256xbf16, #tpu.memory_space<vmem>>, vector<1x320x256xbf16>
    %16 = vector.shape_cast %15 : vector<1x320x256xbf16> to vector<320x256xbf16>
    %cst_17 = arith.constant dense<0.000000e+00> : vector<4x256xf32>
    %17 = tpu.matmul %14, %16, %cst_17 {dimension_numbers = #tpu.dot_dimension_numbers<[1], [0], [0], [1], [0, 0, 1, 1], [], []>} : vector<4x320xbf16>, vector<320x256xbf16>, vector<4x256xf32> -> vector<4x256xf32>
    %18 = arith.addf %10, %17 : vector<4x256xf32>
    %c2 = arith.constant 2 : index
    %c0_18 = arith.constant 0 : index
    %c0_19 = arith.constant 0 : index
    %19 = vector.load %arg2[%c2, %c0_18, %c0_19] : memref<3x4x10xbf16, #tpu.memory_space<vmem>>, vector<1x4x10xbf16>
    %20 = vector.shape_cast %19 : vector<1x4x10xbf16> to vector<4x10xbf16>
    %cst_20 = arith.constant dense<0.000000e+00> : vector<4x320xf32>
    %21 = tpu.matmul %20, %3, %cst_20 {dimension_numbers = #tpu.dot_dimension_numbers<[1], [0], [0], [1], [0, 0, 1, 1], [], []>} : vector<4x10xbf16>, vector<10x320xbf16>, vector<4x320xf32> -> vector<4x320xf32>
    %22 = arith.truncf %21 : vector<4x320xf32> to vector<4x320xbf16>
    %c2_21 = arith.constant 2 : index
    %c0_22 = arith.constant 0 : index
    %c0_23 = arith.constant 0 : index
    %23 = vector.load %arg3[%c2_21, %c0_22, %c0_23] : memref<3x320x256xbf16, #tpu.memory_space<vmem>>, vector<1x320x256xbf16>
    %24 = vector.shape_cast %23 : vector<1x320x256xbf16> to vector<320x256xbf16>
    %cst_24 = arith.constant dense<0.000000e+00> : vector<4x256xf32>
    %25 = tpu.matmul %22, %24, %cst_24 {dimension_numbers = #tpu.dot_dimension_numbers<[1], [0], [0], [1], [0, 0, 1, 1], [], []>} : vector<4x320xbf16>, vector<320x256xbf16>, vector<4x256xf32> -> vector<4x256xf32>
    %26 = arith.addf %18, %25 : vector<4x256xf32>
    %c0_25 = arith.constant 0 : index
    %c0_26 = arith.constant 0 : index
    %27 = vector.load %arg4[%c0_25, %c0_26] : memref<1x256xf32, #tpu.memory_space<vmem>>, vector<1x256xf32>
    %28 = vector.broadcast %27 : vector<1x256xf32> to vector<4x256xf32>
    %29 = arith.addf %26, %28 : vector<4x256xf32>
    %cst_27 = arith.constant dense<0.000000e+00> : vector<256xf32>
    %30 = vector.multi_reduction <add>, %29, %cst_27 [0] : vector<4x256xf32> to vector<256xf32>
    %31 = vector.shape_cast %30 : vector<256xf32> to vector<1x256xf32>
    %32 = arith.mulf %29, %29 : vector<4x256xf32>
    %cst_28 = arith.constant dense<0.000000e+00> : vector<256xf32>
    %33 = vector.multi_reduction <add>, %32, %cst_28 [0] : vector<4x256xf32> to vector<256xf32>
    %34 = vector.shape_cast %33 : vector<256xf32> to vector<1x256xf32>
    %cst_29 = arith.constant dense<0.000000e+00> : vector<1x256xf32>
    %35 = tpu.matmul %31, %0, %cst_29 {dimension_numbers = #tpu.dot_dimension_numbers<[1], [0], [0], [1], [0, 0, 1, 1], [], []>} : vector<1x256xf32>, vector<256x256xf32>, vector<1x256xf32> -> vector<1x256xf32>
    %cst_30 = arith.constant 6.250000e-02 : f32
    %36 = vector.broadcast %cst_30 : f32 to vector<1x256xf32>
    %37 = arith.mulf %35, %36 : vector<1x256xf32>
    %cst_31 = arith.constant dense<0.000000e+00> : vector<1x256xf32>
    %38 = tpu.matmul %34, %0, %cst_31 {dimension_numbers = #tpu.dot_dimension_numbers<[1], [0], [0], [1], [0, 0, 1, 1], [], []>} : vector<1x256xf32>, vector<256x256xf32>, vector<1x256xf32> -> vector<1x256xf32>
    %cst_32 = arith.constant 6.250000e-02 : f32
    %39 = vector.broadcast %cst_32 : f32 to vector<1x256xf32>
    %40 = arith.mulf %38, %39 : vector<1x256xf32>
    %41 = arith.mulf %37, %37 : vector<1x256xf32>
    %42 = arith.subf %40, %41 : vector<1x256xf32>
    %cst_33 = arith.constant 0.000000e+00 : f32
    %43 = vector.broadcast %cst_33 : f32 to vector<1x256xf32>
    %44 = arith.maximumf %42, %43 : vector<1x256xf32>
    %45 = vector.broadcast %37 : vector<1x256xf32> to vector<4x256xf32>
    %46 = arith.subf %29, %45 : vector<4x256xf32>
    %cst_34 = arith.constant 9.99999974E-6 : f32
    %47 = vector.broadcast %cst_34 : f32 to vector<1x256xf32>
    %48 = arith.addf %44, %47 : vector<1x256xf32>
    %49 = math.rsqrt %48 : vector<1x256xf32>
    %50 = vector.broadcast %49 : vector<1x256xf32> to vector<4x256xf32>
    %51 = arith.mulf %46, %50 : vector<4x256xf32>
    %cst_35 = arith.constant 0.000000e+00 : f32
    %52 = vector.broadcast %cst_35 : f32 to vector<4x256xf32>
    %53 = arith.cmpf oge, %51, %52 : vector<4x256xf32>
    %cst_36 = arith.constant 1.000000e-01 : f32
    %54 = vector.broadcast %cst_36 : f32 to vector<4x256xf32>
    %55 = arith.mulf %54, %51 : vector<4x256xf32>
    %56 = arith.select %53, %51, %55 : vector<4x256xi1>, vector<4x256xf32>
    %57 = arith.truncf %56 : vector<4x256xf32> to vector<4x256xbf16>
    %c1_37 = arith.constant 1 : index
    %c0_38 = arith.constant 0 : index
    %c0_39 = arith.constant 0 : index
    %58 = vector.load %arg7[%c1_37, %c0_38, %c0_39] : memref<3x256x256xbf16, #tpu.memory_space<vmem>>, vector<1x256x256xbf16>
    %59 = vector.shape_cast %58 : vector<1x256x256xbf16> to vector<256x256xbf16>
    %cst_40 = arith.constant dense<0.000000e+00> : vector<4x256xf32>
    %60 = tpu.matmul %57, %59, %cst_40 {dimension_numbers = #tpu.dot_dimension_numbers<[1], [0], [0], [1], [0, 0, 1, 1], [], []>} : vector<4x256xbf16>, vector<256x256xbf16>, vector<4x256xf32> -> vector<4x256xf32>
    %c0_41 = arith.constant 0 : index
    %c0_42 = arith.constant 0 : index
    %c0_43 = arith.constant 0 : index
    %61 = vector.load %arg6[%c0_41, %c0_42, %c0_43] : memref<2x4x4xbf16, #tpu.memory_space<vmem>>, vector<1x4x4xbf16>
    %62 = vector.shape_cast %61 : vector<1x4x4xbf16> to vector<4x4xbf16>
    %cst_44 = arith.constant dense<0.000000e+00> : vector<4x256xf32>
    %63 = tpu.matmul %62, %57, %cst_44 {dimension_numbers = #tpu.dot_dimension_numbers<[1], [0], [0], [1], [0, 0, 1, 1], [], []>} : vector<4x4xbf16>, vector<4x256xbf16>, vector<4x256xf32> -> vector<4x256xf32>
    %64 = arith.truncf %63 : vector<4x256xf32> to vector<4x256xbf16>
    %c0_45 = arith.constant 0 : index
    %c0_46 = arith.constant 0 : index
    %c0_47 = arith.constant 0 : index
    %65 = vector.load %arg7[%c0_45, %c0_46, %c0_47] : memref<3x256x256xbf16, #tpu.memory_space<vmem>>, vector<1x256x256xbf16>
    %66 = vector.shape_cast %65 : vector<1x256x256xbf16> to vector<256x256xbf16>
    %cst_48 = arith.constant dense<0.000000e+00> : vector<4x256xf32>
    %67 = tpu.matmul %64, %66, %cst_48 {dimension_numbers = #tpu.dot_dimension_numbers<[1], [0], [0], [1], [0, 0, 1, 1], [], []>} : vector<4x256xbf16>, vector<256x256xbf16>, vector<4x256xf32> -> vector<4x256xf32>
    %68 = arith.addf %60, %67 : vector<4x256xf32>
    %c1_49 = arith.constant 1 : index
    %c0_50 = arith.constant 0 : index
    %c0_51 = arith.constant 0 : index
    %69 = vector.load %arg6[%c1_49, %c0_50, %c0_51] : memref<2x4x4xbf16, #tpu.memory_space<vmem>>, vector<1x4x4xbf16>
    %70 = vector.shape_cast %69 : vector<1x4x4xbf16> to vector<4x4xbf16>
    %cst_52 = arith.constant dense<0.000000e+00> : vector<4x256xf32>
    %71 = tpu.matmul %70, %57, %cst_52 {dimension_numbers = #tpu.dot_dimension_numbers<[1], [0], [0], [1], [0, 0, 1, 1], [], []>} : vector<4x4xbf16>, vector<4x256xbf16>, vector<4x256xf32> -> vector<4x256xf32>
    %72 = arith.truncf %71 : vector<4x256xf32> to vector<4x256xbf16>
    %c2_53 = arith.constant 2 : index
    %c0_54 = arith.constant 0 : index
    %c0_55 = arith.constant 0 : index
    %73 = vector.load %arg7[%c2_53, %c0_54, %c0_55] : memref<3x256x256xbf16, #tpu.memory_space<vmem>>, vector<1x256x256xbf16>
    %74 = vector.shape_cast %73 : vector<1x256x256xbf16> to vector<256x256xbf16>
    %cst_56 = arith.constant dense<0.000000e+00> : vector<4x256xf32>
    %75 = tpu.matmul %72, %74, %cst_56 {dimension_numbers = #tpu.dot_dimension_numbers<[1], [0], [0], [1], [0, 0, 1, 1], [], []>} : vector<4x256xbf16>, vector<256x256xbf16>, vector<4x256xf32> -> vector<4x256xf32>
    %76 = arith.addf %68, %75 : vector<4x256xf32>
    %c0_57 = arith.constant 0 : index
    %c0_58 = arith.constant 0 : index
    %77 = vector.load %arg8[%c0_57, %c0_58] : memref<1x256xf32, #tpu.memory_space<vmem>>, vector<1x256xf32>
    %78 = vector.broadcast %77 : vector<1x256xf32> to vector<4x256xf32>
    %79 = arith.addf %76, %78 : vector<4x256xf32>
    %80 = arith.addf %79, %29 : vector<4x256xf32>
    %cst_59 = arith.constant dense<0.000000e+00> : vector<256xf32>
    %81 = vector.multi_reduction <add>, %80, %cst_59 [0] : vector<4x256xf32> to vector<256xf32>
    %82 = vector.shape_cast %81 : vector<256xf32> to vector<1x256xf32>
    %83 = arith.mulf %80, %80 : vector<4x256xf32>
    %cst_60 = arith.constant dense<0.000000e+00> : vector<256xf32>
    %84 = vector.multi_reduction <add>, %83, %cst_60 [0] : vector<4x256xf32> to vector<256xf32>
    %85 = vector.shape_cast %84 : vector<256xf32> to vector<1x256xf32>
    %cst_61 = arith.constant dense<0.000000e+00> : vector<1x256xf32>
    %86 = tpu.matmul %82, %0, %cst_61 {dimension_numbers = #tpu.dot_dimension_numbers<[1], [0], [0], [1], [0, 0, 1, 1], [], []>} : vector<1x256xf32>, vector<256x256xf32>, vector<1x256xf32> -> vector<1x256xf32>
    %cst_62 = arith.constant 6.250000e-02 : f32
    %87 = vector.broadcast %cst_62 : f32 to vector<1x256xf32>
    %88 = arith.mulf %86, %87 : vector<1x256xf32>
    %cst_63 = arith.constant dense<0.000000e+00> : vector<1x256xf32>
    %89 = tpu.matmul %85, %0, %cst_63 {dimension_numbers = #tpu.dot_dimension_numbers<[1], [0], [0], [1], [0, 0, 1, 1], [], []>} : vector<1x256xf32>, vector<256x256xf32>, vector<1x256xf32> -> vector<1x256xf32>
    %cst_64 = arith.constant 6.250000e-02 : f32
    %90 = vector.broadcast %cst_64 : f32 to vector<1x256xf32>
    %91 = arith.mulf %89, %90 : vector<1x256xf32>
    %92 = arith.mulf %88, %88 : vector<1x256xf32>
    %93 = arith.subf %91, %92 : vector<1x256xf32>
    %cst_65 = arith.constant 0.000000e+00 : f32
    %94 = vector.broadcast %cst_65 : f32 to vector<1x256xf32>
    %95 = arith.maximumf %93, %94 : vector<1x256xf32>
    %96 = vector.broadcast %88 : vector<1x256xf32> to vector<4x256xf32>
    %97 = arith.subf %80, %96 : vector<4x256xf32>
    %cst_66 = arith.constant 9.99999974E-6 : f32
    %98 = vector.broadcast %cst_66 : f32 to vector<1x256xf32>
    %99 = arith.addf %95, %98 : vector<1x256xf32>
    %100 = math.rsqrt %99 : vector<1x256xf32>
    %101 = vector.broadcast %100 : vector<1x256xf32> to vector<4x256xf32>
    %102 = arith.mulf %97, %101 : vector<4x256xf32>
    %cst_67 = arith.constant 0.000000e+00 : f32
    %103 = vector.broadcast %cst_67 : f32 to vector<4x256xf32>
    %104 = arith.cmpf oge, %102, %103 : vector<4x256xf32>
    %cst_68 = arith.constant 1.000000e-01 : f32
    %105 = vector.broadcast %cst_68 : f32 to vector<4x256xf32>
    %106 = arith.mulf %105, %102 : vector<4x256xf32>
    %107 = arith.select %104, %102, %106 : vector<4x256xi1>, vector<4x256xf32>
    %c0_69 = arith.constant 0 : index
    %c0_70 = arith.constant 0 : index
    %c0_71 = arith.constant 0 : index
    %108 = vector.load %arg9[%c0_69, %c0_70, %c0_71] : memref<1x4x256xf32, #tpu.memory_space<vmem>>, vector<1x4x256xf32>
    %109 = vector.shape_cast %108 : vector<1x4x256xf32> to vector<4x256xf32>
    %110 = vector.shape_cast %107 : vector<4x256xf32> to vector<1x4x256xf32>
    tpu.vector_store %arg9[%c0_69, %c0_70, %c0_71], %110 {strides = array<i32>} : memref<1x4x256xf32, #tpu.memory_space<vmem>>, vector<1x4x256xf32>,
    return
  }
  func.func @transform_0(%arg0: i32) -> (i32, i32, i32) {
    %c0_i32 = arith.constant 0 : i32
    %c0_i32_0 = arith.constant 0 : i32
    %c0_i32_1 = arith.constant 0 : i32
    return %arg0, %c0_i32, %c0_i32_0 : i32, i32, i32
  }
  func.func @transform_1(%arg0: i32) -> (i32, i32, i32) {
    %c0_i32 = arith.constant 0 : i32
    %c0_i32_0 = arith.constant 0 : i32
    %c0_i32_1 = arith.constant 0 : i32
    %c0_i32_2 = arith.constant 0 : i32
    return %c0_i32, %c0_i32_0, %c0_i32_1 : i32, i32, i32
  }
  func.func @transform_2(%arg0: i32) -> (i32, i32, i32) {
    %c0_i32 = arith.constant 0 : i32
    %c0_i32_0 = arith.constant 0 : i32
    %c0_i32_1 = arith.constant 0 : i32
    %c0_i32_2 = arith.constant 0 : i32
    return %c0_i32, %c0_i32_0, %c0_i32_1 : i32, i32, i32
  }
  func.func @transform_3(%arg0: i32) -> (i32, i32) {
    %c0_i32 = arith.constant 0 : i32
    %c0_i32_0 = arith.constant 0 : i32
    %c0_i32_1 = arith.constant 0 : i32
    return %c0_i32, %c0_i32_0 : i32, i32
  }
  func.func @transform_4(%arg0: i32) -> (i32, i32) {
    %c0_i32 = arith.constant 0 : i32
    %c0_i32_0 = arith.constant 0 : i32
    %c0_i32_1 = arith.constant 0 : i32
    return %c0_i32, %c0_i32_0 : i32, i32
  }
  func.func @transform_5(%arg0: i32) -> (i32, i32, i32) {
    %c0_i32 = arith.constant 0 : i32
    %c0_i32_0 = arith.constant 0 : i32
    %c0_i32_1 = arith.constant 0 : i32
    %c0_i32_2 = arith.constant 0 : i32
    return %c0_i32, %c0_i32_0, %c0_i32_1 : i32, i32, i32
  }
  func.func @transform_6(%arg0: i32) -> (i32, i32, i32) {
    %c0_i32 = arith.constant 0 : i32
    %c0_i32_0 = arith.constant 0 : i32
    %c0_i32_1 = arith.constant 0 : i32
    %c0_i32_2 = arith.constant 0 : i32
    return %c0_i32, %c0_i32_0, %c0_i32_1 : i32, i32, i32
  }
  func.func @transform_7(%arg0: i32) -> (i32, i32) {
    %c0_i32 = arith.constant 0 : i32
    %c0_i32_0 = arith.constant 0 : i32
    %c0_i32_1 = arith.constant 0 : i32
    return %c0_i32, %c0_i32_0 : i32, i32
  }
  func.func @transform_8(%arg0: i32) -> (i32, i32, i32) {
    %c0_i32 = arith.constant 0 : i32
    %c0_i32_0 = arith.constant 0 : i32
    %c0_i32_1 = arith.constant 0 : i32
    return %arg0, %c0_i32, %c0_i32_0 : i32, i32, i32
  }
}

module attributes {stable_mosaic.version = 11 : i64} {
  func.func @kernel(%arg0: i32, %arg1: memref<1x6x384xf32, #tpu.memory_space<vmem>>, %arg2: memref<3x2x6xbf16, #tpu.memory_space<vmem>>, %arg3: memref<3x384x256xbf16, #tpu.memory_space<vmem>>, %arg4: memref<1x256xf32, #tpu.memory_space<vmem>>, %arg5: memref<256x256xf32, #tpu.memory_space<vmem>>, %arg6: memref<2x2x2xbf16, #tpu.memory_space<vmem>>, %arg7: memref<3x256x256xbf16, #tpu.memory_space<vmem>>, %arg8: memref<1x256xf32, #tpu.memory_space<vmem>>, %arg9: memref<1x2x256xf32, #tpu.memory_space<vmem>>) attributes {dimension_semantics = [#tpu.dimension_semantics<parallel>], iteration_bounds = array<i64: 2>, scalar_prefetch = 0 : i64, scratch_operands = 0 : i64, tpu.core_type = #tpu.core_type<tc>, window_params = [{transform_indices = @transform_0, window_bounds = array<i64: 1, 6, 384>}, {pipeline_mode = #tpu.pipeline_mode<synchronous>, transform_indices = @transform_1, window_bounds = array<i64: 3, 2, 6>}, {pipeline_mode = #tpu.pipeline_mode<synchronous>, transform_indices = @transform_2, window_bounds = array<i64: 3, 384, 256>}, {pipeline_mode = #tpu.pipeline_mode<synchronous>, transform_indices = @transform_3, window_bounds = array<i64: 1, 256>}, {pipeline_mode = #tpu.pipeline_mode<synchronous>, transform_indices = @transform_4, window_bounds = array<i64: 256, 256>}, {pipeline_mode = #tpu.pipeline_mode<synchronous>, transform_indices = @transform_5, window_bounds = array<i64: 2, 2, 2>}, {pipeline_mode = #tpu.pipeline_mode<synchronous>, transform_indices = @transform_6, window_bounds = array<i64: 3, 256, 256>}, {pipeline_mode = #tpu.pipeline_mode<synchronous>, transform_indices = @transform_7, window_bounds = array<i64: 1, 256>}, {transform_indices = @transform_8, window_bounds = array<i64: 1, 2, 256>}]} {
    %c0 = arith.constant 0 : index
    %c0_0 = arith.constant 0 : index
    %0 = vector.load %arg5[%c0, %c0_0] : memref<256x256xf32, #tpu.memory_space<vmem>>, vector<256x256xf32>
    %c0_1 = arith.constant 0 : index
    %c0_2 = arith.constant 0 : index
    %c0_3 = arith.constant 0 : index
    %1 = vector.load %arg1[%c0_1, %c0_2, %c0_3] : memref<1x6x384xf32, #tpu.memory_space<vmem>>, vector<1x6x384xf32>
    %2 = vector.shape_cast %1 : vector<1x6x384xf32> to vector<6x384xf32>
    %3 = arith.truncf %2 : vector<6x384xf32> to vector<6x384xbf16>
    %c0_4 = arith.constant 0 : index
    %c0_5 = arith.constant 0 : index
    %c0_6 = arith.constant 0 : index
    %4 = vector.load %arg2[%c0_4, %c0_5, %c0_6] : memref<3x2x6xbf16, #tpu.memory_space<vmem>>, vector<1x2x6xbf16>
    %5 = vector.shape_cast %4 : vector<1x2x6xbf16> to vector<2x6xbf16>
    %cst = arith.constant dense<0.000000e+00> : vector<2x384xf32>
    %6 = tpu.matmul %5, %3, %cst {dimension_numbers = #tpu.dot_dimension_numbers<[1], [0], [0], [1], [0, 0, 1, 1], [], []>} : vector<2x6xbf16>, vector<6x384xbf16>, vector<2x384xf32> -> vector<2x384xf32>
    %7 = arith.truncf %6 : vector<2x384xf32> to vector<2x384xbf16>
    %c0_7 = arith.constant 0 : index
    %c0_8 = arith.constant 0 : index
    %c0_9 = arith.constant 0 : index
    %8 = vector.load %arg3[%c0_7, %c0_8, %c0_9] : memref<3x384x256xbf16, #tpu.memory_space<vmem>>, vector<1x384x256xbf16>
    %9 = vector.shape_cast %8 : vector<1x384x256xbf16> to vector<384x256xbf16>
    %cst_10 = arith.constant dense<0.000000e+00> : vector<2x256xf32>
    %10 = tpu.matmul %7, %9, %cst_10 {dimension_numbers = #tpu.dot_dimension_numbers<[1], [0], [0], [1], [0, 0, 1, 1], [], []>} : vector<2x384xbf16>, vector<384x256xbf16>, vector<2x256xf32> -> vector<2x256xf32>
    %c1 = arith.constant 1 : index
    %c0_11 = arith.constant 0 : index
    %c0_12 = arith.constant 0 : index
    %11 = vector.load %arg2[%c1, %c0_11, %c0_12] : memref<3x2x6xbf16, #tpu.memory_space<vmem>>, vector<1x2x6xbf16>
    %12 = vector.shape_cast %11 : vector<1x2x6xbf16> to vector<2x6xbf16>
    %cst_13 = arith.constant dense<0.000000e+00> : vector<2x384xf32>
    %13 = tpu.matmul %12, %3, %cst_13 {dimension_numbers = #tpu.dot_dimension_numbers<[1], [0], [0], [1], [0, 0, 1, 1], [], []>} : vector<2x6xbf16>, vector<6x384xbf16>, vector<2x384xf32> -> vector<2x384xf32>
    %14 = arith.truncf %13 : vector<2x384xf32> to vector<2x384xbf16>
    %c1_14 = arith.constant 1 : index
    %c0_15 = arith.constant 0 : index
    %c0_16 = arith.constant 0 : index
    %15 = vector.load %arg3[%c1_14, %c0_15, %c0_16] : memref<3x384x256xbf16, #tpu.memory_space<vmem>>, vector<1x384x256xbf16>
    %16 = vector.shape_cast %15 : vector<1x384x256xbf16> to vector<384x256xbf16>
    %cst_17 = arith.constant dense<0.000000e+00> : vector<2x256xf32>
    %17 = tpu.matmul %14, %16, %cst_17 {dimension_numbers = #tpu.dot_dimension_numbers<[1], [0], [0], [1], [0, 0, 1, 1], [], []>} : vector<2x384xbf16>, vector<384x256xbf16>, vector<2x256xf32> -> vector<2x256xf32>
    %18 = arith.addf %10, %17 : vector<2x256xf32>
    %c2 = arith.constant 2 : index
    %c0_18 = arith.constant 0 : index
    %c0_19 = arith.constant 0 : index
    %19 = vector.load %arg2[%c2, %c0_18, %c0_19] : memref<3x2x6xbf16, #tpu.memory_space<vmem>>, vector<1x2x6xbf16>
    %20 = vector.shape_cast %19 : vector<1x2x6xbf16> to vector<2x6xbf16>
    %cst_20 = arith.constant dense<0.000000e+00> : vector<2x384xf32>
    %21 = tpu.matmul %20, %3, %cst_20 {dimension_numbers = #tpu.dot_dimension_numbers<[1], [0], [0], [1], [0, 0, 1, 1], [], []>} : vector<2x6xbf16>, vector<6x384xbf16>, vector<2x384xf32> -> vector<2x384xf32>
    %22 = arith.truncf %21 : vector<2x384xf32> to vector<2x384xbf16>
    %c2_21 = arith.constant 2 : index
    %c0_22 = arith.constant 0 : index
    %c0_23 = arith.constant 0 : index
    %23 = vector.load %arg3[%c2_21, %c0_22, %c0_23] : memref<3x384x256xbf16, #tpu.memory_space<vmem>>, vector<1x384x256xbf16>
    %24 = vector.shape_cast %23 : vector<1x384x256xbf16> to vector<384x256xbf16>
    %cst_24 = arith.constant dense<0.000000e+00> : vector<2x256xf32>
    %25 = tpu.matmul %22, %24, %cst_24 {dimension_numbers = #tpu.dot_dimension_numbers<[1], [0], [0], [1], [0, 0, 1, 1], [], []>} : vector<2x384xbf16>, vector<384x256xbf16>, vector<2x256xf32> -> vector<2x256xf32>
    %26 = arith.addf %18, %25 : vector<2x256xf32>
    %c0_25 = arith.constant 0 : index
    %c0_26 = arith.constant 0 : index
    %27 = vector.load %arg4[%c0_25, %c0_26] : memref<1x256xf32, #tpu.memory_space<vmem>>, vector<1x256xf32>
    %28 = vector.broadcast %27 : vector<1x256xf32> to vector<2x256xf32>
    %29 = arith.addf %26, %28 : vector<2x256xf32>
    %cst_27 = arith.constant dense<0.000000e+00> : vector<256xf32>
    %30 = vector.multi_reduction <add>, %29, %cst_27 [0] : vector<2x256xf32> to vector<256xf32>
    %31 = vector.shape_cast %30 : vector<256xf32> to vector<1x256xf32>
    %32 = arith.mulf %29, %29 : vector<2x256xf32>
    %cst_28 = arith.constant dense<0.000000e+00> : vector<256xf32>
    %33 = vector.multi_reduction <add>, %32, %cst_28 [0] : vector<2x256xf32> to vector<256xf32>
    %34 = vector.shape_cast %33 : vector<256xf32> to vector<1x256xf32>
    %cst_29 = arith.constant dense<0.000000e+00> : vector<1x256xf32>
    %35 = tpu.matmul %31, %0, %cst_29 {dimension_numbers = #tpu.dot_dimension_numbers<[1], [0], [0], [1], [0, 0, 1, 1], [], []>} : vector<1x256xf32>, vector<256x256xf32>, vector<1x256xf32> -> vector<1x256xf32>
    %cst_30 = arith.constant 2.500000e-01 : f32
    %36 = vector.broadcast %cst_30 : f32 to vector<1x256xf32>
    %37 = arith.mulf %35, %36 : vector<1x256xf32>
    %cst_31 = arith.constant dense<0.000000e+00> : vector<1x256xf32>
    %38 = tpu.matmul %34, %0, %cst_31 {dimension_numbers = #tpu.dot_dimension_numbers<[1], [0], [0], [1], [0, 0, 1, 1], [], []>} : vector<1x256xf32>, vector<256x256xf32>, vector<1x256xf32> -> vector<1x256xf32>
    %cst_32 = arith.constant 2.500000e-01 : f32
    %39 = vector.broadcast %cst_32 : f32 to vector<1x256xf32>
    %40 = arith.mulf %38, %39 : vector<1x256xf32>
    %41 = arith.mulf %37, %37 : vector<1x256xf32>
    %42 = arith.subf %40, %41 : vector<1x256xf32>
    %cst_33 = arith.constant 0.000000e+00 : f32
    %43 = vector.broadcast %cst_33 : f32 to vector<1x256xf32>
    %44 = arith.maximumf %42, %43 : vector<1x256xf32>
    %45 = vector.broadcast %37 : vector<1x256xf32> to vector<2x256xf32>
    %46 = arith.subf %29, %45 : vector<2x256xf32>
    %cst_34 = arith.constant 9.99999974E-6 : f32
    %47 = vector.broadcast %cst_34 : f32 to vector<1x256xf32>
    %48 = arith.addf %44, %47 : vector<1x256xf32>
    %49 = math.rsqrt %48 : vector<1x256xf32>
    %50 = vector.broadcast %49 : vector<1x256xf32> to vector<2x256xf32>
    %51 = arith.mulf %46, %50 : vector<2x256xf32>
    %cst_35 = arith.constant 0.000000e+00 : f32
    %52 = vector.broadcast %cst_35 : f32 to vector<2x256xf32>
    %53 = arith.cmpf oge, %51, %52 : vector<2x256xf32>
    %cst_36 = arith.constant 1.000000e-01 : f32
    %54 = vector.broadcast %cst_36 : f32 to vector<2x256xf32>
    %55 = arith.mulf %54, %51 : vector<2x256xf32>
    %56 = arith.select %53, %51, %55 : vector<2x256xi1>, vector<2x256xf32>
    %57 = arith.truncf %56 : vector<2x256xf32> to vector<2x256xbf16>
    %c1_37 = arith.constant 1 : index
    %c0_38 = arith.constant 0 : index
    %c0_39 = arith.constant 0 : index
    %58 = vector.load %arg7[%c1_37, %c0_38, %c0_39] : memref<3x256x256xbf16, #tpu.memory_space<vmem>>, vector<1x256x256xbf16>
    %59 = vector.shape_cast %58 : vector<1x256x256xbf16> to vector<256x256xbf16>
    %cst_40 = arith.constant dense<0.000000e+00> : vector<2x256xf32>
    %60 = tpu.matmul %57, %59, %cst_40 {dimension_numbers = #tpu.dot_dimension_numbers<[1], [0], [0], [1], [0, 0, 1, 1], [], []>} : vector<2x256xbf16>, vector<256x256xbf16>, vector<2x256xf32> -> vector<2x256xf32>
    %c0_41 = arith.constant 0 : index
    %c0_42 = arith.constant 0 : index
    %c0_43 = arith.constant 0 : index
    %61 = vector.load %arg6[%c0_41, %c0_42, %c0_43] : memref<2x2x2xbf16, #tpu.memory_space<vmem>>, vector<1x2x2xbf16>
    %62 = vector.shape_cast %61 : vector<1x2x2xbf16> to vector<2x2xbf16>
    %cst_44 = arith.constant dense<0.000000e+00> : vector<2x256xf32>
    %63 = tpu.matmul %62, %57, %cst_44 {dimension_numbers = #tpu.dot_dimension_numbers<[1], [0], [0], [1], [0, 0, 1, 1], [], []>} : vector<2x2xbf16>, vector<2x256xbf16>, vector<2x256xf32> -> vector<2x256xf32>
    %64 = arith.truncf %63 : vector<2x256xf32> to vector<2x256xbf16>
    %c0_45 = arith.constant 0 : index
    %c0_46 = arith.constant 0 : index
    %c0_47 = arith.constant 0 : index
    %65 = vector.load %arg7[%c0_45, %c0_46, %c0_47] : memref<3x256x256xbf16, #tpu.memory_space<vmem>>, vector<1x256x256xbf16>
    %66 = vector.shape_cast %65 : vector<1x256x256xbf16> to vector<256x256xbf16>
    %cst_48 = arith.constant dense<0.000000e+00> : vector<2x256xf32>
    %67 = tpu.matmul %64, %66, %cst_48 {dimension_numbers = #tpu.dot_dimension_numbers<[1], [0], [0], [1], [0, 0, 1, 1], [], []>} : vector<2x256xbf16>, vector<256x256xbf16>, vector<2x256xf32> -> vector<2x256xf32>
    %68 = arith.addf %60, %67 : vector<2x256xf32>
    %c1_49 = arith.constant 1 : index
    %c0_50 = arith.constant 0 : index
    %c0_51 = arith.constant 0 : index
    %69 = vector.load %arg6[%c1_49, %c0_50, %c0_51] : memref<2x2x2xbf16, #tpu.memory_space<vmem>>, vector<1x2x2xbf16>
    %70 = vector.shape_cast %69 : vector<1x2x2xbf16> to vector<2x2xbf16>
    %cst_52 = arith.constant dense<0.000000e+00> : vector<2x256xf32>
    %71 = tpu.matmul %70, %57, %cst_52 {dimension_numbers = #tpu.dot_dimension_numbers<[1], [0], [0], [1], [0, 0, 1, 1], [], []>} : vector<2x2xbf16>, vector<2x256xbf16>, vector<2x256xf32> -> vector<2x256xf32>
    %72 = arith.truncf %71 : vector<2x256xf32> to vector<2x256xbf16>
    %c2_53 = arith.constant 2 : index
    %c0_54 = arith.constant 0 : index
    %c0_55 = arith.constant 0 : index
    %73 = vector.load %arg7[%c2_53, %c0_54, %c0_55] : memref<3x256x256xbf16, #tpu.memory_space<vmem>>, vector<1x256x256xbf16>
    %74 = vector.shape_cast %73 : vector<1x256x256xbf16> to vector<256x256xbf16>
    %cst_56 = arith.constant dense<0.000000e+00> : vector<2x256xf32>
    %75 = tpu.matmul %72, %74, %cst_56 {dimension_numbers = #tpu.dot_dimension_numbers<[1], [0], [0], [1], [0, 0, 1, 1], [], []>} : vector<2x256xbf16>, vector<256x256xbf16>, vector<2x256xf32> -> vector<2x256xf32>
    %76 = arith.addf %68, %75 : vector<2x256xf32>
    %c0_57 = arith.constant 0 : index
    %c0_58 = arith.constant 0 : index
    %77 = vector.load %arg8[%c0_57, %c0_58] : memref<1x256xf32, #tpu.memory_space<vmem>>, vector<1x256xf32>
    %78 = vector.broadcast %77 : vector<1x256xf32> to vector<2x256xf32>
    %79 = arith.addf %76, %78 : vector<2x256xf32>
    %80 = arith.addf %79, %29 : vector<2x256xf32>
    %cst_59 = arith.constant dense<0.000000e+00> : vector<256xf32>
    %81 = vector.multi_reduction <add>, %80, %cst_59 [0] : vector<2x256xf32> to vector<256xf32>
    %82 = vector.shape_cast %81 : vector<256xf32> to vector<1x256xf32>
    %83 = arith.mulf %80, %80 : vector<2x256xf32>
    %cst_60 = arith.constant dense<0.000000e+00> : vector<256xf32>
    %84 = vector.multi_reduction <add>, %83, %cst_60 [0] : vector<2x256xf32> to vector<256xf32>
    %85 = vector.shape_cast %84 : vector<256xf32> to vector<1x256xf32>
    %cst_61 = arith.constant dense<0.000000e+00> : vector<1x256xf32>
    %86 = tpu.matmul %82, %0, %cst_61 {dimension_numbers = #tpu.dot_dimension_numbers<[1], [0], [0], [1], [0, 0, 1, 1], [], []>} : vector<1x256xf32>, vector<256x256xf32>, vector<1x256xf32> -> vector<1x256xf32>
    %cst_62 = arith.constant 2.500000e-01 : f32
    %87 = vector.broadcast %cst_62 : f32 to vector<1x256xf32>
    %88 = arith.mulf %86, %87 : vector<1x256xf32>
    %cst_63 = arith.constant dense<0.000000e+00> : vector<1x256xf32>
    %89 = tpu.matmul %85, %0, %cst_63 {dimension_numbers = #tpu.dot_dimension_numbers<[1], [0], [0], [1], [0, 0, 1, 1], [], []>} : vector<1x256xf32>, vector<256x256xf32>, vector<1x256xf32> -> vector<1x256xf32>
    %cst_64 = arith.constant 2.500000e-01 : f32
    %90 = vector.broadcast %cst_64 : f32 to vector<1x256xf32>
    %91 = arith.mulf %89, %90 : vector<1x256xf32>
    %92 = arith.mulf %88, %88 : vector<1x256xf32>
    %93 = arith.subf %91, %92 : vector<1x256xf32>
    %cst_65 = arith.constant 0.000000e+00 : f32
    %94 = vector.broadcast %cst_65 : f32 to vector<1x256xf32>
    %95 = arith.maximumf %93, %94 : vector<1x256xf32>
    %96 = vector.broadcast %88 : vector<1x256xf32> to vector<2x256xf32>
    %97 = arith.subf %80, %96 : vector<2x256xf32>
    %cst_66 = arith.constant 9.99999974E-6 : f32
    %98 = vector.broadcast %cst_66 : f32 to vector<1x256xf32>
    %99 = arith.addf %95, %98 : vector<1x256xf32>
    %100 = math.rsqrt %99 : vector<1x256xf32>
    %101 = vector.broadcast %100 : vector<1x256xf32> to vector<2x256xf32>
    %102 = arith.mulf %97, %101 : vector<2x256xf32>
    %cst_67 = arith.constant 0.000000e+00 : f32
    %103 = vector.broadcast %cst_67 : f32 to vector<2x256xf32>
    %104 = arith.cmpf oge, %102, %103 : vector<2x256xf32>
    %cst_68 = arith.constant 1.000000e-01 : f32
    %105 = vector.broadcast %cst_68 : f32 to vector<2x256xf32>
    %106 = arith.mulf %105, %102 : vector<2x256xf32>
    %107 = arith.select %104, %102, %106 : vector<2x256xi1>, vector<2x256xf32>
    %c0_69 = arith.constant 0 : index
    %c0_70 = arith.constant 0 : index
    %c0_71 = arith.constant 0 : index
    %108 = vector.load %arg9[%c0_69, %c0_70, %c0_71] : memref<1x2x256xf32, #tpu.memory_space<vmem>>, vector<1x2x256xf32>
    %109 = vector.shape_cast %108 : vector<1x2x256xf32> to vector<2x256xf32>
    %110 = vector.shape_cast %107 : vector<2x256xf32> to vector<1x2x256xf32>
    tpu.vector_store %arg9[%c0_69, %c0_70, %c0_71], %110 {strides = array<i32>} : memref<1x2x256xf32, #tpu.memory_space<vmem>>, vector<1x2x256xf32>,
    return
  }
  func.func @transform_0(%arg0: i32) -> (i32, i32, i32) {
    %c0_i32 = arith.constant 0 : i32
    %c0_i32_0 = arith.constant 0 : i32
    %c0_i32_1 = arith.constant 0 : i32
    return %arg0, %c0_i32, %c0_i32_0 : i32, i32, i32
  }
  func.func @transform_1(%arg0: i32) -> (i32, i32, i32) {
    %c0_i32 = arith.constant 0 : i32
    %c0_i32_0 = arith.constant 0 : i32
    %c0_i32_1 = arith.constant 0 : i32
    %c0_i32_2 = arith.constant 0 : i32
    return %c0_i32, %c0_i32_0, %c0_i32_1 : i32, i32, i32
  }
  func.func @transform_2(%arg0: i32) -> (i32, i32, i32) {
    %c0_i32 = arith.constant 0 : i32
    %c0_i32_0 = arith.constant 0 : i32
    %c0_i32_1 = arith.constant 0 : i32
    %c0_i32_2 = arith.constant 0 : i32
    return %c0_i32, %c0_i32_0, %c0_i32_1 : i32, i32, i32
  }
  func.func @transform_3(%arg0: i32) -> (i32, i32) {
    %c0_i32 = arith.constant 0 : i32
    %c0_i32_0 = arith.constant 0 : i32
    %c0_i32_1 = arith.constant 0 : i32
    return %c0_i32, %c0_i32_0 : i32, i32
  }
  func.func @transform_4(%arg0: i32) -> (i32, i32) {
    %c0_i32 = arith.constant 0 : i32
    %c0_i32_0 = arith.constant 0 : i32
    %c0_i32_1 = arith.constant 0 : i32
    return %c0_i32, %c0_i32_0 : i32, i32
  }
  func.func @transform_5(%arg0: i32) -> (i32, i32, i32) {
    %c0_i32 = arith.constant 0 : i32
    %c0_i32_0 = arith.constant 0 : i32
    %c0_i32_1 = arith.constant 0 : i32
    %c0_i32_2 = arith.constant 0 : i32
    return %c0_i32, %c0_i32_0, %c0_i32_1 : i32, i32, i32
  }
  func.func @transform_6(%arg0: i32) -> (i32, i32, i32) {
    %c0_i32 = arith.constant 0 : i32
    %c0_i32_0 = arith.constant 0 : i32
    %c0_i32_1 = arith.constant 0 : i32
    %c0_i32_2 = arith.constant 0 : i32
    return %c0_i32, %c0_i32_0, %c0_i32_1 : i32, i32, i32
  }
  func.func @transform_7(%arg0: i32) -> (i32, i32) {
    %c0_i32 = arith.constant 0 : i32
    %c0_i32_0 = arith.constant 0 : i32
    %c0_i32_1 = arith.constant 0 : i32
    return %c0_i32, %c0_i32_0 : i32, i32
  }
  func.func @transform_8(%arg0: i32) -> (i32, i32, i32) {
    %c0_i32 = arith.constant 0 : i32
    %c0_i32_0 = arith.constant 0 : i32
    %c0_i32_1 = arith.constant 0 : i32
    return %arg0, %c0_i32, %c0_i32_0 : i32, i32, i32
  }
}

</mosaic_0001>

<bundles_post_ra>
// kernel: tile.38
= control target key start
LH: loop header
LB: loop body
LE: loop exit
PB: predicated region body
PF: predicated region fallthrough
CT: control target
= control target key end

     0   :  { %2 = vsyncpa [#allocation1], 0  ;;  %s51_s8 = smov [#allocation0]   ;;  %s71_s0 = inlined_call_operand.hbm [shape: f32[16], index: 0, kind: input, shape index: {}]   ;;  %s72_s1 = inlined_call_operand.vmem [shape: f32[16,16], index: 1, kind: output, shape index: {}]  }
   0x1   :  { %s8_s0 = sshll.u32 %s71_s0, 4  ;;  %s10_s9 = sshll.u32 %s51_s8, 4  ;;  %s9_s0 = int_to_ptr.hbm [resolvable:$true] %s8_s0  ;;  %s11_s9 = int_to_ptr.vmem [resolvable:$true] %s10_s9 }
   0x2   :  { %13 = dma.hbm_to_vmem [thread:$0]  %s9_s0, 16, %s11_s9, [#allocation1]  }
   0x3   :  { %49 = dma.done.wait [#allocation1], 16  }
   0x4   :  { %50 = vsyncadd [#allocation1], 4294967280  ;;  %v18_v0 = vld [vmem:[#allocation0] ss:$0 sm:$0xff] }
   0x5   :  { %19 = vst [vmem:[%s72_s1] sm:$0xff] %v18_v0 }
   0x6   :  { %23 = vst [vmem:[%s72_s1 + $0x8] sm:$0xff] %v18_v0 }
   0x7   :  { %22 = vsyncpa [#allocation1], 1 }

// kernel: tile.39
= control target key start
LH: loop header
LB: loop body
LE: loop exit
PB: predicated region body
PF: predicated region fallthrough
CT: control target
= control target key end

     0   :  { %s7_s6 = smov 3  ;;  %s21_s9 = smov 3  ;;  %vm4_vm0 = vcmask 130048   ;;  %vm11_vm1 = vcmask 1048448   ;;  %vm18_vm2 = vcmask 917248   ;;  %vm25_vm3 = vcmask 786048   ;;  %s129_s0 = inlined_call_operand.vmem [shape: f32[16,16], index: 0, kind: input, shape index: {}]   ;;  %s130_s1 = inlined_call_operand.vmem [shape: f32[1,256], index: 1, kind: output, shape index: {}]  }
   0x1   :  { %v67_v0 = vld [vmem:[%s129_s0 + $0x7] ss:$8 sm:%s7_s6]   ;;  %s82_s10 = smov 112   ;;  %v69_v1 = vld [vmem:[%s129_s0 + $0x5] ss:$8 sm:%s21_s9]   ;;  %s83_s13 = smov 80  }
   0x2   :  { %9 = vrot.lane.b32.xlu0 %v67_v0, %s82_s10  ;;  %23 = vrot.lane.b32.xlu1 %v69_v1, %s83_s13  ;;  %s14_s14 = smov 3  ;;  %s28_s15 = smov 3  ;;  %vm32_vm4 = vcmask 654848   ;;  %vm39_vm5 = vcmask 523648   ;;  %vm46_vm6 = vcmask 392448   ;;  %vm53_vm7 = vcmask 261248  }
   0x3   :  { %s35_s16 = smov 3  ;;  %v68_v3 = vld [vmem:[%s129_s0 + $0x6] ss:$8 sm:%s14_s14]   ;;  %s84_s21 = smov 48   ;;  %v70_v4 = vld [vmem:[%s129_s0 + $0x4] ss:$8 sm:%s28_s15]  }
   0x4   :  { %v71_v2 = vld [vmem:[%s129_s0 + $0x3] ss:$8 sm:%s35_s16]   ;;  %s42_s24 = smov 3  ;;  %s85_s25 = smov 96  }
   0x5   :  { %37 = vrot.lane.b32.xlu2 %v71_v2, %s84_s21  ;;  %s86_s26 = smov 64   ;;  %s49_s27 = smov 3  ;;  %v72_v5 = vld [vmem:[%s129_s0 + $0x2] ss:$8 sm:%s42_s24]  }
   0x6   :  { %v73_v6 = vld [vmem:[%s129_s0 + $0x1] ss:$8 sm:%s49_s27]   ;;  %s87_s3 = smov 32   ;;  %s88_s4 = smov 16  }
   0x7   :  { %s2_s5 = smov 3 }
   0x8   :  { %v3_v7 = vld [vmem:[%s129_s0] ss:$8 sm:%s2_s5]  }
   0x9   :  { %5 = vst.msk [vmem:[#allocation0] ss:$8 sm:$0x3] %vm4_vm0, %v3_v7  }
   0xa   :  { %16 = vrot.lane.b32.xlu0 %v68_v3, %s85_s25  ;;  %30 = vrot.lane.b32.xlu1 %v70_v4, %s86_s26 }
   0xd   :  { %44 = vrot.lane.b32.xlu2 %v72_v5, %s87_s3 }
  0x12   :  { %51 = vrot.lane.b32.xlu0 %v73_v6, %s88_s4 }
  0x5f   :  { %v38_v8 = vpop.permute.xlu2 %37  }
  0x67   :  { %v45_v9 = vpop.permute.xlu2 %44  }
  0x74   :  { %v10_v10 = vpop.permute.xlu0 %9   ;;  %v24_v11 = vpop.permute.xlu1 %23  }
  0x75   :  { %12 = vst.msk [vmem:[#allocation0] ss:$8 sm:$0x3] %vm11_vm1, %v10_v10  }
  0x7c   :  { %v17_v12 = vpop.permute.xlu0 %16   ;;  %v31_v13 = vpop.permute.xlu1 %30  }
  0x7d   :  { %19 = vst.msk [vmem:[#allocation0] ss:$8 sm:$0x3] %vm18_vm2, %v17_v12  }
  0x7e   :  { %26 = vst.msk [vmem:[#allocation0] ss:$8 sm:$0x3] %vm25_vm3, %v24_v11  }
  0x7f   :  { %33 = vst.msk [vmem:[#allocation0] ss:$8 sm:$0x3] %vm32_vm4, %v31_v13  }
  0x80   :  { %40 = vst.msk [vmem:[#allocation0] ss:$8 sm:$0x3] %vm39_vm5, %v38_v8  }
  0x81   :  { %47 = vst.msk [vmem:[#allocation0] ss:$8 sm:$0x3] %vm46_vm6, %v45_v9  }
  0x84   :  { %v52_v14 = vpop.permute.xlu0 %51  }
  0x85   :  { %54 = vst.msk [vmem:[#allocation0] ss:$8 sm:$0x3] %vm53_vm7, %v52_v14  }
  0x8c   :  { %v57_v15 = vld [vmem:[#allocation0] sm:$0x1]  ;;  %v62_v16 = vld [vmem:[#allocation0 + $0x8] sm:$0x1] }
  0x8d   :  { %60 = vst [vmem:[%s130_s1] sm:$0x1] %v57_v15 }
  0x8e   :  { %74 = vst [vmem:[%s130_s1 + $0x1] sm:$0x1] %v62_v16 }

// kernel: encoder_forward.4
= control target key start
LH: loop header
LB: loop body
LE: loop exit
PB: predicated region body
PF: predicated region fallthrough
CT: control target
= control target key end

     0   :  { %10 = vsyncpa [#allocation3], 0  ;;  %s1536_s0 = inlined_call_operand.vmem [shape: f32[2,18,18], index: 0, kind: input, shape index: {}]   ;;  %s1537_s1 = inlined_call_operand.hbm [shape: bf16[3,16,18], index: 1, kind: input, shape index: {}]   ;;  %s1538_s2 = inlined_call_operand.vmem [shape: bf16[3,18,256], index: 2, kind: input, shape index: {}]   ;;  %s1539_s3 = inlined_call_operand.vmem [shape: f32[1,256], index: 3, kind: input, shape index: {}]   ;;  %s1540_s4 = inlined_call_operand.hbm [shape: f32[256,256], index: 4, kind: input, shape index: {}]   ;;  %s1541_s5 = inlined_call_operand.vmem [shape: f32[2,16,256], index: 5, kind: output, shape index: {}]  }
   0x1   :  { %11 = vsyncpa [#allocation5], 0  ;;  %s1146_s18 = smov 0  }
   0x2 LB: > { %s169_s21 = sshll.u32 %s1537_s1, 4  ;;  %s921_s22 = sadd.s32 4294967295, %s1108_s18   ;;  %s1108_s18 = sphi %s1146_s18, %s17_s18   ;;  %s170_s21 = int_to_ptr.hbm [resolvable:$true] %s169_s21 }
   0x3   : > { %p923_p0 = scmp.ge.s32.totalorder %s1108_s18, 1  ;;  %p158_p1 = scmp.lt.s32.totalorder %s1108_s18, 3 }
   0x4   : > { %p1012_p2 = scmp.eq.s32.totalorder %s921_s22, 0  ;;  %s1110_s24 = smov [#allocation2]  }
   0x5   : > { %p1157_p3 = pnand %p923_p0, %p158_p1  ;;  %s171_s25 = sshll.u32 %s1110_s24, 4  ;;  %s172_s25 = int_to_ptr.vmem [resolvable:$true] %s171_s25 }
   0x6   : > { %s189_s28 = sshll.u32 %s1540_s4, 4  ;;  %s1111_s29 = smov [#allocation4]   ;;  %s190_s28 = int_to_ptr.hbm [resolvable:$true] %s189_s28 }
   0x7   : > { %p1005_p4 = pneg %p1157_p3  ;;  %s191_s30 = sshll.u32 %s1111_s29, 4  ;;  %s192_s30 = int_to_ptr.vmem [resolvable:$true] %s191_s30 }
   0x8   : > { %s1112_s6 = smov 64   ;;  %s1113_s7 = smov 4  }
   0x9   : > { %p1006_p5 = pnand %p1012_p2, %p1005_p4  ;;  %s1114_s8 = smov 256  }
   0xa   : > { %s1115_s9 = smov 16   ;;  %215 = sbr.rel (%p1157_p3) target bundleno = 664 (0x298), region = 40 }
   0xb   : > { %1008 = dma.hbm_to_vmem [thread:$0]  (!%p1006_p5), %s170_s21, 384, %s172_s25, [#allocation3], %s1112_s6, %s1112_s6, %s1113_s7  }
   0xc   : > { %1011 = dma.hbm_to_vmem [thread:$0]  (!%p1006_p5), %s190_s28, 8192, %s192_s30, [#allocation5], %s1114_s8, %s1114_s8, %s1115_s9  }
   0xf   : > { %1099 = dma.done.wait (%p1012_p2), [#allocation3], 384  }
  0x10   : > { %1101 = vsyncadd (%p1012_p2), [#allocation3], 4294966912 }
  0x11   : > { %1103 = dma.done.wait (%p1012_p2), [#allocation5], 8192  }
  0x12   : > { %1105 = vsyncadd (%p1012_p2), [#allocation5], 4294959104  ;;  %p249_p6 = scmp.lt.s32.totalorder %s921_s22, 1  ;;  %vm276_vm0 = vcmask 1040384   ;;  %v990_v6 = vld [vmem:[#allocation2 + $0x8] sm:$0xff]  ;;  %v987_v7 = vld [vmem:[#allocation2] sm:$0xff] }
  0x13   : > { %vm272_vm1 = vcmask 146432   ;;  %v945_v8 = vld [vmem:[%s1538_s2 + $0x28] sm:$0x11]  ;;  %v297_v15 = vld [vmem:[%s1538_s2 + $0x10] sm:$0x11]  ;;  %v1242_v56 = vld [vmem:[#allocation4 + $0x1e0] sm:$0xff] }
  0x14   : > { %s1546_s22 = smov (!%p249_p6, %s921_s22), 1  ;;  %v335_v9 = vunpack.c.l.b16 %v945_v8  ;;  %v336_v10 = vunpack.c.h.b16 %v945_v8  ;;  %v948_v16 = vld [vmem:[%s1538_s2 + $0x18] sm:$0xf]  ;;  %v992_v17 = vld [vmem:[%s1538_s2 + $0x1c] sm:$0xf0]  ;;  %v387_v19 = vunpack.c.l.b16 %v297_v15  ;;  %v388_v20 = vunpack.c.h.b16 %v297_v15  ;;  %v993_v40 = vld [vmem:[#allocation2 + $0x10] sm:$0xff] }
  0x15   : > { %s996_s10 = smul.u32 24, %s1546_s22  ;;  %v991_v18 = vld [vmem:[%s1538_s2 + $0x1c] sm:$0xf]  ;;  %v949_v21 = vor.u32 %v992_v17, %v948_v16  ;;  %v950_v22 = vld [vmem:[%s1538_s2 + $0x20] sm:$0xf0]  ;;  %v1238_v54 = vld [vmem:[#allocation4 + $0x1f0] sm:$0xff] }
  0x16   : > { %v339_v11 = vpack.c.b16 %v335_v9, %v335_v9  ;;  %v340_v12 = vpack.c.b16 %v336_v10, %v336_v10  ;;  %v953_v23 = vor.u32 %v991_v18, %v950_v22  ;;  %v391_v24 = vpack.c.b16 %v387_v19, %v387_v19  ;;  %v958_v28 = vld [vmem:[%s1538_s2] sm:$0xf]  ;;  %v989_v29 = vld [vmem:[%s1538_s2 + $0x4] sm:$0xf0]  ;;  %v988_v30 = vld [vmem:[%s1538_s2 + $0x4] sm:$0xf] }
  0x17   : > { %s253_s13 = scalar_lea.vmem %s1536_s0, %s996_s10  ;;  %v392_v25 = vpack.c.b16 %v388_v20, %v388_v20  ;;  %v959_v31 = vor.u32 %v989_v29, %v958_v28  ;;  %v960_v32 = vld [vmem:[%s1538_s2 + $0x8] sm:$0xf0]  ;;  %v973_v41 = vld [vmem:[%s1538_s2 + $0x40] sm:$0x11]  ;;  %v976_v47 = vld [vmem:[%s1538_s2 + $0x30] sm:$0xf] }
  0x18   : > { %v262_v0 = vld [vmem:[%s253_s13 + $0x10] sm:$0x3]  ;;  %v260_v2 = vld [vmem:[%s253_s13] sm:$0xff]  ;;  %v261_v3 = vld [vmem:[%s253_s13 + $0x8] sm:$0xff]  ;;  %v347_v13 = vsel %vm276_vm0, %v339_v11, 0  ;;  %v350_v14 = vsel %vm276_vm0, %v340_v12, 0  ;;  %v963_v33 = vor.u32 %v988_v30, %v960_v32  ;;  %v469_v42 = vunpack.c.l.b16 %v973_v41 }
  0x19   : > { %v264_v1 = vpack.c.bf16 %v262_v0, %v262_v0  ;;  %v263_v5 = vpack.c.bf16 %v261_v3, %v260_v2  ;;  %358 = vmatpush.bf16.msra.mxu2 %v347_v13  ;;  %372 = vmatpush.bf16.msra.mxu3 %v350_v14  ;;  %v399_v26 = vsel %vm276_vm0, %v391_v24, 0  ;;  %v402_v27 = vsel %vm276_vm0, %v392_v25, 0  ;;  %v995_v48 = vld [vmem:[%s1538_s2 + $0x34] sm:$0xf0]  ;;  %v994_v51 = vld [vmem:[%s1538_s2 + $0x34] sm:$0xf] }
  0x1a   : > { %v470_v43 = vunpack.c.h.b16 %v973_v41  ;;  %v473_v44 = vpack.c.b16 %v469_v42, %v469_v42  ;;  %v977_v49 = vor.u32 %v995_v48, %v976_v47  ;;  %v978_v52 = vld [vmem:[%s1538_s2 + $0x38] sm:$0xf0]  ;;  %v1240_v55 = vld [vmem:[#allocation4 + $0x1f8] sm:$0xff]  ;;  %v1246_v57 = vld [vmem:[#allocation4 + $0x1e8] sm:$0xff]  ;;  %s986_s25 = sshll.u32 %s1546_s22, 5 }
  0x1b   : > { %v278_v4 = vsel %vm276_vm0, %v264_v1, 0  ;;  %v981_v53 = vor.u32 %v994_v51, %v978_v52  ;;  %v1248_v58 = vld [vmem:[#allocation4 + $0x1d0] sm:$0xff]  ;;  %v1250_v59 = vld [vmem:[#allocation4 + $0x1d8] sm:$0xff]  ;;  %v1258_v62 = vld [vmem:[#allocation4 + $0xe0] sm:$0xff]  ;;  %s258_s28 = scalar_lea.vmem %s1541_s5, %s986_s25 }
  0x1c   : > { %315 = vmatpush.bf16.msra.mxu1 %v278_v4  ;;  %286 = vmatpush.bf16.msra.mxu0 %v278_v4  ;;  %v481_v45 = vsel %vm276_vm0, %v473_v44, 0  ;;  %v474_v46 = vpack.c.b16 %v470_v43, %v470_v43  ;;  %v1252_v60 = vld [vmem:[#allocation4 + $0xf0] sm:$0xff]  ;;  %v1254_v61 = vld [vmem:[#allocation4 + $0xf8] sm:$0xff]  ;;  %v1261_v63 = vld [vmem:[#allocation4 + $0x1c0] sm:$0xff] }
  0x1d   : > { %359 = vmatpush.bf16.msra.mxu2 %v949_v21  ;;  %373 = vmatpush.bf16.msra.mxu3 %v953_v23  ;;  %v1264_v0 = vld [vmem:[#allocation4 + $0x1c8] sm:$0xff]  ;;  %v1272_v3 = vld [vmem:[#allocation4 + $0xd0] sm:$0xff]  ;;  %v1289_v9 = vld [vmem:[#allocation4 + $0x1a0] sm:$0xff] }
  0x1e   : > { %v484_v50 = vsel %vm276_vm0, %v474_v46, 0  ;;  %v1266_v1 = vld [vmem:[#allocation4 + $0xe8] sm:$0xff]  ;;  %v1296_v11 = vld [vmem:[#allocation4 + $0xb0] sm:$0xff]  ;;  %v1298_v12 = vld [vmem:[#allocation4 + $0xb8] sm:$0xff] }
  0x1f   : > { %v1286_v8 = vld [vmem:[#allocation4 + $0xc8] sm:$0xff]  ;;  %v1301_v13 = vld [vmem:[#allocation4 + $0x190] sm:$0xff]  ;;  %v1304_v14 = vld [vmem:[#allocation4 + $0x198] sm:$0xff] }
  0x20   : > { %316 = vmatpush.bf16.msra.mxu1 %v263_v5  ;;  %287 = vmatpush.bf16.msra.mxu0 %v263_v5  ;;  %v1292_v10 = vld [vmem:[#allocation4 + $0x1a8] sm:$0xff]  ;;  %v1308_v15 = vld [vmem:[#allocation4 + $0xa0] sm:$0xff]  ;;  %v1322_v20 = vld [vmem:[#allocation4 + $0x90] sm:$0xff] }
  0x21   : > { %449 = vmatpush.bf16.msrb.mxu2 %v278_v4  ;;  %492 = vmatpush.bf16.msrb.mxu3 %v481_v45  ;;  %v1274_v4 = vld [vmem:[#allocation4 + $0xd8] sm:$0xff]  ;;  %v1310_v16 = vld [vmem:[#allocation4 + $0xa8] sm:$0xff]  ;;  %v1313_v17 = vld [vmem:[#allocation4 + $0x180] sm:$0xff] }
  0x22   : > { %v1316_v18 = vld [vmem:[#allocation4 + $0x188] sm:$0xff]  ;;  %v1324_v21 = vld [vmem:[#allocation4 + $0x98] sm:$0xff]  ;;  %v1327_v22 = vld [vmem:[#allocation4 + $0x170] sm:$0xff] }
  0x23   : > { %942 = vmatmul.msk.bf16.vlgmr.msra.gmra.mxu1 %vm272_vm1, %v990_v6  ;;  %937 = vmatmul.msk.bf16.vlgmr.msra.gmra.mxu0 %vm272_vm1, %v987_v7  ;;  %v1280_v6 = vld [vmem:[#allocation4 + $0x1b8] sm:$0xff]  ;;  %v1284_v7 = vld [vmem:[#allocation4 + $0xc0] sm:$0xff]  ;;  %v1336_v25 = vld [vmem:[#allocation4 + $0x88] sm:$0xff] }
  0x24   : > { %410 = vmatpush.bf16.msrb.mxu0 %v399_v26  ;;  %424 = vmatpush.bf16.msrb.mxu1 %v402_v27  ;;  %v1330_v23 = vld [vmem:[#allocation4 + $0x178] sm:$0xff]  ;;  %v1334_v24 = vld [vmem:[#allocation4 + $0x80] sm:$0xff]  ;;  %v1342_v27 = vld [vmem:[#allocation4 + $0x168] sm:$0xff] }
  0x25   : > { %450 = vmatpush.bf16.msrb.mxu2 %v263_v5  ;;  %493 = vmatpush.bf16.msrb.mxu3 %v977_v49  ;;  %v1277_v5 = vld [vmem:[#allocation4 + $0x1b0] sm:$0xff]  ;;  %v1339_v26 = vld [vmem:[#allocation4 + $0x160] sm:$0xff]  ;;  %v1348_v29 = vld [vmem:[#allocation4 + $0x78] sm:$0xff] }
  0x26   : > { %v1346_v28 = vld [vmem:[#allocation4 + $0x70] sm:$0xff]  ;;  %v1358_v32 = vld [vmem:[#allocation4 + $0x60] sm:$0xff]  ;;  %v1386_v42 = vld [vmem:[#allocation4 + $0x128] sm:$0xff] }
  0x27   : > { %v1351_v30 = vld [vmem:[#allocation4 + $0x150] sm:$0xff]  ;;  %v1383_v41 = vld [vmem:[#allocation4 + $0x120] sm:$0xff]  ;;  %v1400_v47 = vld [vmem:[#allocation4 + $0x48] sm:$0xff] }
  0x28   : > { %411 = vmatpush.bf16.msrb.mxu0 %v959_v31  ;;  %425 = vmatpush.bf16.msrb.mxu1 %v963_v33  ;;  %v1354_v31 = vld [vmem:[#allocation4 + $0x158] sm:$0xff]  ;;  %v1360_v33 = vld [vmem:[#allocation4 + $0x68] sm:$0xff]  ;;  %v1394_v45 = vld [vmem:[#allocation4 + $0x40] sm:$0xff] }
  0x29   : > { %v1396_v46 = vld [vmem:[#allocation4 + $0x110] sm:$0xff]  ;;  %v1402_v48 = vld [vmem:[#allocation4 + $0x118] sm:$0xff]  ;;  %v1414_v52 = vld [vmem:[#allocation4 + $0x108] sm:$0xff] }
  0x2a   : > { %v1406_v49 = vld [vmem:[#allocation4 + $0x30] sm:$0xff]  ;;  %v1410_v51 = vld [vmem:[#allocation4 + $0x38] sm:$0xff] }
  0x2c   : > { %506 = vmatpush.bf16.msra.mxu0 %v484_v50  ;;  %624 = vmatpush.msra.mxu1 %v1252_v60  ;;  %v1408_v50 = vld [vmem:[#allocation4 + $0x100] sm:$0xff] }
  0x2e   : > { %625 = vmatpush.msra.mxu1 %v1258_v62 }
  0x30   : > { %507 = vmatpush.bf16.msra.mxu0 %v981_v53  ;;  %626 = vmatpush.msra.mxu1 %v1272_v3  ;;  %v1418_v53 = vld [vmem:[#allocation4 + $0x20] sm:$0xff] }
  0x32   : > { %627 = vmatpush.msra.mxu1 %v1284_v7 }
  0x34   : > { %628 = vmatpush.msra.mxu1 %v1296_v11 }
  0x36   : > { %629 = vmatpush.msra.mxu1 %v1308_v15 }
  0x38   : > { %630 = vmatpush.msra.mxu1 %v1322_v20 }
  0x3a   : > { %631 = vmatpush.msra.mxu1 %v1334_v24 }
  0x3c   : > { %632 = vmatpush.msra.mxu1 %v1346_v28 }
  0x3e   : > { %633 = vmatpush.msra.mxu1 %v1358_v32 }
  0xa0   : > { %v318_v34 = vpop.f32.mrf.mxu1  ;;  %v289_v35 = vpop.f32.mrf.mxu0 }
  0xa8   : > { %v320_v36 = vpop.f32.mrf.mxu1  ;;  %v291_v37 = vpop.f32.mrf.mxu0 }
  0xa9   : > { %v323_v38 = vpack.c.bf16 %v320_v36, %v318_v34  ;;  %v294_v39 = vpack.c.bf16 %v291_v37, %v289_v35  ;;  %v1363_v34 = vld [vmem:[#allocation4 + $0x140] sm:$0xff]  ;;  %v1366_v35 = vld [vmem:[#allocation4 + $0x148] sm:$0xff]  ;;  %v1370_v37 = vld [vmem:[#allocation4 + $0x50] sm:$0xff] }
  0xaa   : > { %634 = vmatpush.msra.mxu1 %v1370_v37 }
  0xab   : > { %954 = vmatmul.msk.bf16.vlgmr.msra.gmra.mxu2 %vm272_vm1, %v323_v38  ;;  %955 = vmatmul.msk.bf16.vlgmr.msra.gmra.mxu3 %vm272_vm1, %v323_v38  ;;  %v1372_v38 = vld [vmem:[#allocation4 + $0x58] sm:$0xff] }
  0xac   : > { %964 = vmatmul.msk.bf16.vlgmr.msrb.gmra.mxu0 %vm272_vm1, %v294_v39  ;;  %965 = vmatmul.msk.bf16.vlgmr.msrb.gmra.mxu1 %vm272_vm1, %v294_v39  ;;  %v1375_v39 = vld [vmem:[#allocation4 + $0x130] sm:$0xff] }
  0xad   : > { %644 = vmatpush.msra.mxu2 %v1238_v54  ;;  %684 = vmatpush.msrb.mxu0 %v1240_v55 }
  0xae   : > { %664 = vmatpush.msra.mxu3 %v1254_v61  ;;  %635 = vmatpush.msra.mxu1 %v1394_v45 }
  0xaf   : > { %645 = vmatpush.msra.mxu2 %v1242_v56  ;;  %685 = vmatpush.msrb.mxu0 %v1246_v57 }
  0xb0   : > { %665 = vmatpush.msra.mxu3 %v1266_v1  ;;  %636 = vmatpush.msra.mxu1 %v1406_v49 }
  0xb1   : > { %646 = vmatpush.msra.mxu2 %v1248_v58  ;;  %686 = vmatpush.msrb.mxu0 %v1250_v59 }
  0xb2   : > { %666 = vmatpush.msra.mxu3 %v1274_v4  ;;  %637 = vmatpush.msra.mxu1 %v1418_v53 }
  0xb3   : > { %647 = vmatpush.msra.mxu2 %v1261_v63  ;;  %687 = vmatpush.msrb.mxu0 %v1264_v0 }
  0xb4   : > { %667 = vmatpush.msra.mxu3 %v1286_v8 }
  0xb5   : > { %648 = vmatpush.msra.mxu2 %v1277_v5  ;;  %688 = vmatpush.msrb.mxu0 %v1280_v6 }
  0xb6   : > { %668 = vmatpush.msra.mxu3 %v1298_v12 }
  0xb7   : > { %649 = vmatpush.msra.mxu2 %v1289_v9  ;;  %689 = vmatpush.msrb.mxu0 %v1292_v10 }
  0xb8   : > { %669 = vmatpush.msra.mxu3 %v1310_v16 }
  0xb9   : > { %650 = vmatpush.msra.mxu2 %v1301_v13  ;;  %690 = vmatpush.msrb.mxu0 %v1304_v14 }
  0xba   : > { %670 = vmatpush.msra.mxu3 %v1324_v21 }
  0xbb   : > { %970 = vmatmul.msk.bf16.vlgmr.msrb.gmra.mxu2 %vm272_vm1, %v993_v40  ;;  %691 = vmatpush.msrb.mxu0 %v1316_v18  ;;  %v1378_v40 = vld [vmem:[#allocation4 + $0x138] sm:$0xff] }
  0xbc   : > { %651 = vmatpush.msra.mxu2 %v1313_v17  ;;  %671 = vmatpush.msra.mxu3 %v1336_v25 }
  0xbd   : > { %692 = vmatpush.msrb.mxu0 %v1330_v23 }
  0xbe   : > { %652 = vmatpush.msra.mxu2 %v1327_v22  ;;  %672 = vmatpush.msra.mxu3 %v1348_v29 }
  0xbf   : > { %693 = vmatpush.msrb.mxu0 %v1342_v27 }
  0xc0   : > { %653 = vmatpush.msra.mxu2 %v1339_v26  ;;  %673 = vmatpush.msra.mxu3 %v1360_v33 }
  0xc1   : > { %694 = vmatpush.msrb.mxu0 %v1354_v31 }
  0xc2   : > { %654 = vmatpush.msra.mxu2 %v1351_v30  ;;  %674 = vmatpush.msra.mxu3 %v1372_v38 }
  0xc3   : > { %695 = vmatpush.msrb.mxu0 %v1366_v35 }
  0xc4   : > { %655 = vmatpush.msra.mxu2 %v1363_v34  ;;  %675 = vmatpush.msra.mxu3 %v1400_v47 }
  0xc5   : > { %696 = vmatpush.msrb.mxu0 %v1378_v40 }
  0xc6   : > { %656 = vmatpush.msra.mxu2 %v1375_v39  ;;  %676 = vmatpush.msra.mxu3 %v1410_v51 }
  0xc7   : > { %697 = vmatpush.msrb.mxu0 %v1386_v42 }
  0xc8   : > { %657 = vmatpush.msra.mxu2 %v1383_v41 }
  0xc9   : > { %698 = vmatpush.msrb.mxu0 %v1402_v48 }
  0xca   : > { %658 = vmatpush.msra.mxu2 %v1396_v46 }
  0xcb   : > { %699 = vmatpush.msrb.mxu0 %v1414_v52 }
  0xcc   : > { %659 = vmatpush.msra.mxu2 %v1408_v50 }
  0xce   : > { %726 = vmatpush.msrb.mxu2 %v1238_v54  ;;  %v1436_v54 = vld [vmem:[#allocation4 + $0x8] sm:$0xff] }
  0xd0   : > { %727 = vmatpush.msrb.mxu2 %v1242_v56 }
  0xd2   : > { %728 = vmatpush.msrb.mxu2 %v1248_v58 }
  0xd4   : > { %729 = vmatpush.msrb.mxu2 %v1261_v63 }
  0xd6   : > { %730 = vmatpush.msrb.mxu2 %v1277_v5 }
  0xd8   : > { %731 = vmatpush.msrb.mxu2 %v1289_v9 }
  0xda   : > { %732 = vmatpush.msrb.mxu2 %v1301_v13 }
  0xdc   : > { %733 = vmatpush.msrb.mxu2 %v1313_v17 }
  0xde   : > { %734 = vmatpush.msrb.mxu2 %v1327_v22 }
  0xe0   : > { %735 = vmatpush.msrb.mxu2 %v1339_v26 }
  0xe2   : > { %736 = vmatpush.msrb.mxu2 %v1351_v30 }
  0xe4   : > { %737 = vmatpush.msrb.mxu2 %v1363_v34 }
  0xe6   : > { %738 = vmatpush.msrb.mxu2 %v1375_v39 }
  0xe8   : > { %739 = vmatpush.msrb.mxu2 %v1383_v41 }
  0xea   : > { %740 = vmatpush.msrb.mxu2 %v1396_v46 }
  0xec   : > { %741 = vmatpush.msrb.mxu2 %v1408_v50 }
 0x129   : > { %v427_v58 = vpop.f32.mrf.mxu1 }
 0x12e   : > { %v1268_v2 = vpop.f32.mrf.mxu2  ;;  %v375_v56 = vpop.f32.mrf.mxu3 }
 0x131   : > { %v429_v63 = vpop.f32.mrf.mxu1 }
 0x136   : > { %v1318_v19 = vpop.f32.mrf.mxu2 }
 0x137   : > { %1543 = vst [vmem:[#allocation8_spill] sm:$0xff] %v1318_v19  ;;  %v1434_v19 = vld [vmem:[#allocation4] sm:$0xff] }
 0x13e   : > { %v452_v36 = vpop.f32.mrf.mxu2 }
 0x146   : > { %v454_v43 = vpop.f32.mrf.mxu2 }
 0x147   : > { %v457_v44 = vpack.c.bf16 %v454_v43, %v452_v36  ;;  %v1420_v36 = vld [vmem:[#allocation4 + $0x28] sm:$0xff]  ;;  %v1426_v43 = vld [vmem:[#allocation4 + $0x10] sm:$0xff] }
 0x148   : > { %677 = vmatpush.msra.mxu3 %v1420_v36  ;;  %638 = vmatpush.msra.mxu1 %v1426_v43 }
 0x149   : > { %982 = vmatmul.msk.bf16.vlgmr.msrb.gmra.mxu3 %vm272_vm1, %v457_v44  ;;  %983 = vmatmul.msk.bf16.vlgmr.msra.gmra.mxu0 %vm272_vm1, %v457_v44  ;;  %v1428_v44 = vld [vmem:[#allocation4 + $0x18] sm:$0xff] }
 0x14a   : > { %766 = vmatpush.msra.mxu0 %v1240_v55  ;;  %678 = vmatpush.msra.mxu3 %v1428_v44  ;;  %v413_v55 = vpop.f32.mrf.mxu0 }
 0x14b   : > { %639 = vmatpush.msra.mxu1 %v1434_v19  ;;  %v414_v5 = vadd.f32 %v413_v55, %v1268_v2 }
 0x14c   : > { %767 = vmatpush.msra.mxu0 %v1246_v57  ;;  %679 = vmatpush.msra.mxu3 %v1436_v54 }
 0x14d   : > { %706 = vmatpush.msrb.mxu1 %v1252_v60 }
 0x14e   : > { %768 = vmatpush.msra.mxu0 %v1250_v59  ;;  %746 = vmatpush.msrb.mxu3 %v1254_v61  ;;  %v377_v59 = vpop.f32.mrf.mxu3  ;;  %v518_v61 = vld [vmem:[%s1539_s3] sm:$0x3] }
 0x14f   : > { %707 = vmatpush.msrb.mxu1 %v1258_v62  ;;  %v428_v62 = vadd.f32 %v427_v58, %v375_v56 }
 0x150   : > { %769 = vmatpush.msra.mxu0 %v1264_v0  ;;  %747 = vmatpush.msrb.mxu3 %v1266_v1  ;;  %v521_v1 = vperm.slane %v518_v61, 1 }
 0x151   : > { %708 = vmatpush.msrb.mxu1 %v1272_v3 }
 0x152   : > { %770 = vmatpush.msra.mxu0 %v1280_v6  ;;  %748 = vmatpush.msrb.mxu3 %v1274_v4  ;;  %v415_v57 = vpop.f32.mrf.mxu0  ;;  %v430_v4 = vadd.f32 %v429_v63, %v377_v59 }
 0x153   : > { %709 = vmatpush.msrb.mxu1 %v1284_v7 }
 0x154   : > { %771 = vmatpush.msra.mxu0 %v1292_v10  ;;  %749 = vmatpush.msrb.mxu3 %v1286_v8  ;;  %v520_v10 = vperm.slane %v518_v61, 0 }
 0x155   : > { %710 = vmatpush.msrb.mxu1 %v1296_v11 }
 0x156   : > { %772 = vmatpush.msra.mxu0 %v1304_v14  ;;  %750 = vmatpush.msrb.mxu3 %v1298_v12  ;;  %v1544_v12 = vld [vmem:[#allocation8_spill] sm:$0xff] }
 0x157   : > { %711 = vmatpush.msrb.mxu1 %v1308_v15  ;;  %v416_v13 = vadd.f32 %v415_v57, %v1544_v12 }
 0x158   : > { %773 = vmatpush.msra.mxu0 %v1316_v18  ;;  %751 = vmatpush.msrb.mxu3 %v1310_v16 }
 0x159   : > { %712 = vmatpush.msrb.mxu1 %v1322_v20 }
 0x15a   : > { %774 = vmatpush.msra.mxu0 %v1330_v23  ;;  %752 = vmatpush.msrb.mxu3 %v1324_v21 }
 0x15b   : > { %713 = vmatpush.msrb.mxu1 %v1334_v24 }
 0x15c   : > { %775 = vmatpush.msra.mxu0 %v1342_v27  ;;  %753 = vmatpush.msrb.mxu3 %v1336_v25 }
 0x15d   : > { %714 = vmatpush.msrb.mxu1 %v1346_v28 }
 0x15e   : > { %776 = vmatpush.msra.mxu0 %v1354_v31  ;;  %754 = vmatpush.msrb.mxu3 %v1348_v29 }
 0x15f   : > { %715 = vmatpush.msrb.mxu1 %v1358_v32 }
 0x160   : > { %777 = vmatpush.msra.mxu0 %v1366_v35  ;;  %755 = vmatpush.msrb.mxu3 %v1360_v33 }
 0x161   : > { %716 = vmatpush.msrb.mxu1 %v1370_v37 }
 0x162   : > { %778 = vmatpush.msra.mxu0 %v1378_v40  ;;  %756 = vmatpush.msrb.mxu3 %v1372_v38 }
 0x163   : > { %717 = vmatpush.msrb.mxu1 %v1394_v45 }
 0x164   : > { %779 = vmatpush.msra.mxu0 %v1386_v42  ;;  %757 = vmatpush.msrb.mxu3 %v1400_v47 }
 0x165   : > { %718 = vmatpush.msrb.mxu1 %v1406_v49 }
 0x166   : > { %780 = vmatpush.msra.mxu0 %v1402_v48  ;;  %758 = vmatpush.msrb.mxu3 %v1410_v51 }
 0x167   : > { %719 = vmatpush.msrb.mxu1 %v1418_v53 }
 0x168   : > { %781 = vmatpush.msra.mxu0 %v1414_v52  ;;  %759 = vmatpush.msrb.mxu3 %v1420_v36 }
 0x169   : > { %720 = vmatpush.msrb.mxu1 %v1426_v43 }
 0x16a   : > { %760 = vmatpush.msrb.mxu3 %v1428_v44 }
 0x16b   : > { %721 = vmatpush.msrb.mxu1 %v1434_v19 }
 0x16c   : > { %761 = vmatpush.msrb.mxu3 %v1436_v54 }
 0x1c6   : > { %v509_v60 = vpop.f32.mrf.mxu0 }
 0x1c7   : > { %v515_v0 = vadd.f32 %v509_v60, %v428_v62 }
 0x1c9   : > { %v1502_v7 = vadd.f32 %v521_v1, %v515_v0 }
 0x1cb   : > { %v607_v14 = vmul.f32 %v1502_v7, %v1502_v7 }
 0x1cc   : > { %v495_v3 = vpop.f32.mrf.mxu3 }
 0x1cd   : > { %v514_v9 = vadd.f32 %v495_v3, %v414_v5 }
 0x1ce   : > { %v511_v6 = vpop.f32.mrf.mxu0 }
 0x1cf   : > { %v517_v8 = vadd.f32 %v511_v6, %v430_v4  ;;  %v1515_v16 = vadd.f32 %v520_v10, %v514_v9 }
 0x1d1   : > { %v1506_v11 = vadd.f32 %v521_v1, %v517_v8  ;;  %v606_v24 = vmul.f32 %v1515_v16, %v1515_v16 }
 0x1d3   : > { %v599_v2 = vadd.f32 %v1506_v11, %v1502_v7  ;;  %v609_v15 = vmul.f32 %v1506_v11, %v1506_v11 }
 0x1d4   : > { %v497_v17 = vpop.f32.mrf.mxu3 }
 0x1d5   : > { %v600_v18 = vrot.slane %v599_v2, 4  ;;  %v617_v19 = vadd.f32 %v609_v15, %v607_v14  ;;  %v516_v20 = vadd.f32 %v497_v17, %v416_v13 }
 0x1d7   : > { %v601_v21 = vadd.f32 %v600_v18, %v599_v2  ;;  %v618_v22 = vrot.slane %v617_v19, 4  ;;  %v1517_v23 = vadd.f32 %v520_v10, %v516_v20 }
 0x1d9   : > { %v602_v25 = vrot.slane %v601_v21, 2  ;;  %v619_v26 = vadd.f32 %v618_v22, %v617_v19  ;;  %v592_v27 = vadd.f32 %v1517_v23, %v1515_v16  ;;  %v608_v28 = vmul.f32 %v1517_v23, %v1517_v23 }
 0x1db   : > { %v593_v29 = vrot.slane %v592_v27, 4  ;;  %v610_v30 = vadd.f32 %v608_v28, %v606_v24  ;;  %v603_v31 = vadd.f32 %v602_v25, %v601_v21  ;;  %v620_v32 = vrot.slane %v619_v26, 2 }
 0x1dd   : > { %v594_v33 = vadd.f32 %v593_v29, %v592_v27  ;;  %v611_v34 = vrot.slane %v610_v30, 4  ;;  %v604_v35 = vrot.slane %v603_v31, 1  ;;  %v621_v40 = vadd.f32 %v620_v32, %v619_v26 }
 0x1df   : > { %v595_v37 = vrot.slane %v594_v33, 2  ;;  %v612_v38 = vadd.f32 %v611_v34, %v610_v30  ;;  %v605_v39 = vadd.f32 %v604_v35, %v603_v31  ;;  %v622_v46 = vrot.slane %v621_v40, 1 }
 0x1e1   : > { %660 = vmatmul.f32.vlgmr.msra.gmra.mxu2 %v605_v39  ;;  %700 = vmatmul.f32.vlgmr.msrb.gmra.mxu0 %v605_v39  ;;  %v596_v41 = vadd.f32 %v595_v37, %v594_v33  ;;  %v613_v42 = vrot.slane %v612_v38, 2  ;;  %v623_v49 = vadd.f32 %v622_v46, %v621_v40 }
 0x1e3   : > { %v597_v45 = vrot.slane %v596_v41, 1  ;;  %v614_v48 = vadd.f32 %v613_v42, %v612_v38 }
 0x1e5   : > { %v598_v47 = vadd.f32 %v597_v45, %v596_v41  ;;  %v615_v50 = vrot.slane %v614_v48, 1 }
 0x1e7   : > { %640 = vmatmul.f32.vlgmr.msra.gmra.mxu1 %v598_v47  ;;  %680 = vmatmul.f32.vlgmr.msra.gmra.mxu3 %v598_v47  ;;  %v616_v51 = vadd.f32 %v615_v50, %v614_v48 }
 0x1e9   : > { %742 = vmatmul.f32.vlgmr.msrb.gmra.mxu2 %v623_v49  ;;  %782 = vmatmul.f32.vlgmr.msra.gmra.mxu0 %v623_v49 }
 0x1ef   : > { %722 = vmatmul.f32.vlgmr.msrb.gmra.mxu1 %v616_v51  ;;  %762 = vmatmul.f32.vlgmr.msrb.gmra.mxu3 %v616_v51 }
 0x25e   : > { %v701_v43 = vpop.f32.mrf.mxu0 }
 0x264   : > { %v641_v52 = vpop.f32.mrf.mxu1  ;;  %v661_v53 = vpop.f32.mrf.mxu2 }
 0x265   : > { %v662_v36 = vadd.f32 %v661_v53, %v641_v52 }
 0x266   : > { %v783_v63 = vpop.f32.mrf.mxu0 }
 0x267   : > { %v704_v54 = vmul.f32 0.00390625, %v662_v36 }
 0x269   : > { %v788_v59 = vmul.f32 %v704_v54, %v704_v54  ;;  %v794_v19 = vperm.slane %v704_v54, 0 }
 0x26a   : > { %v681_v44 = vpop.f32.mrf.mxu3 }
 0x26b   : > { %v702_v57 = vadd.f32 %v701_v43, %v681_v44  ;;  %v796_v25 = vsub.f32 %v1515_v16, %v794_v19  ;;  %v798_v26 = vsub.f32 %v1517_v23, %v794_v19 }
 0x26c   : > { %v723_v55 = vpop.f32.mrf.mxu1  ;;  %v743_v56 = vpop.f32.mrf.mxu2 }
 0x26d   : > { %v744_v58 = vadd.f32 %v743_v56, %v723_v55  ;;  %v705_v61 = vmul.f32 0.00390625, %v702_v57 }
 0x26f   : > { %v786_v60 = vmul.f32 0.00390625, %v744_v58  ;;  %v789_v4 = vmul.f32 %v705_v61, %v705_v61  ;;  %v795_v28 = vperm.slane %v705_v61, 0 }
 0x271   : > { %v790_v62 = vsub.f32 %v786_v60, %v788_v59  ;;  %v797_v16 = vsub.f32 %v1502_v7, %v795_v28  ;;  %v799_v35 = vsub.f32 %v1506_v11, %v795_v28 }
 0x272   : > { %v763_v0 = vpop.f32.mrf.mxu3 }
 0x273   : > { %v792_v1 = vmax.f32 %v790_v62, 0.0  ;;  %v784_v3 = vadd.f32 %v783_v63, %v763_v0 }
 0x275   : > { %v800_v5 = vadd.f32 1e-05, %v792_v1  ;;  %v787_v6 = vmul.f32 0.00390625, %v784_v3 }
 0x277   : > { %1030 = vrsqrt.f32 %v800_v5  ;;  %v791_v8 = vsub.f32 %v787_v6, %v789_v4  ;;  %vm808_vm3 = vweird.f32 %v800_v5 }
 0x279   : > { %v793_v9 = vmax.f32 %v791_v8, 0.0 }
 0x27b   : > { %v801_v10 = vadd.f32 1e-05, %v793_v9 }
 0x27d   : > { %v1031_v12 = vpop.eup %1030  ;;  %1032 = vrsqrt.f32 %v801_v10  ;;  %vm818_vm6 = vweird.f32 %v801_v10 }
 0x27e   : > { %v803_v13 = vmul.f32 %v1031_v12, %v800_v5  ;;  %vm809_vm2 = vweird.f32 %v1031_v12 }
 0x27f   : > { %vm810_vm4 = vmor %vm808_vm3, %vm809_vm2 }
 0x280   : > { %v804_v14 = vmul.f32 %v1031_v12, %v803_v13 }
 0x282   : > { %v805_v2 = vmul.f32 0.5, %v804_v14 }
 0x283   : > { %v1033_v15 = vpop.eup %1032 }
 0x284   : > { %v806_v17 = vsub.f32 1.5, %v805_v2  ;;  %v813_v18 = vmul.f32 %v1033_v15, %v801_v10  ;;  %vm819_vm5 = vweird.f32 %v1033_v15 }
 0x285   : > { %vm820_vm9 = vmor %vm818_vm6, %vm819_vm5 }
 0x286   : > { %v807_v20 = vmul.f32 %v1031_v12, %v806_v17  ;;  %v814_v21 = vmul.f32 %v1033_v15, %v813_v18 }
 0x288   : > { %v811_v22 = vsel %vm810_vm4, %v1031_v12, %v807_v20  ;;  %v815_v24 = vmul.f32 0.5, %v814_v21 }
 0x289   : > { %v822_v27 = vperm.slane %v811_v22, 0 }
 0x28a   : > { %v816_v29 = vsub.f32 1.5, %v815_v24 }
 0x28b   : > { %v824_v30 = vmul.f32 %v822_v27, %v796_v25  ;;  %v826_v31 = vmul.f32 %v822_v27, %v798_v26 }
 0x28c   : > { %v817_v32 = vmul.f32 %v1033_v15, %v816_v29 }
 0x28d   : > { %vm828_vm7 = vcmp.ge.f32.partialorder %v824_v30, 0.0  ;;  %vm830_vm8 = vcmp.ge.f32.partialorder %v826_v31, 0.0  ;;  %v832_v33 = vmul.f32 0.1, %v824_v30  ;;  %v834_v34 = vmul.f32 0.1, %v826_v31 }
 0x28e   : > { %v821_v23 = vsel %vm820_vm9, %v1033_v15, %v817_v32 }
 0x28f   : > { %v836_v37 = vsel %vm828_vm7, %v824_v30, %v832_v33  ;;  %v838_v38 = vsel %vm830_vm8, %v826_v31, %v834_v34  ;;  %v823_v39 = vperm.slane %v821_v23, 0 }
 0x290   : > { %840 = vst [vmem:[%s258_s28] sm:$0xff] %v836_v37 }
 0x291   : > { %842 = vst [vmem:[%s258_s28 + $0x10] sm:$0xff] %v838_v38  ;;  %v825_v40 = vmul.f32 %v823_v39, %v797_v16  ;;  %v827_v41 = vmul.f32 %v823_v39, %v799_v35 }
 0x293   : > { %vm829_vm10 = vcmp.ge.f32.partialorder %v825_v40, 0.0  ;;  %vm831_vm11 = vcmp.ge.f32.partialorder %v827_v41, 0.0  ;;  %v833_v42 = vmul.f32 0.1, %v825_v40  ;;  %v835_v45 = vmul.f32 0.1, %v827_v41 }
 0x295   : > { %v837_v46 = vsel %vm829_vm10, %v825_v40, %v833_v42  ;;  %v839_v47 = vsel %vm831_vm11, %v827_v41, %v835_v45 }
 0x296   : > { %841 = vst [vmem:[%s258_s28 + $0x8] sm:$0xff] %v837_v46 }
 0x297   : > { %843 = vst [vmem:[%s258_s28 + $0x18] sm:$0xff] %v839_v47 }
 0x298 PF: > { %s17_s18 = sadd.s32 1, %s1108_s18  }
 0x299   : > { %p14_p7 = scmp.ge.s32.totalorder %s17_s18, 4  }
 0x29b   :  { %16 = sbr.rel (!%p14_p7) target bundleno = 2 (0x2), region = 83 }
 0x2a0   :  { %865 = vsyncpa [#allocation3], 1 }
 0x2a1   :  { %867 = vsyncpa [#allocation3 + $0x1], 1 }
 0x2a2   :  { %868 = vsyncpa [#allocation5], 1 }

// kernel: tile.43
= control target key start
LH: loop header
LB: loop body
LE: loop exit
PB: predicated region body
PF: predicated region fallthrough
CT: control target
= control target key end

     0   :  { %s22_s0 = inlined_call_operand.vmem [shape: f32[32], index: 0, kind: input, shape index: {}]   ;;  %s23_s1 = inlined_call_operand.vmem [shape: f32[8,32], index: 1, kind: output, shape index: {}]  }
   0x1   :  { %v4_v0 = vld [vmem:[%s22_s0] ss:$0 sm:$0xff] }
   0x2   :  { %5 = vst [vmem:[%s23_s1] sm:$0xff] %v4_v0 }

// kernel: tile.44
= control target key start
LH: loop header
LB: loop body
LE: loop exit
PB: predicated region body
PF: predicated region fallthrough
CT: control target
= control target key end

     0   :  { %s7_s6 = smov 3  ;;  %s46_s9 = smov 96   ;;  %vm4_vm0 = vcmask 261120   ;;  %vm11_vm1 = vcmask 1048320   ;;  %vm18_vm2 = vcmask 785920   ;;  %vm25_vm3 = vcmask 523520   ;;  %s77_s0 = inlined_call_operand.vmem [shape: f32[8,32], index: 0, kind: input, shape index: {}]   ;;  %s78_s1 = inlined_call_operand.vmem [shape: f32[1,256], index: 1, kind: output, shape index: {}]  }
   0x1   :  { %v39_v0 = vld [vmem:[%s77_s0 + $0x3] ss:$4 sm:%s7_s6]   ;;  %s21_s10 = smov 3  ;;  %s14_s13 = smov 3 }
   0x2   :  { %9 = vrot.lane.b32.xlu0 %v39_v0, %s46_s9  ;;  %v41_v1 = vld [vmem:[%s77_s0 + $0x1] ss:$4 sm:%s21_s10]   ;;  %s47_s14 = smov 32   ;;  %s48_s17 = smov 64  }
   0x3   :  { %23 = vrot.lane.b32.xlu1 %v41_v1, %s47_s14  ;;  %v40_v2 = vld [vmem:[%s77_s0 + $0x2] ss:$4 sm:%s14_s13]   ;;  %s2_s18 = smov 3 }
   0x4   :  { %v3_v3 = vld [vmem:[%s77_s0] ss:$4 sm:%s2_s18]  }
   0x5   :  { %5 = vst.msk [vmem:[#allocation0] ss:$8 sm:$0x3] %vm4_vm0, %v3_v3  }
   0xa   :  { %16 = vrot.lane.b32.xlu0 %v40_v2, %s48_s17 }
  0x74   :  { %v10_v4 = vpop.permute.xlu0 %9  }
  0x75   :  { %12 = vst.msk [vmem:[#allocation0] ss:$8 sm:$0x3] %vm11_vm1, %v10_v4   ;;  %v24_v5 = vpop.permute.xlu1 %23  }
  0x7c   :  { %v17_v6 = vpop.permute.xlu0 %16  }
  0x7d   :  { %19 = vst.msk [vmem:[#allocation0] ss:$8 sm:$0x3] %vm18_vm2, %v17_v6  }
  0x7e   :  { %26 = vst.msk [vmem:[#allocation0] ss:$8 sm:$0x3] %vm25_vm3, %v24_v5  }
  0x85   :  { %v29_v7 = vld [vmem:[#allocation0] sm:$0x1]  ;;  %v34_v8 = vld [vmem:[#allocation0 + $0x8] sm:$0x1] }
  0x86   :  { %32 = vst [vmem:[%s78_s1] sm:$0x1] %v29_v7 }
  0x87   :  { %42 = vst [vmem:[%s78_s1 + $0x1] sm:$0x1] %v34_v8 }

// kernel: encoder_forward.5
= control target key start
LH: loop header
LB: loop body
LE: loop exit
PB: predicated region body
PF: predicated region fallthrough
CT: control target
= control target key end

     0   :  { %s4106_s27 = smov 0   ;;  %s6422_s0 = inlined_call_operand.vmem [shape: f32[2,18,288], index: 0, kind: input, shape index: {}]   ;;  %s6423_s1 = inlined_call_operand.vmem [shape: bf16[3,8,18], index: 1, kind: input, shape index: {}]   ;;  %s6424_s2 = inlined_call_operand.vmem [shape: bf16[3,288,256], index: 2, kind: input, shape index: {}]   ;;  %s6425_s3 = inlined_call_operand.vmem [shape: f32[1,256], index: 3, kind: input, shape index: {}]   ;;  %s6426_s4 = inlined_call_operand.vmem [shape: f32[256,256], index: 4, kind: input, shape index: {}]   ;;  %s6427_s5 = inlined_call_operand.vmem [shape: bf16[2,8,8], index: 5, kind: input, shape index: {}]   ;;  %s6428_s6 = inlined_call_operand.vmem [shape: bf16[3,256,256], index: 6, kind: input, shape index: {}]   ;;  %s6429_s7 = inlined_call_operand.vmem [shape: f32[1,256], index: 7, kind: input, shape index: {}]   ;;  %s6430_s8 = inlined_call_operand.vmem [shape: f32[2,8,256], index: 8, kind: output, shape index: {}]  }
   0x1 LB: > { %s2783_s28 = sadd.s32 4294967295, %s4059_s27   ;;  %p2787_p0 = scmp.ge.s32.totalorder %s4059_s27, 1  ;;  %s4059_s27 = sphi %s4106_s27, %s18_s27  }
   0x2   : > { %p262_p1 = scmp.lt.s32.totalorder %s4059_s27, 3 }
   0x4   : > { %p263_p2 = pnand %p2787_p0, %p262_p1 }
   0x6   : > { %266 = sbr.rel (%p263_p2) target bundleno = 1321 (0x529), region = 52 }
   0xb   : > { %p296_p3 = scmp.lt.s32.totalorder %s2783_s28, 1  ;;  %vm391_vm0 = vcmask 1040384   ;;  %v2892_v14 = vld [vmem:[%s6424_s2 + $0x190] sm:$0xf]  ;;  %v3819_v18 = vld [vmem:[%s6424_s2 + $0x194] sm:$0xf0] }
   0xc   : > { %v386_v19 = vld [vmem:[%s6423_s1] sm:$0xf]  ;;  %vm387_vm1 = vcmask 146432   ;;  %v3818_v20 = vld [vmem:[%s6424_s2 + $0x194] sm:$0xf]  ;;  %v2893_v25 = vor.u32 %v3819_v18, %v2892_v14  ;;  %vm743_vm2 = vcmask 261120  }
   0xd   : > { %s6445_s28 = smov (!%p296_p3, %s2783_s28), 1  ;;  %v2894_v21 = vld [vmem:[%s6424_s2 + $0x198] sm:$0xf0]  ;;  %v2956_v22 = vld [vmem:[%s6424_s2 + $0x210] sm:$0xf]  ;;  %vm1713_vm10 = vcmask 1043456  }
   0xe   : > { %s3972_s29 = smul.u32 72, %s6445_s28  ;;  %v3835_v24 = vld [vmem:[%s6424_s2 + $0x214] sm:$0xf0]  ;;  %v2972_v26 = vld [vmem:[%s6424_s2 + $0x230] sm:$0xf]  ;;  %v2897_v31 = vor.u32 %v3818_v20, %v2894_v21  ;;  %vm1709_vm11 = vcmask 64512  }
   0xf   : > { %v3839_v27 = vld [vmem:[%s6424_s2 + $0x234] sm:$0xf0]  ;;  %v4172_v28 = vld [vmem:[%s6423_s1 + $0x4] sm:$0xf]  ;;  %v2884_v29 = vld [vmem:[%s6424_s2 + $0x180] sm:$0xf]  ;;  %v2957_v34 = vor.u32 %v3835_v24, %v2956_v22 }
  0x10   : > { %s300_s10 = scalar_lea.vmem %s6422_s0, %s3972_s29  ;;  %v3817_v30 = vld [vmem:[%s6424_s2 + $0x184] sm:$0xf0]  ;;  %v3816_v32 = vld [vmem:[%s6424_s2 + $0x184] sm:$0xf]  ;;  %v2886_v33 = vld [vmem:[%s6424_s2 + $0x188] sm:$0xf0]  ;;  %v2973_v36 = vor.u32 %v3839_v27, %v2972_v26 }
  0x11   : > { %v377_v0 = vld [vmem:[%s300_s10 + $0x30] sm:$0x3]  ;;  %v378_v1 = vld [vmem:[%s300_s10 + $0x38] sm:$0x3]  ;;  %v371_v2 = vld [vmem:[%s300_s10] sm:$0xff]  ;;  %v2885_v38 = vor.u32 %v3817_v30, %v2884_v29  ;;  %v2889_v43 = vor.u32 %v3816_v32, %v2886_v33  ;;  %s3767_s17 = sshll.u32 %s6445_s28, 4 }
  0x12   : > { %v383_v3 = vpack.c.bf16 %v377_v0, %v377_v0  ;;  %v384_v4 = vpack.c.bf16 %v378_v1, %v378_v1  ;;  %v374_v5 = vld [vmem:[%s300_s10 + $0x18] sm:$0xff]  ;;  %v372_v6 = vld [vmem:[%s300_s10 + $0x8] sm:$0xff]  ;;  %v375_v7 = vld [vmem:[%s300_s10 + $0x20] sm:$0xff]  ;;  %s305_s20 = scalar_lea.vmem %s6430_s8, %s3767_s17 }
  0x13   : > { %v379_v8 = vld [vmem:[%s300_s10 + $0x40] sm:$0x3]  ;;  %v4128_v12 = vpack.c.bf16 %v374_v5, %v371_v2  ;;  %v4130_v13 = vpack.c.bf16 %v375_v7, %v372_v6  ;;  %v373_v16 = vld [vmem:[%s300_s10 + $0x10] sm:$0xff]  ;;  %v376_v17 = vld [vmem:[%s300_s10 + $0x28] sm:$0xff] }
  0x14   : > { %v4121_v9 = vsel %vm391_vm0, %v383_v3, 0  ;;  %v4124_v10 = vsel %vm391_vm0, %v384_v4, 0  ;;  %v385_v11 = vpack.c.bf16 %v379_v8, %v379_v8  ;;  %v4157_v23 = vpack.c.bf16 %v376_v17, %v373_v16  ;;  %v2948_v35 = vld [vmem:[%s6424_s2 + $0x200] sm:$0xf]  ;;  %v3833_v37 = vld [vmem:[%s6424_s2 + $0x204] sm:$0xf0] }
  0x15   : > { %407 = vmatpush.bf16.msra.mxu0 %v4121_v9  ;;  %420 = vmatpush.bf16.msra.mxu1 %v4124_v10  ;;  %v2964_v39 = vld [vmem:[%s6424_s2 + $0x220] sm:$0xf]  ;;  %v3837_v40 = vld [vmem:[%s6424_s2 + $0x224] sm:$0xf0]  ;;  %v2876_v41 = vld [vmem:[%s6424_s2 + $0x170] sm:$0xf]  ;;  %v2949_v46 = vor.u32 %v3833_v37, %v2948_v35 }
  0x16   : > { %490 = vmatpush.bf16.msra.mxu3 %v4121_v9  ;;  %v4137_v15 = vsel %vm391_vm0, %v385_v11, 0  ;;  %v3815_v42 = vld [vmem:[%s6424_s2 + $0x174] sm:$0xf0]  ;;  %v3814_v44 = vld [vmem:[%s6424_s2 + $0x174] sm:$0xf]  ;;  %v2965_v47 = vor.u32 %v3837_v40, %v2964_v39 }
  0x17   : > { %433 = vmatpush.bf16.msra.mxu2 %v4137_v15  ;;  %v2878_v45 = vld [vmem:[%s6424_s2 + $0x178] sm:$0xf0]  ;;  %v2940_v48 = vld [vmem:[%s6424_s2 + $0x1f0] sm:$0xf]  ;;  %v3831_v49 = vld [vmem:[%s6424_s2 + $0x1f4] sm:$0xf0]  ;;  %v2877_v50 = vor.u32 %v3815_v42, %v2876_v41 }
  0x18   : > { %v2868_v51 = vld [vmem:[%s6424_s2 + $0x160] sm:$0xf]  ;;  %v3813_v52 = vld [vmem:[%s6424_s2 + $0x164] sm:$0xf0]  ;;  %v2881_v53 = vor.u32 %v3814_v44, %v2878_v45  ;;  %v3812_v54 = vld [vmem:[%s6424_s2 + $0x164] sm:$0xf]  ;;  %v2941_v56 = vor.u32 %v3831_v49, %v2940_v48 }
  0x19   : > { %408 = vmatpush.bf16.msra.mxu0 %v4128_v12  ;;  %421 = vmatpush.bf16.msra.mxu1 %v4130_v13  ;;  %v2870_v55 = vld [vmem:[%s6424_s2 + $0x168] sm:$0xf0]  ;;  %v2932_v57 = vld [vmem:[%s6424_s2 + $0x1e0] sm:$0xf]  ;;  %v2869_v58 = vor.u32 %v3813_v52, %v2868_v51  ;;  %v3829_v59 = vld [vmem:[%s6424_s2 + $0x1e4] sm:$0xf0] }
  0x1a   : > { %491 = vmatpush.bf16.msra.mxu3 %v4128_v12  ;;  %v3834_v60 = vld [vmem:[%s6424_s2 + $0x214] sm:$0xf]  ;;  %v2958_v61 = vld [vmem:[%s6424_s2 + $0x218] sm:$0xf0]  ;;  %v2873_v62 = vor.u32 %v3812_v54, %v2870_v55  ;;  %v2860_v63 = vld [vmem:[%s6424_s2 + $0x150] sm:$0xf]  ;;  %v2933_v3 = vor.u32 %v3829_v59, %v2932_v57 }
  0x1b   : > { %434 = vmatpush.bf16.msra.mxu2 %v4157_v23  ;;  %v3811_v0 = vld [vmem:[%s6424_s2 + $0x154] sm:$0xf0]  ;;  %v3810_v1 = vld [vmem:[%s6424_s2 + $0x154] sm:$0xf]  ;;  %v2862_v2 = vld [vmem:[%s6424_s2 + $0x158] sm:$0xf0]  ;;  %v2961_v5 = vor.u32 %v3834_v60, %v2958_v61 }
  0x1c   : > { %2791 = vmatmul.msk.bf16.vlgmr.msra.gmra.mxu0 %vm387_vm1, %v386_v19  ;;  %2792 = vmatmul.msk.bf16.vlgmr.msra.gmra.mxu1 %vm387_vm1, %v386_v19  ;;  %v2924_v4 = vld [vmem:[%s6424_s2 + $0x1d0] sm:$0xf]  ;;  %v3827_v6 = vld [vmem:[%s6424_s2 + $0x1d4] sm:$0xf0]  ;;  %v2861_v7 = vor.u32 %v3811_v0, %v2860_v63  ;;  %v3832_v8 = vld [vmem:[%s6424_s2 + $0x204] sm:$0xf]  ;;  %v2865_v14 = vor.u32 %v3810_v1, %v2862_v2 }
  0x1d   : > { %516 = vmatpush.bf16.msrb.mxu1 %v4137_v15  ;;  %503 = vmatpush.bf16.msrb.mxu0 %v4124_v10  ;;  %v2950_v11 = vld [vmem:[%s6424_s2 + $0x208] sm:$0xf0]  ;;  %v2852_v16 = vld [vmem:[%s6424_s2 + $0x140] sm:$0xf]  ;;  %v3809_v17 = vld [vmem:[%s6424_s2 + $0x144] sm:$0xf0]  ;;  %v2925_v20 = vor.u32 %v3827_v6, %v2924_v4 }
  0x1e   : > { %2795 = vmatmul.msk.bf16.vlgmr.msra.gmra.mxu3 %vm387_vm1, %v4172_v28  ;;  %2793 = vmatmul.msk.bf16.vlgmr.msra.gmra.mxu2 %vm387_vm1, %v386_v19  ;;  %v3808_v18 = vld [vmem:[%s6424_s2 + $0x144] sm:$0xf]  ;;  %v2854_v19 = vld [vmem:[%s6424_s2 + $0x148] sm:$0xf0]  ;;  %v2916_v21 = vld [vmem:[%s6424_s2 + $0x1c0] sm:$0xf]  ;;  %v2953_v22 = vor.u32 %v3832_v8, %v2950_v11 }
  0x1f   : > { %747 = vmatpush.bf16.msrb.mxu2 %v2893_v25  ;;  %760 = vmatpush.bf16.msrb.mxu3 %v2957_v34  ;;  %v3825_v24 = vld [vmem:[%s6424_s2 + $0x1c4] sm:$0xf0]  ;;  %v2853_v25 = vor.u32 %v3809_v17, %v2852_v16  ;;  %v3830_v26 = vld [vmem:[%s6424_s2 + $0x1f4] sm:$0xf]  ;;  %v2942_v27 = vld [vmem:[%s6424_s2 + $0x1f8] sm:$0xf0] }
  0x20   : > { %v3806_v29 = vld [vmem:[%s6424_s2 + $0x134] sm:$0xf]  ;;  %v2846_v30 = vld [vmem:[%s6424_s2 + $0x138] sm:$0xf0]  ;;  %v2945_v32 = vor.u32 %v3830_v26, %v2942_v27  ;;  %v2908_v33 = vld [vmem:[%s6424_s2 + $0x1b0] sm:$0xf] }
  0x21   : > { %517 = vmatpush.bf16.msrb.mxu1 %v4157_v23  ;;  %504 = vmatpush.bf16.msrb.mxu0 %v4130_v13  ;;  %v3823_v34 = vld [vmem:[%s6424_s2 + $0x1b4] sm:$0xf0]  ;;  %v2849_v35 = vor.u32 %v3806_v29, %v2846_v30  ;;  %v2838_v37 = vld [vmem:[%s6424_s2 + $0x128] sm:$0xf0]  ;;  %v3797_v44 = vld [vmem:[%s6424_s2 + $0xe4] sm:$0xf0] }
  0x22   : > { %v3799_v39 = vld [vmem:[%s6424_s2 + $0xf4] sm:$0xf0]  ;;  %v2909_v40 = vor.u32 %v3823_v34, %v2908_v33  ;;  %v3086_v48 = vld [vmem:[%s6424_s2 + $0xd0] sm:$0xf]  ;;  %v2900_v51 = vld [vmem:[%s6424_s2 + $0x1a0] sm:$0xf] }
  0x23   : > { %748 = vmatpush.bf16.msrb.mxu2 %v2885_v38  ;;  %761 = vmatpush.bf16.msrb.mxu3 %v2949_v46  ;;  %v3102_v38 = vld [vmem:[%s6424_s2 + $0xf0] sm:$0xf]  ;;  %v3821_v52 = vld [vmem:[%s6424_s2 + $0x1a4] sm:$0xf0]  ;;  %v3828_v55 = vld [vmem:[%s6424_s2 + $0x1e4] sm:$0xf] }
  0x24   : > { %v3103_v42 = vor.u32 %v3799_v39, %v3102_v38  ;;  %v2844_v46 = vld [vmem:[%s6424_s2 + $0x130] sm:$0xf]  ;;  %v2901_v54 = vor.u32 %v3821_v52, %v2900_v51  ;;  %v3783_v59 = vld [vmem:[%s6424_s2 + $0x74] sm:$0xf0]  ;;  %v2836_v61 = vld [vmem:[%s6424_s2 + $0x120] sm:$0xf] }
  0x25   : > { %786 = vmatpush.bf16.msra.mxu1 %v2897_v31  ;;  %779 = vmatpush.bf16.msra.mxu0 %v2973_v36  ;;  %v2917_v31 = vor.u32 %v3825_v24, %v2916_v21  ;;  %v3804_v36 = vld [vmem:[%s6424_s2 + $0x124] sm:$0xf]  ;;  %v3038_v57 = vld [vmem:[%s6424_s2 + $0x70] sm:$0xf]  ;;  %v3078_v63 = vld [vmem:[%s6424_s2 + $0xc0] sm:$0xf] }
  0x26   : > { %v2841_v41 = vor.u32 %v3804_v36, %v2838_v37  ;;  %v3039_v60 = vor.u32 %v3783_v59, %v3038_v57  ;;  %v3793_v1 = vld [vmem:[%s6424_s2 + $0xc4] sm:$0xf0]  ;;  %v3826_v2 = vld [vmem:[%s6424_s2 + $0x1d4] sm:$0xf]  ;;  %v3030_v6 = vld [vmem:[%s6424_s2 + $0x60] sm:$0xf] }
  0x27   : > { %749 = vmatpush.bf16.msrb.mxu2 %v2877_v50  ;;  %762 = vmatpush.bf16.msrb.mxu3 %v2941_v56  ;;  %v3795_v50 = vld [vmem:[%s6424_s2 + $0xd4] sm:$0xf0]  ;;  %v2934_v56 = vld [vmem:[%s6424_s2 + $0x1e8] sm:$0xf0]  ;;  %v3079_v4 = vor.u32 %v3793_v1, %v3078_v63  ;;  %v3070_v11 = vld [vmem:[%s6424_s2 + $0xb0] sm:$0xf] }
  0x28   : > { %v3824_v17 = vld [vmem:[%s6424_s2 + $0x1c4] sm:$0xf]  ;;  %v3779_v21 = vld [vmem:[%s6424_s2 + $0x54] sm:$0xf0]  ;;  %v3822_v26 = vld [vmem:[%s6424_s2 + $0x1b4] sm:$0xf] }
  0x29   : > { %787 = vmatpush.bf16.msra.mxu1 %v2889_v43  ;;  %780 = vmatpush.bf16.msra.mxu0 %v2965_v47  ;;  %v3094_v43 = vld [vmem:[%s6424_s2 + $0xe0] sm:$0xf]  ;;  %v3807_v47 = vld [vmem:[%s6424_s2 + $0x134] sm:$0xf0]  ;;  %v2910_v27 = vld [vmem:[%s6424_s2 + $0x1b8] sm:$0xf0] }
  0x2a   : > { %v3095_v45 = vor.u32 %v3797_v44, %v3094_v43  ;;  %v2845_v49 = vor.u32 %v3807_v47, %v2844_v46  ;;  %v2913_v29 = vor.u32 %v3822_v26, %v2910_v27  ;;  %v3838_v30 = vld [vmem:[%s6424_s2 + $0x234] sm:$0xf]  ;;  %v3777_v34 = vld [vmem:[%s6424_s2 + $0x44] sm:$0xf0]  ;;  %v3054_v36 = vld [vmem:[%s6424_s2 + $0x90] sm:$0xf] }
  0x2b   : > { %750 = vmatpush.bf16.msrb.mxu2 %v2869_v58  ;;  %763 = vmatpush.bf16.msrb.mxu3 %v2933_v3  ;;  %v2937_v58 = vor.u32 %v3828_v55, %v2934_v56  ;;  %v2926_v3 = vld [vmem:[%s6424_s2 + $0x1d8] sm:$0xf0]  ;;  %v3787_v37 = vld [vmem:[%s6424_s2 + $0x94] sm:$0xf0]  ;;  %v3820_v39 = vld [vmem:[%s6424_s2 + $0x1a4] sm:$0xf] }
  0x2c   : > { %2796 = vmatmul.msk.bf16.vlgmr.msrb.gmra.mxu0 %vm387_vm1, %v4172_v28  ;;  %2797 = vmatmul.msk.bf16.vlgmr.msrb.gmra.mxu1 %vm387_vm1, %v4172_v28  ;;  %v2857_v28 = vor.u32 %v3808_v18, %v2854_v19  ;;  %v2918_v18 = vld [vmem:[%s6424_s2 + $0x1c8] sm:$0xf0]  ;;  %v3055_v38 = vor.u32 %v3787_v37, %v3054_v36  ;;  %v3006_v44 = vld [vmem:[%s6424_s2 + $0x30] sm:$0xf]  ;;  %v3775_v46 = vld [vmem:[%s6424_s2 + $0x34] sm:$0xf0] }
  0x2d   : > { %788 = vmatpush.bf16.msra.mxu1 %v2881_v53  ;;  %799 = vmatpush.bf16.msrb.mxu0 %v2961_v5  ;;  %v3087_v53 = vor.u32 %v3795_v50, %v3086_v48  ;;  %v2929_v5 = vor.u32 %v3826_v2, %v2926_v3  ;;  %v2921_v19 = vor.u32 %v3824_v17, %v2918_v18  ;;  %v2966_v43 = vld [vmem:[%s6424_s2 + $0x228] sm:$0xf0]  ;;  %v3046_v48 = vld [vmem:[%s6424_s2 + $0x80] sm:$0xf]  ;;  %v3773_v52 = vld [vmem:[%s6424_s2 + $0x24] sm:$0xf0] }
  0x2e   : > { %v3007_v47 = vor.u32 %v3775_v46, %v3006_v44  ;;  %v2998_v51 = vld [vmem:[%s6424_s2 + $0x20] sm:$0xf]  ;;  %v3771_v55 = vld [vmem:[%s6424_s2 + $0x14] sm:$0xf0]  ;;  %v3120_v17 = vld [vmem:[%s6424_s2 + $0x118] sm:$0xf0] }
  0x2f   : > { %751 = vmatpush.bf16.msrb.mxu2 %v2861_v7  ;;  %764 = vmatpush.bf16.msrb.mxu3 %v2925_v20  ;;  %v3781_v7 = vld [vmem:[%s6424_s2 + $0x64] sm:$0xf0]  ;;  %v3022_v20 = vld [vmem:[%s6424_s2 + $0x50] sm:$0xf]  ;;  %v2982_v57 = vld [vmem:[%s6424_s2] sm:$0xf] }
  0x30   : > { %v3031_v8 = vor.u32 %v3781_v7, %v3030_v6  ;;  %v3023_v24 = vor.u32 %v3779_v21, %v3022_v20  ;;  %v3803_v63 = vld [vmem:[%s6424_s2 + $0x114] sm:$0xf0]  ;;  %v3801_v6 = vld [vmem:[%s6424_s2 + $0x104] sm:$0xf0]  ;;  %v3780_v21 = vld [vmem:[%s6424_s2 + $0x64] sm:$0xf] }
  0x31   : > { %789 = vmatpush.bf16.msra.mxu1 %v2873_v62  ;;  %800 = vmatpush.bf16.msrb.mxu0 %v2953_v22  ;;  %v3805_v62 = vld [vmem:[%s6424_s2 + $0x124] sm:$0xf0]  ;;  %v3062_v22 = vld [vmem:[%s6424_s2 + $0xa0] sm:$0xf]  ;;  %v3032_v26 = vld [vmem:[%s6424_s2 + $0x68] sm:$0xf0] }
  0x32   : > { %v2837_v0 = vor.u32 %v3805_v62, %v2836_v61  ;;  %v3118_v62 = vld [vmem:[%s6424_s2 + $0x110] sm:$0xf]  ;;  %v3800_v27 = vld [vmem:[%s6424_s2 + $0x104] sm:$0xf]  ;;  %v3794_v46 = vld [vmem:[%s6424_s2 + $0xd4] sm:$0xf] }
  0x33   : > { %752 = vmatpush.bf16.msrb.mxu2 %v2853_v25  ;;  %765 = vmatpush.bf16.msrb.mxu3 %v2917_v31  ;;  %v3789_v25 = vld [vmem:[%s6424_s2 + $0xa4] sm:$0xf0]  ;;  %v2974_v31 = vld [vmem:[%s6424_s2 + $0x238] sm:$0xf0]  ;;  %v3119_v1 = vor.u32 %v3803_v63, %v3118_v62  ;;  %v3770_v62 = vld [vmem:[%s6424_s2 + $0x14] sm:$0xf] }
  0x34   : > { %v2977_v33 = vor.u32 %v3838_v30, %v2974_v31  ;;  %v3798_v30 = vld [vmem:[%s6424_s2 + $0xf4] sm:$0xf]  ;;  %v3104_v31 = vld [vmem:[%s6424_s2 + $0xf8] sm:$0xf0] }
  0x35   : > { %790 = vmatpush.bf16.msra.mxu1 %v2865_v14  ;;  %801 = vmatpush.bf16.msrb.mxu0 %v2945_v32  ;;  %v3791_v14 = vld [vmem:[%s6424_s2 + $0xb4] sm:$0xf0]  ;;  %v3014_v32 = vld [vmem:[%s6424_s2 + $0x40] sm:$0xf] }
  0x36   : > { %v3071_v16 = vor.u32 %v3791_v14, %v3070_v11  ;;  %v3782_v11 = vld [vmem:[%s6424_s2 + $0x74] sm:$0xf]  ;;  %v3040_v14 = vld [vmem:[%s6424_s2 + $0x78] sm:$0xf0] }
  0x37   : > { %766 = vmatpush.bf16.msrb.mxu3 %v2909_v40  ;;  %753 = vmatpush.bf16.msrb.mxu2 %v2845_v49  ;;  %v2902_v40 = vld [vmem:[%s6424_s2 + $0x1a8] sm:$0xf0]  ;;  %v3785_v49 = vld [vmem:[%s6424_s2 + $0x84] sm:$0xf0]  ;;  %v3043_v20 = vor.u32 %v3782_v11, %v3040_v14  ;;  %v3056_v11 = vld [vmem:[%s6424_s2 + $0x98] sm:$0xf0] }
  0x38   : > { %v3047_v50 = vor.u32 %v3785_v49, %v3046_v48  ;;  %v3774_v48 = vld [vmem:[%s6424_s2 + $0x34] sm:$0xf]  ;;  %v3008_v49 = vld [vmem:[%s6424_s2 + $0x38] sm:$0xf0] }
  0x39   : > { %791 = vmatpush.bf16.msra.mxu1 %v2857_v28  ;;  %802 = vmatpush.bf16.msrb.mxu0 %v2937_v58  ;;  %v3063_v28 = vor.u32 %v3789_v25, %v3062_v22  ;;  %v3769_v58 = vld [vmem:[%s6424_s2 + $0x4] sm:$0xf0] }
  0x3a   : > { %v2983_v59 = vor.u32 %v3769_v58, %v2982_v57 }
  0x3b   : > { %767 = vmatpush.bf16.msrb.mxu3 %v2901_v54  ;;  %754 = vmatpush.bf16.msrb.mxu2 %v2837_v0  ;;  %v2990_v54 = vld [vmem:[%s6424_s2 + $0x10] sm:$0xf] }
  0x3c   : > { %v2991_v56 = vor.u32 %v3771_v55, %v2990_v54  ;;  %v3772_v54 = vld [vmem:[%s6424_s2 + $0x24] sm:$0xf]  ;;  %v3000_v55 = vld [vmem:[%s6424_s2 + $0x28] sm:$0xf0] }
  0x3d   : > { %792 = vmatpush.bf16.msra.mxu1 %v2849_v35  ;;  %803 = vmatpush.bf16.msrb.mxu0 %v2929_v5  ;;  %v3015_v35 = vor.u32 %v3777_v34, %v3014_v32  ;;  %v3110_v5 = vld [vmem:[%s6424_s2 + $0x100] sm:$0xf]  ;;  %v3024_v34 = vld [vmem:[%s6424_s2 + $0x58] sm:$0xf0]  ;;  %v3003_v58 = vor.u32 %v3772_v54, %v3000_v55  ;;  %v3875_v54 = vld [vmem:[%s6424_s2 + $0x354] sm:$0xf0] }
  0x3f   : > { %1008 = vmatpush.bf16.msra.mxu3 %v3039_v60  ;;  %818 = vmatpush.bf16.msra.mxu2 %v2977_v33  ;;  %v3778_v33 = vld [vmem:[%s6424_s2 + $0x54] sm:$0xf] }
  0x41   : > { %793 = vmatpush.bf16.msra.mxu1 %v2841_v41  ;;  %804 = vmatpush.bf16.msrb.mxu0 %v2921_v19  ;;  %v2905_v41 = vor.u32 %v3820_v39, %v2902_v40  ;;  %v3027_v39 = vor.u32 %v3778_v33, %v3024_v34  ;;  %v3796_v40 = vld [vmem:[%s6424_s2 + $0xe4] sm:$0xf]  ;;  %v3184_v33 = vld [vmem:[%s6424_s2 + $0x260] sm:$0xf]  ;;  %v3845_v34 = vld [vmem:[%s6424_s2 + $0x264] sm:$0xf0] }
  0x43   : > { %1009 = vmatpush.bf16.msra.mxu3 %v3031_v8  ;;  %v3111_v8 = vor.u32 %v3801_v6, %v3110_v5  ;;  %v2984_v5 = vld [vmem:[%s6424_s2 + $0x8] sm:$0xf0] }
  0x45   : > { %1021 = vmatpush.bf16.msrb.mxu1 %v3103_v42  ;;  %805 = vmatpush.bf16.msrb.mxu0 %v2913_v29  ;;  %v3836_v42 = vld [vmem:[%s6424_s2 + $0x224] sm:$0xf]  ;;  %v3035_v29 = vor.u32 %v3780_v21, %v3032_v26  ;;  %v3208_v21 = vld [vmem:[%s6424_s2 + $0x290] sm:$0xf]  ;;  %v3849_v26 = vld [vmem:[%s6424_s2 + $0x284] sm:$0xf0] }
  0x47   : > { %1010 = vmatpush.bf16.msra.mxu3 %v3023_v24 }
  0x49   : > { %1022 = vmatpush.bf16.msrb.mxu1 %v3095_v45  ;;  %v2969_v45 = vor.u32 %v3836_v42, %v2966_v43  ;;  %806 = vmatpush.bf16.msrb.mxu0 %v2905_v41  ;;  %v3096_v41 = vld [vmem:[%s6424_s2 + $0xe8] sm:$0xf0]  ;;  %v3776_v42 = vld [vmem:[%s6424_s2 + $0x44] sm:$0xf] }
  0x4a   : > { %v3016_v43 = vld [vmem:[%s6424_s2 + $0x48] sm:$0xf0]  ;;  %v3099_v44 = vor.u32 %v3796_v40, %v3096_v41  ;;  %v3288_v40 = vld [vmem:[%s6424_s2 + $0x330] sm:$0xf]  ;;  %v3871_v41 = vld [vmem:[%s6424_s2 + $0x334] sm:$0xf0] }
  0x4b   : > { %1011 = vmatpush.bf16.msra.mxu3 %v3015_v35  ;;  %819 = vmatpush.bf16.msra.mxu2 %v2969_v45  ;;  %v3107_v35 = vor.u32 %v3798_v30, %v3104_v31  ;;  %v3019_v45 = vor.u32 %v3776_v42, %v3016_v43  ;;  %v3226_v31 = vld [vmem:[%s6424_s2 + $0x2b8] sm:$0xf0]  ;;  %v3289_v42 = vor.u32 %v3871_v41, %v3288_v40  ;;  %v3176_v43 = vld [vmem:[%s6424_s2 + $0x250] sm:$0xf]  ;;  %v3248_v40 = vld [vmem:[%s6424_s2 + $0x2e0] sm:$0xf] }
  0x4c   : > { %v3861_v41 = vld [vmem:[%s6424_s2 + $0x2e4] sm:$0xf0] }
  0x4d   : > { %1023 = vmatpush.bf16.msrb.mxu1 %v3087_v53  ;;  %v2999_v53 = vor.u32 %v3773_v52, %v2998_v51  ;;  %v3011_v51 = vor.u32 %v3774_v48, %v3008_v49  ;;  %v3792_v52 = vld [vmem:[%s6424_s2 + $0xc4] sm:$0xf]  ;;  %v3280_v49 = vld [vmem:[%s6424_s2 + $0x320] sm:$0xf] }
  0x4f   : > { %1012 = vmatpush.bf16.msra.mxu3 %v3007_v47  ;;  %v3088_v47 = vld [vmem:[%s6424_s2 + $0xd8] sm:$0xf0] }
  0x51   : > { %1024 = vmatpush.bf16.msrb.mxu1 %v3079_v4 }
  0x53   : > { %1013 = vmatpush.bf16.msra.mxu3 %v2999_v53  ;;  %v3080_v53 = vld [vmem:[%s6424_s2 + $0xc8] sm:$0xf0] }
  0x54   : > { %v3083_v57 = vor.u32 %v3792_v52, %v3080_v53  ;;  %v3304_v53 = vld [vmem:[%s6424_s2 + $0x350] sm:$0xf] }
  0x55   : > { %1025 = vmatpush.bf16.msrb.mxu1 %v3071_v16  ;;  %v3802_v16 = vld [vmem:[%s6424_s2 + $0x114] sm:$0xf]  ;;  %v3305_v55 = vor.u32 %v3875_v54, %v3304_v53 }
  0x56   : > { %v3123_v22 = vor.u32 %v3802_v16, %v3120_v17  ;;  %v3048_v16 = vld [vmem:[%s6424_s2 + $0x88] sm:$0xf0] }
  0x57   : > { %1014 = vmatpush.bf16.msra.mxu3 %v2991_v56 }
  0x59   : > { %1026 = vmatpush.bf16.msrb.mxu1 %v3063_v28 }
  0x5b   : > { %1015 = vmatpush.bf16.msra.mxu3 %v2983_v59  ;;  %v3790_v59 = vld [vmem:[%s6424_s2 + $0xb4] sm:$0xf] }
  0x5d   : > { %1027 = vmatpush.bf16.msrb.mxu1 %v3055_v38 }
  0x61   : > { %1028 = vmatpush.bf16.msrb.mxu1 %v3047_v50  ;;  %v3091_v50 = vor.u32 %v3794_v46, %v3088_v47  ;;  %v3210_v47 = vld [vmem:[%s6424_s2 + $0x298] sm:$0xf0] }
  0x99   : > { %v4476_v60 = vpop.f32.mrf.mxu0  ;;  %v423_v61 = vpop.f32.mrf.mxu1 }
  0x9a   : > { %v4531_v36 = vpack.c.bf16 %v423_v61, %v423_v61  ;;  %v440_v56 = vpack.c.bf16 %v4476_v60, %v4476_v60  ;;  %v3072_v61 = vld [vmem:[%s6424_s2 + $0xb8] sm:$0xf0] }
  0x9b   : > { %v2992_v60 = vld [vmem:[%s6424_s2 + $0x18] sm:$0xf0] }
  0xa1   : > { %v493_v0 = vpop.f32.mrf.mxu3  ;;  %v412_v3 = vpop.f32.mrf.mxu0 }
  0xa2   : > { %v523_v2 = vpack.c.bf16 %v493_v0, %v493_v0  ;;  %v425_v4 = vpop.f32.mrf.mxu1  ;;  %v4490_v7 = vpop.f32.mrf.mxu2  ;;  %v3075_v0 = vor.u32 %v3790_v59, %v3072_v61  ;;  %v3788_v3 = vld [vmem:[%s6424_s2 + $0xa4] sm:$0xf] }
  0xa3   : > { %v442_v63 = vpack.c.bf16 %v4490_v7, %v4490_v7  ;;  %v3064_v4 = vld [vmem:[%s6424_s2 + $0xa8] sm:$0xf0] }
  0xa4   : > { %755 = vmatmul.bf16.vlgmr.msrb.gmra.mxu2 %v523_v2  ;;  %794 = vmatmul.bf16.vlgmr.msra.gmra.mxu1 %v523_v2  ;;  %v2995_v2 = vor.u32 %v3770_v62, %v2992_v60  ;;  %v3067_v6 = vor.u32 %v3788_v3, %v3064_v4  ;;  %v3202_v62 = vld [vmem:[%s6424_s2 + $0x288] sm:$0xf0]  ;;  %v3296_v3 = vld [vmem:[%s6424_s2 + $0x340] sm:$0xf]  ;;  %v3873_v4 = vld [vmem:[%s6424_s2 + $0x344] sm:$0xf0] }
  0xa5   : > { %1040 = vmatpush.bf16.msrb.mxu2 %v3119_v1  ;;  %1097 = vmatpush.bf16.msra.mxu1 %v4121_v9  ;;  %v3126_v1 = vld [vmem:[%s6423_s1 + $0x8] sm:$0xf] }
  0xa9   : > { %1041 = vmatpush.bf16.msrb.mxu2 %v3111_v8  ;;  %v495_v18 = vpop.f32.mrf.mxu3  ;;  %1098 = vmatpush.bf16.msra.mxu1 %v4128_v12  ;;  %v506_v9 = vpop.f32.mrf.mxu0  ;;  %v3112_v12 = vld [vmem:[%s6424_s2 + $0x108] sm:$0xf0]  ;;  %v3786_v8 = vld [vmem:[%s6424_s2 + $0x94] sm:$0xf] }
  0xaa   : > { %v519_v19 = vpop.f32.mrf.mxu1  ;;  %v524_v24 = vpack.c.bf16 %v506_v9, %v506_v9  ;;  %v438_v28 = vpop.f32.mrf.mxu2  ;;  %v3115_v32 = vor.u32 %v3800_v27, %v3112_v12  ;;  %v3059_v14 = vor.u32 %v3786_v8, %v3056_v11  ;;  %v3224_v18 = vld [vmem:[%s6424_s2 + $0x2b0] sm:$0xf]  ;;  %v3290_v11 = vld [vmem:[%s6424_s2 + $0x338] sm:$0xf0] }
  0xab   : > { %v525_v25 = vpack.c.bf16 %v519_v19, %v519_v19  ;;  %v3853_v19 = vld [vmem:[%s6424_s2 + $0x2a4] sm:$0xf0]  ;;  %v3192_v12 = vld [vmem:[%s6424_s2 + $0x270] sm:$0xf]  ;;  %v3847_v28 = vld [vmem:[%s6424_s2 + $0x274] sm:$0xf0] }
  0xac   : > { %768 = vmatmul.bf16.vlgmr.msrb.gmra.mxu3 %v524_v24  ;;  %v3193_v30 = vor.u32 %v3847_v28, %v3192_v12  ;;  %v3863_v12 = vld [vmem:[%s6424_s2 + $0x2f4] sm:$0xf0] }
  0xad   : > { %2978 = vmatmul.msk.bf16.vlgmr.msra.gmra.mxu0 %vm743_vm2, %v525_v25  ;;  %1079 = vmatpush.bf16.msrb.mxu3 %v3123_v22  ;;  %v3851_v22 = vld [vmem:[%s6424_s2 + $0x294] sm:$0xf0] }
  0xae   : > { %1047 = vmatpush.bf16.msra.mxu0 %v3043_v20 }
  0xb1   : > { %v508_v37 = vpop.f32.mrf.mxu0  ;;  %1080 = vmatpush.bf16.msrb.mxu3 %v3115_v32 }
  0xb2   : > { %v521_v38 = vpop.f32.mrf.mxu1  ;;  %1048 = vmatpush.bf16.msra.mxu0 %v3035_v29  ;;  %v3854_v29 = vld [vmem:[%s6424_s2 + $0x2b4] sm:$0xf]  ;;  %v3185_v37 = vor.u32 %v3845_v34, %v3184_v33  ;;  %v3274_v34 = vld [vmem:[%s6424_s2 + $0x318] sm:$0xf0] }
  0xb3   : > { %v3229_v32 = vor.u32 %v3854_v29, %v3226_v31  ;;  %v3218_v38 = vld [vmem:[%s6424_s2 + $0x2a8] sm:$0xf0]  ;;  %v3178_v31 = vld [vmem:[%s6424_s2 + $0x258] sm:$0xf0] }
  0xb4   : > { %2979 = vmatmul.msk.bf16.vlgmr.msra.gmra.mxu2 %vm743_vm2, %v525_v25  ;;  %1029 = vmatmul.bf16.vlgmr.msrb.gmra.mxu1 %v4531_v36  ;;  %v3200_v25 = vld [vmem:[%s6424_s2 + $0x280] sm:$0xf] }
  0xb5   : > { %1060 = vmatpush.bf16.msra.mxu2 %v3107_v35  ;;  %v3201_v27 = vor.u32 %v3849_v26, %v3200_v25  ;;  %v3852_v35 = vld [vmem:[%s6424_s2 + $0x2a4] sm:$0xf] }
  0xb6   : > { %1049 = vmatpush.bf16.msra.mxu0 %v3027_v39  ;;  %v3221_v39 = vor.u32 %v3852_v35, %v3218_v38  ;;  %v3874_v35 = vld [vmem:[%s6424_s2 + $0x354] sm:$0xf] }
  0xb9   : > { %1061 = vmatpush.bf16.msra.mxu2 %v3099_v44  ;;  %v3843_v44 = vld [vmem:[%s6424_s2 + $0x254] sm:$0xf0] }
  0xba   : > { %1050 = vmatpush.bf16.msra.mxu0 %v3019_v45  ;;  %v3850_v45 = vld [vmem:[%s6424_s2 + $0x294] sm:$0xf]  ;;  %v3177_v46 = vor.u32 %v3843_v44, %v3176_v43  ;;  %v3249_v43 = vor.u32 %v3861_v41, %v3248_v40 }
  0xbb   : > { %v3213_v48 = vor.u32 %v3850_v45, %v3210_v47  ;;  %v3840_v45 = vld [vmem:[%s6424_s2 + $0x244] sm:$0xf] }
  0xbc   : > { %1016 = vmatmul.bf16.vlgmr.msra.gmra.mxu3 %v440_v56  ;;  %v3864_v47 = vld [vmem:[%s6424_s2 + $0x304] sm:$0xf] }
  0xbd   : > { %1062 = vmatpush.bf16.msra.mxu2 %v3091_v50  ;;  %807 = vmatmul.bf16.vlgmr.msrb.gmra.mxu0 %v524_v24  ;;  %v3209_v24 = vor.u32 %v3851_v22, %v3208_v21  ;;  %v3869_v50 = vld [vmem:[%s6424_s2 + $0x324] sm:$0xf0] }
  0xbe   : > { %1051 = vmatpush.bf16.msra.mxu0 %v3011_v51  ;;  %1110 = vmatpush.bf16.msra.mxu3 %v4124_v10  ;;  %v3768_v10 = vld [vmem:[%s6424_s2 + $0x4] sm:$0xf]  ;;  %v3281_v52 = vor.u32 %v3869_v50, %v3280_v49  ;;  %v3266_v50 = vld [vmem:[%s6424_s2 + $0x308] sm:$0xf0] }
  0xbf   : > { %v2987_v7 = vor.u32 %v3768_v10, %v2984_v5  ;;  %v3297_v10 = vor.u32 %v3873_v4, %v3296_v3  ;;  %v3846_v5 = vld [vmem:[%s6424_s2 + $0x274] sm:$0xf]  ;;  %v3269_v54 = vor.u32 %v3864_v47, %v3266_v50  ;;  %v3860_v3 = vld [vmem:[%s6424_s2 + $0x2e4] sm:$0xf]  ;;  %v3250_v4 = vld [vmem:[%s6424_s2 + $0x2e8] sm:$0xf0] }
  0xc0   : > { %v4901_v47 = vld [vmem:[%s6426_s4 + $0xb0] sm:$0xff]  ;;  %v4918_v50 = vld [vmem:[%s6426_s4 + $0xa0] sm:$0xff] }
  0xc1   : > { %1063 = vmatpush.bf16.msra.mxu2 %v3083_v57  ;;  %v3841_v57 = vld [vmem:[%s6424_s2 + $0x244] sm:$0xf0] }
  0xc2   : > { %1052 = vmatpush.bf16.msra.mxu0 %v3003_v58  ;;  %1111 = vmatpush.bf16.msra.mxu3 %v4130_v13  ;;  %v3784_v13 = vld [vmem:[%s6424_s2 + $0x84] sm:$0xf] }
  0xc3   : > { %v3051_v17 = vor.u32 %v3784_v13, %v3048_v16  ;;  %v3848_v58 = vld [vmem:[%s6424_s2 + $0x284] sm:$0xf]  ;;  %v3264_v13 = vld [vmem:[%s6424_s2 + $0x300] sm:$0xf]  ;;  %v3865_v16 = vld [vmem:[%s6424_s2 + $0x304] sm:$0xf0] }
  0xc4   : > { %3124 = vmatmul.msk.bf16.vlgmr.msrb.gmra.mxu2 %vm743_vm2, %v442_v63  ;;  %3127 = vmatmul.msk.bf16.vlgmr.msra.gmra.mxu1 %vm387_vm1, %v3126_v1 }
  0xc5   : > { %1064 = vmatpush.bf16.msra.mxu2 %v3075_v0  ;;  %v3272_v0 = vld [vmem:[%s6424_s2 + $0x310] sm:$0xf] }
  0xc6   : > { %1053 = vmatpush.bf16.msra.mxu0 %v2995_v2 }
  0xc9   : > { %1065 = vmatpush.bf16.msra.mxu2 %v3067_v6  ;;  %v3194_v6 = vld [vmem:[%s6424_s2 + $0x278] sm:$0xf0] }
  0xca   : > { %1054 = vmatpush.bf16.msra.mxu0 %v2987_v7  ;;  %v3870_v7 = vld [vmem:[%s6424_s2 + $0x334] sm:$0xf]  ;;  %v3197_v8 = vor.u32 %v3846_v5, %v3194_v6  ;;  %v3253_v6 = vor.u32 %v3860_v3, %v3250_v4  ;;  %v5024_v3 = vld [vmem:[%s6426_s4 + $0x1b8] sm:$0xff] }
  0xcb   : > { %v5031_v4 = vld [vmem:[%s6426_s4 + $0x50] sm:$0xff] }
  0xcc   : > { %3125 = vmatmul.msk.bf16.vlgmr.msrb.gmra.mxu3 %vm743_vm2, %v442_v63  ;;  %v3205_v63 = vor.u32 %v3848_v58, %v3202_v62  ;;  %v3258_v62 = vld [vmem:[%s6424_s2 + $0x2f8] sm:$0xf0] }
  0xcd   : > { %1066 = vmatpush.bf16.msra.mxu2 %v3059_v14  ;;  %1055 = vmatmul.bf16.vlgmr.msra.gmra.mxu0 %v440_v56  ;;  %v3168_v56 = vld [vmem:[%s6424_s2 + $0x240] sm:$0xf]  ;;  %v3293_v14 = vor.u32 %v3870_v7, %v3290_v11 }
  0xce   : > { %1123 = vmatpush.bf16.msrb.mxu0 %v4137_v15  ;;  %v3855_v15 = vld [vmem:[%s6424_s2 + $0x2b4] sm:$0xf0]  ;;  %v3169_v61 = vor.u32 %v3841_v57, %v3168_v56  ;;  %1385 = vmatpush.bf16.msrb.mxu3 %v3305_v55  ;;  %v3240_v56 = vld [vmem:[%s6424_s2 + $0x2d0] sm:$0xf] }
  0xcf   : > { %v3225_v9 = vor.u32 %v3855_v15, %v3224_v18  ;;  %v3265_v18 = vor.u32 %v3865_v16, %v3264_v13  ;;  %v3859_v57 = vld [vmem:[%s6424_s2 + $0x2d4] sm:$0xf0]  ;;  %v3858_v13 = vld [vmem:[%s6424_s2 + $0x2d4] sm:$0xf]  ;;  %v3242_v16 = vld [vmem:[%s6424_s2 + $0x2d8] sm:$0xf0] }
  0xd1   : > { %1067 = vmatpush.bf16.msra.mxu2 %v3051_v17  ;;  %1353 = vmatpush.bf16.msrb.mxu1 %v3225_v9  ;;  %v3844_v9 = vld [vmem:[%s6424_s2 + $0x264] sm:$0xf] }
  0xd2   : > { %1124 = vmatpush.bf16.msrb.mxu0 %v4157_v23  ;;  %v3216_v23 = vld [vmem:[%s6424_s2 + $0x2a0] sm:$0xf]  ;;  %1386 = vmatpush.bf16.msrb.mxu3 %v3297_v10 }
  0xd3   : > { %v3217_v20 = vor.u32 %v3853_v19, %v3216_v23  ;;  %v3186_v23 = vld [vmem:[%s6424_s2 + $0x268] sm:$0xf0]  ;;  %v3868_v19 = vld [vmem:[%s6424_s2 + $0x324] sm:$0xf] }
  0xd4   : > { %1068 = vmatmul.bf16.vlgmr.msra.gmra.mxu2 %v4531_v36  ;;  %v3189_v22 = vor.u32 %v3844_v9, %v3186_v23  ;;  %v3856_v9 = vld [vmem:[%s6424_s2 + $0x2c4] sm:$0xf]  ;;  %v3234_v23 = vld [vmem:[%s6424_s2 + $0x2c8] sm:$0xf0] }
  0xd5   : > { %1354 = vmatpush.bf16.msrb.mxu1 %v3217_v20  ;;  %1366 = vmatpush.bf16.msrb.mxu2 %v3289_v42 }
  0xd6   : > { %1392 = vmatpush.bf16.msra.mxu0 %v3229_v32  ;;  %v3866_v32 = vld [vmem:[%s6424_s2 + $0x314] sm:$0xf] }
  0xd7   : > { %v3277_v38 = vor.u32 %v3866_v32, %v3274_v34 }
  0xd9   : > { %1355 = vmatpush.bf16.msrb.mxu1 %v3209_v24  ;;  %1367 = vmatpush.bf16.msrb.mxu2 %v3281_v52  ;;  %v3282_v24 = vld [vmem:[%s6424_s2 + $0x328] sm:$0xf0] }
  0xda   : > { %1393 = vmatpush.bf16.msra.mxu0 %v3221_v39  ;;  %v3285_v26 = vor.u32 %v3868_v19, %v3282_v24  ;;  %v3298_v52 = vld [vmem:[%s6424_s2 + $0x348] sm:$0xf0] }
  0xdc   : > { %3128 = vmatmul.msk.bf16.vlgmr.msra.gmra.mxu3 %vm387_vm1, %v3126_v1 }
  0xdd   : > { %3129 = vmatmul.msk.bf16.vlgmr.msrb.gmra.mxu0 %vm387_vm1, %v3126_v1  ;;  %1356 = vmatpush.bf16.msrb.mxu1 %v3201_v27  ;;  %v3867_v1 = vld [vmem:[%s6424_s2 + $0x314] sm:$0xf0]  ;;  %v3256_v27 = vld [vmem:[%s6424_s2 + $0x2f0] sm:$0xf] }
  0xde   : > { %1394 = vmatpush.bf16.msra.mxu0 %v3213_v48  ;;  %v3273_v2 = vor.u32 %v3867_v1, %v3272_v0  ;;  %1405 = vmatpush.bf16.msra.mxu3 %v3293_v14  ;;  %v3257_v29 = vor.u32 %v3863_v12, %v3256_v27  ;;  %v3232_v0 = vld [vmem:[%s6424_s2 + $0x2c0] sm:$0xf]  ;;  %v4868_v12 = vld [vmem:[%s6426_s4 + $0xe8] sm:$0xff] }
  0xdf   : > { %v4861_v27 = vld [vmem:[%s6426_s4 + $0xe0] sm:$0xff] }
  0xe0   : > { %1368 = vmatpush.bf16.msrb.mxu2 %v3273_v2 }
  0xe1   : > { %1357 = vmatpush.bf16.msrb.mxu1 %v3193_v30  ;;  %v3842_v30 = vld [vmem:[%s6424_s2 + $0x254] sm:$0xf] }
  0xe2   : > { %1395 = vmatpush.bf16.msra.mxu0 %v3205_v63  ;;  %1406 = vmatpush.bf16.msra.mxu3 %v3285_v26  ;;  %v3181_v33 = vor.u32 %v3842_v30, %v3178_v31  ;;  %v4856_v26 = vld [vmem:[%s6426_s4 + $0xf8] sm:$0xff] }
  0xe3   : > { %v4878_v30 = vld [vmem:[%s6426_s4 + $0xd8] sm:$0xff] }
  0xe4   : > { %1369 = vmatpush.bf16.msrb.mxu2 %v3265_v18 }
  0xe5   : > { %1358 = vmatpush.bf16.msrb.mxu1 %v3185_v37  ;;  %v3306_v37 = vld [vmem:[%s6424_s2 + $0x358] sm:$0xf0] }
  0xe6   : > { %1396 = vmatpush.bf16.msra.mxu0 %v3197_v8  ;;  %v3309_v39 = vor.u32 %v3874_v35, %v3306_v37  ;;  %1407 = vmatpush.bf16.msra.mxu3 %v3277_v38 }
  0xe8   : > { %1370 = vmatpush.bf16.msrb.mxu2 %v3257_v29  ;;  %v4873_v29 = vld [vmem:[%s6426_s4 + $0xd0] sm:$0xff] }
  0xe9   : > { %1359 = vmatpush.bf16.msrb.mxu1 %v3177_v46  ;;  %v3170_v46 = vld [vmem:[%s6424_s2 + $0x248] sm:$0xf0] }
  0xea   : > { %1397 = vmatpush.bf16.msra.mxu0 %v3189_v22  ;;  %v3173_v49 = vor.u32 %v3840_v45, %v3170_v46  ;;  %1408 = vmatpush.bf16.msra.mxu3 %v3269_v54  ;;  %v4891_v45 = vld [vmem:[%s6426_s4 + $0xc0] sm:$0xff]  ;;  %v4896_v46 = vld [vmem:[%s6426_s4 + $0xc8] sm:$0xff] }
  0xeb   : > { %v4941_v54 = vld [vmem:[%s6426_s4 + $0x1e8] sm:$0xff] }
  0xec   : > { %1371 = vmatpush.bf16.msrb.mxu2 %v3249_v43 }
  0xed   : > { %1360 = vmatpush.bf16.msrb.mxu1 %v3169_v61  ;;  %v3862_v61 = vld [vmem:[%s6424_s2 + $0x2f4] sm:$0xf] }
  0xee   : > { %1398 = vmatpush.bf16.msra.mxu0 %v3181_v33  ;;  %v3261_v63 = vor.u32 %v3862_v61, %v3258_v62  ;;  %v4980_v61 = vld [vmem:[%s6426_s4 + $0x1d8] sm:$0xff]  ;;  %v4985_v62 = vld [vmem:[%s6426_s4 + $0x70] sm:$0xff] }
  0xf0   : > { %1409 = vmatpush.bf16.msra.mxu3 %v3261_v63  ;;  %v4997_v63 = vld [vmem:[%s6426_s4 + $0x78] sm:$0xff] }
  0xf1   : > { %1424 = vmatpush.bf16.msra.mxu1 %v3309_v39 }
  0xf2   : > { %1399 = vmatpush.bf16.msra.mxu0 %v3173_v49  ;;  %v4913_v49 = vld [vmem:[%s6426_s4 + $0x1f0] sm:$0xff] }
  0xf4   : > { %1410 = vmatpush.bf16.msra.mxu3 %v3253_v6  ;;  %v5048_v6 = vld [vmem:[%s6426_s4 + $0x1a8] sm:$0xff] }
  0xf6   : > { %1487 = vmatpush.msrb.mxu0 %v4913_v49 }
 0x121   : > { %v4669_v36 = vpop.f32.mrf.mxu1 }
 0x127   : > { %v756_v51 = vpop.f32.mrf.mxu2 }
 0x129   : > { %v797_v59 = vpop.f32.mrf.mxu1 }
 0x12a   : > { %v782_v60 = vpop.f32.mrf.mxu0  ;;  %v3241_v59 = vor.u32 %v3859_v57, %v3240_v56  ;;  %v4953_v56 = vld [vmem:[%s6426_s4 + $0x98] sm:$0xff]  ;;  %v4963_v57 = vld [vmem:[%s6426_s4 + $0x80] sm:$0xff] }
 0x12c   : > { %1372 = vmatpush.bf16.msrb.mxu2 %v3241_v59  ;;  %v4973_v59 = vld [vmem:[%s6426_s4 + $0x88] sm:$0xff] }
 0x12f   : > { %v758_v17 = vpop.f32.mrf.mxu2  ;;  %v769_v15 = vpop.f32.mrf.mxu3 }
 0x130   : > { %v770_v20 = vadd.f32 %v769_v15, %v756_v51  ;;  %v3872_v51 = vld [vmem:[%s6424_s2 + $0x344] sm:$0xf]  ;;  %v3245_v17 = vor.u32 %v3858_v13, %v3242_v16  ;;  %v5081_v13 = vld [vmem:[%s6426_s4 + $0x30] sm:$0xff] }
 0x131   : > { %v4755_v21 = vpop.f32.mrf.mxu1  ;;  %v3301_v55 = vor.u32 %v3872_v51, %v3298_v52  ;;  %v4924_v51 = vld [vmem:[%s6426_s4 + $0xa8] sm:$0xff]  ;;  %v4929_v52 = vld [vmem:[%s6426_s4 + $0x1f8] sm:$0xff]  ;;  %v5086_v16 = vld [vmem:[%s6426_s4 + $0x180] sm:$0xff] }
 0x132   : > { %v784_v25 = vpop.f32.mrf.mxu0  ;;  %v783_v28 = vadd.f32 %v782_v60, %v770_v20  ;;  %1411 = vmatpush.bf16.msra.mxu3 %v3245_v17  ;;  %v5093_v17 = vld [vmem:[%s6426_s4 + $0x38] sm:$0xff] }
 0x133   : > { %1425 = vmatpush.bf16.msra.mxu1 %v3301_v55  ;;  %v4851_v25 = vld [vmem:[%s6426_s4 + $0xf0] sm:$0xff] }
 0x134   : > { %v4947_v55 = vld [vmem:[%s6426_s4 + $0x90] sm:$0xff] }
 0x137   : > { %v821_v42 = vpop.f32.mrf.mxu2  ;;  %v771_v44 = vpop.f32.mrf.mxu3 }
 0x139   : > { %v1032_v48 = vpop.f32.mrf.mxu1 }
 0x13a   : > { %v808_v53 = vpop.f32.mrf.mxu0  ;;  %v4908_v48 = vld [vmem:[%s6426_s4 + $0xb8] sm:$0xff] }
 0x13b   : > { %v809_v58 = vadd.f32 %v808_v53, %v4669_v36  ;;  %v3857_v36 = vld [vmem:[%s6424_s2 + $0x2c4] sm:$0xf0]  ;;  %v4936_v53 = vld [vmem:[%s6426_s4 + $0x1e0] sm:$0xff] }
 0x13c   : > { %v3233_v2 = vor.u32 %v3857_v36, %v3232_v0  ;;  %1488 = vmatpush.msrb.mxu0 %v4936_v53  ;;  %v5002_v0 = vld [vmem:[%s6426_s4 + $0x1c8] sm:$0xff]  ;;  %v5007_v36 = vld [vmem:[%s6426_s4 + $0x60] sm:$0xff] }
 0x13d   : > { %v822_v60 = vadd.f32 %v821_v42, %v809_v58  ;;  %v4968_v58 = vld [vmem:[%s6426_s4 + $0x1d0] sm:$0xff] }
 0x13e   : > { %1373 = vmatpush.bf16.msrb.mxu2 %v3233_v2  ;;  %1489 = vmatpush.msrb.mxu0 %v4968_v58  ;;  %v5019_v2 = vld [vmem:[%s6426_s4 + $0x68] sm:$0xff] }
 0x13f   : > { %v823_v1 = vpop.f32.mrf.mxu2  ;;  %v1017_v10 = vpop.f32.mrf.mxu3 }
 0x140   : > { %v1018_v7 = vadd.f32 %v1017_v10, %v783_v28  ;;  %v5014_v1 = vld [vmem:[%s6426_s4 + $0x1b0] sm:$0xff]  ;;  %v5036_v10 = vld [vmem:[%s6426_s4 + $0x1a0] sm:$0xff] }
 0x141   : > { %v1100_v5 = vpop.f32.mrf.mxu1 }
 0x142   : > { %v810_v8 = vpop.f32.mrf.mxu0  ;;  %v1130_v11 = vpack.c.bf16 %v1100_v5, %v1100_v5  ;;  %v1031_v14 = vadd.f32 %v4755_v21, %v1018_v7  ;;  %v3237_v21 = vor.u32 %v3856_v9, %v3234_v23  ;;  %1467 = vmatpush.msra.mxu2 %v4851_v25  ;;  %v5043_v5 = vld [vmem:[%s6426_s4 + $0x58] sm:$0xff]  ;;  %v5059_v7 = vld [vmem:[%s6426_s4 + $0x40] sm:$0xff]  ;;  %v5110_v23 = vld [vmem:[%s6426_s4 + $0x170] sm:$0xff] }
 0x143   : > { %v5064_v8 = vld [vmem:[%s6426_s4 + $0x190] sm:$0xff]  ;;  %v5103_v9 = vld [vmem:[%s6426_s4 + $0x20] sm:$0xff] }
 0x144   : > { %1361 = vmatmul.bf16.vlgmr.msrb.gmra.mxu1 %v1130_v11  ;;  %1400 = vmatmul.bf16.vlgmr.msra.gmra.mxu0 %v1130_v11  ;;  %v5069_v11 = vld [vmem:[%s6426_s4 + $0x48] sm:$0xff] }
 0x145   : > { %1412 = vmatpush.bf16.msra.mxu3 %v3237_v21  ;;  %1507 = vmatpush.msrb.mxu1 %v4856_v26  ;;  %v5131_v21 = vld [vmem:[%s6426_s4 + $0x10] sm:$0xff] }
 0x146   : > { %1468 = vmatpush.msra.mxu2 %v4861_v27 }
 0x147   : > { %v1043_v18 = vpop.f32.mrf.mxu2  ;;  %v1019_v19 = vpop.f32.mrf.mxu3  ;;  %1508 = vmatpush.msrb.mxu1 %v4868_v12 }
 0x148   : > { %v4840_v15 = vadd.f32 %v1043_v18, %v1031_v14  ;;  %1469 = vmatpush.msra.mxu2 %v4873_v29  ;;  %v5076_v14 = vld [vmem:[%s6426_s4 + $0x198] sm:$0xff]  ;;  %v5098_v18 = vld [vmem:[%s6426_s4 + $0x188] sm:$0xff] }
 0x149   : > { %v1102_v20 = vpop.f32.mrf.mxu1  ;;  %1509 = vmatpush.msrb.mxu1 %v4878_v30  ;;  %v5115_v19 = vld [vmem:[%s6426_s4 + $0x28] sm:$0xff] }
 0x14a   : > { %v1056_v22 = vpop.f32.mrf.mxu0  ;;  %1470 = vmatpush.msra.mxu2 %v4891_v45  ;;  %v5120_v20 = vld [vmem:[%s6426_s4 + $0x178] sm:$0xff] }
 0x14b   : > { %v1057_v24 = vadd.f32 %v1056_v22, %v822_v60  ;;  %1510 = vmatpush.msrb.mxu1 %v4896_v46  ;;  %v4990_v60 = vld [vmem:[%s6426_s4 + $0x1c0] sm:$0xff] }
 0x14c   : > { %1471 = vmatpush.msra.mxu2 %v4901_v47  ;;  %1490 = vmatpush.msrb.mxu0 %v4990_v60  ;;  %v5136_v22 = vld [vmem:[%s6426_s4 + $0x160] sm:$0xff] }
 0x14d   : > { %1511 = vmatpush.msrb.mxu1 %v4908_v48 }
 0x14e   : > { %1472 = vmatpush.msra.mxu2 %v4918_v50  ;;  %1491 = vmatpush.msrb.mxu0 %v5014_v1 }
 0x14f   : > { %v1045_v28 = vpop.f32.mrf.mxu2  ;;  %v1082_v31 = vpop.f32.mrf.mxu3  ;;  %1512 = vmatpush.msrb.mxu1 %v4924_v51 }
 0x150   : > { %1473 = vmatpush.msra.mxu2 %v4947_v55  ;;  %1492 = vmatpush.msrb.mxu0 %v5036_v10 }
 0x151   : > { %1513 = vmatpush.msrb.mxu1 %v4953_v56 }
 0x152   : > { %v1058_v32 = vpop.f32.mrf.mxu0  ;;  %1474 = vmatpush.msra.mxu2 %v4963_v57  ;;  %1493 = vmatpush.msrb.mxu0 %v5064_v8 }
 0x153   : > { %1514 = vmatpush.msrb.mxu1 %v4973_v59  ;;  %v5152_v32 = vld [vmem:[%s6426_s4 + $0x168] sm:$0xff] }
 0x154   : > { %1475 = vmatpush.msra.mxu2 %v4985_v62  ;;  %1494 = vmatpush.msrb.mxu0 %v5086_v16 }
 0x155   : > { %1515 = vmatpush.msrb.mxu1 %v4997_v63 }
 0x156   : > { %1476 = vmatpush.msra.mxu2 %v5007_v36  ;;  %1495 = vmatpush.msrb.mxu0 %v5110_v23 }
 0x157   : > { %v1069_v33 = vpop.f32.mrf.mxu2  ;;  %v1084_v35 = vpop.f32.mrf.mxu3  ;;  %1516 = vmatpush.msrb.mxu1 %v5019_v2 }
 0x158   : > { %v1070_v34 = vadd.f32 %v1069_v33, %v1057_v24  ;;  %1477 = vmatpush.msra.mxu2 %v5031_v4  ;;  %v5141_v24 = vld [vmem:[%s6426_s4 + $0x18] sm:$0xff]  ;;  %1496 = vmatpush.msrb.mxu0 %v5136_v22  ;;  %v5159_v33 = vld [vmem:[%s6426_s4] sm:$0xff]  ;;  %v5169_v35 = vld [vmem:[%s6426_s4 + $0x8] sm:$0xff] }
 0x159   : > { %1517 = vmatpush.msrb.mxu1 %v5043_v5 }
 0x15a   : > { %v4884_v37 = vadd.f32 %v1082_v31, %v1070_v34  ;;  %v1126_v38 = vpop.f32.mrf.mxu0  ;;  %1478 = vmatpush.msra.mxu2 %v5059_v7  ;;  %v5164_v34 = vld [vmem:[%s6426_s4 + $0x150] sm:$0xff] }
 0x15b   : > { %v1132_v39 = vpack.c.bf16 %v1126_v38, %v1126_v38  ;;  %1518 = vmatpush.msrb.mxu1 %v5069_v11  ;;  %1497 = vmatpush.msrb.mxu0 %v5164_v34  ;;  %v5176_v38 = vld [vmem:[%s6426_s4 + $0x158] sm:$0xff] }
 0x15c   : > { %1479 = vmatpush.msra.mxu2 %v5081_v13 }
 0x15d   : > { %3310 = vmatmul.msk.bf16.vlgmr.msrb.gmra.mxu3 %vm743_vm2, %v1132_v39  ;;  %3311 = vmatmul.msk.bf16.vlgmr.msra.gmra.mxu1 %vm743_vm2, %v1132_v39  ;;  %v5181_v39 = vld [vmem:[%s6426_s4 + $0x140] sm:$0xff] }
 0x15e   : > { %1527 = vmatpush.msrb.mxu3 %v4929_v52  ;;  %1519 = vmatpush.msrb.mxu1 %v5093_v17 }
 0x15f   : > { %v1071_v40 = vpop.f32.mrf.mxu2  ;;  %v1113_v41 = vpop.f32.mrf.mxu3  ;;  %1480 = vmatpush.msra.mxu2 %v5103_v9  ;;  %1498 = vmatpush.msrb.mxu0 %v5181_v39 }
 0x160   : > { %v1131_v42 = vpack.c.bf16 %v1113_v41, %v1113_v41  ;;  %1528 = vmatpush.msrb.mxu3 %v4941_v54  ;;  %1520 = vmatpush.msrb.mxu1 %v5115_v19  ;;  %v5186_v40 = vld [vmem:[%s6426_s4 + $0x148] sm:$0xff]  ;;  %v5199_v41 = vld [vmem:[%s6426_s4 + $0x130] sm:$0xff] }
 0x161   : > { %1481 = vmatpush.msra.mxu2 %v5131_v21  ;;  %1499 = vmatpush.msrb.mxu0 %v5199_v41 }
 0x162   : > { %v1128_v43 = vpop.f32.mrf.mxu0  ;;  %1374 = vmatmul.bf16.vlgmr.msrb.gmra.mxu2 %v1131_v42  ;;  %1529 = vmatpush.msrb.mxu3 %v4980_v61 }
 0x163   : > { %1521 = vmatpush.msrb.mxu1 %v5141_v24  ;;  %1482 = vmatpush.msra.mxu2 %v5159_v33  ;;  %v5241_v43 = vld [vmem:[%s6426_s4 + $0x100] sm:$0xff] }
 0x164   : > { %1530 = vmatpush.msrb.mxu3 %v5002_v0 }
 0x165   : > { %1522 = vmatpush.msrb.mxu1 %v5169_v35  ;;  %1549 = vmatpush.msrb.mxu2 %v4851_v25 }
 0x166   : > { %1531 = vmatpush.msrb.mxu3 %v5024_v3 }
 0x167   : > { %v1115_v44 = vpop.f32.mrf.mxu3  ;;  %1589 = vmatpush.msra.mxu1 %v4856_v26  ;;  %1550 = vmatpush.msrb.mxu2 %v4861_v27  ;;  %v5213_v27 = vld [vmem:[%s6426_s4 + $0x120] sm:$0xff] }
 0x168   : > { %1532 = vmatpush.msrb.mxu3 %v5048_v6  ;;  %1500 = vmatpush.msrb.mxu0 %v5213_v27  ;;  %v5246_v44 = vld [vmem:[%s6426_s4 + $0x108] sm:$0xff] }
 0x169   : > { %1590 = vmatpush.msra.mxu1 %v4868_v12  ;;  %1551 = vmatpush.msrb.mxu2 %v4873_v29  ;;  %v5218_v12 = vld [vmem:[%s6426_s4 + $0x128] sm:$0xff]  ;;  %v5227_v29 = vld [vmem:[%s6426_s4 + $0x110] sm:$0xff] }
 0x16a   : > { %1533 = vmatpush.msrb.mxu3 %v5076_v14  ;;  %1501 = vmatpush.msrb.mxu0 %v5227_v29 }
 0x16b   : > { %1591 = vmatpush.msra.mxu1 %v4878_v30  ;;  %1552 = vmatpush.msrb.mxu2 %v4891_v45  ;;  %v5232_v30 = vld [vmem:[%s6426_s4 + $0x118] sm:$0xff] }
 0x16c   : > { %1534 = vmatpush.msrb.mxu3 %v5098_v18  ;;  %1502 = vmatpush.msrb.mxu0 %v5241_v43 }
 0x16d   : > { %1413 = vmatmul.bf16.vlgmr.msra.gmra.mxu3 %v1131_v42  ;;  %v5204_v42 = vld [vmem:[%s6426_s4 + $0x138] sm:$0xff]  ;;  %1592 = vmatpush.msra.mxu1 %v4896_v46 }
 0x16e   : > { %1535 = vmatpush.msrb.mxu3 %v5120_v20  ;;  %1553 = vmatpush.msrb.mxu2 %v4901_v47 }
 0x16f   : > { %1593 = vmatpush.msra.mxu1 %v4908_v48  ;;  %1569 = vmatpush.msra.mxu0 %v4913_v49  ;;  %v1433_v49 = vld [vmem:[%s6425_s3] sm:$0x3] }
 0x170   : > { %1536 = vmatpush.msrb.mxu3 %v5152_v32  ;;  %1554 = vmatpush.msrb.mxu2 %v4918_v50 }
 0x171   : > { %1594 = vmatpush.msra.mxu1 %v4924_v51  ;;  %1570 = vmatpush.msra.mxu0 %v4936_v53  ;;  %v1435_v53 = vperm.slane %v1433_v49, 0 }
 0x172   : > { %1537 = vmatpush.msrb.mxu3 %v5176_v38  ;;  %1555 = vmatpush.msrb.mxu2 %v4947_v55 }
 0x173   : > { %1595 = vmatpush.msra.mxu1 %v4953_v56  ;;  %1571 = vmatpush.msra.mxu0 %v4968_v58 }
 0x174   : > { %1538 = vmatpush.msrb.mxu3 %v5186_v40  ;;  %1556 = vmatpush.msrb.mxu2 %v4963_v57 }
 0x175   : > { %1596 = vmatpush.msra.mxu1 %v4973_v59  ;;  %1572 = vmatpush.msra.mxu0 %v4990_v60 }
 0x176   : > { %1539 = vmatpush.msrb.mxu3 %v5204_v42  ;;  %1557 = vmatpush.msrb.mxu2 %v4985_v62 }
 0x177   : > { %1597 = vmatpush.msra.mxu1 %v4997_v63  ;;  %1573 = vmatpush.msra.mxu0 %v5014_v1  ;;  %v1436_v63 = vperm.slane %v1433_v49, 1 }
 0x178   : > { %1540 = vmatpush.msrb.mxu3 %v5218_v12  ;;  %1558 = vmatpush.msrb.mxu2 %v5007_v36 }
 0x179   : > { %1598 = vmatpush.msra.mxu1 %v5019_v2  ;;  %1574 = vmatpush.msra.mxu0 %v5036_v10 }
 0x17a   : > { %1541 = vmatpush.msrb.mxu3 %v5232_v30  ;;  %1559 = vmatpush.msrb.mxu2 %v5031_v4 }
 0x17b   : > { %1599 = vmatpush.msra.mxu1 %v5043_v5  ;;  %1575 = vmatpush.msra.mxu0 %v5064_v8 }
 0x17c   : > { %1542 = vmatpush.msrb.mxu3 %v5246_v44  ;;  %1560 = vmatpush.msrb.mxu2 %v5059_v7 }
 0x17d   : > { %1600 = vmatpush.msra.mxu1 %v5069_v11  ;;  %1576 = vmatpush.msra.mxu0 %v5086_v16 }
 0x17e   : > { %1609 = vmatpush.msra.mxu3 %v4929_v52  ;;  %1561 = vmatpush.msrb.mxu2 %v5081_v13 }
 0x17f   : > { %1601 = vmatpush.msra.mxu1 %v5093_v17  ;;  %1577 = vmatpush.msra.mxu0 %v5110_v23 }
 0x180   : > { %1610 = vmatpush.msra.mxu3 %v4941_v54  ;;  %1562 = vmatpush.msrb.mxu2 %v5103_v9 }
 0x181   : > { %1602 = vmatpush.msra.mxu1 %v5115_v19  ;;  %1578 = vmatpush.msra.mxu0 %v5136_v22 }
 0x182   : > { %1611 = vmatpush.msra.mxu3 %v4980_v61  ;;  %1563 = vmatpush.msrb.mxu2 %v5131_v21 }
 0x183   : > { %1603 = vmatpush.msra.mxu1 %v5141_v24  ;;  %1579 = vmatpush.msra.mxu0 %v5164_v34 }
 0x184   : > { %1612 = vmatpush.msra.mxu3 %v5002_v0  ;;  %1564 = vmatpush.msrb.mxu2 %v5159_v33 }
 0x185   : > { %1604 = vmatpush.msra.mxu1 %v5169_v35  ;;  %1580 = vmatpush.msra.mxu0 %v5181_v39 }
 0x186   : > { %1613 = vmatpush.msra.mxu3 %v5024_v3 }
 0x187   : > { %1581 = vmatpush.msra.mxu0 %v5199_v41 }
 0x188   : > { %1614 = vmatpush.msra.mxu3 %v5048_v6 }
 0x189   : > { %1582 = vmatpush.msra.mxu0 %v5213_v27 }
 0x18a   : > { %1615 = vmatpush.msra.mxu3 %v5076_v14 }
 0x18b   : > { %1583 = vmatpush.msra.mxu0 %v5227_v29 }
 0x18c   : > { %1616 = vmatpush.msra.mxu3 %v5098_v18 }
 0x18d   : > { %1584 = vmatpush.msra.mxu0 %v5241_v43 }
 0x18e   : > { %1617 = vmatpush.msra.mxu3 %v5120_v20 }
 0x190   : > { %1618 = vmatpush.msra.mxu3 %v5152_v32 }
 0x192   : > { %1619 = vmatpush.msra.mxu3 %v5176_v38 }
 0x194   : > { %1620 = vmatpush.msra.mxu3 %v5186_v40 }
 0x196   : > { %1621 = vmatpush.msra.mxu3 %v5204_v42 }
 0x198   : > { %1622 = vmatpush.msra.mxu3 %v5218_v12 }
 0x19a   : > { %1623 = vmatpush.msra.mxu3 %v5232_v30 }
 0x19c   : > { %1624 = vmatpush.msra.mxu3 %v5246_v44 }
 0x1c1   : > { %v5143_v28 = vpop.f32.mrf.mxu1  ;;  %v5145_v31 = vpop.f32.mrf.mxu0 }
 0x1c9   : > { %v1364_v25 = vpop.f32.mrf.mxu1  ;;  %v1403_v26 = vpop.f32.mrf.mxu0 }
 0x1da   : > { %v1427_v45 = vpop.f32.mrf.mxu1 }
 0x1e0   : > { %v1388_v46 = vpop.f32.mrf.mxu3 }
 0x1e2   : > { %v1429_v47 = vpop.f32.mrf.mxu1 }
 0x1e5   : > { %v1375_v48 = vpop.f32.mrf.mxu2 }
 0x1e6   : > { %v1376_v50 = vadd.f32 %v1375_v48, %v5143_v28 }
 0x1e8   : > { %v1390_v51 = vpop.f32.mrf.mxu3  ;;  %v1389_v52 = vadd.f32 %v1388_v46, %v1376_v50  ;;  %v3468_v50 = vld [vmem:[%s6428_s6 + $0xf0] sm:$0xf] }
 0x1ea   : > { %v1431_v54 = vadd.f32 %v1389_v52, %v4840_v15  ;;  %v3939_v52 = vld [vmem:[%s6428_s6 + $0xf4] sm:$0xf0] }
 0x1ec   : > { %v5308_v55 = vadd.f32 %v1435_v53, %v1431_v54  ;;  %v3469_v54 = vor.u32 %v3939_v52, %v3468_v50  ;;  %v3420_v50 = vld [vmem:[%s6428_s6 + $0x90] sm:$0xf] }
 0x1ed   : > { %v1377_v56 = vpop.f32.mrf.mxu2 }
 0x1ee   : > { %6434 = vst [vmem:[#allocation2_spill] sm:$0xff] %v5308_v55  ;;  %v1441_v58 = vrot.slane %v5308_v55, 4  ;;  %v1453_v59 = vmul.f32 %v5308_v55, %v5308_v55  ;;  %v3460_v56 = vld [vmem:[%s6428_s6 + $0xe0] sm:$0xf] }
 0x1f0   : > { %v1414_v57 = vpop.f32.mrf.mxu3  ;;  %v1442_v62 = vadd.f32 %v1441_v58, %v5308_v55  ;;  %v1455_v15 = vrot.slane %v1453_v59, 4 }
 0x1f1   : > { %v1415_v61 = vadd.f32 %v1414_v57, %v5145_v31  ;;  %v3937_v57 = vld [vmem:[%s6428_s6 + $0xe4] sm:$0xf0] }
 0x1f2   : > { %v1443_v0 = vrot.slane %v1442_v62, 2  ;;  %v1456_v36 = vadd.f32 %v1455_v15, %v1453_v59  ;;  %v3461_v59 = vor.u32 %v3937_v57, %v3460_v56  ;;  %v3922_v15 = vld [vmem:[%s6428_s6 + $0x74] sm:$0xf]  ;;  %v3470_v57 = vld [vmem:[%s6428_s6 + $0xf8] sm:$0xf0] }
 0x1f3   : > { %v1428_v60 = vadd.f32 %v1427_v45, %v1415_v61  ;;  %v3452_v61 = vld [vmem:[%s6428_s6 + $0xd0] sm:$0xf] }
 0x1f4   : > { %v1444_v2 = vadd.f32 %v1443_v0, %v1442_v62  ;;  %v1457_v3 = vrot.slane %v1456_v36, 2  ;;  %v3935_v62 = vld [vmem:[%s6428_s6 + $0xd4] sm:$0xf0] }
 0x1f5   : > { %v1432_v1 = vadd.f32 %v1428_v60, %v4884_v37 }
 0x1f6   : > { %v1445_v5 = vrot.slane %v1444_v2, 1  ;;  %v1458_v11 = vadd.f32 %v1457_v3, %v1456_v36 }
 0x1f7   : > { %v5317_v4 = vadd.f32 %v1436_v63, %v1432_v1  ;;  %v3406_v63 = vld [vmem:[%s6428_s6 + $0x78] sm:$0xf0] }
 0x1f8   : > { %v1416_v10 = vpop.f32.mrf.mxu3  ;;  %v1446_v8 = vadd.f32 %v1445_v5, %v1444_v2  ;;  %v1459_v17 = vrot.slane %v1458_v11, 1  ;;  %v3409_v1 = vor.u32 %v3922_v15, %v3406_v63  ;;  %v3444_v5 = vld [vmem:[%s6428_s6 + $0xc0] sm:$0xf]  ;;  %v3936_v63 = vld [vmem:[%s6428_s6 + $0xe4] sm:$0xf] }
 0x1f9   : > { %6435 = vst [vmem:[#allocation3_spill] sm:$0xff] %v5317_v4  ;;  %v1447_v6 = vrot.slane %v5317_v4, 4  ;;  %v1454_v7 = vmul.f32 %v5317_v4, %v5317_v4  ;;  %v3453_v10 = vor.u32 %v3935_v62, %v3452_v61  ;;  %v3388_v61 = vld [vmem:[%s6428_s6 + $0x50] sm:$0xf] }
 0x1fa   : > { %1483 = vmatmul.f32.vlgmr.msra.gmra.mxu2 %v1446_v8  ;;  %1523 = vmatmul.f32.vlgmr.msrb.gmra.mxu1 %v1446_v8  ;;  %v1460_v19 = vadd.f32 %v1459_v17, %v1458_v11  ;;  %v3398_v8 = vld [vmem:[%s6428_s6 + $0x68] sm:$0xf0] }
 0x1fb   : > { %v1448_v14 = vadd.f32 %v1447_v6, %v5317_v4  ;;  %v1461_v13 = vrot.slane %v1454_v7, 4  ;;  %1953 = vmatpush.bf16.msrb.mxu1 %v3469_v54  ;;  %v3933_v6 = vld [vmem:[%s6428_s6 + $0xc4] sm:$0xf0]  ;;  %v3374_v54 = vld [vmem:[%s6428_s6 + $0x38] sm:$0xf0] }
 0x1fc   : > { %v3445_v17 = vor.u32 %v3933_v6, %v3444_v5  ;;  %v3462_v5 = vld [vmem:[%s6428_s6 + $0xe8] sm:$0xf0]  ;;  %v3596_v6 = vld [vmem:[%s6428_s6 + $0x1f0] sm:$0xf] }
 0x1fd   : > { %v1449_v16 = vrot.slane %v1448_v14, 2  ;;  %v1462_v37 = vadd.f32 %v1461_v13, %v1454_v7  ;;  %v3920_v7 = vld [vmem:[%s6428_s6 + $0x64] sm:$0xf] }
 0x1fe   : > { %v3401_v13 = vor.u32 %v3920_v7, %v3398_v8  ;;  %v3907_v7 = vld [vmem:[%s6428_s6 + $0x1f4] sm:$0xf0] }
 0x1ff   : > { %v1450_v18 = vadd.f32 %v1449_v16, %v1448_v14  ;;  %v1463_v9 = vrot.slane %v1462_v37, 2  ;;  %1954 = vmatpush.bf16.msrb.mxu1 %v3461_v59 }
 0x201   : > { %v1451_v23 = vrot.slane %v1450_v18, 1  ;;  %v1464_v21 = vadd.f32 %v1463_v9, %v1462_v37  ;;  %v3931_v9 = vld [vmem:[%s6428_s6 + $0xb4] sm:$0xf0] }
 0x202   : > { %1565 = vmatmul.f32.vlgmr.msrb.gmra.mxu2 %v1460_v19  ;;  %1605 = vmatmul.f32.vlgmr.msra.gmra.mxu1 %v1460_v19 }
 0x203   : > { %v1452_v20 = vadd.f32 %v1451_v23, %v1450_v18  ;;  %v1465_v22 = vrot.slane %v1464_v21, 1  ;;  %1955 = vmatpush.bf16.msrb.mxu1 %v3453_v10  ;;  %v3436_v18 = vld [vmem:[%s6428_s6 + $0xb0] sm:$0xf]  ;;  %v3366_v10 = vld [vmem:[%s6428_s6 + $0x28] sm:$0xf0] }
 0x205   : > { %1503 = vmatmul.f32.vlgmr.msrb.gmra.mxu0 %v1452_v20  ;;  %1543 = vmatmul.f32.vlgmr.msrb.gmra.mxu3 %v1452_v20  ;;  %v1466_v24 = vadd.f32 %v1465_v22, %v1464_v21  ;;  %v3918_v20 = vld [vmem:[%s6428_s6 + $0x54] sm:$0xf]  ;;  %v3390_v21 = vld [vmem:[%s6428_s6 + $0x58] sm:$0xf0] }
 0x206   : > { %1966 = vmatpush.bf16.msrb.mxu3 %v3409_v1 }
 0x207   : > { %1956 = vmatpush.bf16.msrb.mxu1 %v3445_v17  ;;  %v3910_v17 = vld [vmem:[%s6428_s6 + $0x14] sm:$0xf] }
 0x20a   : > { %1967 = vmatpush.bf16.msrb.mxu3 %v3401_v13  ;;  %v3380_v13 = vld [vmem:[%s6428_s6 + $0x40] sm:$0xf] }
 0x20d   : > { %1585 = vmatmul.f32.vlgmr.msra.gmra.mxu0 %v1466_v24  ;;  %1625 = vmatmul.f32.vlgmr.msra.gmra.mxu3 %v1466_v24  ;;  %v3393_v24 = vor.u32 %v3918_v20, %v3390_v21  ;;  %v3454_v20 = vld [vmem:[%s6428_s6 + $0xd8] sm:$0xf0]  ;;  %v3588_v21 = vld [vmem:[%s6428_s6 + $0x1e0] sm:$0xf] }
 0x20f   : > { %1968 = vmatpush.bf16.msrb.mxu3 %v3393_v24 }
 0x277   : > { %v1524_v33 = vpop.f32.mrf.mxu1 }
 0x27d   : > { %v1484_v28 = vpop.f32.mrf.mxu2 }
 0x27f   : > { %v1606_v12 = vpop.f32.mrf.mxu1 }
 0x282   : > { %v1504_v31 = vpop.f32.mrf.mxu0 }
 0x283   : > { %v1505_v32 = vadd.f32 %v1504_v31, %v1484_v28 }
 0x285   : > { %v1547_v35 = vmul.f32 0.015625, %v1505_v32  ;;  %v1566_v38 = vpop.f32.mrf.mxu2  ;;  %v3404_v32 = vld [vmem:[%s6428_s6 + $0x70] sm:$0xf] }
 0x287   : > { %v1631_v42 = vmul.f32 %v1547_v35, %v1547_v35  ;;  %v1637_v36 = vperm.slane %v1547_v35, 0  ;;  %v3437_v35 = vor.u32 %v3931_v9, %v3436_v18  ;;  %v3465_v18 = vor.u32 %v3936_v63, %v3462_v5  ;;  %v3934_v9 = vld [vmem:[%s6428_s6 + $0xd4] sm:$0xf]  ;;  %v3430_v63 = vld [vmem:[%s6428_s6 + $0xa8] sm:$0xf0] }
 0x288   : > { %v1544_v34 = vpop.f32.mrf.mxu3  ;;  %v3909_v5 = vld [vmem:[%s6428_s6 + $0x4] sm:$0xf0] }
 0x289   : > { %v1545_v40 = vadd.f32 %v1544_v34, %v1524_v33  ;;  %v1639_v23 = vsub.f32 %v5308_v55, %v1637_v36  ;;  %v3923_v33 = vld [vmem:[%s6428_s6 + $0x74] sm:$0xf0]  ;;  %1957 = vmatpush.bf16.msrb.mxu1 %v3437_v35  ;;  %v3457_v35 = vor.u32 %v3934_v9, %v3454_v20 }
 0x28a   : > { %v1586_v39 = vpop.f32.mrf.mxu0 }
 0x28b   : > { %v1587_v41 = vadd.f32 %v1586_v39, %v1566_v38  ;;  %v5323_v26 = vmul.f32 0.015625, %v1545_v40  ;;  %v3428_v38 = vld [vmem:[%s6428_s6 + $0xa0] sm:$0xf]  ;;  %v3929_v39 = vld [vmem:[%s6428_s6 + $0xa4] sm:$0xf0] }
 0x28c   : > { %v3916_v40 = vld [vmem:[%s6428_s6 + $0x44] sm:$0xf] }
 0x28d   : > { %v1629_v25 = vmul.f32 0.015625, %v1587_v41  ;;  %v1632_v44 = vmul.f32 %v5323_v26, %v5323_v26  ;;  %v1638_v28 = vperm.slane %v5323_v26, 0 }
 0x28f   : > { %v1633_v27 = vsub.f32 %v1629_v25, %v1631_v42  ;;  %v3382_v42 = vld [vmem:[%s6428_s6 + $0x48] sm:$0xf0] }
 0x290   : > { %v1626_v29 = vpop.f32.mrf.mxu3  ;;  %v3385_v26 = vor.u32 %v3916_v40, %v3382_v42  ;;  %v3580_v40 = vld [vmem:[%s6428_s6 + $0x1d0] sm:$0xf]  ;;  %v3903_v42 = vld [vmem:[%s6428_s6 + $0x1d4] sm:$0xf0] }
 0x291   : > { %v1635_v30 = vmax.f32 %v1633_v27, 0.0  ;;  %v1627_v43 = vadd.f32 %v1626_v29, %v1606_v12  ;;  %v1640_v27 = vsub.f32 %v5317_v4, %v1638_v28  ;;  %v6297_v4 = vld [vmem:[%s6426_s4 + $0x18] sm:$0xff] }
 0x292   : > { %1969 = vmatpush.bf16.msrb.mxu3 %v3385_v26  ;;  %v3890_v26 = vld [vmem:[%s6428_s6 + $0x174] sm:$0xf] }
 0x293   : > { %v1641_v45 = vadd.f32 1e-05, %v1635_v30  ;;  %v1630_v46 = vmul.f32 0.015625, %v1627_v43  ;;  %v3405_v43 = vor.u32 %v3923_v33, %v3404_v32  ;;  %v3915_v32 = vld [vmem:[%s6428_s6 + $0x34] sm:$0xf0] }
 0x294   : > { %v3932_v33 = vld [vmem:[%s6428_s6 + $0xc4] sm:$0xf] }
 0x295   : > { %3981 = vrsqrt.f32 %v1641_v45  ;;  %v1634_v47 = vsub.f32 %v1630_v46, %v1632_v44  ;;  %vm1649_vm4 = vweird.f32 %v1641_v45  ;;  %v3396_v44 = vld [vmem:[%s6428_s6 + $0x60] sm:$0xf]  ;;  %v3429_v46 = vor.u32 %v3929_v39, %v3428_v38  ;;  %v3446_v38 = vld [vmem:[%s6428_s6 + $0xc8] sm:$0xf0] }
 0x297   : > { %v1636_v48 = vmax.f32 %v1634_v47, 0.0  ;;  %v1708_v47 = vld [vmem:[%s6427_s5] sm:$0xf]  ;;  %1958 = vmatpush.bf16.msrb.mxu1 %v3429_v46  ;;  %v3449_v46 = vor.u32 %v3932_v33, %v3446_v38  ;;  %v3598_v33 = vld [vmem:[%s6428_s6 + $0x1f8] sm:$0xf0] }
 0x298   : > { %v3887_v38 = vld [vmem:[%s6428_s6 + $0x154] sm:$0xf0] }
 0x299   : > { %v1642_v49 = vadd.f32 1e-05, %v1636_v48 }
 0x29b   : > { %v3982_v51 = vpop.eup %3981  ;;  %3983 = vrsqrt.f32 %v1642_v49  ;;  %vm1659_vm7 = vweird.f32 %v1642_v49 }
 0x29c   : > { %v1644_v53 = vmul.f32 %v3982_v51, %v1641_v45  ;;  %vm1650_vm3 = vweird.f32 %v3982_v51  ;;  %v3921_v45 = vld [vmem:[%s6428_s6 + $0x64] sm:$0xf0] }
 0x29d   : > { %vm1651_vm5 = vmor %vm1649_vm4, %vm1650_vm3  ;;  %v3397_v59 = vor.u32 %v3921_v45, %v3396_v44  ;;  %v3913_v44 = vld [vmem:[%s6428_s6 + $0x24] sm:$0xf0]  ;;  %v3888_v45 = vld [vmem:[%s6428_s6 + $0x164] sm:$0xf] }
 0x29e   : > { %v1645_v58 = vmul.f32 %v3982_v51, %v1644_v53  ;;  %v3914_v53 = vld [vmem:[%s6428_s6 + $0x34] sm:$0xf] }
 0x2a0   : > { %v1646_v60 = vmul.f32 0.5, %v1645_v58  ;;  %v3377_v58 = vor.u32 %v3914_v53, %v3374_v54  ;;  %v3901_v53 = vld [vmem:[%s6428_s6 + $0x1c4] sm:$0xf0] }
 0x2a1   : > { %v3984_v0 = vpop.eup %3983 }
 0x2a2   : > { %v1647_v2 = vsub.f32 1.5, %v1646_v60  ;;  %v1654_v3 = vmul.f32 %v3984_v0, %v1642_v49  ;;  %vm1660_vm6 = vweird.f32 %v3984_v0  ;;  %v3938_v49 = vld [vmem:[%s6428_s6 + $0xf4] sm:$0xf]  ;;  %v3919_v60 = vld [vmem:[%s6428_s6 + $0x54] sm:$0xf0]  ;;  %1970 = vmatpush.bf16.msrb.mxu3 %v3377_v58 }
 0x2a3   : > { %vm1661_vm8 = vmor %vm1659_vm7, %vm1660_vm6  ;;  %v3473_v1 = vor.u32 %v3938_v49, %v3470_v57  ;;  %v3526_v49 = vld [vmem:[%s6428_s6 + $0x168] sm:$0xf0]  ;;  %v3356_v57 = vld [vmem:[%s6428_s6 + $0x10] sm:$0xf] }
 0x2a4   : > { %v1648_v11 = vmul.f32 %v3982_v51, %v1647_v2  ;;  %v1655_v14 = vmul.f32 %v3984_v0, %v1654_v3  ;;  %v3412_v2 = vld [vmem:[%s6428_s6 + $0x80] sm:$0xf]  ;;  %v3925_v3 = vld [vmem:[%s6428_s6 + $0x84] sm:$0xf0]  ;;  %v3529_v54 = vor.u32 %v3888_v45, %v3526_v49  ;;  %v3911_v58 = vld [vmem:[%s6428_s6 + $0x14] sm:$0xf0] }
 0x2a6   : > { %v1652_v16 = vsel %vm1651_vm5, %v3982_v51, %v1648_v11  ;;  %v1656_v37 = vmul.f32 0.5, %v1655_v14  ;;  %v3927_v51 = vld [vmem:[%s6428_s6 + $0x94] sm:$0xf0]  ;;  %v3389_v14 = vor.u32 %v3919_v60, %v3388_v61  ;;  %v3518_v60 = vld [vmem:[%s6428_s6 + $0x158] sm:$0xf0] }
 0x2a7   : > { %v1663_v19 = vperm.slane %v1652_v16, 0  ;;  %v3421_v62 = vor.u32 %v3927_v51, %v3420_v50  ;;  %v3917_v16 = vld [vmem:[%s6428_s6 + $0x44] sm:$0xf0]  ;;  %v3438_v50 = vld [vmem:[%s6428_s6 + $0xb8] sm:$0xf0] }
 0x2a8   : > { %v1657_v22 = vsub.f32 1.5, %v1656_v37  ;;  %v3413_v37 = vor.u32 %v3925_v3, %v3412_v2  ;;  %v3381_v28 = vor.u32 %v3917_v16, %v3380_v13  ;;  %v3572_v51 = vld [vmem:[%s6428_s6 + $0x1c0] sm:$0xf]  ;;  %v3357_v3 = vor.u32 %v3911_v58, %v3356_v57  ;;  %v3422_v16 = vld [vmem:[%s6428_s6 + $0x98] sm:$0xf0] }
 0x2a9   : > { %v1665_v31 = vmul.f32 %v1663_v19, %v1639_v23  ;;  %1959 = vmatpush.bf16.msrb.mxu1 %v3421_v62  ;;  %v3597_v23 = vor.u32 %v3907_v7, %v3596_v6  ;;  %v3358_v19 = vld [vmem:[%s6428_s6 + $0x18] sm:$0xf0]  ;;  %v3928_v62 = vld [vmem:[%s6428_s6 + $0xa4] sm:$0xf]  ;;  %v3532_v6 = vld [vmem:[%s6428_s6 + $0x170] sm:$0xf] }
 0x2aa   : > { %v1658_v34 = vmul.f32 %v3984_v0, %v1657_v22  ;;  %v3905_v22 = vld [vmem:[%s6428_s6 + $0x1e4] sm:$0xf0]  ;;  %v3361_v24 = vor.u32 %v3910_v17, %v3358_v19  ;;  %v3891_v7 = vld [vmem:[%s6428_s6 + $0x174] sm:$0xf0]  ;;  %v3884_v58 = vld [vmem:[%s6428_s6 + $0x144] sm:$0xf] }
 0x2ab   : > { %vm1667_vm9 = vcmp.ge.f32.partialorder %v1665_v31, 0.0  ;;  %v1669_v41 = vmul.f32 0.1, %v1665_v31  ;;  %v3589_v39 = vor.u32 %v3905_v22, %v3588_v21  ;;  %v3897_v17 = vld [vmem:[%s6428_s6 + $0x1a4] sm:$0xf0]  ;;  %v3533_v9 = vor.u32 %v3891_v7, %v3532_v6 }
 0x2ac   : > { %v1662_v25 = vsel %vm1661_vm8, %v3984_v0, %v1658_v34  ;;  %v3912_v0 = vld [vmem:[%s6428_s6 + $0x24] sm:$0xf]  ;;  %v3889_v19 = vld [vmem:[%s6428_s6 + $0x164] sm:$0xf0]  ;;  %v3502_v6 = vld [vmem:[%s6428_s6 + $0x138] sm:$0xf0] }
 0x2ad   : > { %v1664_v12 = vperm.slane %v1662_v25, 0  ;;  %v1671_v29 = vsel %vm1667_vm9, %v1665_v31, %v1669_v41  ;;  %v3369_v8 = vor.u32 %v3912_v0, %v3366_v10  ;;  %v3372_v31 = vld [vmem:[%s6428_s6 + $0x30] sm:$0xf]  ;;  %1960 = vmatpush.bf16.msrb.mxu1 %v3413_v37  ;;  %v3908_v34 = vld [vmem:[%s6428_s6 + $0x4] sm:$0xf] }
 0x2ae   : > { %v5396_v30 = vpack.c.bf16 %v1671_v29, %v1671_v29  ;;  %v3350_v41 = vld [vmem:[%s6428_s6 + $0x8] sm:$0xf0]  ;;  %v3564_v0 = vld [vmem:[%s6428_s6 + $0x1b0] sm:$0xf]  ;;  %v3348_v10 = vld [vmem:[%s6428_s6] sm:$0xf] }
 0x2af   : > { %v1666_v48 = vmul.f32 %v1664_v12, %v1640_v27  ;;  %1971 = vmatpush.bf16.msrb.mxu3 %v3369_v8  ;;  %v3353_v25 = vor.u32 %v3908_v34, %v3350_v41  ;;  %v3534_v27 = vld [vmem:[%s6428_s6 + $0x178] sm:$0xf0]  ;;  %v3373_v12 = vor.u32 %v3915_v32, %v3372_v31  ;;  %v3433_v8 = vor.u32 %v3928_v62, %v3430_v63  ;;  %v3556_v37 = vld [vmem:[%s6428_s6 + $0x1a0] sm:$0xf]  ;;  %v3924_v21 = vld [vmem:[%s6428_s6 + $0x84] sm:$0xf] }
 0x2b0   : > { %v5418_v52 = vsel %vm1713_vm10, %v5396_v30, 0  ;;  %v3537_v29 = vor.u32 %v3890_v26, %v3534_v27  ;;  %v3557_v22 = vor.u32 %v3897_v17, %v3556_v37  ;;  %v3895_v31 = vld [vmem:[%s6428_s6 + $0x194] sm:$0xf0]  ;;  %v3906_v32 = vld [vmem:[%s6428_s6 + $0x1f4] sm:$0xf] }
 0x2b1   : > { %1727 = vmatpush.bf16.msra.mxu2 %v5418_v52  ;;  %vm1668_vm12 = vcmp.ge.f32.partialorder %v1666_v48, 0.0  ;;  %v1670_v56 = vmul.f32 0.1, %v1666_v48  ;;  %2165 = vmatpush.bf16.msra.mxu1 %v3597_v23  ;;  %v3524_v23 = vld [vmem:[%s6428_s6 + $0x160] sm:$0xf]  ;;  %v3601_v41 = vor.u32 %v3906_v32, %v3598_v33 }
 0x2b2   : > { %v3525_v34 = vor.u32 %v3889_v19, %v3524_v23  ;;  %v3508_v27 = vld [vmem:[%s6428_s6 + $0x140] sm:$0xf]  ;;  %v3898_v7 = vld [vmem:[%s6428_s6 + $0x1b4] sm:$0xf]  ;;  %v3494_v37 = vld [vmem:[%s6428_s6 + $0x128] sm:$0xf0] }
 0x2b3   : > { %v1672_v15 = vsel %vm1668_vm12, %v1666_v48, %v1670_v56  ;;  %1972 = vmatpush.bf16.msrb.mxu3 %v3361_v24  ;;  %v3581_v48 = vor.u32 %v3903_v42, %v3580_v40  ;;  %v3414_v24 = vld [vmem:[%s6428_s6 + $0x88] sm:$0xf0]  ;;  %v3904_v42 = vld [vmem:[%s6428_s6 + $0x1e4] sm:$0xf]  ;;  %v3476_v63 = vld [vmem:[%s6428_s6 + $0x100] sm:$0xf] }
 0x2b4   : > { %3344 = vmatmul.msk.bf16.vlgmr.msra.gmra.mxu2 %vm1709_vm11, %v1708_v47  ;;  %v5443_v36 = vpack.c.bf16 %v1672_v15, %v1672_v15  ;;  %v3573_v15 = vor.u32 %v3901_v53, %v3572_v51  ;;  %v3881_v51 = vld [vmem:[%s6428_s6 + $0x124] sm:$0xf0]  ;;  %v3896_v17 = vld [vmem:[%s6428_s6 + $0x1a4] sm:$0xf]  ;;  %v3878_v23 = vld [vmem:[%s6428_s6 + $0x114] sm:$0xf] }
 0x2b5   : > { %1940 = vmatpush.bf16.msrb.mxu2 %v3405_v43  ;;  %v3364_v43 = vld [vmem:[%s6428_s6 + $0x20] sm:$0xf]  ;;  %2166 = vmatpush.bf16.msra.mxu1 %v3589_v39  ;;  %v3417_v39 = vor.u32 %v3924_v21, %v3414_v24  ;;  %v3486_v19 = vld [vmem:[%s6428_s6 + $0x118] sm:$0xf0]  ;;  %v3894_v21 = vld [vmem:[%s6428_s6 + $0x194] sm:$0xf] }
 0x2b6   : > { %v5465_v11 = vsel %vm1713_vm10, %v5443_v36, 0  ;;  %v3365_v56 = vor.u32 %v3913_v44, %v3364_v43  ;;  %v3902_v43 = vld [vmem:[%s6428_s6 + $0x1d4] sm:$0xf]  ;;  %v3582_v44 = vld [vmem:[%s6428_s6 + $0x1d8] sm:$0xf0]  ;;  %v3489_v24 = vor.u32 %v3878_v23, %v3486_v19 }
 0x2b7   : > { %1740 = vmatpush.bf16.msrb.mxu0 %v5465_v11  ;;  %1973 = vmatpush.bf16.msrb.mxu3 %v3353_v25  ;;  %v3590_v25 = vld [vmem:[%s6428_s6 + $0x1e8] sm:$0xf0]  ;;  %v3892_v33 = vld [vmem:[%s6428_s6 + $0x184] sm:$0xf]  ;;  %v3949_v23 = vld [vmem:[%s6428_s6 + $0x244] sm:$0xf0] }
 0x2b8   : > { %v3478_v32 = vld [vmem:[%s6428_s6 + $0x108] sm:$0xf0]  ;;  %v3948_v19 = vld [vmem:[%s6428_s6 + $0x244] sm:$0xf] }
 0x2b9   : > { %1941 = vmatpush.bf16.msrb.mxu2 %v3397_v59  ;;  %v3886_v59 = vld [vmem:[%s6428_s6 + $0x154] sm:$0xf]  ;;  %2167 = vmatpush.bf16.msra.mxu1 %v3581_v48  ;;  %v3585_v48 = vor.u32 %v3902_v43, %v3582_v44  ;;  %v3955_v43 = vld [vmem:[%s6428_s6 + $0x274] sm:$0xf0] }
 0x2ba   : > { %3345 = vmatmul.msk.bf16.vlgmr.msrb.gmra.mxu0 %vm1709_vm11, %v1708_v47  ;;  %v3930_v47 = vld [vmem:[%s6428_s6 + $0xb4] sm:$0xf]  ;;  %v3521_v2 = vor.u32 %v3886_v59, %v3518_v60  ;;  %v3510_v59 = vld [vmem:[%s6428_s6 + $0x148] sm:$0xf0] }
 0x2bb   : > { %1979 = vmatpush.bf16.msra.mxu0 %v3473_v1  ;;  %2178 = vmatpush.bf16.msra.mxu3 %v3537_v29  ;;  %v3441_v61 = vor.u32 %v3930_v47, %v3438_v50  ;;  %v3899_v1 = vld [vmem:[%s6428_s6 + $0x1b4] sm:$0xf0]  ;;  %v3593_v29 = vor.u32 %v3904_v42, %v3590_v25  ;;  %v3492_v50 = vld [vmem:[%s6428_s6 + $0x120] sm:$0xf]  ;;  %v3513_v62 = vor.u32 %v3884_v58, %v3510_v59  ;;  %v3954_v44 = vld [vmem:[%s6428_s6 + $0x274] sm:$0xf] }
 0x2bc   : > { %v3565_v13 = vor.u32 %v3899_v1, %v3564_v0  ;;  %v3883_v47 = vld [vmem:[%s6428_s6 + $0x134] sm:$0xf0]  ;;  %v3493_v53 = vor.u32 %v3881_v51, %v3492_v50  ;;  %v3877_v0 = vld [vmem:[%s6428_s6 + $0x104] sm:$0xf0]  ;;  %v3540_v1 = vld [vmem:[%s6428_s6 + $0x180] sm:$0xf] }
 0x2bd   : > { %1942 = vmatpush.bf16.msrb.mxu2 %v3389_v14  ;;  %v3926_v14 = vld [vmem:[%s6428_s6 + $0x94] sm:$0xf]  ;;  %2168 = vmatpush.bf16.msra.mxu1 %v3573_v15  ;;  %v3574_v15 = vld [vmem:[%s6428_s6 + $0x1c8] sm:$0xf0]  ;;  %v3969_v50 = vld [vmem:[%s6428_s6 + $0x2e4] sm:$0xf0] }
 0x2be   : > { %v3425_v20 = vor.u32 %v3926_v14, %v3422_v16  ;;  %v3566_v14 = vld [vmem:[%s6428_s6 + $0x1b8] sm:$0xf0]  ;;  %v3880_v16 = vld [vmem:[%s6428_s6 + $0x124] sm:$0xf] }
 0x2bf   : > { %1980 = vmatpush.bf16.msra.mxu0 %v3465_v18  ;;  %2179 = vmatpush.bf16.msra.mxu3 %v3529_v54  ;;  %v3349_v18 = vor.u32 %v3909_v5, %v3348_v10  ;;  %v3484_v54 = vld [vmem:[%s6428_s6 + $0x110] sm:$0xf]  ;;  %v3882_v5 = vld [vmem:[%s6428_s6 + $0x134] sm:$0xf]  ;;  %v3968_v51 = vld [vmem:[%s6428_s6 + $0x2e4] sm:$0xf] }
 0x2c0   : > { %v3952_v58 = vld [vmem:[%s6428_s6 + $0x264] sm:$0xf] }
 0x2c1   : > { %1943 = vmatpush.bf16.msrb.mxu2 %v3381_v28  ;;  %2169 = vmatpush.bf16.msra.mxu1 %v3565_v13  ;;  %v3548_v28 = vld [vmem:[%s6428_s6 + $0x190] sm:$0xf]  ;;  %v3569_v13 = vor.u32 %v3898_v7, %v3566_v14 }
 0x2c2   : > { %v3549_v40 = vor.u32 %v3895_v31, %v3548_v28  ;;  %v3876_v31 = vld [vmem:[%s6428_s6 + $0x104] sm:$0xf] }
 0x2c3   : > { %1981 = vmatpush.bf16.msra.mxu0 %v3457_v35  ;;  %2180 = vmatpush.bf16.msra.mxu3 %v3521_v2  ;;  %v3516_v35 = vld [vmem:[%s6428_s6 + $0x150] sm:$0xf]  ;;  %v3477_v2 = vor.u32 %v3877_v0, %v3476_v63  ;;  %v3967_v63 = vld [vmem:[%s6428_s6 + $0x2d4] sm:$0xf0]  ;;  %v3966_v0 = vld [vmem:[%s6428_s6 + $0x2d4] sm:$0xf] }
 0x2c4   : > { %v3517_v26 = vor.u32 %v3887_v38, %v3516_v35  ;;  %v3481_v35 = vor.u32 %v3876_v31, %v3478_v32  ;;  %v3963_v31 = vld [vmem:[%s6428_s6 + $0x2b4] sm:$0xf0]  ;;  %v3962_v32 = vld [vmem:[%s6428_s6 + $0x2b4] sm:$0xf] }
 0x2c5   : > { %1944 = vmatpush.bf16.msrb.mxu2 %v3373_v12  ;;  %2170 = vmatpush.bf16.msra.mxu1 %v3557_v22  ;;  %v3885_v12 = vld [vmem:[%s6428_s6 + $0x144] sm:$0xf0]  ;;  %v3550_v22 = vld [vmem:[%s6428_s6 + $0x198] sm:$0xf0] }
 0x2c6   : > { %v3509_v45 = vor.u32 %v3885_v12, %v3508_v27  ;;  %v3553_v28 = vor.u32 %v3894_v21, %v3550_v22  ;;  %v3602_v27 = vld [vmem:[%s6427_s5 + $0x4] sm:$0xf]  ;;  %v3761_v12 = vld [vmem:[%s6428_s6 + $0x2f8] sm:$0xf0]  ;;  %v3673_v22 = vld [vmem:[%s6428_s6 + $0x248] sm:$0xf0] }
 0x2c7   : > { %1982 = vmatpush.bf16.msra.mxu0 %v3449_v46  ;;  %v3500_v46 = vld [vmem:[%s6428_s6 + $0x130] sm:$0xf]  ;;  %2181 = vmatpush.bf16.msra.mxu3 %v3513_v62  ;;  %v3689_v62 = vld [vmem:[%s6428_s6 + $0x268] sm:$0xf0] }
 0x2c8   : > { %v3501_v49 = vor.u32 %v3883_v47, %v3500_v46  ;;  %v3697_v47 = vld [vmem:[%s6428_s6 + $0x278] sm:$0xf0] }
 0x2c9   : > { %1945 = vmatpush.bf16.msrb.mxu2 %v3365_v56  ;;  %2171 = vmatpush.bf16.msra.mxu1 %v3549_v40  ;;  %v3879_v56 = vld [vmem:[%s6428_s6 + $0x114] sm:$0xf0] }
 0x2ca   : > { %v3485_v57 = vor.u32 %v3879_v56, %v3484_v54  ;;  %v3753_v54 = vld [vmem:[%s6428_s6 + $0x2e8] sm:$0xf0]  ;;  %v3687_v56 = vld [vmem:[%s6428_s6 + $0x260] sm:$0xf] }
 0x2cb   : > { %1983 = vmatpush.bf16.msra.mxu0 %v3441_v61  ;;  %v3900_v61 = vld [vmem:[%s6428_s6 + $0x1c4] sm:$0xf]  ;;  %v3756_v59 = vor.u32 %v3968_v51, %v3753_v54  ;;  %v3711_v54 = vld [vmem:[%s6428_s6 + $0x290] sm:$0xf] }
 0x2cc   : > { %v3577_v60 = vor.u32 %v3900_v61, %v3574_v15  ;;  %v3692_v15 = vor.u32 %v3952_v58, %v3689_v62  ;;  %v3713_v62 = vld [vmem:[%s6428_s6 + $0x298] sm:$0xf0] }
 0x2cd   : > { %1946 = vmatpush.bf16.msrb.mxu2 %v3357_v3  ;;  %v3893_v3 = vld [vmem:[%s6428_s6 + $0x184] sm:$0xf0] }
 0x2ce   : > { %v3541_v10 = vor.u32 %v3893_v3, %v3540_v1  ;;  %v3679_v3 = vld [vmem:[%s6428_s6 + $0x250] sm:$0xf] }
 0x2cf   : > { %1984 = vmatpush.bf16.msra.mxu0 %v3433_v8  ;;  %v3505_v8 = vor.u32 %v3882_v5, %v3502_v6  ;;  %v3950_v5 = vld [vmem:[%s6428_s6 + $0x254] sm:$0xf] }
 0x2d0   : > { %2172 = vmatpush.bf16.msra.mxu1 %v3541_v10  ;;  %v3951_v10 = vld [vmem:[%s6428_s6 + $0x254] sm:$0xf0] }
 0x2d1   : > { %1947 = vmatpush.bf16.msrb.mxu2 %v3349_v18  ;;  %2182 = vmatpush.bf16.msra.mxu3 %v3505_v8  ;;  %v3497_v18 = vor.u32 %v3880_v16, %v3494_v37  ;;  %v3680_v7 = vor.u32 %v3951_v10, %v3679_v3  ;;  %v3681_v8 = vld [vmem:[%s6428_s6 + $0x258] sm:$0xf0]  ;;  %v3965_v16 = vld [vmem:[%s6428_s6 + $0x2c4] sm:$0xf0]  ;;  %v3964_v37 = vld [vmem:[%s6428_s6 + $0x2c4] sm:$0xf] }
 0x2d2   : > { %v3684_v14 = vor.u32 %v3950_v5, %v3681_v8  ;;  %v3639_v3 = vld [vmem:[%s6428_s6 + $0x200] sm:$0xf]  ;;  %v3941_v10 = vld [vmem:[%s6428_s6 + $0x204] sm:$0xf0]  ;;  %v3940_v5 = vld [vmem:[%s6428_s6 + $0x204] sm:$0xf] }
 0x2d3   : > { %1985 = vmatpush.bf16.msra.mxu0 %v3425_v20  ;;  %v3640_v8 = vor.u32 %v3941_v10, %v3639_v3  ;;  %v6171_v3 = vld [vmem:[%s6426_s4 + $0x160] sm:$0xff]  ;;  %v6177_v10 = vld [vmem:[%s6426_s4 + $0x68] sm:$0xff] }
 0x2d5   : > { %2152 = vmatpush.bf16.msra.mxu2 %v3533_v9  ;;  %v3558_v9 = vld [vmem:[%s6428_s6 + $0x1a8] sm:$0xf0]  ;;  %2183 = vmatpush.bf16.msra.mxu3 %v3497_v18 }
 0x2d6   : > { %v3561_v20 = vor.u32 %v3896_v17, %v3558_v9  ;;  %v3737_v18 = vld [vmem:[%s6428_s6 + $0x2c8] sm:$0xf0]  ;;  %v3671_v9 = vld [vmem:[%s6428_s6 + $0x240] sm:$0xf] }
 0x2d7   : > { %1986 = vmatpush.bf16.msra.mxu0 %v3417_v39  ;;  %v3672_v21 = vor.u32 %v3949_v23, %v3671_v9  ;;  %v5943_v23 = vld [vmem:[%s6426_s4 + $0xf0] sm:$0xff] }
 0x2d9   : > { %2153 = vmatpush.bf16.msra.mxu2 %v3525_v34  ;;  %v3542_v34 = vld [vmem:[%s6428_s6 + $0x188] sm:$0xf0]  ;;  %2184 = vmatpush.bf16.msra.mxu3 %v3489_v24  ;;  %v3676_v24 = vor.u32 %v3948_v19, %v3673_v22  ;;  %v5949_v19 = vld [vmem:[%s6426_s4 + $0x1f0] sm:$0xff]  ;;  %v5967_v22 = vld [vmem:[%s6426_s4 + $0xe0] sm:$0xff] }
 0x2da   : > { %v3545_v38 = vor.u32 %v3892_v33, %v3542_v34  ;;  %v3729_v34 = vld [vmem:[%s6428_s6 + $0x2b8] sm:$0xf0] }
 0x2db   : > { %2191 = vmatpush.bf16.msrb.mxu0 %v3601_v41 }
 0x2dd   : > { %2154 = vmatpush.bf16.msra.mxu2 %v3517_v26  ;;  %2185 = vmatpush.bf16.msra.mxu3 %v3481_v35  ;;  %v3663_v35 = vld [vmem:[%s6428_s6 + $0x230] sm:$0xf] }
 0x2df   : > { %2192 = vmatpush.bf16.msrb.mxu0 %v3593_v29  ;;  %v3695_v29 = vld [vmem:[%s6428_s6 + $0x270] sm:$0xf] }
 0x2e0   : > { %v3696_v46 = vor.u32 %v3955_v43, %v3695_v29  ;;  %v3944_v29 = vld [vmem:[%s6428_s6 + $0x224] sm:$0xf] }
 0x2e1   : > { %2155 = vmatpush.bf16.msra.mxu2 %v3509_v45 }
 0x2e3   : > { %2193 = vmatpush.bf16.msrb.mxu0 %v3585_v48  ;;  %v3700_v48 = vor.u32 %v3954_v44, %v3697_v47  ;;  %v3647_v47 = vld [vmem:[%s6428_s6 + $0x210] sm:$0xf] }
 0x2e5   : > { %2156 = vmatpush.bf16.msra.mxu2 %v3501_v49  ;;  %v3751_v49 = vld [vmem:[%s6428_s6 + $0x2e0] sm:$0xf] }
 0x2e7   : > { %2194 = vmatpush.bf16.msrb.mxu0 %v3577_v60  ;;  %v3743_v60 = vld [vmem:[%s6428_s6 + $0x2d0] sm:$0xf] }
 0x2e8   : > { %v3744_v1 = vor.u32 %v3967_v63, %v3743_v60  ;;  %v3703_v60 = vld [vmem:[%s6428_s6 + $0x280] sm:$0xf]  ;;  %v3957_v63 = vld [vmem:[%s6428_s6 + $0x284] sm:$0xf0] }
 0x2e9   : > { %2157 = vmatpush.bf16.msra.mxu2 %v3493_v53  ;;  %v3752_v53 = vor.u32 %v3969_v50, %v3751_v49  ;;  %v3942_v49 = vld [vmem:[%s6428_s6 + $0x214] sm:$0xf] }
 0x2eb   : > { %2195 = vmatpush.bf16.msrb.mxu0 %v3569_v13  ;;  %v3735_v13 = vld [vmem:[%s6428_s6 + $0x2c0] sm:$0xf] }
 0x2ec   : > { %v3736_v17 = vor.u32 %v3965_v16, %v3735_v13 }
 0x2ed   : > { %2158 = vmatpush.bf16.msra.mxu2 %v3485_v57  ;;  %v3953_v57 = vld [vmem:[%s6428_s6 + $0x264] sm:$0xf0] }
 0x2ee   : > { %v3688_v61 = vor.u32 %v3953_v57, %v3687_v56  ;;  %v3959_v56 = vld [vmem:[%s6428_s6 + $0x294] sm:$0xf0] }
 0x2ef   : > { %2196 = vmatpush.bf16.msrb.mxu0 %v3561_v20  ;;  %v3740_v20 = vor.u32 %v3964_v37, %v3737_v18 }
 0x2f1   : > { %2159 = vmatpush.bf16.msra.mxu2 %v3477_v2  ;;  %v3745_v2 = vld [vmem:[%s6428_s6 + $0x2d8] sm:$0xf0] }
 0x2f2   : > { %v3748_v6 = vor.u32 %v3966_v0, %v3745_v2  ;;  %v3956_v0 = vld [vmem:[%s6428_s6 + $0x284] sm:$0xf]  ;;  %v3705_v2 = vld [vmem:[%s6428_s6 + $0x288] sm:$0xf0] }
 0x2f3   : > { %2197 = vmatpush.bf16.msrb.mxu0 %v3553_v28  ;;  %v3727_v28 = vld [vmem:[%s6428_s6 + $0x2b0] sm:$0xf] }
 0x2f4   : > { %v3728_v33 = vor.u32 %v3963_v31, %v3727_v28  ;;  %v5979_v28 = vld [vmem:[%s6426_s4 + $0xe8] sm:$0xff] }
 0x2f5   : > { %v5985_v31 = vld [vmem:[%s6426_s4 + $0x1e8] sm:$0xff] }
 0x2f7   : > { %2198 = vmatpush.bf16.msrb.mxu0 %v3545_v38  ;;  %v3947_v38 = vld [vmem:[%s6428_s6 + $0x234] sm:$0xf0] }
 0x337   : > { %v1729_v39 = vpop.f32.mrf.mxu2  ;;  %v1742_v40 = vpop.f32.mrf.mxu0 }
 0x338   : > { %v1746_v41 = vpack.c.bf16 %v1729_v39, %v1729_v39  ;;  %v1747_v42 = vpack.c.bf16 %v1742_v40, %v1742_v40  ;;  %v3946_v39 = vld [vmem:[%s6428_s6 + $0x234] sm:$0xf]  ;;  %v3732_v40 = vor.u32 %v3962_v32, %v3729_v34 }
 0x339   : > { %v5991_v32 = vld [vmem:[%s6426_s4 + $0xd0] sm:$0xff] }
 0x33a   : > { %1948 = vmatmul.bf16.vlgmr.msrb.gmra.mxu2 %v1746_v41  ;;  %1961 = vmatmul.bf16.vlgmr.msrb.gmra.mxu1 %v1747_v42  ;;  %v5997_v34 = vld [vmem:[%s6426_s4 + $0x1d0] sm:$0xff] }
 0x33b   : > { %1974 = vmatmul.bf16.vlgmr.msrb.gmra.mxu3 %v1746_v41  ;;  %1987 = vmatmul.bf16.vlgmr.msra.gmra.mxu0 %v1747_v42  ;;  %v3664_v41 = vor.u32 %v3947_v38, %v3663_v35  ;;  %v3665_v42 = vld [vmem:[%s6428_s6 + $0x238] sm:$0xf0] }
 0x33c   : > { %2216 = vmatpush.bf16.msrb.mxu2 %v5418_v52  ;;  %2229 = vmatpush.bf16.msrb.mxu1 %v5465_v11  ;;  %v3759_v52 = vld [vmem:[%s6428_s6 + $0x2f0] sm:$0xf]  ;;  %v3971_v11 = vld [vmem:[%s6428_s6 + $0x2f4] sm:$0xf0] }
 0x33d   : > { %2430 = vmatpush.bf16.msrb.mxu3 %v3696_v46  ;;  %v6003_v35 = vld [vmem:[%s6426_s4 + $0xd8] sm:$0xff] }
 0x33f   : > { %v1731_v25 = vpop.f32.mrf.mxu2  ;;  %v1744_v26 = vpop.f32.mrf.mxu0 }
 0x340   : > { %v3668_v25 = vor.u32 %v3946_v39, %v3665_v42  ;;  %v3719_v26 = vld [vmem:[%s6428_s6 + $0x2a0] sm:$0xf]  ;;  %v6009_v39 = vld [vmem:[%s6426_s4 + $0x1d8] sm:$0xff] }
 0x341   : > { %2431 = vmatpush.bf16.msrb.mxu3 %v3688_v61  ;;  %v3958_v61 = vld [vmem:[%s6428_s6 + $0x294] sm:$0xf]  ;;  %v6021_v42 = vld [vmem:[%s6426_s4 + $0x1c0] sm:$0xff] }
 0x345   : > { %2432 = vmatpush.bf16.msrb.mxu3 %v3680_v7 }
 0x349   : > { %2433 = vmatpush.bf16.msrb.mxu3 %v3672_v21  ;;  %v5961_v21 = vld [vmem:[%s6426_s4 + $0x1f8] sm:$0xff] }
 0x34a   : > { %2160 = vmatmul.bf16.vlgmr.msra.gmra.mxu2 %v5396_v30  ;;  %2173 = vmatmul.bf16.vlgmr.msra.gmra.mxu1 %v5443_v36 }
 0x34b   : > { %2186 = vmatmul.bf16.vlgmr.msra.gmra.mxu3 %v5396_v30  ;;  %2199 = vmatmul.bf16.vlgmr.msrb.gmra.mxu0 %v5443_v36  ;;  %v3970_v30 = vld [vmem:[%s6428_s6 + $0x2f4] sm:$0xf]  ;;  %v3760_v36 = vor.u32 %v3971_v11, %v3759_v52  ;;  %v3960_v52 = vld [vmem:[%s6428_s6 + $0x2a4] sm:$0xf] }
 0x34c   : > { %v3764_v45 = vor.u32 %v3970_v30, %v3761_v12  ;;  %2456 = vmatpush.bf16.msra.mxu2 %v3700_v48  ;;  %v3721_v30 = vld [vmem:[%s6428_s6 + $0x2a8] sm:$0xf0]  ;;  %v3945_v12 = vld [vmem:[%s6428_s6 + $0x224] sm:$0xf0]  ;;  %v3943_v48 = vld [vmem:[%s6428_s6 + $0x214] sm:$0xf0] }
 0x34d   : > { %2443 = vmatpush.bf16.msra.mxu0 %v3760_v36  ;;  %2434 = vmatpush.bf16.msrb.mxu3 %v3664_v41  ;;  %v3655_v36 = vld [vmem:[%s6428_s6 + $0x220] sm:$0xf]  ;;  %v3724_v43 = vor.u32 %v3960_v52, %v3721_v30  ;;  %v3648_v51 = vor.u32 %v3943_v48, %v3647_v47  ;;  %v6039_v52 = vld [vmem:[%s6426_s4 + $0xb0] sm:$0xff]  ;;  %v6051_v30 = vld [vmem:[%s6426_s4 + $0xb8] sm:$0xff] }
 0x34e   : > { %2469 = vmatpush.bf16.msra.mxu1 %v3764_v45  ;;  %v3656_v44 = vor.u32 %v3945_v12, %v3655_v36  ;;  %v3657_v45 = vld [vmem:[%s6428_s6 + $0x228] sm:$0xf0]  ;;  %v6057_v36 = vld [vmem:[%s6426_s4 + $0x1b8] sm:$0xff]  ;;  %v6063_v12 = vld [vmem:[%s6426_s4 + $0xa0] sm:$0xff] }
 0x34f   : > { %v3660_v46 = vor.u32 %v3944_v29, %v3657_v45  ;;  %v6069_v29 = vld [vmem:[%s6426_s4 + $0x1a0] sm:$0xff]  ;;  %v6087_v45 = vld [vmem:[%s6426_s4 + $0x90] sm:$0xff]  ;;  %v6099_v48 = vld [vmem:[%s6426_s4 + $0x98] sm:$0xff] }
 0x350   : > { %2457 = vmatpush.bf16.msra.mxu2 %v3692_v15  ;;  %v3716_v15 = vor.u32 %v3958_v61, %v3713_v62  ;;  %v6093_v47 = vld [vmem:[%s6426_s4 + $0x190] sm:$0xff]  ;;  %v6133_v62 = vld [vmem:[%s6426_s4 + $0x188] sm:$0xff] }
 0x351   : > { %2444 = vmatpush.bf16.msra.mxu0 %v3752_v53  ;;  %2435 = vmatpush.bf16.msrb.mxu3 %v3656_v44  ;;  %v3649_v53 = vld [vmem:[%s6428_s6 + $0x218] sm:$0xf0]  ;;  %v6081_v44 = vld [vmem:[%s6426_s4 + $0x1a8] sm:$0xff] }
 0x352   : > { %2470 = vmatpush.bf16.msra.mxu1 %v3756_v59  ;;  %v3652_v58 = vor.u32 %v3942_v49, %v3649_v53  ;;  %v3712_v59 = vor.u32 %v3959_v56, %v3711_v54  ;;  %v6112_v53 = vld [vmem:[%s6426_s4 + $0x80] sm:$0xff] }
 0x354   : > { %2458 = vmatpush.bf16.msra.mxu2 %v3684_v14  ;;  %v3641_v14 = vld [vmem:[%s6428_s6 + $0x208] sm:$0xf0] }
 0x355   : > { %2445 = vmatpush.bf16.msra.mxu0 %v3744_v1  ;;  %2436 = vmatpush.bf16.msrb.mxu3 %v3648_v51  ;;  %v3704_v1 = vor.u32 %v3957_v63, %v3703_v60  ;;  %v3644_v37 = vor.u32 %v3940_v5, %v3641_v14  ;;  %v6106_v51 = vld [vmem:[%s6426_s4 + $0x198] sm:$0xff]  ;;  %v6147_v63 = vld [vmem:[%s6426_s4 + $0x170] sm:$0xff]  ;;  %v6183_v5 = vld [vmem:[%s6426_s4 + $0x168] sm:$0xff] }
 0x356   : > { %2471 = vmatpush.bf16.msra.mxu1 %v3748_v6  ;;  %v3708_v6 = vor.u32 %v3956_v0, %v3705_v2  ;;  %v6153_v0 = vld [vmem:[%s6426_s4 + $0x78] sm:$0xff]  ;;  %v6165_v2 = vld [vmem:[%s6426_s4 + $0x60] sm:$0xff] }
 0x357   : > { %v6201_v14 = vld [vmem:[%s6426_s4 + $0x58] sm:$0xff] }
 0x358   : > { %2459 = vmatpush.bf16.msra.mxu2 %v3676_v24  ;;  %v5973_v24 = vld [vmem:[%s6426_s4 + $0x1e0] sm:$0xff] }
 0x359   : > { %2446 = vmatpush.bf16.msra.mxu0 %v3736_v17  ;;  %2437 = vmatpush.bf16.msrb.mxu3 %v3640_v8  ;;  %v6195_v8 = vld [vmem:[%s6426_s4 + $0x150] sm:$0xff] }
 0x35a   : > { %3603 = vmatmul.msk.bf16.vlgmr.msrb.gmra.mxu2 %vm1709_vm11, %v3602_v27  ;;  %3604 = vmatmul.msk.bf16.vlgmr.msrb.gmra.mxu1 %vm1709_vm11, %v3602_v27  ;;  %v3961_v27 = vld [vmem:[%s6428_s6 + $0x2a4] sm:$0xf0] }
 0x35b   : > { %2472 = vmatpush.bf16.msra.mxu1 %v3740_v20  ;;  %v3720_v11 = vor.u32 %v3961_v27, %v3719_v26  ;;  %v5955_v20 = vld [vmem:[%s6426_s4 + $0xf8] sm:$0xff]  ;;  %v6033_v27 = vld [vmem:[%s6426_s4 + $0x1c8] sm:$0xff] }
 0x35c   : > { %2460 = vmatpush.bf16.msra.mxu2 %v3668_v25  ;;  %v6027_v25 = vld [vmem:[%s6426_s4 + $0xc8] sm:$0xff] }
 0x35d   : > { %2447 = vmatpush.bf16.msra.mxu0 %v3728_v33  ;;  %2520 = vmatpush.msra.mxu3 %v5943_v23 }
 0x35f   : > { %2473 = vmatpush.bf16.msra.mxu1 %v3732_v40  ;;  %2521 = vmatpush.msra.mxu3 %v5967_v22  ;;  %v6015_v40 = vld [vmem:[%s6426_s4 + $0xc0] sm:$0xff] }
 0x360   : > { %2461 = vmatpush.bf16.msra.mxu2 %v3660_v46 }
 0x361   : > { %2448 = vmatpush.bf16.msra.mxu0 %v3720_v11  ;;  %2522 = vmatpush.msra.mxu3 %v5991_v32  ;;  %v6045_v11 = vld [vmem:[%s6426_s4 + $0x1b0] sm:$0xff] }
 0x363   : > { %2474 = vmatpush.bf16.msra.mxu1 %v3724_v43  ;;  %2523 = vmatpush.msra.mxu3 %v6015_v40  ;;  %v6075_v43 = vld [vmem:[%s6426_s4 + $0xa8] sm:$0xff] }
 0x364   : > { %2462 = vmatpush.bf16.msra.mxu2 %v3652_v58  ;;  %v6125_v58 = vld [vmem:[%s6426_s4 + $0x88] sm:$0xff] }
 0x365   : > { %2449 = vmatpush.bf16.msra.mxu0 %v3712_v59  ;;  %2524 = vmatpush.msra.mxu3 %v6039_v52 }
 0x367   : > { %2475 = vmatpush.bf16.msra.mxu1 %v3716_v15  ;;  %2525 = vmatpush.msra.mxu3 %v6063_v12  ;;  %v6139_v15 = vld [vmem:[%s6426_s4 + $0x70] sm:$0xff] }
 0x368   : > { %2463 = vmatpush.bf16.msra.mxu2 %v3644_v37  ;;  %v6213_v37 = vld [vmem:[%s6426_s4 + $0x40] sm:$0xff] }
 0x369   : > { %2450 = vmatpush.bf16.msra.mxu0 %v3704_v1  ;;  %2526 = vmatpush.msra.mxu3 %v6087_v45  ;;  %v6159_v1 = vld [vmem:[%s6426_s4 + $0x178] sm:$0xff] }
 0x36b   : > { %2476 = vmatpush.bf16.msra.mxu1 %v3708_v6  ;;  %2527 = vmatpush.msra.mxu3 %v6112_v53  ;;  %v6189_v6 = vld [vmem:[%s6426_s4 + $0x50] sm:$0xff] }
 0x36c   : > { %2560 = vmatpush.msrb.mxu2 %v5955_v20 }
 0x36d   : > { %2540 = vmatpush.msrb.mxu0 %v5949_v19  ;;  %2528 = vmatpush.msra.mxu3 %v6139_v15 }
 0x36e   : > { %2561 = vmatpush.msrb.mxu2 %v5979_v28 }
 0x36f   : > { %2580 = vmatpush.msrb.mxu1 %v5961_v21  ;;  %2541 = vmatpush.msrb.mxu0 %v5973_v24 }
 0x370   : > { %2562 = vmatpush.msrb.mxu2 %v6003_v35  ;;  %2529 = vmatpush.msra.mxu3 %v6165_v2 }
 0x371   : > { %2581 = vmatpush.msrb.mxu1 %v5985_v31  ;;  %2542 = vmatpush.msrb.mxu0 %v5997_v34 }
 0x372   : > { %2563 = vmatpush.msrb.mxu2 %v6027_v25  ;;  %2530 = vmatpush.msra.mxu3 %v6189_v6 }
 0x373   : > { %2582 = vmatpush.msrb.mxu1 %v6009_v39  ;;  %2543 = vmatpush.msrb.mxu0 %v6021_v42 }
 0x374   : > { %2564 = vmatpush.msrb.mxu2 %v6051_v30  ;;  %2531 = vmatpush.msra.mxu3 %v6213_v37 }
 0x375   : > { %2583 = vmatpush.msrb.mxu1 %v6033_v27  ;;  %2544 = vmatpush.msrb.mxu0 %v6045_v11 }
 0x376   : > { %2565 = vmatpush.msrb.mxu2 %v6075_v43 }
 0x377   : > { %2584 = vmatpush.msrb.mxu1 %v6057_v36  ;;  %2545 = vmatpush.msrb.mxu0 %v6069_v29 }
 0x378   : > { %2566 = vmatpush.msrb.mxu2 %v6099_v48 }
 0x379   : > { %2585 = vmatpush.msrb.mxu1 %v6081_v44  ;;  %2546 = vmatpush.msrb.mxu0 %v6093_v47 }
 0x37a   : > { %2567 = vmatpush.msrb.mxu2 %v6125_v58 }
 0x37b   : > { %2586 = vmatpush.msrb.mxu1 %v6106_v51 }
 0x37c   : > { %2568 = vmatpush.msrb.mxu2 %v6153_v0 }
 0x37d   : > { %2587 = vmatpush.msrb.mxu1 %v6133_v62 }
 0x37e   : > { %2569 = vmatpush.msrb.mxu2 %v6177_v10 }
 0x37f   : > { %2588 = vmatpush.msrb.mxu1 %v6159_v1 }
 0x380   : > { %2570 = vmatpush.msrb.mxu2 %v6201_v14 }
 0x381   : > { %2589 = vmatpush.msrb.mxu1 %v6183_v5 }
 0x3b7   : > { %v1962_v50 = vpop.f32.mrf.mxu1 }
 0x3b8   : > { %v1988_v57 = vpop.f32.mrf.mxu0 }
 0x3bd   : > { %v1949_v7 = vpop.f32.mrf.mxu2 }
 0x3be   : > { %v5936_v13 = vadd.f32 %v1962_v50, %v1949_v7  ;;  %v1975_v16 = vpop.f32.mrf.mxu3 }
 0x3bf   : > { %v5938_v17 = vadd.f32 %v1988_v57, %v1975_v16  ;;  %v1964_v18 = vpop.f32.mrf.mxu1  ;;  %v6119_v57 = vld [vmem:[%s6426_s4 + $0x180] sm:$0xff]  ;;  %v6207_v16 = vld [vmem:[%s6426_s4 + $0x158] sm:$0xff] }
 0x3c0   : > { %v1990_v9 = vpop.f32.mrf.mxu0  ;;  %2547 = vmatpush.msrb.mxu0 %v6119_v57  ;;  %2590 = vmatpush.msrb.mxu1 %v6207_v16  ;;  %v6219_v18 = vld [vmem:[%s6426_s4 + $0x140] sm:$0xff] }
 0x3c1   : > { %v6225_v9 = vld [vmem:[%s6426_s4 + $0x48] sm:$0xff] }
 0x3c2   : > { %2548 = vmatpush.msrb.mxu0 %v6147_v63  ;;  %2571 = vmatpush.msrb.mxu2 %v6225_v9 }
 0x3c4   : > { %2549 = vmatpush.msrb.mxu0 %v6171_v3 }
 0x3c5   : > { %v1951_v33 = vpop.f32.mrf.mxu2 }
 0x3c6   : > { %v1977_v38 = vpop.f32.mrf.mxu3  ;;  %2550 = vmatpush.msrb.mxu0 %v6195_v8 }
 0x3c7   : > { %v2174_v41 = vpop.f32.mrf.mxu1  ;;  %v6231_v38 = vld [vmem:[%s6426_s4 + $0x148] sm:$0xff] }
 0x3c8   : > { %v2200_v26 = vpop.f32.mrf.mxu0  ;;  %2551 = vmatpush.msrb.mxu0 %v6219_v18  ;;  %2591 = vmatpush.msrb.mxu1 %v6231_v38 }
 0x3cd   : > { %v2161_v46 = vpop.f32.mrf.mxu2 }
 0x3ce   : > { %v2162_v49 = vadd.f32 %v2161_v46, %v5936_v13  ;;  %v2187_v50 = vpop.f32.mrf.mxu3  ;;  %v6249_v46 = vld [vmem:[%s6426_s4 + $0x38] sm:$0xff] }
 0x3cf   : > { %v2188_v54 = vadd.f32 %v2187_v50, %v5938_v17  ;;  %v2176_v56 = vpop.f32.mrf.mxu1  ;;  %2572 = vmatpush.msrb.mxu2 %v6249_v46  ;;  %v6261_v50 = vld [vmem:[%s6426_s4 + $0x20] sm:$0xff] }
 0x3d0   : > { %v6128_v59 = vadd.f32 %v2174_v41, %v2162_v49  ;;  %v2202_v61 = vpop.f32.mrf.mxu0  ;;  %v6237_v41 = vld [vmem:[%s6426_s4 + $0x30] sm:$0xff]  ;;  %v6255_v49 = vld [vmem:[%s6426_s4 + $0x138] sm:$0xff]  ;;  %v6273_v56 = vld [vmem:[%s6426_s4 + $0x28] sm:$0xff] }
 0x3d1   : > { %v6142_v60 = vadd.f32 %v2200_v26, %v2188_v54  ;;  %2532 = vmatpush.msra.mxu3 %v6237_v41  ;;  %v6243_v26 = vld [vmem:[%s6426_s4 + $0x130] sm:$0xff]  ;;  %2592 = vmatpush.msrb.mxu1 %v6255_v49  ;;  %v6267_v54 = vld [vmem:[%s6426_s4 + $0x120] sm:$0xff] }
 0x3d2   : > { %6436 = vst [vmem:[#allocation4_spill] sm:$0xff] %v6128_v59  ;;  %2552 = vmatpush.msrb.mxu0 %v6243_v26  ;;  %2573 = vmatpush.msrb.mxu2 %v6273_v56  ;;  %v6321_v59 = vld [vmem:[%s6426_s4 + $0x8] sm:$0xff] }
 0x3d3   : > { %6437 = vst [vmem:[#allocation5_spill] sm:$0xff] %v6142_v60  ;;  %2533 = vmatpush.msra.mxu3 %v6261_v50  ;;  %v6303_v60 = vld [vmem:[%s6426_s4 + $0x118] sm:$0xff] }
 0x3d4   : > { %2553 = vmatpush.msrb.mxu0 %v6267_v54  ;;  %2574 = vmatpush.msrb.mxu2 %v6297_v4 }
 0x3d5   : > { %v2163_v7 = vpop.f32.mrf.mxu2 }
 0x3d6   : > { %v2189_v13 = vpop.f32.mrf.mxu3  ;;  %v6279_v7 = vld [vmem:[%s6426_s4 + $0x128] sm:$0xff]  ;;  %2575 = vmatpush.msrb.mxu2 %v6321_v59 }
 0x3d7   : > { %v2231_v17 = vpop.f32.mrf.mxu1  ;;  %2593 = vmatpush.msrb.mxu1 %v6279_v7  ;;  %v6285_v13 = vld [vmem:[%s6426_s4 + $0x10] sm:$0xff] }
 0x3d8   : > { %v2236_v33 = vpack.c.bf16 %v2231_v17, %v2231_v17  ;;  %2534 = vmatpush.msra.mxu3 %v6285_v13 }
 0x3d9   : > { %2594 = vmatpush.msrb.mxu1 %v6303_v60 }
 0x3da   : > { %2451 = vmatmul.bf16.vlgmr.msra.gmra.mxu0 %v2236_v33  ;;  %2477 = vmatmul.bf16.vlgmr.msra.gmra.mxu1 %v2236_v33  ;;  %v6291_v33 = vld [vmem:[%s6426_s4 + $0x110] sm:$0xff] }
 0x3db   : > { %2554 = vmatpush.msrb.mxu0 %v6291_v33 }
 0x3dd   : > { %v2218_v61 = vpop.f32.mrf.mxu2 }
 0x3de   : > { %v2235_v17 = vpack.c.bf16 %v2218_v61, %v2218_v61  ;;  %v6309_v61 = vld [vmem:[%s6426_s4] sm:$0xff] }
 0x3df   : > { %v2233_v55 = vpop.f32.mrf.mxu1  ;;  %6438 = vst [vmem:[#allocation6_spill] sm:$0xff] %v6309_v61  ;;  %2535 = vmatpush.msra.mxu3 %v6309_v61  ;;  %v6327_v61 = vld [vmem:[%s6426_s4 + $0x108] sm:$0xff] }
 0x3e0   : > { %2438 = vmatmul.bf16.vlgmr.msrb.gmra.mxu3 %v2235_v17  ;;  %2464 = vmatmul.bf16.vlgmr.msra.gmra.mxu2 %v2235_v17  ;;  %v6315_v55 = vld [vmem:[%s6426_s4 + $0x100] sm:$0xff] }
 0x3e1   : > { %2555 = vmatpush.msrb.mxu0 %v6315_v55  ;;  %2595 = vmatpush.msrb.mxu1 %v6327_v61 }
 0x3e2   : > { %2602 = vmatpush.msrb.mxu3 %v5943_v23  ;;  %2642 = vmatpush.msra.mxu2 %v5955_v20 }
 0x3e3   : > { %2622 = vmatpush.msra.mxu0 %v5949_v19  ;;  %2662 = vmatpush.msra.mxu1 %v5961_v21 }
 0x3e4   : > { %2603 = vmatpush.msrb.mxu3 %v5967_v22  ;;  %2643 = vmatpush.msra.mxu2 %v5979_v28 }
 0x3e5   : > { %v2220_v17 = vpop.f32.mrf.mxu2  ;;  %2623 = vmatpush.msra.mxu0 %v5973_v24  ;;  %2663 = vmatpush.msra.mxu1 %v5985_v31  ;;  %v2484_v24 = vld [vmem:[%s6429_s7] sm:$0x3] }
 0x3e6   : > { %2604 = vmatpush.msrb.mxu3 %v5991_v32  ;;  %2644 = vmatpush.msra.mxu2 %v6003_v35  ;;  %v6439_v23 = vld [vmem:[#allocation6_spill] sm:$0xff]  ;;  %v2486_v32 = vperm.slane %v2484_v24, 0  ;;  %v2487_v35 = vperm.slane %v2484_v24, 1 }
 0x3e7   : > { %2624 = vmatpush.msra.mxu0 %v5997_v34  ;;  %2664 = vmatpush.msra.mxu1 %v6009_v39  ;;  %v6440_v39 = vld [vmem:[#allocation4_spill] sm:$0xff] }
 0x3e8   : > { %2605 = vmatpush.msrb.mxu3 %v6015_v40  ;;  %2645 = vmatpush.msra.mxu2 %v6027_v25 }
 0x3e9   : > { %2625 = vmatpush.msra.mxu0 %v6021_v42  ;;  %2665 = vmatpush.msra.mxu1 %v6033_v27  ;;  %v6441_v42 = vld [vmem:[#allocation5_spill] sm:$0xff] }
 0x3ea   : > { %2606 = vmatpush.msrb.mxu3 %v6039_v52  ;;  %2646 = vmatpush.msra.mxu2 %v6051_v30 }
 0x3eb   : > { %2626 = vmatpush.msra.mxu0 %v6045_v11  ;;  %2666 = vmatpush.msra.mxu1 %v6057_v36  ;;  %v6442_v11 = vld [vmem:[#allocation2_spill] sm:$0xff]  ;;  %v6443_v36 = vld [vmem:[#allocation3_spill] sm:$0xff] }
 0x3ec   : > { %2607 = vmatpush.msrb.mxu3 %v6063_v12  ;;  %2647 = vmatpush.msra.mxu2 %v6075_v43 }
 0x3ed   : > { %2627 = vmatpush.msra.mxu0 %v6069_v29  ;;  %2667 = vmatpush.msra.mxu1 %v6081_v44 }
 0x3ee   : > { %2608 = vmatpush.msrb.mxu3 %v6087_v45  ;;  %2648 = vmatpush.msra.mxu2 %v6099_v48 }
 0x3ef   : > { %2628 = vmatpush.msra.mxu0 %v6093_v47  ;;  %2668 = vmatpush.msra.mxu1 %v6106_v51 }
 0x3f0   : > { %2609 = vmatpush.msrb.mxu3 %v6112_v53  ;;  %2649 = vmatpush.msra.mxu2 %v6125_v58 }
 0x3f1   : > { %2629 = vmatpush.msra.mxu0 %v6119_v57  ;;  %2669 = vmatpush.msra.mxu1 %v6133_v62 }
 0x3f2   : > { %2610 = vmatpush.msrb.mxu3 %v6139_v15  ;;  %2650 = vmatpush.msra.mxu2 %v6153_v0 }
 0x3f3   : > { %2630 = vmatpush.msra.mxu0 %v6147_v63  ;;  %2670 = vmatpush.msra.mxu1 %v6159_v1 }
 0x3f4   : > { %2611 = vmatpush.msrb.mxu3 %v6165_v2  ;;  %2651 = vmatpush.msra.mxu2 %v6177_v10 }
 0x3f5   : > { %2631 = vmatpush.msra.mxu0 %v6171_v3  ;;  %2671 = vmatpush.msra.mxu1 %v6183_v5 }
 0x3f6   : > { %2612 = vmatpush.msrb.mxu3 %v6189_v6  ;;  %2652 = vmatpush.msra.mxu2 %v6201_v14 }
 0x3f7   : > { %2632 = vmatpush.msra.mxu0 %v6195_v8  ;;  %2672 = vmatpush.msra.mxu1 %v6207_v16 }
 0x3f8   : > { %2613 = vmatpush.msrb.mxu3 %v6213_v37  ;;  %2653 = vmatpush.msra.mxu2 %v6225_v9 }
 0x3f9   : > { %2633 = vmatpush.msra.mxu0 %v6219_v18  ;;  %2673 = vmatpush.msra.mxu1 %v6231_v38 }
 0x3fa   : > { %2614 = vmatpush.msrb.mxu3 %v6237_v41  ;;  %2654 = vmatpush.msra.mxu2 %v6249_v46 }
 0x3fb   : > { %2634 = vmatpush.msra.mxu0 %v6243_v26  ;;  %2674 = vmatpush.msra.mxu1 %v6255_v49 }
 0x3fc   : > { %2615 = vmatpush.msrb.mxu3 %v6261_v50  ;;  %2655 = vmatpush.msra.mxu2 %v6273_v56 }
 0x3fd   : > { %2635 = vmatpush.msra.mxu0 %v6267_v54  ;;  %2675 = vmatpush.msra.mxu1 %v6279_v7 }
 0x3fe   : > { %2616 = vmatpush.msrb.mxu3 %v6285_v13  ;;  %2656 = vmatpush.msra.mxu2 %v6297_v4 }
 0x3ff   : > { %2636 = vmatpush.msra.mxu0 %v6291_v33  ;;  %2676 = vmatpush.msra.mxu1 %v6303_v60 }
 0x400   : > { %2617 = vmatpush.msrb.mxu3 %v6439_v23  ;;  %2657 = vmatpush.msra.mxu2 %v6321_v59 }
 0x401   : > { %2637 = vmatpush.msra.mxu0 %v6315_v55  ;;  %2677 = vmatpush.msra.mxu1 %v6327_v61 }
 0x457   : > { %v2452_v19 = vpop.f32.mrf.mxu0  ;;  %v2478_v20 = vpop.f32.mrf.mxu1 }
 0x45f   : > { %v2454_v21 = vpop.f32.mrf.mxu0  ;;  %v2480_v22 = vpop.f32.mrf.mxu1 }
 0x463   : > { %v2439_v28 = vpop.f32.mrf.mxu3  ;;  %v2465_v4 = vpop.f32.mrf.mxu2 }
 0x464   : > { %v2453_v31 = vadd.f32 %v2452_v19, %v2439_v28  ;;  %v2479_v34 = vadd.f32 %v2478_v20, %v2465_v4 }
 0x466   : > { %v2482_v40 = vadd.f32 %v2453_v31, %v6440_v39  ;;  %v2483_v25 = vadd.f32 %v2479_v34, %v6441_v42 }
 0x468   : > { %v2490_v27 = vadd.f32 %v2486_v32, %v2482_v40  ;;  %v2491_v52 = vadd.f32 %v2487_v35, %v2483_v25 }
 0x46a   : > { %v6400_v30 = vadd.f32 %v2490_v27, %v6442_v11  ;;  %v6403_v12 = vadd.f32 %v2491_v52, %v6443_v36 }
 0x46b   : > { %v2441_v29 = vpop.f32.mrf.mxu3  ;;  %v2467_v43 = vpop.f32.mrf.mxu2 }
 0x46c   : > { %v2500_v44 = vrot.slane %v6403_v12, 4  ;;  %v2507_v45 = vmul.f32 %v6403_v12, %v6403_v12  ;;  %v2494_v47 = vrot.slane %v6400_v30, 4  ;;  %v2506_v48 = vmul.f32 %v6400_v30, %v6400_v30 }
 0x46e   : > { %v2501_v51 = vadd.f32 %v2500_v44, %v6403_v12  ;;  %v2514_v53 = vrot.slane %v2507_v45, 4  ;;  %v2495_v57 = vadd.f32 %v2494_v47, %v6400_v30  ;;  %v2508_v58 = vrot.slane %v2506_v48, 4 }
 0x470   : > { %v2496_v59 = vrot.slane %v2495_v57, 2  ;;  %v2502_v62 = vrot.slane %v2501_v51, 2  ;;  %v2509_v15 = vadd.f32 %v2508_v58, %v2506_v48  ;;  %v2515_v60 = vadd.f32 %v2514_v53, %v2507_v45 }
 0x472   : > { %v2497_v63 = vadd.f32 %v2496_v59, %v2495_v57  ;;  %v2503_v0 = vadd.f32 %v2502_v62, %v2501_v51  ;;  %v2510_v1 = vrot.slane %v2509_v15, 2  ;;  %v2516_v2 = vrot.slane %v2515_v60, 2 }
 0x474   : > { %v2498_v3 = vrot.slane %v2497_v63, 1  ;;  %v2504_v10 = vrot.slane %v2503_v0, 1  ;;  %v2511_v8 = vadd.f32 %v2510_v1, %v2509_v15  ;;  %v2517_v14 = vadd.f32 %v2516_v2, %v2515_v60 }
 0x476   : > { %v2499_v5 = vadd.f32 %v2498_v3, %v2497_v63  ;;  %v2505_v6 = vadd.f32 %v2504_v10, %v2503_v0  ;;  %v2512_v16 = vrot.slane %v2511_v8, 1  ;;  %v2518_v37 = vrot.slane %v2517_v14, 1 }
 0x478   : > { %2536 = vmatmul.f32.vlgmr.msra.gmra.mxu3 %v2499_v5  ;;  %2556 = vmatmul.f32.vlgmr.msrb.gmra.mxu0 %v2505_v6  ;;  %v2513_v18 = vadd.f32 %v2512_v16, %v2511_v8  ;;  %v2519_v9 = vadd.f32 %v2518_v37, %v2517_v14 }
 0x479   : > { %2576 = vmatmul.f32.vlgmr.msrb.gmra.mxu2 %v2499_v5  ;;  %2596 = vmatmul.f32.vlgmr.msrb.gmra.mxu1 %v2505_v6 }
 0x480   : > { %2618 = vmatmul.f32.vlgmr.msrb.gmra.mxu3 %v2513_v18  ;;  %2638 = vmatmul.f32.vlgmr.msra.gmra.mxu0 %v2519_v9 }
 0x481   : > { %2658 = vmatmul.f32.vlgmr.msra.gmra.mxu2 %v2513_v18  ;;  %2678 = vmatmul.f32.vlgmr.msra.gmra.mxu1 %v2519_v9 }
 0x4f5   : > { %v2557_v38 = vpop.f32.mrf.mxu0 }
 0x4f6   : > { %v2597_v41 = vpop.f32.mrf.mxu1 }
 0x4fb   : > { %v2537_v26 = vpop.f32.mrf.mxu3 }
 0x4fc   : > { %v2577_v46 = vpop.f32.mrf.mxu2  ;;  %v2558_v49 = vadd.f32 %v2557_v38, %v2537_v26 }
 0x4fd   : > { %v2598_v50 = vadd.f32 %v2597_v41, %v2577_v46  ;;  %v2639_v7 = vpop.f32.mrf.mxu0 }
 0x4fe   : > { %v2600_v54 = vmul.f32 0.015625, %v2558_v49  ;;  %v2679_v33 = vpop.f32.mrf.mxu1 }
 0x4ff   : > { %v2601_v56 = vmul.f32 0.015625, %v2598_v50 }
 0x500   : > { %v2684_v23 = vmul.f32 %v2600_v54, %v2600_v54  ;;  %v2690_v36 = vperm.slane %v2600_v54, 0 }
 0x501   : > { %v2685_v20 = vmul.f32 %v2601_v56, %v2601_v56  ;;  %v2691_v43 = vperm.slane %v2601_v56, 0 }
 0x502   : > { %v2692_v48 = vsub.f32 %v6400_v30, %v2690_v36 }
 0x503   : > { %v2619_v13 = vpop.f32.mrf.mxu3  ;;  %v2693_v57 = vsub.f32 %v6403_v12, %v2691_v43 }
 0x504   : > { %v2640_v61 = vadd.f32 %v2639_v7, %v2619_v13  ;;  %v2659_v55 = vpop.f32.mrf.mxu2 }
 0x505   : > { %v2680_v17 = vadd.f32 %v2679_v33, %v2659_v55 }
 0x506   : > { %v2682_v19 = vmul.f32 0.015625, %v2640_v61 }
 0x507   : > { %v2683_v21 = vmul.f32 0.015625, %v2680_v17 }
 0x508   : > { %v2686_v22 = vsub.f32 %v2682_v19, %v2684_v23 }
 0x509   : > { %v2687_v24 = vsub.f32 %v2683_v21, %v2685_v20 }
 0x50a   : > { %v2688_v28 = vmax.f32 %v2686_v22, 0.0 }
 0x50b   : > { %v2689_v4 = vmax.f32 %v2687_v24, 0.0 }
 0x50c   : > { %v2694_v31 = vadd.f32 1e-05, %v2688_v28 }
 0x50d   : > { %v2695_v32 = vadd.f32 1e-05, %v2689_v4 }
 0x50e   : > { %3985 = vrsqrt.f32 %v2694_v31  ;;  %vm2702_vm15 = vweird.f32 %v2694_v31 }
 0x50f   : > { %3987 = vrsqrt.f32 %v2695_v32  ;;  %vm2712_vm1 = vweird.f32 %v2695_v32 }
 0x514   : > { %v3986_v34 = vpop.eup %3985 }
 0x515   : > { %v3988_v35 = vpop.eup %3987  ;;  %v2697_v39 = vmul.f32 %v3986_v34, %v2694_v31  ;;  %vm2703_vm13 = vweird.f32 %v3986_v34 }
 0x516   : > { %v2707_v40 = vmul.f32 %v3988_v35, %v2695_v32  ;;  %vm2713_vm14 = vweird.f32 %v3988_v35  ;;  %vm2704_vm0 = vmor %vm2702_vm15, %vm2703_vm13 }
 0x517   : > { %v2698_v42 = vmul.f32 %v3986_v34, %v2697_v39  ;;  %vm2714_vm2 = vmor %vm2712_vm1, %vm2713_vm14 }
 0x518   : > { %v2708_v25 = vmul.f32 %v3988_v35, %v2707_v40 }
 0x519   : > { %v2699_v27 = vmul.f32 0.5, %v2698_v42 }
 0x51a   : > { %v2709_v52 = vmul.f32 0.5, %v2708_v25 }
 0x51b   : > { %v2700_v11 = vsub.f32 1.5, %v2699_v27 }
 0x51c   : > { %v2710_v29 = vsub.f32 1.5, %v2709_v52 }
 0x51d   : > { %v2701_v44 = vmul.f32 %v3986_v34, %v2700_v11 }
 0x51e   : > { %v2711_v45 = vmul.f32 %v3988_v35, %v2710_v29 }
 0x51f   : > { %v2705_v47 = vsel %vm2704_vm0, %v3986_v34, %v2701_v44 }
 0x520   : > { %v2716_v51 = vperm.slane %v2705_v47, 0  ;;  %v2715_v53 = vsel %vm2714_vm2, %v3988_v35, %v2711_v45 }
 0x521   : > { %v2717_v58 = vperm.slane %v2715_v53, 0 }
 0x522   : > { %v2718_v59 = vmul.f32 %v2716_v51, %v2692_v48 }
 0x523   : > { %v2719_v62 = vmul.f32 %v2717_v58, %v2693_v57 }
 0x524   : > { %vm2720_vm3 = vcmp.ge.f32.partialorder %v2718_v59, 0.0  ;;  %v2722_v15 = vmul.f32 0.1, %v2718_v59 }
 0x525   : > { %vm2721_vm4 = vcmp.ge.f32.partialorder %v2719_v62, 0.0  ;;  %v2723_v60 = vmul.f32 0.1, %v2719_v62 }
 0x526   : > { %v2724_v63 = vsel %vm2720_vm3, %v2718_v59, %v2722_v15 }
 0x527   : > { %2726 = vst [vmem:[%s305_s20] sm:$0xff] %v2724_v63  ;;  %v2725_v0 = vsel %vm2721_vm4, %v2719_v62, %v2723_v60 }
 0x528   : > { %2727 = vst [vmem:[%s305_s20 + $0x8] sm:$0xff] %v2725_v0 }
 0x529 PF: > { %s18_s27 = sadd.s32 1, %s4059_s27  }
 0x52a   : > { %p15_p4 = scmp.ge.s32.totalorder %s18_s27, 4  }
 0x52c   :  { %17 = sbr.rel (!%p15_p4) target bundleno = 1 (0x1), region = 89 }

// kernel: tile.53
= control target key start
LH: loop header
LB: loop body
LE: loop exit
PB: predicated region body
PF: predicated region fallthrough
CT: control target
= control target key end

     0   :  { %s22_s0 = inlined_call_operand.vmem [shape: f32[64], index: 0, kind: input, shape index: {}]   ;;  %s23_s1 = inlined_call_operand.vmem [shape: f32[4,64], index: 1, kind: output, shape index: {}]  }
   0x1   :  { %v4_v0 = vld [vmem:[%s22_s0] ss:$0 sm:$0xff] }
   0x2   :  { %5 = vst [vmem:[%s23_s1] sm:$0xf] %v4_v0 }

// kernel: tile.54
= control target key start
LH: loop header
LB: loop body
LE: loop exit
PB: predicated region body
PF: predicated region fallthrough
CT: control target
= control target key end

     0   :  { %s6_s8 = smov 3  ;;  %vm8_vm0 = vcmask 523264   ;;  %s31_s9 = smov 64   ;;  %vm15_vm1 = vcmask 1048064   ;;  %s51_s0 = inlined_call_operand.vmem [shape: f32[4,64], index: 0, kind: input, shape index: {}]   ;;  %s52_s1 = inlined_call_operand.vmem [shape: f32[1,256], index: 1, kind: output, shape index: {}]  }
   0x1   :  { %v4_v0 = vld [vmem:[%s51_s0] sm:$0xf]  ;;  %s11_s0 = smov 3 }
   0x2   :  { %5 = vst [vmem:[#allocation1] sm:$0xf] %v4_v0 }
   0x9   :  { %v12_v1 = vld [vmem:[#allocation1 + $0x1] ss:$2 sm:%s11_s0]   ;;  %v7_v2 = vld [vmem:[#allocation1] ss:$2 sm:%s6_s8]  }
   0xa   :  { %13 = vrot.lane.b32.xlu0 %v12_v1, %s31_s9  ;;  %9 = vst.msk [vmem:[#allocation0] ss:$8 sm:$0x3] %vm8_vm0, %v7_v2  }
  0x7c   :  { %v14_v3 = vpop.permute.xlu0 %13  }
  0x7d   :  { %16 = vst.msk [vmem:[#allocation0] ss:$8 sm:$0x3] %vm15_vm1, %v14_v3  }
  0x84   :  { %v19_v4 = vld [vmem:[#allocation0] sm:$0x1]  ;;  %v24_v5 = vld [vmem:[#allocation0 + $0x8] sm:$0x1] }
  0x85   :  { %22 = vst [vmem:[%s52_s1] sm:$0x1] %v19_v4 }
  0x86   :  { %29 = vst [vmem:[%s52_s1 + $0x1] sm:$0x1] %v24_v5 }

// kernel: encoder_forward.6
= control target key start
LH: loop header
LB: loop body
LE: loop exit
PB: predicated region body
PF: predicated region fallthrough
CT: control target
= control target key end

     0   :  { %s4253_s27 = smov 0   ;;  %s6635_s0 = inlined_call_operand.vmem [shape: f32[2,10,320], index: 0, kind: input, shape index: {}]   ;;  %s6636_s1 = inlined_call_operand.vmem [shape: bf16[3,4,10], index: 1, kind: input, shape index: {}]   ;;  %s6637_s2 = inlined_call_operand.vmem [shape: bf16[3,320,256], index: 2, kind: input, shape index: {}]   ;;  %s6638_s3 = inlined_call_operand.vmem [shape: f32[1,256], index: 3, kind: input, shape index: {}]   ;;  %s6639_s4 = inlined_call_operand.vmem [shape: f32[256,256], index: 4, kind: input, shape index: {}]   ;;  %s6640_s5 = inlined_call_operand.vmem [shape: bf16[2,4,4], index: 5, kind: input, shape index: {}]   ;;  %s6641_s6 = inlined_call_operand.vmem [shape: bf16[3,256,256], index: 6, kind: input, shape index: {}]   ;;  %s6642_s7 = inlined_call_operand.vmem [shape: f32[1,256], index: 7, kind: input, shape index: {}]   ;;  %s6643_s8 = inlined_call_operand.vmem [shape: f32[2,4,256], index: 8, kind: output, shape index: {}]  }
   0x1 LB: > { %s2862_s28 = sadd.s32 4294967295, %s4206_s27   ;;  %p2866_p0 = scmp.ge.s32.totalorder %s4206_s27, 1  ;;  %s4206_s27 = sphi %s4253_s27, %s18_s27  }
   0x2   : > { %p262_p1 = scmp.lt.s32.totalorder %s4206_s27, 3 }
   0x4   : > { %p263_p2 = pnand %p2866_p0, %p262_p1 }
   0x6   : > { %266 = sbr.rel (%p263_p2) target bundleno = 1322 (0x52a), region = 52 }
   0xb   : > { %p296_p3 = scmp.lt.s32.totalorder %s2862_s28, 1  ;;  %v2975_v0 = vld [vmem:[%s6637_s2 + $0x1b0] sm:$0xf]  ;;  %v3958_v1 = vld [vmem:[%s6637_s2 + $0x1b4] sm:$0xf0]  ;;  %vm385_vm0 = vcmask 1044480  }
   0xc   : > { %v3957_v5 = vld [vmem:[%s6637_s2 + $0x1b4] sm:$0xf]  ;;  %v380_v11 = vld [vmem:[%s6636_s1] sm:$0x3]  ;;  %v2977_v13 = vld [vmem:[%s6637_s2 + $0x1b8] sm:$0xf0]  ;;  %v2976_v22 = vor.u32 %v3958_v1, %v2975_v0 }
   0xd   : > { %s6658_s28 = smov (!%p296_p3, %s2862_s28), 1  ;;  %v3039_v14 = vld [vmem:[%s6637_s2 + $0x230] sm:$0xf]  ;;  %v3974_v15 = vld [vmem:[%s6637_s2 + $0x234] sm:$0xf0]  ;;  %vm381_vm1 = vcmask 80896   ;;  %v2980_v23 = vor.u32 %v3957_v5, %v2977_v13 }
   0xe   : > { %s4119_s29 = smul.u32 48, %s6658_s28  ;;  %v3071_v17 = vld [vmem:[%s6637_s2 + $0x270] sm:$0xf]  ;;  %v3982_v18 = vld [vmem:[%s6637_s2 + $0x274] sm:$0xf0]  ;;  %v3040_v28 = vor.u32 %v3974_v15, %v3039_v14  ;;  %vm765_vm2 = vcmask 523264  }
   0xf   : > { %v4305_v20 = vld [vmem:[%s6636_s1 + $0x2] sm:$0x3]  ;;  %v3956_v25 = vld [vmem:[%s6637_s2 + $0x1a4] sm:$0xf0]  ;;  %v3955_v26 = vld [vmem:[%s6637_s2 + $0x1a4] sm:$0xf]  ;;  %v3072_v29 = vor.u32 %v3982_v18, %v3071_v17 }
  0x10   : > { %s300_s10 = scalar_lea.vmem %s6635_s0, %s4119_s29  ;;  %v2967_v24 = vld [vmem:[%s6637_s2 + $0x1a0] sm:$0xf]  ;;  %v2969_v27 = vld [vmem:[%s6637_s2 + $0x1a8] sm:$0xf0]  ;;  %v3972_v31 = vld [vmem:[%s6637_s2 + $0x224] sm:$0xf0] }
  0x11   : > { %v371_v2 = vld [vmem:[%s300_s10] sm:$0xff]  ;;  %v374_v3 = vld [vmem:[%s300_s10 + $0x18] sm:$0x3]  ;;  %v372_v4 = vld [vmem:[%s300_s10 + $0x8] sm:$0xff]  ;;  %v2968_v34 = vor.u32 %v3956_v25, %v2967_v24  ;;  %v2972_v35 = vor.u32 %v3955_v26, %v2969_v27  ;;  %vm1507_vm3 = vcmask 1043456   ;;  %vm1784_vm11 = vcmask 1041408  }
  0x12   : > { %v377_v6 = vpack.c.bf16 %v374_v3, %v371_v2  ;;  %v375_v7 = vld [vmem:[%s300_s10 + $0x20] sm:$0x3]  ;;  %v373_v8 = vld [vmem:[%s300_s10 + $0x10] sm:$0xff]  ;;  %v376_v9 = vld [vmem:[%s300_s10 + $0x28] sm:$0x3]  ;;  %vm1780_vm12 = vcmask 31744  }
  0x13   : > { %v378_v10 = vpack.c.bf16 %v375_v7, %v372_v4  ;;  %v379_v12 = vpack.c.bf16 %v376_v9, %v373_v8  ;;  %v3031_v30 = vld [vmem:[%s6637_s2 + $0x220] sm:$0xf]  ;;  %v3980_v33 = vld [vmem:[%s6637_s2 + $0x264] sm:$0xf0]  ;;  %v2959_v36 = vld [vmem:[%s6637_s2 + $0x190] sm:$0xf] }
  0x14   : > { %v4289_v16 = vsel %vm385_vm0, %v377_v6, 0  ;;  %v3063_v32 = vld [vmem:[%s6637_s2 + $0x260] sm:$0xf]  ;;  %v3954_v37 = vld [vmem:[%s6637_s2 + $0x194] sm:$0xf0]  ;;  %v3032_v40 = vor.u32 %v3972_v31, %v3031_v30  ;;  %s3902_s25 = sshll.u32 %s6658_s28, 3 }
  0x15   : > { %402 = vmatpush.bf16.msra.mxu0 %v4289_v16  ;;  %v4299_v19 = vsel %vm385_vm0, %v378_v10, 0  ;;  %489 = vmatpush.bf16.msra.mxu3 %v4289_v16  ;;  %v4308_v21 = vsel %vm385_vm0, %v379_v12, 0  ;;  %v3953_v38 = vld [vmem:[%s6637_s2 + $0x194] sm:$0xf]  ;;  %v2961_v39 = vld [vmem:[%s6637_s2 + $0x198] sm:$0xf0]  ;;  %v3064_v41 = vor.u32 %v3980_v33, %v3063_v32  ;;  %v2960_v46 = vor.u32 %v3954_v37, %v2959_v36  ;;  %s305_s30 = scalar_lea.vmem %s6643_s8, %s3902_s25 }
  0x16   : > { %415 = vmatpush.bf16.msra.mxu1 %v4299_v19  ;;  %428 = vmatpush.bf16.msra.mxu2 %v4308_v21  ;;  %v3023_v42 = vld [vmem:[%s6637_s2 + $0x210] sm:$0xf]  ;;  %v3970_v43 = vld [vmem:[%s6637_s2 + $0x214] sm:$0xf0]  ;;  %v2964_v47 = vor.u32 %v3953_v38, %v2961_v39  ;;  %v2951_v48 = vld [vmem:[%s6637_s2 + $0x180] sm:$0xf] }
  0x17   : > { %v3055_v44 = vld [vmem:[%s6637_s2 + $0x250] sm:$0xf]  ;;  %v3978_v45 = vld [vmem:[%s6637_s2 + $0x254] sm:$0xf0]  ;;  %v3952_v49 = vld [vmem:[%s6637_s2 + $0x184] sm:$0xf0]  ;;  %v3024_v52 = vor.u32 %v3970_v43, %v3023_v42 }
  0x18   : > { %2870 = vmatmul.msk.bf16.vlgmr.msra.gmra.mxu0 %vm381_vm1, %v380_v11  ;;  %2874 = vmatmul.msk.bf16.vlgmr.msra.gmra.mxu3 %vm381_vm1, %v4305_v20  ;;  %v3951_v50 = vld [vmem:[%s6637_s2 + $0x184] sm:$0xf]  ;;  %v2953_v51 = vld [vmem:[%s6637_s2 + $0x188] sm:$0xf0]  ;;  %v3056_v53 = vor.u32 %v3978_v45, %v3055_v44  ;;  %v3015_v54 = vld [vmem:[%s6637_s2 + $0x200] sm:$0xf]  ;;  %v2952_v58 = vor.u32 %v3952_v49, %v2951_v48 }
  0x19   : > { %502 = vmatpush.bf16.msrb.mxu0 %v4299_v19  ;;  %2871 = vmatmul.msk.bf16.vlgmr.msra.gmra.mxu1 %vm381_vm1, %v380_v11  ;;  %v3968_v55 = vld [vmem:[%s6637_s2 + $0x204] sm:$0xf0]  ;;  %v3047_v56 = vld [vmem:[%s6637_s2 + $0x240] sm:$0xf]  ;;  %v2956_v59 = vor.u32 %v3951_v50, %v2953_v51  ;;  %v3949_v60 = vld [vmem:[%s6637_s2 + $0x174] sm:$0xf] }
  0x1a   : > { %515 = vmatpush.bf16.msrb.mxu1 %v4308_v21  ;;  %769 = vmatpush.bf16.msrb.mxu2 %v2976_v22  ;;  %v3976_v57 = vld [vmem:[%s6637_s2 + $0x244] sm:$0xf0]  ;;  %v2943_v61 = vld [vmem:[%s6637_s2 + $0x170] sm:$0xf]  ;;  %v3950_v62 = vld [vmem:[%s6637_s2 + $0x174] sm:$0xf0]  ;;  %v3016_v0 = vor.u32 %v3968_v55, %v3015_v54 }
  0x1b   : > { %2872 = vmatmul.msk.bf16.vlgmr.msra.gmra.mxu2 %vm381_vm1, %v380_v11  ;;  %782 = vmatpush.bf16.msrb.mxu3 %v3040_v28  ;;  %v2945_v63 = vld [vmem:[%s6637_s2 + $0x178] sm:$0xf0]  ;;  %v3048_v1 = vor.u32 %v3976_v57, %v3047_v56  ;;  %v3973_v2 = vld [vmem:[%s6637_s2 + $0x234] sm:$0xf]  ;;  %v3007_v4 = vld [vmem:[%s6637_s2 + $0x1f0] sm:$0xf]  ;;  %v2944_v6 = vor.u32 %v3950_v62, %v2943_v61 }
  0x1c   : > { %v3041_v3 = vld [vmem:[%s6637_s2 + $0x238] sm:$0xf0]  ;;  %v3966_v5 = vld [vmem:[%s6637_s2 + $0x1f4] sm:$0xf0]  ;;  %v2948_v7 = vor.u32 %v3949_v60, %v2945_v63  ;;  %v3947_v8 = vld [vmem:[%s6637_s2 + $0x164] sm:$0xf] }
  0x1d   : > { %799 = vmatpush.bf16.msra.mxu0 %v3072_v29  ;;  %v2935_v9 = vld [vmem:[%s6637_s2 + $0x160] sm:$0xf]  ;;  %v3948_v10 = vld [vmem:[%s6637_s2 + $0x164] sm:$0xf0]  ;;  %v3044_v11 = vor.u32 %v3973_v2, %v3041_v3  ;;  %v2937_v12 = vld [vmem:[%s6637_s2 + $0x168] sm:$0xf0]  ;;  %v3008_v13 = vor.u32 %v3966_v5, %v3007_v4 }
  0x1e   : > { %808 = vmatpush.bf16.msra.mxu1 %v2980_v23  ;;  %770 = vmatpush.bf16.msrb.mxu2 %v2968_v34  ;;  %v3971_v14 = vld [vmem:[%s6637_s2 + $0x224] sm:$0xf]  ;;  %v3033_v15 = vld [vmem:[%s6637_s2 + $0x228] sm:$0xf0]  ;;  %v2999_v17 = vld [vmem:[%s6637_s2 + $0x1e0] sm:$0xf]  ;;  %v2936_v22 = vor.u32 %v3948_v10, %v2935_v9  ;;  %v2940_v23 = vor.u32 %v3947_v8, %v2937_v12 }
  0x1f   : > { %783 = vmatpush.bf16.msrb.mxu3 %v3032_v40  ;;  %v3964_v18 = vld [vmem:[%s6637_s2 + $0x1e4] sm:$0xf0]  ;;  %v3945_v24 = vld [vmem:[%s6637_s2 + $0x154] sm:$0xf]  ;;  %v2927_v25 = vld [vmem:[%s6637_s2 + $0x150] sm:$0xf]  ;;  %v3036_v27 = vor.u32 %v3971_v14, %v3033_v15 }
  0x20   : > { %v3946_v26 = vld [vmem:[%s6637_s2 + $0x154] sm:$0xf0]  ;;  %v3000_v28 = vor.u32 %v3964_v18, %v2999_v17  ;;  %v3969_v29 = vld [vmem:[%s6637_s2 + $0x214] sm:$0xf]  ;;  %v3025_v30 = vld [vmem:[%s6637_s2 + $0x218] sm:$0xf0] }
  0x21   : > { %800 = vmatpush.bf16.msra.mxu0 %v3064_v41  ;;  %v2991_v31 = vld [vmem:[%s6637_s2 + $0x1d0] sm:$0xf]  ;;  %v3962_v32 = vld [vmem:[%s6637_s2 + $0x1d4] sm:$0xf0]  ;;  %v2928_v33 = vor.u32 %v3946_v26, %v2927_v25  ;;  %v3944_v36 = vld [vmem:[%s6637_s2 + $0x144] sm:$0xf0]  ;;  %v3028_v37 = vor.u32 %v3969_v29, %v3025_v30 }
  0x22   : > { %809 = vmatpush.bf16.msra.mxu1 %v2972_v35  ;;  %771 = vmatpush.bf16.msrb.mxu2 %v2960_v46  ;;  %v2919_v35 = vld [vmem:[%s6637_s2 + $0x140] sm:$0xf]  ;;  %v3943_v38 = vld [vmem:[%s6637_s2 + $0x144] sm:$0xf]  ;;  %v2921_v39 = vld [vmem:[%s6637_s2 + $0x148] sm:$0xf0]  ;;  %v2992_v40 = vor.u32 %v3962_v32, %v2991_v31 }
  0x23   : > { %784 = vmatpush.bf16.msrb.mxu3 %v3024_v52  ;;  %v3201_v41 = vld [vmem:[%s6637_s2 + $0xf0] sm:$0xf]  ;;  %v3934_v42 = vld [vmem:[%s6637_s2 + $0xf4] sm:$0xf0]  ;;  %v2920_v43 = vor.u32 %v3944_v36, %v2919_v35  ;;  %v2924_v44 = vor.u32 %v3943_v38, %v2921_v39  ;;  %v3193_v46 = vld [vmem:[%s6637_s2 + $0xe0] sm:$0xf] }
  0x24   : > { %v3202_v45 = vor.u32 %v3934_v42, %v3201_v41  ;;  %v3981_v49 = vld [vmem:[%s6637_s2 + $0x274] sm:$0xf]  ;;  %v3073_v50 = vld [vmem:[%s6637_s2 + $0x278] sm:$0xf0]  ;;  %v3185_v52 = vld [vmem:[%s6637_s2 + $0xd0] sm:$0xf] }
  0x25   : > { %801 = vmatpush.bf16.msra.mxu0 %v3056_v53  ;;  %v3076_v51 = vor.u32 %v3981_v49, %v3073_v50  ;;  %v3930_v53 = vld [vmem:[%s6637_s2 + $0xd4] sm:$0xf0]  ;;  %v2983_v55 = vld [vmem:[%s6637_s2 + $0x1c0] sm:$0xf]  ;;  %v3960_v56 = vld [vmem:[%s6637_s2 + $0x1c4] sm:$0xf0] }
  0x26   : > { %810 = vmatpush.bf16.msra.mxu1 %v2964_v47  ;;  %772 = vmatpush.bf16.msrb.mxu2 %v2952_v58  ;;  %v3932_v47 = vld [vmem:[%s6637_s2 + $0xe4] sm:$0xf0]  ;;  %v3186_v54 = vor.u32 %v3930_v53, %v3185_v52  ;;  %v3967_v57 = vld [vmem:[%s6637_s2 + $0x204] sm:$0xf]  ;;  %v2984_v58 = vor.u32 %v3960_v56, %v2983_v55  ;;  %v3065_v61 = vld [vmem:[%s6637_s2 + $0x268] sm:$0xf0] }
  0x27   : > { %785 = vmatpush.bf16.msrb.mxu3 %v3016_v0  ;;  %v3194_v48 = vor.u32 %v3932_v47, %v3193_v46  ;;  %v3979_v60 = vld [vmem:[%s6637_s2 + $0x264] sm:$0xf]  ;;  %v3137_v0 = vld [vmem:[%s6637_s2 + $0x70] sm:$0xf]  ;;  %v3177_v3 = vld [vmem:[%s6637_s2 + $0xc0] sm:$0xf] }
  0x28   : > { %2875 = vmatmul.msk.bf16.vlgmr.msrb.gmra.mxu0 %vm381_vm1, %v4305_v20  ;;  %v3068_v63 = vor.u32 %v3979_v60, %v3065_v61  ;;  %v3928_v4 = vld [vmem:[%s6637_s2 + $0xc4] sm:$0xf0]  ;;  %v3977_v9 = vld [vmem:[%s6637_s2 + $0x254] sm:$0xf]  ;;  %v3057_v10 = vld [vmem:[%s6637_s2 + $0x258] sm:$0xf0] }
  0x29   : > { %802 = vmatpush.bf16.msra.mxu0 %v3048_v1  ;;  %2876 = vmatmul.msk.bf16.vlgmr.msrb.gmra.mxu1 %vm381_vm1, %v4305_v20  ;;  %v2929_v20 = vld [vmem:[%s6637_s2 + $0x158] sm:$0xf0]  ;;  %v3918_v1 = vld [vmem:[%s6637_s2 + $0x74] sm:$0xf0]  ;;  %v3178_v5 = vor.u32 %v3928_v4, %v3177_v3  ;;  %v3060_v12 = vor.u32 %v3977_v9, %v3057_v10  ;;  %v3169_v15 = vld [vmem:[%s6637_s2 + $0xb0] sm:$0xf] }
  0x2a   : > { %811 = vmatpush.bf16.msra.mxu1 %v2956_v59  ;;  %773 = vmatpush.bf16.msrb.mxu2 %v2944_v6  ;;  %v2932_v34 = vor.u32 %v3945_v24, %v2929_v20  ;;  %v3017_v59 = vld [vmem:[%s6637_s2 + $0x208] sm:$0xf0]  ;;  %v3138_v2 = vor.u32 %v3918_v1, %v3137_v0  ;;  %v3965_v6 = vld [vmem:[%s6637_s2 + $0x1f4] sm:$0xf]  ;;  %v3926_v17 = vld [vmem:[%s6637_s2 + $0xb4] sm:$0xf0] }
  0x2b   : > { %786 = vmatpush.bf16.msrb.mxu3 %v3008_v13  ;;  %v3020_v62 = vor.u32 %v3967_v57, %v3017_v59  ;;  %v3916_v13 = vld [vmem:[%s6637_s2 + $0x64] sm:$0xf0]  ;;  %v3170_v18 = vor.u32 %v3926_v17, %v3169_v15  ;;  %v3975_v24 = vld [vmem:[%s6637_s2 + $0x244] sm:$0xf]  ;;  %v3049_v26 = vld [vmem:[%s6637_s2 + $0x248] sm:$0xf0] }
  0x2c   : > { %v3914_v20 = vld [vmem:[%s6637_s2 + $0x54] sm:$0xf0]  ;;  %v3161_v30 = vld [vmem:[%s6637_s2 + $0xa0] sm:$0xf]  ;;  %v3924_v31 = vld [vmem:[%s6637_s2 + $0xa4] sm:$0xf0] }
  0x2d   : > { %821 = vmatpush.bf16.msrb.mxu0 %v3044_v11  ;;  %v3129_v11 = vld [vmem:[%s6637_s2 + $0x60] sm:$0xf]  ;;  %v3961_v32 = vld [vmem:[%s6637_s2 + $0x1d4] sm:$0xf]  ;;  %v3153_v39 = vld [vmem:[%s6637_s2 + $0x90] sm:$0xf] }
  0x2e   : > { %812 = vmatpush.bf16.msra.mxu1 %v2948_v7  ;;  %774 = vmatpush.bf16.msrb.mxu2 %v2936_v22  ;;  %v3009_v7 = vld [vmem:[%s6637_s2 + $0x1f8] sm:$0xf0]  ;;  %v3130_v14 = vor.u32 %v3916_v13, %v3129_v11  ;;  %v3963_v22 = vld [vmem:[%s6637_s2 + $0x1e4] sm:$0xf]  ;;  %v3113_v36 = vld [vmem:[%s6637_s2 + $0x40] sm:$0xf] }
  0x2f   : > { %787 = vmatpush.bf16.msrb.mxu3 %v3000_v28  ;;  %v3012_v8 = vor.u32 %v3965_v6, %v3009_v7  ;;  %v3052_v28 = vor.u32 %v3975_v24, %v3049_v26  ;;  %v3959_v42 = vld [vmem:[%s6637_s2 + $0x1c4] sm:$0xf]  ;;  %v3910_v46 = vld [vmem:[%s6637_s2 + $0x34] sm:$0xf0]  ;;  %v3920_v49 = vld [vmem:[%s6637_s2 + $0x84] sm:$0xf0] }
  0x30   : > { %v3908_v52 = vld [vmem:[%s6637_s2 + $0x24] sm:$0xf0]  ;;  %v3906_v55 = vld [vmem:[%s6637_s2 + $0x14] sm:$0xf0]  ;;  %v3081_v57 = vld [vmem:[%s6637_s2] sm:$0xf] }
  0x31   : > { %822 = vmatpush.bf16.msrb.mxu0 %v3036_v27  ;;  %v3121_v27 = vld [vmem:[%s6637_s2 + $0x50] sm:$0xf]  ;;  %v3225_v3 = vld [vmem:[%s6637_s2 + $0x120] sm:$0xf]  ;;  %v3940_v4 = vld [vmem:[%s6637_s2 + $0x124] sm:$0xf0] }
  0x32   : > { %813 = vmatpush.bf16.msra.mxu1 %v2940_v23  ;;  %775 = vmatpush.bf16.msrb.mxu2 %v2928_v33  ;;  %v3001_v23 = vld [vmem:[%s6637_s2 + $0x1e8] sm:$0xf0]  ;;  %v3122_v29 = vor.u32 %v3914_v20, %v3121_v27  ;;  %v2993_v33 = vld [vmem:[%s6637_s2 + $0x1d8] sm:$0xf0]  ;;  %v3217_v9 = vld [vmem:[%s6637_s2 + $0x110] sm:$0xf] }
  0x33   : > { %788 = vmatpush.bf16.msrb.mxu3 %v2992_v40  ;;  %v3004_v25 = vor.u32 %v3963_v22, %v3001_v23  ;;  %v2996_v35 = vor.u32 %v3961_v32, %v2993_v33  ;;  %v3922_v40 = vld [vmem:[%s6637_s2 + $0x94] sm:$0xf0]  ;;  %v3941_v11 = vld [vmem:[%s6637_s2 + $0x134] sm:$0xf]  ;;  %v3139_v13 = vld [vmem:[%s6637_s2 + $0x78] sm:$0xf0] }
  0x34   : > { %v3154_v41 = vor.u32 %v3922_v40, %v3153_v39  ;;  %v3938_v10 = vld [vmem:[%s6637_s2 + $0x114] sm:$0xf0]  ;;  %v3209_v17 = vld [vmem:[%s6637_s2 + $0x100] sm:$0xf]  ;;  %v3939_v20 = vld [vmem:[%s6637_s2 + $0x124] sm:$0xf] }
  0x35   : > { %823 = vmatpush.bf16.msrb.mxu0 %v3028_v37  ;;  %v3912_v37 = vld [vmem:[%s6637_s2 + $0x44] sm:$0xf0]  ;;  %v3933_v33 = vld [vmem:[%s6637_s2 + $0xf4] sm:$0xf] }
  0x36   : > { %814 = vmatpush.bf16.msra.mxu1 %v2932_v34  ;;  %776 = vmatpush.bf16.msrb.mxu2 %v2920_v43  ;;  %v3162_v34 = vor.u32 %v3924_v31, %v3161_v30  ;;  %v3114_v38 = vor.u32 %v3912_v37, %v3113_v36  ;;  %v2985_v43 = vld [vmem:[%s6637_s2 + $0x1c8] sm:$0xf0]  ;;  %v3915_v30 = vld [vmem:[%s6637_s2 + $0x64] sm:$0xf]  ;;  %v3937_v37 = vld [vmem:[%s6637_s2 + $0x114] sm:$0xf] }
  0x37   : > { %789 = vmatpush.bf16.msrb.mxu3 %v2984_v58  ;;  %v3904_v58 = vld [vmem:[%s6637_s2 + $0x4] sm:$0xf0]  ;;  %v3131_v31 = vld [vmem:[%s6637_s2 + $0x68] sm:$0xf0]  ;;  %v3913_v40 = vld [vmem:[%s6637_s2 + $0x54] sm:$0xf] }
  0x38   : > { %v3082_v59 = vor.u32 %v3904_v58, %v3081_v57  ;;  %v3134_v36 = vor.u32 %v3915_v30, %v3131_v31  ;;  %v3327_v31 = vld [vmem:[%s6637_s2 + $0x2d0] sm:$0xf] }
  0x39   : > { %824 = vmatpush.bf16.msrb.mxu0 %v3020_v62  ;;  %v3233_v62 = vld [vmem:[%s6637_s2 + $0x130] sm:$0xf] }
  0x3a   : > { %815 = vmatpush.bf16.msra.mxu1 %v2924_v44  ;;  %838 = vmatpush.bf16.msra.mxu2 %v3076_v51  ;;  %v2988_v44 = vor.u32 %v3959_v42, %v2985_v43  ;;  %v3097_v51 = vld [vmem:[%s6637_s2 + $0x20] sm:$0xf]  ;;  %v3931_v42 = vld [vmem:[%s6637_s2 + $0xe4] sm:$0xf]  ;;  %v3195_v43 = vld [vmem:[%s6637_s2 + $0xe8] sm:$0xf0] }
  0x3b   : > { %1050 = vmatpush.bf16.msra.mxu3 %v3138_v2  ;;  %v3098_v53 = vor.u32 %v3908_v52, %v3097_v51  ;;  %v3198_v51 = vor.u32 %v3931_v42, %v3195_v43  ;;  %v3911_v52 = vld [vmem:[%s6637_s2 + $0x44] sm:$0xf]  ;;  %v3439_v43 = vld [vmem:[%s6637_s2 + $0x3b0] sm:$0xf] }
  0x3d   : > { %825 = vmatpush.bf16.msrb.mxu0 %v3012_v8  ;;  %v3226_v8 = vor.u32 %v3940_v4, %v3225_v3  ;;  %v3907_v3 = vld [vmem:[%s6637_s2 + $0x24] sm:$0xf]  ;;  %v3099_v4 = vld [vmem:[%s6637_s2 + $0x28] sm:$0xf0] }
  0x3e   : > { %1063 = vmatpush.bf16.msrb.mxu1 %v3202_v45  ;;  %839 = vmatpush.bf16.msra.mxu2 %v3068_v63  ;;  %v3105_v45 = vld [vmem:[%s6637_s2 + $0x30] sm:$0xf]  ;;  %v3942_v63 = vld [vmem:[%s6637_s2 + $0x134] sm:$0xf0] }
  0x3f   : > { %1051 = vmatpush.bf16.msra.mxu3 %v3130_v14  ;;  %v3106_v47 = vor.u32 %v3910_v46, %v3105_v45  ;;  %v3234_v1 = vor.u32 %v3942_v63, %v3233_v62  ;;  %v3218_v14 = vor.u32 %v3938_v10, %v3217_v9  ;;  %v3927_v62 = vld [vmem:[%s6637_s2 + $0xc4] sm:$0xf]  ;;  %v3179_v63 = vld [vmem:[%s6637_s2 + $0xc8] sm:$0xf0]  ;;  %v3905_v10 = vld [vmem:[%s6637_s2 + $0x14] sm:$0xf] }
  0x41   : > { %826 = vmatpush.bf16.msrb.mxu0 %v3004_v25 }
  0x42   : > { %1064 = vmatpush.bf16.msrb.mxu1 %v3194_v48  ;;  %840 = vmatpush.bf16.msra.mxu2 %v3060_v12  ;;  %v3145_v48 = vld [vmem:[%s6637_s2 + $0x80] sm:$0xf]  ;;  %v3235_v12 = vld [vmem:[%s6637_s2 + $0x138] sm:$0xf0] }
  0x43   : > { %1052 = vmatpush.bf16.msra.mxu3 %v3122_v29  ;;  %v3146_v50 = vor.u32 %v3920_v49, %v3145_v48  ;;  %v3238_v23 = vor.u32 %v3941_v11, %v3235_v12  ;;  %v3935_v49 = vld [vmem:[%s6637_s2 + $0x104] sm:$0xf]  ;;  %v3091_v11 = vld [vmem:[%s6637_s2 + $0x18] sm:$0xf0] }
  0x44   : > { %v3923_v12 = vld [vmem:[%s6637_s2 + $0xa4] sm:$0xf] }
  0x45   : > { %827 = vmatpush.bf16.msrb.mxu0 %v2996_v35 }
  0x46   : > { %1065 = vmatpush.bf16.msrb.mxu1 %v3186_v54  ;;  %841 = vmatpush.bf16.msra.mxu2 %v3052_v28  ;;  %v3089_v54 = vld [vmem:[%s6637_s2 + $0x10] sm:$0xf]  ;;  %v3227_v28 = vld [vmem:[%s6637_s2 + $0x128] sm:$0xf0] }
  0x47   : > { %1053 = vmatpush.bf16.msra.mxu3 %v3114_v38  ;;  %v3090_v56 = vor.u32 %v3906_v55, %v3089_v54  ;;  %v3230_v35 = vor.u32 %v3939_v20, %v3227_v28  ;;  %v3219_v38 = vld [vmem:[%s6637_s2 + $0x118] sm:$0xf0]  ;;  %v3929_v54 = vld [vmem:[%s6637_s2 + $0xd4] sm:$0xf]  ;;  %v3998_v20 = vld [vmem:[%s6637_s2 + $0x2f4] sm:$0xf0] }
  0x48   : > { %v3222_v46 = vor.u32 %v3937_v37, %v3219_v38  ;;  %v3187_v55 = vld [vmem:[%s6637_s2 + $0xd8] sm:$0xf0]  ;;  %v3311_v37 = vld [vmem:[%s6637_s2 + $0x2b0] sm:$0xf]  ;;  %v3990_v38 = vld [vmem:[%s6637_s2 + $0x2b4] sm:$0xf0] }
  0x49   : > { %828 = vmatpush.bf16.msrb.mxu0 %v2988_v44  ;;  %v3190_v58 = vor.u32 %v3929_v54, %v3187_v55  ;;  %v4014_v54 = vld [vmem:[%s6637_s2 + $0x374] sm:$0xf0] }
  0x4a   : > { %1066 = vmatpush.bf16.msrb.mxu1 %v3178_v5 }
  0x4b   : > { %1054 = vmatpush.bf16.msra.mxu3 %v3106_v47 }
  0x4e   : > { %1067 = vmatpush.bf16.msrb.mxu1 %v3170_v18  ;;  %v3936_v18 = vld [vmem:[%s6637_s2 + $0x104] sm:$0xf0] }
  0x4f   : > { %1055 = vmatpush.bf16.msra.mxu3 %v3098_v53  ;;  %v3210_v32 = vor.u32 %v3936_v18, %v3209_v17  ;;  %v3115_v53 = vld [vmem:[%s6637_s2 + $0x48] sm:$0xf0]  ;;  %v3921_v17 = vld [vmem:[%s6637_s2 + $0x94] sm:$0xf]  ;;  %v3155_v18 = vld [vmem:[%s6637_s2 + $0x98] sm:$0xf0] }
  0x50   : > { %v3118_v57 = vor.u32 %v3911_v52, %v3115_v53  ;;  %v3407_v53 = vld [vmem:[%s6637_s2 + $0x370] sm:$0xf] }
  0x51   : > { %v3408_v55 = vor.u32 %v4014_v54, %v3407_v53  ;;  %v3985_v53 = vld [vmem:[%s6637_s2 + $0x294] sm:$0xf]  ;;  %v3297_v54 = vld [vmem:[%s6637_s2 + $0x298] sm:$0xf0] }
  0x52   : > { %1068 = vmatpush.bf16.msrb.mxu1 %v3162_v34  ;;  %v3203_v34 = vld [vmem:[%s6637_s2 + $0xf8] sm:$0xf0] }
  0x53   : > { %1056 = vmatpush.bf16.msra.mxu3 %v3090_v56  ;;  %v3206_v39 = vor.u32 %v3933_v33, %v3203_v34  ;;  %v3319_v34 = vld [vmem:[%s6637_s2 + $0x2c0] sm:$0xf] }
  0x56   : > { %1069 = vmatpush.bf16.msrb.mxu1 %v3154_v41  ;;  %v3123_v41 = vld [vmem:[%s6637_s2 + $0x58] sm:$0xf0] }
  0x57   : > { %1057 = vmatpush.bf16.msra.mxu3 %v3082_v59  ;;  %v3126_v48 = vor.u32 %v3913_v40, %v3123_v41  ;;  %v3909_v59 = vld [vmem:[%s6637_s2 + $0x34] sm:$0xf]  ;;  %v3312_v40 = vor.u32 %v3990_v38, %v3311_v37  ;;  %v3345_v41 = vld [vmem:[%s6637_s2 + $0x2f8] sm:$0xf0]  ;;  %v3305_v37 = vld [vmem:[%s6637_s2 + $0x2a8] sm:$0xf0] }
  0x58   : > { %v4011_v38 = vld [vmem:[%s6637_s2 + $0x364] sm:$0xf] }
  0x5a   : > { %1070 = vmatpush.bf16.msrb.mxu1 %v3146_v50  ;;  %v3211_v50 = vld [vmem:[%s6637_s2 + $0x108] sm:$0xf0] }
  0x5b   : > { %v3214_v56 = vor.u32 %v3935_v49, %v3211_v50  ;;  %v3995_v49 = vld [vmem:[%s6637_s2 + $0x2e4] sm:$0xf] }
  0x95   : > { %v4635_v60 = vpop.f32.mrf.mxu0 }
  0x96   : > { %v417_v61 = vpop.f32.mrf.mxu1 }
  0x97   : > { %v4716_v44 = vpack.c.bf16 %v417_v61, %v417_v61  ;;  %v3107_v61 = vld [vmem:[%s6637_s2 + $0x38] sm:$0xf0] }
  0x9b   : > { %v491_v0 = vpop.f32.mrf.mxu3 }
  0x9c   : > { %v521_v2 = vpack.c.bf16 %v491_v0, %v491_v0  ;;  %v434_v0 = vpack.c.bf16 %v4635_v60, %v4635_v60  ;;  %v3171_v60 = vld [vmem:[%s6637_s2 + $0xb8] sm:$0xf0] }
  0x9d   : > { %v406_v5 = vpop.f32.mrf.mxu0 }
  0x9e   : > { %v4649_v6 = vpop.f32.mrf.mxu2  ;;  %v419_v7 = vpop.f32.mrf.mxu1  ;;  %777 = vmatmul.bf16.vlgmr.msrb.gmra.mxu2 %v521_v2  ;;  %816 = vmatmul.bf16.vlgmr.msra.gmra.mxu1 %v521_v2  ;;  %v3182_v2 = vor.u32 %v3927_v62, %v3179_v63  ;;  %v3925_v5 = vld [vmem:[%s6637_s2 + $0xb4] sm:$0xf] }
  0x9f   : > { %1080 = vmatpush.bf16.msrb.mxu2 %v3234_v1  ;;  %1140 = vmatpush.bf16.msra.mxu1 %v4289_v16  ;;  %v3917_v16 = vld [vmem:[%s6637_s2 + $0x74] sm:$0xf]  ;;  %v3110_v1 = vor.u32 %v3909_v59, %v3107_v61  ;;  %v436_v7 = vpack.c.bf16 %v4649_v6, %v4649_v6  ;;  %v3174_v9 = vor.u32 %v3925_v5, %v3171_v60  ;;  %v3241_v6 = vld [vmem:[%s6636_s1 + $0x4] sm:$0x3]  ;;  %v3295_v59 = vld [vmem:[%s6637_s2 + $0x290] sm:$0xf] }
  0xa0   : > { %v3142_v27 = vor.u32 %v3917_v16, %v3139_v13  ;;  %v3094_v16 = vor.u32 %v3905_v10, %v3091_v11  ;;  %v3986_v61 = vld [vmem:[%s6637_s2 + $0x294] sm:$0xf0]  ;;  %v3993_v62 = vld [vmem:[%s6637_s2 + $0x2d4] sm:$0xf]  ;;  %v3423_v60 = vld [vmem:[%s6637_s2 + $0x390] sm:$0xf] }
  0xa1   : > { %v3296_v63 = vor.u32 %v3986_v61, %v3295_v59  ;;  %v3287_v10 = vld [vmem:[%s6637_s2 + $0x280] sm:$0xf]  ;;  %v3984_v11 = vld [vmem:[%s6637_s2 + $0x284] sm:$0xf0]  ;;  %v3425_v59 = vld [vmem:[%s6637_s2 + $0x398] sm:$0xf0] }
  0xa3   : > { %1081 = vmatpush.bf16.msrb.mxu2 %v3226_v8  ;;  %v493_v15 = vpop.f32.mrf.mxu3  ;;  %v3102_v8 = vor.u32 %v3907_v3, %v3099_v4  ;;  %v3399_v3 = vld [vmem:[%s6637_s2 + $0x360] sm:$0xf]  ;;  %v4012_v4 = vld [vmem:[%s6637_s2 + $0x364] sm:$0xf0] }
  0xa4   : > { %v3083_v15 = vld [vmem:[%s6637_s2 + $0x8] sm:$0xf0]  ;;  %v3400_v5 = vor.u32 %v4012_v4, %v3399_v3  ;;  %v3983_v4 = vld [vmem:[%s6637_s2 + $0x284] sm:$0xf] }
  0xa5   : > { %v504_v22 = vpop.f32.mrf.mxu0 }
  0xa6   : > { %v432_v24 = vpop.f32.mrf.mxu2  ;;  %v4676_v25 = vpack.c.bf16 %v504_v22, %v504_v22  ;;  %v517_v26 = vpop.f32.mrf.mxu1 }
  0xa7   : > { %v523_v29 = vpack.c.bf16 %v517_v26, %v517_v26  ;;  %1082 = vmatpush.bf16.msrb.mxu2 %v3218_v14  ;;  %v3903_v14 = vld [vmem:[%s6637_s2 + $0x4] sm:$0xf] }
  0xa8   : > { %790 = vmatmul.bf16.vlgmr.msrb.gmra.mxu3 %v4676_v25  ;;  %v3086_v22 = vor.u32 %v3903_v14, %v3083_v15  ;;  %v3919_v24 = vld [vmem:[%s6637_s2 + $0x84] sm:$0xf]  ;;  %v4010_v14 = vld [vmem:[%s6637_s2 + $0x354] sm:$0xf0] }
  0xa9   : > { %3077 = vmatmul.msk.bf16.vlgmr.msra.gmra.mxu0 %vm765_vm2, %v523_v29  ;;  %1119 = vmatpush.bf16.msrb.mxu3 %v3238_v23  ;;  %v3158_v23 = vor.u32 %v3921_v17, %v3155_v18  ;;  %v3415_v18 = vld [vmem:[%s6637_s2 + $0x380] sm:$0xf] }
  0xaa   : > { %1089 = vmatpush.bf16.msra.mxu0 %v3142_v27  ;;  %v3343_v27 = vld [vmem:[%s6637_s2 + $0x2f0] sm:$0xf] }
  0xab   : > { %1083 = vmatpush.bf16.msrb.mxu2 %v3210_v32  ;;  %v3344_v28 = vor.u32 %v3998_v20, %v3343_v27  ;;  %v3994_v32 = vld [vmem:[%s6637_s2 + $0x2d4] sm:$0xf0]  ;;  %v3409_v20 = vld [vmem:[%s6637_s2 + $0x378] sm:$0xf0] }
  0xac   : > { %v3328_v33 = vor.u32 %v3994_v32, %v3327_v31  ;;  %v3383_v32 = vld [vmem:[%s6637_s2 + $0x340] sm:$0xf] }
  0xad   : > { %v506_v45 = vpop.f32.mrf.mxu0  ;;  %1120 = vmatpush.bf16.msrb.mxu3 %v3230_v35  ;;  %v3992_v35 = vld [vmem:[%s6637_s2 + $0x2c4] sm:$0xf0] }
  0xae   : > { %v519_v47 = vpop.f32.mrf.mxu1  ;;  %1090 = vmatpush.bf16.msra.mxu0 %v3134_v36  ;;  %3078 = vmatmul.msk.bf16.vlgmr.msra.gmra.mxu2 %vm765_vm2, %v523_v29  ;;  %v3996_v29 = vld [vmem:[%s6637_s2 + $0x2e4] sm:$0xf0]  ;;  %v3320_v36 = vor.u32 %v3992_v35, %v3319_v34 }
  0xaf   : > { %1071 = vmatmul.bf16.vlgmr.msrb.gmra.mxu1 %v4716_v44  ;;  %1102 = vmatpush.bf16.msra.mxu2 %v3206_v39  ;;  %v3997_v39 = vld [vmem:[%s6637_s2 + $0x2f4] sm:$0xf]  ;;  %v3303_v47 = vld [vmem:[%s6637_s2 + $0x2a0] sm:$0xf] }
  0xb0   : > { %1419 = vmatpush.bf16.msrb.mxu1 %v3344_v28  ;;  %v3348_v42 = vor.u32 %v3997_v39, %v3345_v41  ;;  %v4021_v28 = vld [vmem:[%s6637_s2 + $0x3b4] sm:$0xf] }
  0xb1   : > { %1121 = vmatpush.bf16.msrb.mxu3 %v3222_v46 }
  0xb2   : > { %1091 = vmatpush.bf16.msra.mxu0 %v3126_v48  ;;  %v3988_v48 = vld [vmem:[%s6637_s2 + $0x2a4] sm:$0xf0] }
  0xb3   : > { %1103 = vmatpush.bf16.msra.mxu2 %v3198_v51  ;;  %v3304_v50 = vor.u32 %v3988_v48, %v3303_v47  ;;  %v3337_v51 = vld [vmem:[%s6637_s2 + $0x2e8] sm:$0xf0]  ;;  %v3375_v48 = vld [vmem:[%s6637_s2 + $0x330] sm:$0xf] }
  0xb4   : > { %v3340_v52 = vor.u32 %v3995_v49, %v3337_v51  ;;  %v4006_v49 = vld [vmem:[%s6637_s2 + $0x334] sm:$0xf0] }
  0xb5   : > { %1122 = vmatpush.bf16.msrb.mxu3 %v3214_v56  ;;  %v3431_v56 = vld [vmem:[%s6637_s2 + $0x3a0] sm:$0xf] }
  0xb6   : > { %1092 = vmatpush.bf16.msra.mxu0 %v3118_v57  ;;  %v4020_v57 = vld [vmem:[%s6637_s2 + $0x3a4] sm:$0xf0] }
  0xb7   : > { %1104 = vmatpush.bf16.msra.mxu2 %v3190_v58  ;;  %v3432_v58 = vor.u32 %v4020_v57, %v3431_v56  ;;  %v3300_v56 = vor.u32 %v3985_v53, %v3297_v54  ;;  %v3393_v57 = vld [vmem:[%s6637_s2 + $0x358] sm:$0xf0] }
  0xb8   : > { %1058 = vmatmul.bf16.vlgmr.msra.gmra.mxu3 %v434_v0 }
  0xb9   : > { %829 = vmatmul.bf16.vlgmr.msrb.gmra.mxu0 %v4676_v25  ;;  %1153 = vmatpush.bf16.msra.mxu3 %v4299_v19  ;;  %v3163_v19 = vld [vmem:[%s6637_s2 + $0xa8] sm:$0xf0] }
  0xba   : > { %1093 = vmatpush.bf16.msra.mxu0 %v3110_v1  ;;  %v3166_v13 = vor.u32 %v3923_v12, %v3163_v19  ;;  %v3147_v25 = vld [vmem:[%s6637_s2 + $0x88] sm:$0xf0]  ;;  %v3991_v12 = vld [vmem:[%s6637_s2 + $0x2c4] sm:$0xf]  ;;  %v3288_v19 = vor.u32 %v3984_v11, %v3287_v10 }
  0xbb   : > { %1105 = vmatpush.bf16.msra.mxu2 %v3182_v2  ;;  %v3150_v26 = vor.u32 %v3919_v24, %v3147_v25  ;;  %v3989_v24 = vld [vmem:[%s6637_s2 + $0x2b4] sm:$0xf]  ;;  %v3313_v25 = vld [vmem:[%s6637_s2 + $0x2b8] sm:$0xf0]  ;;  %v4015_v10 = vld [vmem:[%s6637_s2 + $0x384] sm:$0xf] }
  0xbc   : > { %v3316_v27 = vor.u32 %v3989_v24, %v3313_v25  ;;  %v3417_v11 = vld [vmem:[%s6637_s2 + $0x388] sm:$0xf0]  ;;  %v3351_v25 = vld [vmem:[%s6637_s2 + $0x300] sm:$0xf] }
  0xbe   : > { %1094 = vmatpush.bf16.msra.mxu0 %v3102_v8  ;;  %3239 = vmatmul.msk.bf16.vlgmr.msrb.gmra.mxu2 %vm765_vm2, %v436_v7 }
  0xbf   : > { %1106 = vmatpush.bf16.msra.mxu2 %v3174_v9  ;;  %3242 = vmatmul.msk.bf16.vlgmr.msra.gmra.mxu1 %vm381_vm1, %v3241_v6 }
  0xc2   : > { %1095 = vmatpush.bf16.msra.mxu0 %v3094_v16 }
  0xc3   : > { %1107 = vmatpush.bf16.msra.mxu2 %v3166_v13  ;;  %v3391_v13 = vld [vmem:[%s6637_s2 + $0x350] sm:$0xf] }
  0xc4   : > { %v3392_v17 = vor.u32 %v4010_v14, %v3391_v13 }
  0xc6   : > { %1096 = vmatpush.bf16.msra.mxu0 %v3086_v22  ;;  %v4016_v22 = vld [vmem:[%s6637_s2 + $0x384] sm:$0xf0] }
  0xc7   : > { %1108 = vmatpush.bf16.msra.mxu2 %v3158_v23  ;;  %v3416_v23 = vor.u32 %v4016_v22, %v3415_v18  ;;  %v3377_v18 = vld [vmem:[%s6637_s2 + $0x338] sm:$0xf0] }
  0xc8   : > { %3240 = vmatmul.msk.bf16.vlgmr.msrb.gmra.mxu3 %vm765_vm2, %v436_v7  ;;  %v4018_v7 = vld [vmem:[%s6637_s2 + $0x394] sm:$0xf0] }
  0xc9   : > { %1097 = vmatmul.bf16.vlgmr.msra.gmra.mxu0 %v434_v0  ;;  %v3329_v0 = vld [vmem:[%s6637_s2 + $0x2d8] sm:$0xf0]  ;;  %v3424_v9 = vor.u32 %v4018_v7, %v3423_v60  ;;  %v4007_v60 = vld [vmem:[%s6637_s2 + $0x344] sm:$0xf] }
  0xca   : > { %1166 = vmatpush.bf16.msrb.mxu0 %v4308_v21  ;;  %v3335_v21 = vld [vmem:[%s6637_s2 + $0x2e0] sm:$0xf]  ;;  %v3332_v2 = vor.u32 %v3993_v62, %v3329_v0 }
  0xcb   : > { %1109 = vmatpush.bf16.msra.mxu2 %v3150_v26  ;;  %v3336_v30 = vor.u32 %v3996_v29, %v3335_v21  ;;  %v4013_v26 = vld [vmem:[%s6637_s2 + $0x374] sm:$0xf]  ;;  %v3441_v21 = vld [vmem:[%s6637_s2 + $0x3b8] sm:$0xf0]  ;;  %v3367_v0 = vld [vmem:[%s6637_s2 + $0x320] sm:$0xf] }
  0xcc   : > { %v3444_v31 = vor.u32 %v4021_v28, %v3441_v21  ;;  %v3369_v28 = vld [vmem:[%s6637_s2 + $0x328] sm:$0xf0] }
  0xcd   : > { %1420 = vmatpush.bf16.msrb.mxu1 %v3336_v30  ;;  %v3412_v30 = vor.u32 %v4013_v26, %v3409_v20  ;;  %v4003_v20 = vld [vmem:[%s6637_s2 + $0x324] sm:$0xf] }
  0xce   : > { %1110 = vmatmul.bf16.vlgmr.msra.gmra.mxu2 %v4716_v44  ;;  %v4022_v44 = vld [vmem:[%s6637_s2 + $0x3b4] sm:$0xf0]  ;;  %1458 = vmatpush.bf16.msra.mxu0 %v3348_v42  ;;  %v3401_v42 = vld [vmem:[%s6637_s2 + $0x368] sm:$0xf0] }
  0xcf   : > { %v3440_v46 = vor.u32 %v4022_v44, %v3439_v43  ;;  %1432 = vmatpush.bf16.msrb.mxu2 %v3408_v55  ;;  %v4019_v43 = vld [vmem:[%s6637_s2 + $0x3a4] sm:$0xf]  ;;  %v3433_v44 = vld [vmem:[%s6637_s2 + $0x3a8] sm:$0xf0]  ;;  %v4009_v55 = vld [vmem:[%s6637_s2 + $0x354] sm:$0xf] }
  0xd0   : > { %v3436_v47 = vor.u32 %v4019_v43, %v3433_v44  ;;  %v3396_v62 = vor.u32 %v4009_v55, %v3393_v57 }
  0xd1   : > { %1421 = vmatpush.bf16.msrb.mxu1 %v3328_v33  ;;  %1449 = vmatpush.bf16.msrb.mxu3 %v3440_v46  ;;  %v4008_v33 = vld [vmem:[%s6637_s2 + $0x344] sm:$0xf0]  ;;  %v3404_v46 = vor.u32 %v4011_v38, %v3401_v42 }
  0xd2   : > { %1459 = vmatpush.bf16.msra.mxu0 %v3340_v52  ;;  %v3384_v34 = vor.u32 %v4008_v33, %v3383_v32  ;;  %v3376_v52 = vor.u32 %v4006_v49, %v3375_v48  ;;  %v5059_v48 = vld [vmem:[%s6639_s4 + $0xf0] sm:$0xff]  ;;  %v5064_v49 = vld [vmem:[%s6639_s4 + $0xf8] sm:$0xff] }
  0xd3   : > { %1433 = vmatpush.bf16.msrb.mxu2 %v3400_v5  ;;  %v3289_v5 = vld [vmem:[%s6637_s2 + $0x288] sm:$0xf0] }
  0xd5   : > { %1422 = vmatpush.bf16.msrb.mxu1 %v3320_v36  ;;  %1450 = vmatpush.bf16.msrb.mxu3 %v3432_v58  ;;  %v3987_v36 = vld [vmem:[%s6637_s2 + $0x2a4] sm:$0xf]  ;;  %v4017_v58 = vld [vmem:[%s6637_s2 + $0x394] sm:$0xf] }
  0xd6   : > { %1460 = vmatpush.bf16.msra.mxu0 %v3332_v2  ;;  %v3308_v41 = vor.u32 %v3987_v36, %v3305_v37 }
  0xd7   : > { %1434 = vmatpush.bf16.msrb.mxu2 %v3392_v17  ;;  %v4005_v17 = vld [vmem:[%s6637_s2 + $0x334] sm:$0xf] }
  0xd8   : > { %3243 = vmatmul.msk.bf16.vlgmr.msra.gmra.mxu3 %vm381_vm1, %v3241_v6  ;;  %v3380_v22 = vor.u32 %v4005_v17, %v3377_v18  ;;  %v5186_v17 = vld [vmem:[%s6639_s4 + $0x1d8] sm:$0xff]  ;;  %v5191_v18 = vld [vmem:[%s6639_s4 + $0x70] sm:$0xff] }
  0xd9   : > { %3244 = vmatmul.msk.bf16.vlgmr.msrb.gmra.mxu0 %vm381_vm1, %v3241_v6  ;;  %1423 = vmatpush.bf16.msrb.mxu1 %v3312_v40  ;;  %v3321_v6 = vld [vmem:[%s6637_s2 + $0x2c8] sm:$0xf0] }
  0xda   : > { %1451 = vmatpush.bf16.msrb.mxu3 %v3424_v9  ;;  %v3324_v16 = vor.u32 %v3991_v12, %v3321_v6  ;;  %v3385_v9 = vld [vmem:[%s6637_s2 + $0x348] sm:$0xf0]  ;;  %v3359_v6 = vld [vmem:[%s6637_s2 + $0x310] sm:$0xf] }
  0xdb   : > { %1435 = vmatpush.bf16.msrb.mxu2 %v3384_v34  ;;  %v3388_v12 = vor.u32 %v4007_v60, %v3385_v9  ;;  %v4001_v34 = vld [vmem:[%s6637_s2 + $0x314] sm:$0xf]  ;;  %v5126_v9 = vld [vmem:[%s6639_s4 + $0x1f8] sm:$0xff] }
  0xdc   : > { %1461 = vmatpush.bf16.msra.mxu0 %v3324_v16  ;;  %v4002_v16 = vld [vmem:[%s6637_s2 + $0x314] sm:$0xf0]  ;;  %v5109_v60 = vld [vmem:[%s6639_s4 + $0xb0] sm:$0xff] }
  0xdd   : > { %1424 = vmatpush.bf16.msrb.mxu1 %v3304_v50  ;;  %v3360_v14 = vor.u32 %v4002_v16, %v3359_v6  ;;  %v5157_v6 = vld [vmem:[%s6639_s4 + $0x98] sm:$0xff]  ;;  %v5164_v16 = vld [vmem:[%s6639_s4 + $0x1e8] sm:$0xff] }
  0xde   : > { %1452 = vmatpush.bf16.msrb.mxu3 %v3416_v23 }
  0xdf   : > { %1436 = vmatpush.bf16.msrb.mxu2 %v3376_v52 }
  0xe0   : > { %1462 = vmatpush.bf16.msra.mxu0 %v3316_v27 }
  0xe1   : > { %1425 = vmatpush.bf16.msrb.mxu1 %v3296_v63  ;;  %v3428_v63 = vor.u32 %v4017_v58, %v3425_v59 }
  0xe2   : > { %1471 = vmatpush.bf16.msra.mxu3 %v3412_v30  ;;  %v3372_v30 = vor.u32 %v4003_v20, %v3369_v28  ;;  %v5243_v20 = vld [vmem:[%s6639_s4 + $0x50] sm:$0xff]  ;;  %v5248_v28 = vld [vmem:[%s6639_s4 + $0x1a0] sm:$0xff] }
  0xe4   : > { %1463 = vmatpush.bf16.msra.mxu0 %v3308_v41  ;;  %v3353_v41 = vld [vmem:[%s6637_s2 + $0x308] sm:$0xf0] }
  0xe5   : > { %1426 = vmatpush.bf16.msrb.mxu1 %v3288_v19  ;;  %v3420_v19 = vor.u32 %v4015_v10, %v3417_v11  ;;  %v5131_v10 = vld [vmem:[%s6639_s4 + $0xa0] sm:$0xff]  ;;  %v5137_v11 = vld [vmem:[%s6639_s4 + $0xa8] sm:$0xff] }
  0xe6   : > { %1472 = vmatpush.bf16.msra.mxu3 %v3404_v46 }
  0xe8   : > { %1464 = vmatpush.bf16.msra.mxu0 %v3300_v56 }
  0xe9   : > { %1488 = vmatpush.bf16.msra.mxu1 %v3444_v31 }
  0xea   : > { %1473 = vmatpush.bf16.msra.mxu3 %v3396_v62 }
  0xed   : > { %1489 = vmatpush.bf16.msra.mxu1 %v3436_v47 }
  0xee   : > { %1474 = vmatpush.bf16.msra.mxu3 %v3388_v12  ;;  %v5147_v12 = vld [vmem:[%s6639_s4 + $0x90] sm:$0xff] }
  0xf1   : > { %1490 = vmatpush.bf16.msra.mxu1 %v3428_v63 }
  0xf2   : > { %1475 = vmatpush.bf16.msra.mxu3 %v3380_v22  ;;  %v5198_v22 = vld [vmem:[%s6639_s4 + $0x1c0] sm:$0xff] }
  0xf5   : > { %1491 = vmatpush.bf16.msra.mxu1 %v3420_v19  ;;  %v5152_v19 = vld [vmem:[%s6639_s4 + $0x1e0] sm:$0xff] }
  0xf6   : > { %1476 = vmatpush.bf16.msra.mxu3 %v3372_v30  ;;  %v5265_v30 = vld [vmem:[%s6639_s4 + $0x40] sm:$0xff] }
 0x11b   : > { %v4850_v45 = vpop.f32.mrf.mxu1 }
 0x121   : > { %v778_v1 = vpop.f32.mrf.mxu2 }
 0x123   : > { %v819_v8 = vpop.f32.mrf.mxu1 }
 0x124   : > { %v3292_v8 = vor.u32 %v3983_v4, %v3289_v5  ;;  %v5097_v4 = vld [vmem:[%s6639_s4 + $0xc0] sm:$0xff]  ;;  %v5104_v5 = vld [vmem:[%s6639_s4 + $0xc8] sm:$0xff] }
 0x126   : > { %v804_v15 = vpop.f32.mrf.mxu0  ;;  %1465 = vmatpush.bf16.msra.mxu0 %v3292_v8  ;;  %v5119_v8 = vld [vmem:[%s6639_s4 + $0x1f0] sm:$0xff] }
 0x129   : > { %v780_v29 = vpop.f32.mrf.mxu2 }
 0x12a   : > { %1558 = vmatpush.msrb.mxu0 %v5119_v8 }
 0x12b   : > { %v791_v35 = vpop.f32.mrf.mxu3 }
 0x12c   : > { %v792_v39 = vadd.f32 %v791_v35, %v778_v1  ;;  %v4957_v40 = vpop.f32.mrf.mxu1  ;;  %v4004_v1 = vld [vmem:[%s6637_s2 + $0x324] sm:$0xf0]  ;;  %v3361_v35 = vld [vmem:[%s6637_s2 + $0x318] sm:$0xf0]  ;;  %1559 = vmatpush.msrb.mxu0 %v5152_v19 }
 0x12d   : > { %v3368_v2 = vor.u32 %v4004_v1, %v3367_v0  ;;  %v3364_v36 = vor.u32 %v4001_v34, %v3361_v35  ;;  %v5287_v34 = vld [vmem:[%s6639_s4 + $0x30] sm:$0xff]  ;;  %v5294_v35 = vld [vmem:[%s6639_s4 + $0x180] sm:$0xff] }
 0x12e   : > { %v806_v50 = vpop.f32.mrf.mxu0  ;;  %v805_v51 = vadd.f32 %v804_v15, %v792_v39 }
 0x12f   : > { %1437 = vmatpush.bf16.msrb.mxu2 %v3368_v2  ;;  %1477 = vmatpush.bf16.msra.mxu3 %v3364_v36  ;;  %v5069_v50 = vld [vmem:[%s6639_s4 + $0xe0] sm:$0xff]  ;;  %v5087_v2 = vld [vmem:[%s6639_s4 + $0xd0] sm:$0xff]  ;;  %v5299_v36 = vld [vmem:[%s6639_s4 + $0x38] sm:$0xff] }
 0x131   : > { %v843_v61 = vpop.f32.mrf.mxu2 }
 0x133   : > { %v793_v3 = vpop.f32.mrf.mxu3  ;;  %1438 = vmatpush.bf16.msrb.mxu2 %v3360_v14  ;;  %v5174_v14 = vld [vmem:[%s6639_s4 + $0x1d0] sm:$0xff] }
 0x134   : > { %v1074_v7 = vpop.f32.mrf.mxu1  ;;  %v5092_v3 = vld [vmem:[%s6639_s4 + $0xd8] sm:$0xff]  ;;  %1560 = vmatpush.msrb.mxu0 %v5174_v14 }
 0x135   : > { %v5114_v7 = vld [vmem:[%s6639_s4 + $0xb8] sm:$0xff] }
 0x136   : > { %v830_v13 = vpop.f32.mrf.mxu0  ;;  %1561 = vmatpush.msrb.mxu0 %v5198_v22 }
 0x137   : > { %v831_v15 = vadd.f32 %v830_v13, %v4850_v45  ;;  %v4000_v45 = vld [vmem:[%s6637_s2 + $0x304] sm:$0xf0]  ;;  %v5169_v13 = vld [vmem:[%s6639_s4 + $0x80] sm:$0xff] }
 0x138   : > { %v3352_v26 = vor.u32 %v4000_v45, %v3351_v25  ;;  %v5215_v25 = vld [vmem:[%s6639_s4 + $0x60] sm:$0xff]  ;;  %v5220_v45 = vld [vmem:[%s6639_s4 + $0x1b0] sm:$0xff] }
 0x139   : > { %v845_v23 = vpop.f32.mrf.mxu2  ;;  %v844_v24 = vadd.f32 %v843_v61, %v831_v15  ;;  %v5181_v15 = vld [vmem:[%s6639_s4 + $0x88] sm:$0xff]  ;;  %1562 = vmatpush.msrb.mxu0 %v5220_v45 }
 0x13a   : > { %1439 = vmatpush.bf16.msrb.mxu2 %v3352_v26  ;;  %v5203_v23 = vld [vmem:[%s6639_s4 + $0x78] sm:$0xff]  ;;  %v5227_v26 = vld [vmem:[%s6639_s4 + $0x68] sm:$0xff] }
 0x13b   : > { %v1059_v27 = vpop.f32.mrf.mxu3  ;;  %1563 = vmatpush.msrb.mxu0 %v5248_v28 }
 0x13c   : > { %v1060_v21 = vadd.f32 %v1059_v27, %v805_v51  ;;  %v1142_v29 = vpop.f32.mrf.mxu1  ;;  %v5076_v51 = vld [vmem:[%s6639_s4 + $0xe8] sm:$0xff]  ;;  %v5232_v27 = vld [vmem:[%s6639_s4 + $0x1b8] sm:$0xff] }
 0x13d   : > { %v1172_v31 = vpack.c.bf16 %v1142_v29, %v1142_v29  ;;  %v5260_v29 = vld [vmem:[%s6639_s4 + $0x1a8] sm:$0xff] }
 0x13e   : > { %v832_v32 = vpop.f32.mrf.mxu0  ;;  %v1073_v33 = vadd.f32 %v4957_v40, %v1060_v21  ;;  %v3999_v40 = vld [vmem:[%s6637_s2 + $0x304] sm:$0xf]  ;;  %1538 = vmatpush.msra.mxu2 %v5059_v48  ;;  %v5253_v21 = vld [vmem:[%s6639_s4 + $0x58] sm:$0xff] }
 0x13f   : > { %1427 = vmatmul.bf16.vlgmr.msrb.gmra.mxu1 %v1172_v31  ;;  %1466 = vmatmul.bf16.vlgmr.msra.gmra.mxu0 %v1172_v31  ;;  %v3356_v43 = vor.u32 %v3999_v40, %v3353_v41  ;;  %v5270_v31 = vld [vmem:[%s6639_s4 + $0x190] sm:$0xff]  ;;  %v5277_v32 = vld [vmem:[%s6639_s4 + $0x48] sm:$0xff] }
 0x140   : > { %1578 = vmatpush.msrb.mxu1 %v5064_v49  ;;  %1539 = vmatpush.msra.mxu2 %v5069_v50  ;;  %v5320_v40 = vld [vmem:[%s6639_s4 + $0x170] sm:$0xff]  ;;  %v5325_v41 = vld [vmem:[%s6639_s4 + $0x28] sm:$0xff] }
 0x141   : > { %v1085_v37 = vpop.f32.mrf.mxu2  ;;  %1478 = vmatpush.bf16.msra.mxu3 %v3356_v43  ;;  %1564 = vmatpush.msrb.mxu0 %v5270_v31 }
 0x142   : > { %v5048_v38 = vadd.f32 %v1085_v37, %v1073_v33  ;;  %1579 = vmatpush.msrb.mxu1 %v5076_v51  ;;  %1540 = vmatpush.msra.mxu2 %v5087_v2  ;;  %v5282_v33 = vld [vmem:[%s6639_s4 + $0x198] sm:$0xff]  ;;  %v5304_v37 = vld [vmem:[%s6639_s4 + $0x188] sm:$0xff] }
 0x143   : > { %v1061_v39 = vpop.f32.mrf.mxu3  ;;  %1565 = vmatpush.msrb.mxu0 %v5294_v35 }
 0x144   : > { %v1144_v42 = vpop.f32.mrf.mxu1  ;;  %1580 = vmatpush.msrb.mxu1 %v5092_v3  ;;  %1541 = vmatpush.msra.mxu2 %v5097_v4  ;;  %v5315_v39 = vld [vmem:[%s6639_s4 + $0x20] sm:$0xff] }
 0x145   : > { %1566 = vmatpush.msrb.mxu0 %v5320_v40 }
 0x146   : > { %v1098_v44 = vpop.f32.mrf.mxu0  ;;  %1581 = vmatpush.msrb.mxu1 %v5104_v5  ;;  %1542 = vmatpush.msra.mxu2 %v5109_v60 }
 0x147   : > { %v1099_v46 = vadd.f32 %v1098_v44, %v844_v24  ;;  %v5208_v24 = vld [vmem:[%s6639_s4 + $0x1c8] sm:$0xff]  ;;  %v5336_v44 = vld [vmem:[%s6639_s4 + $0x178] sm:$0xff] }
 0x148   : > { %1582 = vmatpush.msrb.mxu1 %v5114_v7  ;;  %1543 = vmatpush.msra.mxu2 %v5131_v10 }
 0x149   : > { %v1087_v47 = vpop.f32.mrf.mxu2 }
 0x14a   : > { %1583 = vmatpush.msrb.mxu1 %v5137_v11  ;;  %1544 = vmatpush.msra.mxu2 %v5147_v12  ;;  %v5348_v47 = vld [vmem:[%s6639_s4 + $0x160] sm:$0xff] }
 0x14b   : > { %v1124_v52 = vpop.f32.mrf.mxu3  ;;  %1567 = vmatpush.msrb.mxu0 %v5348_v47 }
 0x14c   : > { %1584 = vmatpush.msrb.mxu1 %v5157_v6  ;;  %1545 = vmatpush.msra.mxu2 %v5169_v13 }
 0x14e   : > { %v1100_v53 = vpop.f32.mrf.mxu0  ;;  %1585 = vmatpush.msrb.mxu1 %v5181_v15  ;;  %1546 = vmatpush.msra.mxu2 %v5191_v18 }
 0x14f   : > { %v5360_v53 = vld [vmem:[%s6639_s4 + $0x168] sm:$0xff] }
 0x150   : > { %1586 = vmatpush.msrb.mxu1 %v5203_v23  ;;  %1547 = vmatpush.msra.mxu2 %v5215_v25 }
 0x151   : > { %v1111_v54 = vpop.f32.mrf.mxu2 }
 0x152   : > { %v1112_v55 = vadd.f32 %v1111_v54, %v1099_v46  ;;  %1587 = vmatpush.msrb.mxu1 %v5227_v26  ;;  %1548 = vmatpush.msra.mxu2 %v5243_v20  ;;  %v5343_v46 = vld [vmem:[%s6639_s4 + $0x10] sm:$0xff]  ;;  %v5365_v54 = vld [vmem:[%s6639_s4] sm:$0xff] }
 0x153   : > { %v1126_v56 = vpop.f32.mrf.mxu3 }
 0x154   : > { %v5080_v57 = vadd.f32 %v1124_v52, %v1112_v55  ;;  %1588 = vmatpush.msrb.mxu1 %v5253_v21  ;;  %1549 = vmatpush.msra.mxu2 %v5265_v30  ;;  %v5353_v52 = vld [vmem:[%s6639_s4 + $0x18] sm:$0xff]  ;;  %v5370_v55 = vld [vmem:[%s6639_s4 + $0x150] sm:$0xff]  ;;  %v5377_v56 = vld [vmem:[%s6639_s4 + $0x8] sm:$0xff] }
 0x155   : > { %1568 = vmatpush.msrb.mxu0 %v5370_v55 }
 0x156   : > { %v1168_v58 = vpop.f32.mrf.mxu0  ;;  %1589 = vmatpush.msrb.mxu1 %v5277_v32  ;;  %1550 = vmatpush.msra.mxu2 %v5287_v34 }
 0x157   : > { %v1174_v59 = vpack.c.bf16 %v1168_v58, %v1168_v58  ;;  %v5382_v58 = vld [vmem:[%s6639_s4 + $0x158] sm:$0xff] }
 0x158   : > { %1590 = vmatpush.msrb.mxu1 %v5299_v36  ;;  %1551 = vmatpush.msra.mxu2 %v5315_v39 }
 0x159   : > { %3445 = vmatmul.msk.bf16.vlgmr.msrb.gmra.mxu3 %vm765_vm2, %v1174_v59  ;;  %3446 = vmatmul.msk.bf16.vlgmr.msra.gmra.mxu1 %vm765_vm2, %v1174_v59  ;;  %v1113_v61 = vpop.f32.mrf.mxu2  ;;  %v5391_v59 = vld [vmem:[%s6639_s4 + $0x140] sm:$0xff] }
 0x15a   : > { %1598 = vmatpush.msrb.mxu3 %v5126_v9  ;;  %1591 = vmatpush.msrb.mxu1 %v5325_v41  ;;  %v5396_v61 = vld [vmem:[%s6639_s4 + $0x148] sm:$0xff] }
 0x15b   : > { %v1155_v62 = vpop.f32.mrf.mxu3  ;;  %1552 = vmatpush.msra.mxu2 %v5343_v46  ;;  %1569 = vmatpush.msrb.mxu0 %v5391_v59 }
 0x15c   : > { %v1173_v63 = vpack.c.bf16 %v1155_v62, %v1155_v62  ;;  %1599 = vmatpush.msrb.mxu3 %v5164_v16  ;;  %1592 = vmatpush.msrb.mxu1 %v5353_v52  ;;  %v5405_v62 = vld [vmem:[%s6639_s4 + $0x130] sm:$0xff] }
 0x15d   : > { %1553 = vmatpush.msra.mxu2 %v5365_v54  ;;  %1570 = vmatpush.msrb.mxu0 %v5405_v62 }
 0x15e   : > { %v1170_v0 = vpop.f32.mrf.mxu0  ;;  %1440 = vmatmul.bf16.vlgmr.msrb.gmra.mxu2 %v1173_v63  ;;  %1600 = vmatpush.msrb.mxu3 %v5186_v17 }
 0x15f   : > { %1593 = vmatpush.msrb.mxu1 %v5377_v56  ;;  %1620 = vmatpush.msrb.mxu2 %v5059_v48  ;;  %v5419_v48 = vld [vmem:[%s6639_s4 + $0x120] sm:$0xff] }
 0x160   : > { %1601 = vmatpush.msrb.mxu3 %v5208_v24  ;;  %1571 = vmatpush.msrb.mxu0 %v5419_v48 }
 0x161   : > { %1660 = vmatpush.msra.mxu1 %v5064_v49  ;;  %1621 = vmatpush.msrb.mxu2 %v5069_v50  ;;  %v5424_v49 = vld [vmem:[%s6639_s4 + $0x128] sm:$0xff]  ;;  %v5433_v50 = vld [vmem:[%s6639_s4 + $0x110] sm:$0xff] }
 0x162   : > { %1602 = vmatpush.msrb.mxu3 %v5232_v27  ;;  %1572 = vmatpush.msrb.mxu0 %v5433_v50 }
 0x163   : > { %v1157_v1 = vpop.f32.mrf.mxu3  ;;  %1661 = vmatpush.msra.mxu1 %v5076_v51  ;;  %1622 = vmatpush.msrb.mxu2 %v5087_v2  ;;  %v5438_v51 = vld [vmem:[%s6639_s4 + $0x118] sm:$0xff]  ;;  %v5447_v2 = vld [vmem:[%s6639_s4 + $0x100] sm:$0xff] }
 0x164   : > { %1603 = vmatpush.msrb.mxu3 %v5260_v29  ;;  %1573 = vmatpush.msrb.mxu0 %v5447_v2 }
 0x165   : > { %1662 = vmatpush.msra.mxu1 %v5092_v3  ;;  %1623 = vmatpush.msrb.mxu2 %v5097_v4  ;;  %v5452_v3 = vld [vmem:[%s6639_s4 + $0x108] sm:$0xff] }
 0x166   : > { %1604 = vmatpush.msrb.mxu3 %v5282_v33  ;;  %1640 = vmatpush.msra.mxu0 %v5119_v8  ;;  %v1499_v8 = vld [vmem:[%s6638_s3] sm:$0x3] }
 0x167   : > { %1663 = vmatpush.msra.mxu1 %v5104_v5  ;;  %1624 = vmatpush.msrb.mxu2 %v5109_v60 }
 0x168   : > { %1605 = vmatpush.msrb.mxu3 %v5304_v37  ;;  %1641 = vmatpush.msra.mxu0 %v5152_v19 }
 0x169   : > { %1479 = vmatmul.bf16.vlgmr.msra.gmra.mxu3 %v1173_v63  ;;  %v5410_v63 = vld [vmem:[%s6639_s4 + $0x138] sm:$0xff]  ;;  %1664 = vmatpush.msra.mxu1 %v5114_v7 }
 0x16a   : > { %1606 = vmatpush.msrb.mxu3 %v5336_v44  ;;  %1625 = vmatpush.msrb.mxu2 %v5131_v10 }
 0x16b   : > { %1665 = vmatpush.msra.mxu1 %v5137_v11  ;;  %1642 = vmatpush.msra.mxu0 %v5174_v14  ;;  %v1501_v11 = vperm.slane %v1499_v8, 0 }
 0x16c   : > { %1607 = vmatpush.msrb.mxu3 %v5360_v53  ;;  %1626 = vmatpush.msrb.mxu2 %v5147_v12 }
 0x16d   : > { %1666 = vmatpush.msra.mxu1 %v5157_v6  ;;  %1643 = vmatpush.msra.mxu0 %v5198_v22 }
 0x16e   : > { %1608 = vmatpush.msrb.mxu3 %v5382_v58  ;;  %1627 = vmatpush.msrb.mxu2 %v5169_v13 }
 0x16f   : > { %1667 = vmatpush.msra.mxu1 %v5181_v15  ;;  %1644 = vmatpush.msra.mxu0 %v5220_v45 }
 0x170   : > { %1609 = vmatpush.msrb.mxu3 %v5396_v61  ;;  %1628 = vmatpush.msrb.mxu2 %v5191_v18 }
 0x171   : > { %1668 = vmatpush.msra.mxu1 %v5203_v23  ;;  %1645 = vmatpush.msra.mxu0 %v5248_v28 }
 0x172   : > { %1610 = vmatpush.msrb.mxu3 %v5410_v63  ;;  %1629 = vmatpush.msrb.mxu2 %v5215_v25  ;;  %v1502_v25 = vperm.slane %v1499_v8, 1 }
 0x173   : > { %1669 = vmatpush.msra.mxu1 %v5227_v26  ;;  %1646 = vmatpush.msra.mxu0 %v5270_v31 }
 0x174   : > { %1611 = vmatpush.msrb.mxu3 %v5424_v49  ;;  %1630 = vmatpush.msrb.mxu2 %v5243_v20 }
 0x175   : > { %1670 = vmatpush.msra.mxu1 %v5253_v21  ;;  %1647 = vmatpush.msra.mxu0 %v5294_v35 }
 0x176   : > { %1612 = vmatpush.msrb.mxu3 %v5438_v51  ;;  %1631 = vmatpush.msrb.mxu2 %v5265_v30 }
 0x177   : > { %1671 = vmatpush.msra.mxu1 %v5277_v32  ;;  %1648 = vmatpush.msra.mxu0 %v5320_v40 }
 0x178   : > { %1613 = vmatpush.msrb.mxu3 %v5452_v3  ;;  %1632 = vmatpush.msrb.mxu2 %v5287_v34 }
 0x179   : > { %1672 = vmatpush.msra.mxu1 %v5299_v36  ;;  %1649 = vmatpush.msra.mxu0 %v5348_v47 }
 0x17a   : > { %1680 = vmatpush.msra.mxu3 %v5126_v9  ;;  %1633 = vmatpush.msrb.mxu2 %v5315_v39 }
 0x17b   : > { %1673 = vmatpush.msra.mxu1 %v5325_v41  ;;  %1650 = vmatpush.msra.mxu0 %v5370_v55 }
 0x17c   : > { %1681 = vmatpush.msra.mxu3 %v5164_v16  ;;  %1634 = vmatpush.msrb.mxu2 %v5343_v46 }
 0x17d   : > { %1674 = vmatpush.msra.mxu1 %v5353_v52  ;;  %1651 = vmatpush.msra.mxu0 %v5391_v59 }
 0x17e   : > { %1682 = vmatpush.msra.mxu3 %v5186_v17  ;;  %1635 = vmatpush.msrb.mxu2 %v5365_v54 }
 0x17f   : > { %1675 = vmatpush.msra.mxu1 %v5377_v56  ;;  %1652 = vmatpush.msra.mxu0 %v5405_v62 }
 0x180   : > { %1683 = vmatpush.msra.mxu3 %v5208_v24 }
 0x181   : > { %1653 = vmatpush.msra.mxu0 %v5419_v48 }
 0x182   : > { %1684 = vmatpush.msra.mxu3 %v5232_v27 }
 0x183   : > { %1654 = vmatpush.msra.mxu0 %v5433_v50 }
 0x184   : > { %1685 = vmatpush.msra.mxu3 %v5260_v29 }
 0x185   : > { %1655 = vmatpush.msra.mxu0 %v5447_v2 }
 0x186   : > { %1686 = vmatpush.msra.mxu3 %v5282_v33 }
 0x188   : > { %1687 = vmatpush.msra.mxu3 %v5304_v37 }
 0x18a   : > { %1688 = vmatpush.msra.mxu3 %v5336_v44 }
 0x18c   : > { %1689 = vmatpush.msra.mxu3 %v5360_v53 }
 0x18e   : > { %1690 = vmatpush.msra.mxu3 %v5382_v58 }
 0x190   : > { %1691 = vmatpush.msra.mxu3 %v5396_v61 }
 0x192   : > { %1692 = vmatpush.msra.mxu3 %v5410_v63 }
 0x194   : > { %1693 = vmatpush.msra.mxu3 %v5424_v49 }
 0x196   : > { %1694 = vmatpush.msra.mxu3 %v5438_v51 }
 0x198   : > { %1695 = vmatpush.msra.mxu3 %v5452_v3 }
 0x1bc   : > { %v5327_v42 = vpop.f32.mrf.mxu1  ;;  %v5329_v43 = vpop.f32.mrf.mxu0 }
 0x1c4   : > { %v1430_v0 = vpop.f32.mrf.mxu1  ;;  %v1469_v1 = vpop.f32.mrf.mxu0 }
 0x1d6   : > { %v1493_v4 = vpop.f32.mrf.mxu1 }
 0x1dc   : > { %v1454_v5 = vpop.f32.mrf.mxu3 }
 0x1de   : > { %v1495_v60 = vpop.f32.mrf.mxu1 }
 0x1e1   : > { %v1441_v7 = vpop.f32.mrf.mxu2 }
 0x1e2   : > { %v1442_v9 = vadd.f32 %v1441_v7, %v5327_v42 }
 0x1e4   : > { %v1455_v10 = vadd.f32 %v1454_v5, %v1442_v9  ;;  %v1456_v12 = vpop.f32.mrf.mxu3 }
 0x1e6   : > { %v1497_v19 = vadd.f32 %v1455_v10, %v5048_v38 }
 0x1e8   : > { %v5513_v6 = vadd.f32 %v1501_v11, %v1497_v19  ;;  %v3603_v19 = vld [vmem:[%s6641_s6 + $0xf0] sm:$0xf] }
 0x1e9   : > { %v1443_v16 = vpop.f32.mrf.mxu2 }
 0x1ea   : > { %6647 = vst [vmem:[#allocation2_spill] sm:$0xff] %v5513_v6  ;;  %v1508_v13 = vsel %vm1507_vm3, %v5513_v6, 0.0  ;;  %v1522_v14 = vmul.f32 %v5513_v6, %v5513_v6 }
 0x1eb   : > { %v1509_v38 = vrot.slane %v1508_v13, 4 }
 0x1ec   : > { %v1480_v15 = vpop.f32.mrf.mxu3  ;;  %v1524_v17 = vsel %vm1507_vm3, %v1522_v14, 0.0 }
 0x1ed   : > { %v1481_v18 = vadd.f32 %v1480_v15, %v5329_v43  ;;  %v1510_v22 = vadd.f32 %v1509_v38, %v1508_v13  ;;  %v1525_v23 = vrot.slane %v1524_v17, 4  ;;  %v4086_v13 = vld [vmem:[%s6641_s6 + $0xf4] sm:$0xf0]  ;;  %v3595_v15 = vld [vmem:[%s6641_s6 + $0xe0] sm:$0xf] }
 0x1ee   : > { %v3604_v38 = vor.u32 %v4086_v13, %v3603_v19  ;;  %v3555_v19 = vld [vmem:[%s6641_s6 + $0x90] sm:$0xf] }
 0x1ef   : > { %v1494_v24 = vadd.f32 %v1493_v4, %v1481_v18  ;;  %v1511_v45 = vrot.slane %v1510_v22, 2  ;;  %v1526_v26 = vadd.f32 %v1525_v23, %v1524_v17  ;;  %v4084_v17 = vld [vmem:[%s6641_s6 + $0xe4] sm:$0xf0]  ;;  %v3587_v23 = vld [vmem:[%s6641_s6 + $0xd0] sm:$0xf] }
 0x1f1   : > { %v1498_v27 = vadd.f32 %v1494_v24, %v5080_v57  ;;  %v1512_v20 = vadd.f32 %v1511_v45, %v1510_v22  ;;  %v1527_v28 = vrot.slane %v1526_v26, 2  ;;  %v3596_v22 = vor.u32 %v4084_v17, %v3595_v15  ;;  %v4082_v24 = vld [vmem:[%s6641_s6 + $0xd4] sm:$0xf0]  ;;  %v3605_v17 = vld [vmem:[%s6641_s6 + $0xf8] sm:$0xf0] }
 0x1f3   : > { %v5526_v21 = vadd.f32 %v1502_v25, %v1498_v27  ;;  %v1513_v29 = vrot.slane %v1512_v20, 1  ;;  %v1528_v32 = vadd.f32 %v1527_v28, %v1526_v26  ;;  %v4069_v25 = vld [vmem:[%s6641_s6 + $0x74] sm:$0xf]  ;;  %v3541_v26 = vld [vmem:[%s6641_s6 + $0x78] sm:$0xf0] }
 0x1f4   : > { %v1482_v30 = vpop.f32.mrf.mxu3  ;;  %v3544_v28 = vor.u32 %v4069_v25, %v3541_v26  ;;  %v4083_v26 = vld [vmem:[%s6641_s6 + $0xe4] sm:$0xf] }
 0x1f5   : > { %6648 = vst [vmem:[#allocation3_spill] sm:$0xff] %v5526_v21  ;;  %v1514_v31 = vadd.f32 %v1513_v29, %v1512_v20  ;;  %v1515_v33 = vsel %vm1507_vm3, %v5526_v21, 0.0  ;;  %v1523_v34 = vmul.f32 %v5526_v21, %v5526_v21  ;;  %v1529_v39 = vrot.slane %v1528_v32, 1 }
 0x1f6   : > { %v1516_v35 = vrot.slane %v1515_v33, 4 }
 0x1f7   : > { %1554 = vmatmul.f32.vlgmr.msra.gmra.mxu2 %v1514_v31  ;;  %1594 = vmatmul.f32.vlgmr.msrb.gmra.mxu1 %v1514_v31  ;;  %v1531_v36 = vsel %vm1507_vm3, %v1523_v34, 0.0  ;;  %v1530_v44 = vadd.f32 %v1529_v39, %v1528_v32  ;;  %v3588_v31 = vor.u32 %v4082_v24, %v3587_v23  ;;  %v3579_v32 = vld [vmem:[%s6641_s6 + $0xc0] sm:$0xf]  ;;  %v4067_v34 = vld [vmem:[%s6641_s6 + $0x64] sm:$0xf] }
 0x1f8   : > { %v1517_v57 = vadd.f32 %v1516_v35, %v1515_v33  ;;  %v1532_v37 = vrot.slane %v1531_v36, 4  ;;  %2024 = vmatpush.bf16.msrb.mxu1 %v3604_v38  ;;  %v4080_v33 = vld [vmem:[%s6641_s6 + $0xc4] sm:$0xf0]  ;;  %v3533_v35 = vld [vmem:[%s6641_s6 + $0x68] sm:$0xf0] }
 0x1f9   : > { %v3509_v38 = vld [vmem:[%s6641_s6 + $0x38] sm:$0xf0]  ;;  %v3523_v23 = vld [vmem:[%s6641_s6 + $0x50] sm:$0xf] }
 0x1fa   : > { %v1518_v40 = vrot.slane %v1517_v57, 2  ;;  %v1533_v41 = vadd.f32 %v1532_v37, %v1531_v36  ;;  %v3536_v37 = vor.u32 %v4067_v34, %v3533_v35  ;;  %v4054_v34 = vld [vmem:[%s6641_s6 + $0x1f4] sm:$0xf0] }
 0x1fc   : > { %v1519_v42 = vadd.f32 %v1518_v40, %v1517_v57  ;;  %v1534_v43 = vrot.slane %v1533_v41, 2  ;;  %2025 = vmatpush.bf16.msrb.mxu1 %v3596_v22 }
 0x1fe   : > { %v1520_v46 = vrot.slane %v1519_v42, 1  ;;  %v1535_v52 = vadd.f32 %v1534_v43, %v1533_v41  ;;  %v3580_v41 = vor.u32 %v4080_v33, %v3579_v32  ;;  %v4078_v43 = vld [vmem:[%s6641_s6 + $0xb4] sm:$0xf0]  ;;  %v3597_v32 = vld [vmem:[%s6641_s6 + $0xe8] sm:$0xf0] }
 0x1ff   : > { %1636 = vmatmul.f32.vlgmr.msrb.gmra.mxu2 %v1530_v44  ;;  %1676 = vmatmul.f32.vlgmr.msra.gmra.mxu1 %v1530_v44  ;;  %v3731_v33 = vld [vmem:[%s6641_s6 + $0x1f0] sm:$0xf] }
 0x200   : > { %v1521_v47 = vadd.f32 %v1520_v46, %v1519_v42  ;;  %v1536_v53 = vrot.slane %v1535_v52, 1  ;;  %2026 = vmatpush.bf16.msrb.mxu1 %v3588_v31  ;;  %v3571_v42 = vld [vmem:[%s6641_s6 + $0xb0] sm:$0xf]  ;;  %v3501_v31 = vld [vmem:[%s6641_s6 + $0x28] sm:$0xf0] }
 0x202   : > { %1574 = vmatmul.f32.vlgmr.msrb.gmra.mxu0 %v1521_v47  ;;  %1614 = vmatmul.f32.vlgmr.msrb.gmra.mxu3 %v1521_v47  ;;  %v1537_v54 = vadd.f32 %v1536_v53, %v1535_v52  ;;  %v4065_v47 = vld [vmem:[%s6641_s6 + $0x54] sm:$0xf]  ;;  %v3525_v52 = vld [vmem:[%s6641_s6 + $0x58] sm:$0xf0] }
 0x203   : > { %2037 = vmatpush.bf16.msrb.mxu3 %v3544_v28 }
 0x204   : > { %2027 = vmatpush.bf16.msrb.mxu1 %v3580_v41  ;;  %v4057_v41 = vld [vmem:[%s6641_s6 + $0x14] sm:$0xf] }
 0x207   : > { %2038 = vmatpush.bf16.msrb.mxu3 %v3536_v37  ;;  %v3515_v37 = vld [vmem:[%s6641_s6 + $0x40] sm:$0xf] }
 0x20a   : > { %1656 = vmatmul.f32.vlgmr.msra.gmra.mxu0 %v1537_v54  ;;  %1696 = vmatmul.f32.vlgmr.msra.gmra.mxu3 %v1537_v54  ;;  %v3528_v54 = vor.u32 %v4065_v47, %v3525_v52  ;;  %v3589_v47 = vld [vmem:[%s6641_s6 + $0xd8] sm:$0xf0]  ;;  %v3723_v52 = vld [vmem:[%s6641_s6 + $0x1e0] sm:$0xf] }
 0x20c   : > { %2039 = vmatpush.bf16.msrb.mxu3 %v3528_v54 }
 0x274   : > { %v1595_v59 = vpop.f32.mrf.mxu1 }
 0x27a   : > { %v1555_v55 = vpop.f32.mrf.mxu2 }
 0x27c   : > { %v1677_v3 = vpop.f32.mrf.mxu1 }
 0x27f   : > { %v1575_v56 = vpop.f32.mrf.mxu0 }
 0x280   : > { %v1576_v58 = vadd.f32 %v1575_v56, %v1555_v55 }
 0x282   : > { %v1618_v62 = vmul.f32 0.0625, %v1576_v58  ;;  %v1637_v63 = vpop.f32.mrf.mxu2  ;;  %v3539_v58 = vld [vmem:[%s6641_s6 + $0x70] sm:$0xf] }
 0x284   : > { %v1702_v49 = vmul.f32 %v1618_v62, %v1618_v62  ;;  %v1708_v20 = vperm.slane %v1618_v62, 0  ;;  %v3572_v62 = vor.u32 %v4078_v43, %v3571_v42  ;;  %v3600_v42 = vor.u32 %v4083_v26, %v3597_v32  ;;  %v4081_v43 = vld [vmem:[%s6641_s6 + $0xd4] sm:$0xf]  ;;  %v3565_v26 = vld [vmem:[%s6641_s6 + $0xa8] sm:$0xf0] }
 0x285   : > { %v1615_v61 = vpop.f32.mrf.mxu3  ;;  %v4056_v32 = vld [vmem:[%s6641_s6 + $0x4] sm:$0xf0] }
 0x286   : > { %v1616_v1 = vadd.f32 %v1615_v61, %v1595_v59  ;;  %v1710_v44 = vsub.f32 %v5513_v6, %v1708_v20  ;;  %v4070_v59 = vld [vmem:[%s6641_s6 + $0x74] sm:$0xf0]  ;;  %2028 = vmatpush.bf16.msrb.mxu1 %v3572_v62  ;;  %v3592_v62 = vor.u32 %v4081_v43, %v3589_v47 }
 0x287   : > { %v1657_v0 = vpop.f32.mrf.mxu0 }
 0x288   : > { %v1658_v48 = vadd.f32 %v1657_v0, %v1637_v63  ;;  %v5533_v51 = vmul.f32 0.0625, %v1616_v1  ;;  %v3563_v63 = vld [vmem:[%s6641_s6 + $0xa0] sm:$0xf]  ;;  %v4076_v0 = vld [vmem:[%s6641_s6 + $0xa4] sm:$0xf0] }
 0x289   : > { %v4063_v1 = vld [vmem:[%s6641_s6 + $0x44] sm:$0xf] }
 0x28a   : > { %v1700_v50 = vmul.f32 0.0625, %v1658_v48  ;;  %v1703_v7 = vmul.f32 %v5533_v51, %v5533_v51  ;;  %v1709_v55 = vperm.slane %v5533_v51, 0 }
 0x28c   : > { %v1704_v2 = vsub.f32 %v1700_v50, %v1702_v49  ;;  %v3517_v49 = vld [vmem:[%s6641_s6 + $0x48] sm:$0xf0] }
 0x28d   : > { %v1697_v4 = vpop.f32.mrf.mxu3  ;;  %v3520_v51 = vor.u32 %v4063_v1, %v3517_v49  ;;  %v3715_v1 = vld [vmem:[%s6641_s6 + $0x1d0] sm:$0xf]  ;;  %v4050_v49 = vld [vmem:[%s6641_s6 + $0x1d4] sm:$0xf0] }
 0x28e   : > { %v1706_v5 = vmax.f32 %v1704_v2, 0.0  ;;  %v1698_v60 = vadd.f32 %v1697_v4, %v1677_v3  ;;  %v1711_v2 = vsub.f32 %v5526_v21, %v1709_v55  ;;  %v6507_v21 = vld [vmem:[%s6639_s4 + $0x18] sm:$0xff] }
 0x28f   : > { %2040 = vmatpush.bf16.msrb.mxu3 %v3520_v51  ;;  %v4037_v51 = vld [vmem:[%s6641_s6 + $0x174] sm:$0xf] }
 0x290   : > { %v1712_v8 = vadd.f32 1e-05, %v1706_v5  ;;  %v1701_v9 = vmul.f32 0.0625, %v1698_v60  ;;  %v3540_v60 = vor.u32 %v4070_v59, %v3539_v58  ;;  %v4062_v58 = vld [vmem:[%s6641_s6 + $0x34] sm:$0xf0] }
 0x291   : > { %v4079_v59 = vld [vmem:[%s6641_s6 + $0xc4] sm:$0xf] }
 0x292   : > { %4128 = vrsqrt.f32 %v1712_v8  ;;  %v1705_v10 = vsub.f32 %v1701_v9, %v1703_v7  ;;  %vm1720_vm5 = vweird.f32 %v1712_v8  ;;  %v3531_v7 = vld [vmem:[%s6641_s6 + $0x60] sm:$0xf]  ;;  %v3564_v9 = vor.u32 %v4076_v0, %v3563_v63  ;;  %v3581_v63 = vld [vmem:[%s6641_s6 + $0xc8] sm:$0xf0] }
 0x294   : > { %v1707_v11 = vmax.f32 %v1705_v10, 0.0  ;;  %v1779_v10 = vld [vmem:[%s6640_s5] sm:$0x3]  ;;  %2029 = vmatpush.bf16.msrb.mxu1 %v3564_v9  ;;  %v3584_v9 = vor.u32 %v4079_v59, %v3581_v63  ;;  %v3733_v59 = vld [vmem:[%s6641_s6 + $0x1f8] sm:$0xf0] }
 0x295   : > { %v4034_v63 = vld [vmem:[%s6641_s6 + $0x154] sm:$0xf0] }
 0x296   : > { %v1713_v12 = vadd.f32 1e-05, %v1707_v11 }
 0x298   : > { %v4129_v16 = vpop.eup %4128  ;;  %4130 = vrsqrt.f32 %v1713_v12  ;;  %vm1730_vm8 = vweird.f32 %v1713_v12 }
 0x299   : > { %v1715_v14 = vmul.f32 %v4129_v16, %v1712_v8  ;;  %vm1721_vm4 = vweird.f32 %v4129_v16  ;;  %v4068_v8 = vld [vmem:[%s6641_s6 + $0x64] sm:$0xf0] }
 0x29a   : > { %vm1722_vm6 = vmor %vm1720_vm5, %vm1721_vm4  ;;  %v3532_v22 = vor.u32 %v4068_v8, %v3531_v7  ;;  %v4060_v7 = vld [vmem:[%s6641_s6 + $0x24] sm:$0xf0]  ;;  %v4035_v8 = vld [vmem:[%s6641_s6 + $0x164] sm:$0xf] }
 0x29b   : > { %v1716_v18 = vmul.f32 %v4129_v16, %v1715_v14  ;;  %v4061_v14 = vld [vmem:[%s6641_s6 + $0x34] sm:$0xf] }
 0x29d   : > { %v1717_v45 = vmul.f32 0.5, %v1716_v18  ;;  %v3512_v18 = vor.u32 %v4061_v14, %v3509_v38  ;;  %v4048_v14 = vld [vmem:[%s6641_s6 + $0x1c4] sm:$0xf0] }
 0x29e   : > { %v4131_v27 = vpop.eup %4130 }
 0x29f   : > { %v1718_v29 = vsub.f32 1.5, %v1717_v45  ;;  %v1725_v30 = vmul.f32 %v4131_v27, %v1713_v12  ;;  %vm1731_vm7 = vweird.f32 %v4131_v27  ;;  %v4085_v12 = vld [vmem:[%s6641_s6 + $0xf4] sm:$0xf]  ;;  %v4066_v45 = vld [vmem:[%s6641_s6 + $0x54] sm:$0xf0]  ;;  %2041 = vmatpush.bf16.msrb.mxu3 %v3512_v18 }
 0x2a0   : > { %vm1732_vm9 = vmor %vm1730_vm8, %vm1731_vm7  ;;  %v3608_v28 = vor.u32 %v4085_v12, %v3605_v17  ;;  %v3661_v12 = vld [vmem:[%s6641_s6 + $0x168] sm:$0xf0]  ;;  %v3491_v17 = vld [vmem:[%s6641_s6 + $0x10] sm:$0xf] }
 0x2a1   : > { %v1719_v36 = vmul.f32 %v4129_v16, %v1718_v29  ;;  %v1726_v57 = vmul.f32 %v4131_v27, %v1725_v30  ;;  %v3547_v29 = vld [vmem:[%s6641_s6 + $0x80] sm:$0xf]  ;;  %v4072_v30 = vld [vmem:[%s6641_s6 + $0x84] sm:$0xf0]  ;;  %v3664_v38 = vor.u32 %v4035_v8, %v3661_v12  ;;  %v4058_v18 = vld [vmem:[%s6641_s6 + $0x14] sm:$0xf0] }
 0x2a3   : > { %v1723_v39 = vsel %vm1722_vm6, %v4129_v16, %v1719_v36  ;;  %v1727_v40 = vmul.f32 0.5, %v1726_v57  ;;  %v4074_v16 = vld [vmem:[%s6641_s6 + $0x94] sm:$0xf0]  ;;  %v3524_v57 = vor.u32 %v4066_v45, %v3523_v23  ;;  %v3653_v45 = vld [vmem:[%s6641_s6 + $0x158] sm:$0xf0] }
 0x2a4   : > { %v1734_v46 = vperm.slane %v1723_v39, 0  ;;  %v3556_v24 = vor.u32 %v4074_v16, %v3555_v19  ;;  %v4064_v39 = vld [vmem:[%s6641_s6 + $0x44] sm:$0xf0]  ;;  %v3573_v19 = vld [vmem:[%s6641_s6 + $0xb8] sm:$0xf0] }
 0x2a5   : > { %v1728_v53 = vsub.f32 1.5, %v1727_v40  ;;  %v3548_v40 = vor.u32 %v4072_v30, %v3547_v29  ;;  %v3516_v55 = vor.u32 %v4064_v39, %v3515_v37  ;;  %v3707_v16 = vld [vmem:[%s6641_s6 + $0x1c0] sm:$0xf]  ;;  %v3492_v30 = vor.u32 %v4058_v18, %v3491_v17  ;;  %v3557_v39 = vld [vmem:[%s6641_s6 + $0x98] sm:$0xf0] }
 0x2a6   : > { %v1736_v56 = vmul.f32 %v1734_v46, %v1710_v44  ;;  %2030 = vmatpush.bf16.msrb.mxu1 %v3556_v24  ;;  %v3732_v44 = vor.u32 %v4054_v34, %v3731_v33  ;;  %v3493_v46 = vld [vmem:[%s6641_s6 + $0x18] sm:$0xf0]  ;;  %v4075_v24 = vld [vmem:[%s6641_s6 + $0xa4] sm:$0xf]  ;;  %v3667_v33 = vld [vmem:[%s6641_s6 + $0x170] sm:$0xf] }
 0x2a7   : > { %v1729_v61 = vmul.f32 %v4131_v27, %v1728_v53  ;;  %v4052_v53 = vld [vmem:[%s6641_s6 + $0x1e4] sm:$0xf0]  ;;  %v3496_v54 = vor.u32 %v4057_v41, %v3493_v46  ;;  %v4038_v34 = vld [vmem:[%s6641_s6 + $0x174] sm:$0xf0]  ;;  %v4031_v18 = vld [vmem:[%s6641_s6 + $0x144] sm:$0xf] }
 0x2a8   : > { %vm1738_vm10 = vcmp.ge.f32.partialorder %v1736_v56, 0.0  ;;  %v1740_v48 = vmul.f32 0.1, %v1736_v56  ;;  %v3724_v0 = vor.u32 %v4052_v53, %v3723_v52  ;;  %v4044_v41 = vld [vmem:[%s6641_s6 + $0x1a4] sm:$0xf0]  ;;  %v3668_v43 = vor.u32 %v4038_v34, %v3667_v33 }
 0x2a9   : > { %v1733_v50 = vsel %vm1732_vm9, %v4131_v27, %v1729_v61  ;;  %v4059_v27 = vld [vmem:[%s6641_s6 + $0x24] sm:$0xf]  ;;  %v4036_v46 = vld [vmem:[%s6641_s6 + $0x164] sm:$0xf0]  ;;  %v3637_v33 = vld [vmem:[%s6641_s6 + $0x138] sm:$0xf0] }
 0x2aa   : > { %v1735_v3 = vperm.slane %v1733_v50, 0  ;;  %v1742_v4 = vsel %vm1738_vm10, %v1736_v56, %v1740_v48  ;;  %v3504_v35 = vor.u32 %v4059_v27, %v3501_v31  ;;  %v3507_v56 = vld [vmem:[%s6641_s6 + $0x30] sm:$0xf]  ;;  %2031 = vmatpush.bf16.msrb.mxu1 %v3548_v40  ;;  %v4055_v61 = vld [vmem:[%s6641_s6 + $0x4] sm:$0xf] }
 0x2ab   : > { %v5606_v5 = vpack.c.bf16 %v1742_v4, %v1742_v4  ;;  %v3485_v48 = vld [vmem:[%s6641_s6 + $0x8] sm:$0xf0]  ;;  %v3699_v27 = vld [vmem:[%s6641_s6 + $0x1b0] sm:$0xf]  ;;  %v3483_v31 = vld [vmem:[%s6641_s6] sm:$0xf] }
 0x2ac   : > { %v1737_v11 = vmul.f32 %v1735_v3, %v1711_v2  ;;  %2042 = vmatpush.bf16.msrb.mxu3 %v3504_v35  ;;  %v3488_v50 = vor.u32 %v4055_v61, %v3485_v48  ;;  %v3669_v2 = vld [vmem:[%s6641_s6 + $0x178] sm:$0xf0]  ;;  %v3508_v3 = vor.u32 %v4062_v58, %v3507_v56  ;;  %v3568_v35 = vor.u32 %v4075_v24, %v3565_v26  ;;  %v3691_v40 = vld [vmem:[%s6641_s6 + $0x1a0] sm:$0xf]  ;;  %v4071_v52 = vld [vmem:[%s6641_s6 + $0x84] sm:$0xf] }
 0x2ad   : > { %v5628_v13 = vsel %vm1784_vm11, %v5606_v5, 0  ;;  %v3672_v4 = vor.u32 %v4037_v51, %v3669_v2  ;;  %v3692_v53 = vor.u32 %v4044_v41, %v3691_v40  ;;  %v4042_v56 = vld [vmem:[%s6641_s6 + $0x194] sm:$0xf0]  ;;  %v4053_v58 = vld [vmem:[%s6641_s6 + $0x1f4] sm:$0xf] }
 0x2ae   : > { %1798 = vmatpush.bf16.msra.mxu2 %v5628_v13  ;;  %vm1739_vm13 = vcmp.ge.f32.partialorder %v1737_v11, 0.0  ;;  %v1741_v15 = vmul.f32 0.1, %v1737_v11  ;;  %2236 = vmatpush.bf16.msra.mxu1 %v3732_v44  ;;  %v3659_v44 = vld [vmem:[%s6641_s6 + $0x160] sm:$0xf]  ;;  %v3736_v48 = vor.u32 %v4053_v58, %v3733_v59 }
 0x2af   : > { %v3660_v61 = vor.u32 %v4036_v46, %v3659_v44  ;;  %v3643_v2 = vld [vmem:[%s6641_s6 + $0x140] sm:$0xf]  ;;  %v4045_v34 = vld [vmem:[%s6641_s6 + $0x1b4] sm:$0xf]  ;;  %v3629_v40 = vld [vmem:[%s6641_s6 + $0x128] sm:$0xf0] }
 0x2b0   : > { %v1743_v25 = vsel %vm1739_vm13, %v1737_v11, %v1741_v15  ;;  %2043 = vmatpush.bf16.msrb.mxu3 %v3496_v54  ;;  %v3716_v11 = vor.u32 %v4050_v49, %v3715_v1  ;;  %v3549_v54 = vld [vmem:[%s6641_s6 + $0x88] sm:$0xf0]  ;;  %v4051_v49 = vld [vmem:[%s6641_s6 + $0x1e4] sm:$0xf]  ;;  %v3611_v26 = vld [vmem:[%s6641_s6 + $0x100] sm:$0xf] }
 0x2b1   : > { %3479 = vmatmul.msk.bf16.vlgmr.msra.gmra.mxu2 %vm1780_vm12, %v1779_v10  ;;  %v5653_v20 = vpack.c.bf16 %v1743_v25, %v1743_v25  ;;  %v3708_v25 = vor.u32 %v4048_v14, %v3707_v16  ;;  %v4028_v16 = vld [vmem:[%s6641_s6 + $0x124] sm:$0xf0]  ;;  %v4043_v41 = vld [vmem:[%s6641_s6 + $0x1a4] sm:$0xf]  ;;  %v4025_v44 = vld [vmem:[%s6641_s6 + $0x114] sm:$0xf] }
 0x2b2   : > { %2011 = vmatpush.bf16.msrb.mxu2 %v3540_v60  ;;  %v3499_v60 = vld [vmem:[%s6641_s6 + $0x20] sm:$0xf]  ;;  %2237 = vmatpush.bf16.msra.mxu1 %v3724_v0  ;;  %v3552_v0 = vor.u32 %v4071_v52, %v3549_v54  ;;  %v3621_v46 = vld [vmem:[%s6641_s6 + $0x118] sm:$0xf0]  ;;  %v4041_v52 = vld [vmem:[%s6641_s6 + $0x194] sm:$0xf] }
 0x2b3   : > { %v5675_v36 = vsel %vm1784_vm11, %v5653_v20, 0  ;;  %v3500_v15 = vor.u32 %v4060_v7, %v3499_v60  ;;  %v4049_v60 = vld [vmem:[%s6641_s6 + $0x1d4] sm:$0xf]  ;;  %v3717_v7 = vld [vmem:[%s6641_s6 + $0x1d8] sm:$0xf0]  ;;  %v3624_v54 = vor.u32 %v4025_v44, %v3621_v46 }
 0x2b4   : > { %1811 = vmatpush.bf16.msrb.mxu0 %v5675_v36  ;;  %2044 = vmatpush.bf16.msrb.mxu3 %v3488_v50  ;;  %v3725_v50 = vld [vmem:[%s6641_s6 + $0x1e8] sm:$0xf0]  ;;  %v4039_v59 = vld [vmem:[%s6641_s6 + $0x184] sm:$0xf]  ;;  %v4096_v44 = vld [vmem:[%s6641_s6 + $0x244] sm:$0xf0] }
 0x2b5   : > { %v3613_v58 = vld [vmem:[%s6641_s6 + $0x108] sm:$0xf0]  ;;  %v4095_v46 = vld [vmem:[%s6641_s6 + $0x244] sm:$0xf] }
 0x2b6   : > { %2012 = vmatpush.bf16.msrb.mxu2 %v3532_v22  ;;  %v4033_v22 = vld [vmem:[%s6641_s6 + $0x154] sm:$0xf]  ;;  %2238 = vmatpush.bf16.msra.mxu1 %v3716_v11  ;;  %v3720_v11 = vor.u32 %v4049_v60, %v3717_v7  ;;  %v4102_v60 = vld [vmem:[%s6641_s6 + $0x274] sm:$0xf0] }
 0x2b7   : > { %3480 = vmatmul.msk.bf16.vlgmr.msrb.gmra.mxu0 %vm1780_vm12, %v1779_v10  ;;  %v4077_v10 = vld [vmem:[%s6641_s6 + $0xb4] sm:$0xf]  ;;  %v3656_v29 = vor.u32 %v4033_v22, %v3653_v45  ;;  %v3645_v22 = vld [vmem:[%s6641_s6 + $0x148] sm:$0xf0] }
 0x2b8   : > { %2050 = vmatpush.bf16.msra.mxu0 %v3608_v28  ;;  %2249 = vmatpush.bf16.msra.mxu3 %v3672_v4  ;;  %v3576_v23 = vor.u32 %v4077_v10, %v3573_v19  ;;  %v4046_v28 = vld [vmem:[%s6641_s6 + $0x1b4] sm:$0xf0]  ;;  %v3728_v4 = vor.u32 %v4051_v49, %v3725_v50  ;;  %v3627_v19 = vld [vmem:[%s6641_s6 + $0x120] sm:$0xf]  ;;  %v3648_v24 = vor.u32 %v4031_v18, %v3645_v22  ;;  %v4101_v7 = vld [vmem:[%s6641_s6 + $0x274] sm:$0xf] }
 0x2b9   : > { %v3700_v37 = vor.u32 %v4046_v28, %v3699_v27  ;;  %v4030_v10 = vld [vmem:[%s6641_s6 + $0x134] sm:$0xf0]  ;;  %v3628_v14 = vor.u32 %v4028_v16, %v3627_v19  ;;  %v4024_v27 = vld [vmem:[%s6641_s6 + $0x104] sm:$0xf0]  ;;  %v3675_v28 = vld [vmem:[%s6641_s6 + $0x180] sm:$0xf] }
 0x2ba   : > { %2013 = vmatpush.bf16.msrb.mxu2 %v3524_v57  ;;  %v4073_v57 = vld [vmem:[%s6641_s6 + $0x94] sm:$0xf]  ;;  %2239 = vmatpush.bf16.msra.mxu1 %v3708_v25  ;;  %v3709_v25 = vld [vmem:[%s6641_s6 + $0x1c8] sm:$0xf0]  ;;  %v4116_v19 = vld [vmem:[%s6641_s6 + $0x2e4] sm:$0xf0] }
 0x2bb   : > { %v3560_v47 = vor.u32 %v4073_v57, %v3557_v39  ;;  %v3701_v57 = vld [vmem:[%s6641_s6 + $0x1b8] sm:$0xf0]  ;;  %v4027_v39 = vld [vmem:[%s6641_s6 + $0x124] sm:$0xf] }
 0x2bc   : > { %2051 = vmatpush.bf16.msra.mxu0 %v3600_v42  ;;  %2250 = vmatpush.bf16.msra.mxu3 %v3664_v38  ;;  %v3484_v42 = vor.u32 %v4056_v32, %v3483_v31  ;;  %v3619_v38 = vld [vmem:[%s6641_s6 + $0x110] sm:$0xf]  ;;  %v4029_v32 = vld [vmem:[%s6641_s6 + $0x134] sm:$0xf]  ;;  %v4115_v16 = vld [vmem:[%s6641_s6 + $0x2e4] sm:$0xf] }
 0x2bd   : > { %v4099_v18 = vld [vmem:[%s6641_s6 + $0x264] sm:$0xf] }
 0x2be   : > { %2014 = vmatpush.bf16.msrb.mxu2 %v3516_v55  ;;  %2240 = vmatpush.bf16.msra.mxu1 %v3700_v37  ;;  %v3683_v55 = vld [vmem:[%s6641_s6 + $0x190] sm:$0xf]  ;;  %v3704_v37 = vor.u32 %v4045_v34, %v3701_v57 }
 0x2bf   : > { %v3684_v1 = vor.u32 %v4042_v56, %v3683_v55  ;;  %v4023_v56 = vld [vmem:[%s6641_s6 + $0x104] sm:$0xf] }
 0x2c0   : > { %2052 = vmatpush.bf16.msra.mxu0 %v3592_v62  ;;  %2251 = vmatpush.bf16.msra.mxu3 %v3656_v29  ;;  %v3651_v62 = vld [vmem:[%s6641_s6 + $0x150] sm:$0xf]  ;;  %v3612_v29 = vor.u32 %v4024_v27, %v3611_v26  ;;  %v4114_v26 = vld [vmem:[%s6641_s6 + $0x2d4] sm:$0xf0]  ;;  %v4113_v27 = vld [vmem:[%s6641_s6 + $0x2d4] sm:$0xf] }
 0x2c1   : > { %v3652_v51 = vor.u32 %v4034_v63, %v3651_v62  ;;  %v3616_v62 = vor.u32 %v4023_v56, %v3613_v58  ;;  %v4110_v56 = vld [vmem:[%s6641_s6 + $0x2b4] sm:$0xf0]  ;;  %v4109_v58 = vld [vmem:[%s6641_s6 + $0x2b4] sm:$0xf] }
 0x2c2   : > { %2015 = vmatpush.bf16.msrb.mxu2 %v3508_v3  ;;  %2241 = vmatpush.bf16.msra.mxu1 %v3692_v53  ;;  %v4032_v3 = vld [vmem:[%s6641_s6 + $0x144] sm:$0xf0]  ;;  %v3685_v53 = vld [vmem:[%s6641_s6 + $0x198] sm:$0xf0] }
 0x2c3   : > { %v3644_v8 = vor.u32 %v4032_v3, %v3643_v2  ;;  %v3688_v55 = vor.u32 %v4041_v52, %v3685_v53  ;;  %v3737_v2 = vld [vmem:[%s6640_s5 + $0x2] sm:$0x3]  ;;  %v3896_v3 = vld [vmem:[%s6641_s6 + $0x2f8] sm:$0xf0]  ;;  %v3808_v53 = vld [vmem:[%s6641_s6 + $0x248] sm:$0xf0] }
 0x2c4   : > { %2053 = vmatpush.bf16.msra.mxu0 %v3584_v9  ;;  %v3635_v9 = vld [vmem:[%s6641_s6 + $0x130] sm:$0xf]  ;;  %2252 = vmatpush.bf16.msra.mxu3 %v3648_v24  ;;  %v3824_v24 = vld [vmem:[%s6641_s6 + $0x268] sm:$0xf0] }
 0x2c5   : > { %v3636_v12 = vor.u32 %v4030_v10, %v3635_v9  ;;  %v3832_v10 = vld [vmem:[%s6641_s6 + $0x278] sm:$0xf0] }
 0x2c6   : > { %2016 = vmatpush.bf16.msrb.mxu2 %v3500_v15  ;;  %2242 = vmatpush.bf16.msra.mxu1 %v3684_v1  ;;  %v4026_v15 = vld [vmem:[%s6641_s6 + $0x114] sm:$0xf0] }
 0x2c7   : > { %v3620_v17 = vor.u32 %v4026_v15, %v3619_v38  ;;  %v3888_v38 = vld [vmem:[%s6641_s6 + $0x2e8] sm:$0xf0]  ;;  %v3822_v15 = vld [vmem:[%s6641_s6 + $0x260] sm:$0xf] }
 0x2c8   : > { %2054 = vmatpush.bf16.msra.mxu0 %v3576_v23  ;;  %v4047_v23 = vld [vmem:[%s6641_s6 + $0x1c4] sm:$0xf]  ;;  %v3891_v22 = vor.u32 %v4115_v16, %v3888_v38  ;;  %v3846_v38 = vld [vmem:[%s6641_s6 + $0x290] sm:$0xf] }
 0x2c9   : > { %v3712_v45 = vor.u32 %v4047_v23, %v3709_v25  ;;  %v3827_v25 = vor.u32 %v4099_v18, %v3824_v24  ;;  %v3848_v24 = vld [vmem:[%s6641_s6 + $0x298] sm:$0xf0] }
 0x2ca   : > { %2017 = vmatpush.bf16.msrb.mxu2 %v3492_v30  ;;  %v4040_v30 = vld [vmem:[%s6641_s6 + $0x184] sm:$0xf0] }
 0x2cb   : > { %v3676_v31 = vor.u32 %v4040_v30, %v3675_v28  ;;  %v3814_v30 = vld [vmem:[%s6641_s6 + $0x250] sm:$0xf] }
 0x2cc   : > { %2055 = vmatpush.bf16.msra.mxu0 %v3568_v35  ;;  %v3640_v35 = vor.u32 %v4029_v32, %v3637_v33  ;;  %v4097_v32 = vld [vmem:[%s6641_s6 + $0x254] sm:$0xf] }
 0x2cd   : > { %2243 = vmatpush.bf16.msra.mxu1 %v3676_v31  ;;  %v4098_v31 = vld [vmem:[%s6641_s6 + $0x254] sm:$0xf0] }
 0x2ce   : > { %2018 = vmatpush.bf16.msrb.mxu2 %v3484_v42  ;;  %2253 = vmatpush.bf16.msra.mxu3 %v3640_v35  ;;  %v3632_v42 = vor.u32 %v4027_v39, %v3629_v40  ;;  %v3815_v34 = vor.u32 %v4098_v31, %v3814_v30  ;;  %v3816_v35 = vld [vmem:[%s6641_s6 + $0x258] sm:$0xf0]  ;;  %v4112_v39 = vld [vmem:[%s6641_s6 + $0x2c4] sm:$0xf0]  ;;  %v4111_v40 = vld [vmem:[%s6641_s6 + $0x2c4] sm:$0xf] }
 0x2cf   : > { %v3819_v57 = vor.u32 %v4097_v32, %v3816_v35  ;;  %v3774_v30 = vld [vmem:[%s6641_s6 + $0x200] sm:$0xf]  ;;  %v4088_v31 = vld [vmem:[%s6641_s6 + $0x204] sm:$0xf0]  ;;  %v4087_v32 = vld [vmem:[%s6641_s6 + $0x204] sm:$0xf] }
 0x2d0   : > { %2056 = vmatpush.bf16.msra.mxu0 %v3560_v47  ;;  %v3775_v35 = vor.u32 %v4088_v31, %v3774_v30  ;;  %v6381_v30 = vld [vmem:[%s6639_s4 + $0x160] sm:$0xff]  ;;  %v6387_v31 = vld [vmem:[%s6639_s4 + $0x68] sm:$0xff] }
 0x2d2   : > { %2223 = vmatpush.bf16.msra.mxu2 %v3668_v43  ;;  %v3693_v43 = vld [vmem:[%s6641_s6 + $0x1a8] sm:$0xf0]  ;;  %2254 = vmatpush.bf16.msra.mxu3 %v3632_v42 }
 0x2d3   : > { %v3696_v47 = vor.u32 %v4043_v41, %v3693_v43  ;;  %v3872_v42 = vld [vmem:[%s6641_s6 + $0x2c8] sm:$0xf0]  ;;  %v3806_v43 = vld [vmem:[%s6641_s6 + $0x240] sm:$0xf] }
 0x2d4   : > { %2057 = vmatpush.bf16.msra.mxu0 %v3552_v0  ;;  %v3807_v52 = vor.u32 %v4096_v44, %v3806_v43  ;;  %v6153_v44 = vld [vmem:[%s6639_s4 + $0xf0] sm:$0xff] }
 0x2d6   : > { %2224 = vmatpush.bf16.msra.mxu2 %v3660_v61  ;;  %v3677_v61 = vld [vmem:[%s6641_s6 + $0x188] sm:$0xf0]  ;;  %2255 = vmatpush.bf16.msra.mxu3 %v3624_v54  ;;  %v3811_v54 = vor.u32 %v4095_v46, %v3808_v53  ;;  %v6159_v46 = vld [vmem:[%s6639_s4 + $0x1f0] sm:$0xff]  ;;  %v6177_v53 = vld [vmem:[%s6639_s4 + $0xe0] sm:$0xff] }
 0x2d7   : > { %v3680_v63 = vor.u32 %v4039_v59, %v3677_v61  ;;  %v3864_v61 = vld [vmem:[%s6641_s6 + $0x2b8] sm:$0xf0] }
 0x2d8   : > { %2262 = vmatpush.bf16.msrb.mxu0 %v3736_v48 }
 0x2da   : > { %2225 = vmatpush.bf16.msra.mxu2 %v3652_v51  ;;  %2256 = vmatpush.bf16.msra.mxu3 %v3616_v62  ;;  %v3798_v62 = vld [vmem:[%s6641_s6 + $0x230] sm:$0xf] }
 0x2dc   : > { %2263 = vmatpush.bf16.msrb.mxu0 %v3728_v4  ;;  %v3830_v4 = vld [vmem:[%s6641_s6 + $0x270] sm:$0xf] }
 0x2dd   : > { %v3831_v9 = vor.u32 %v4102_v60, %v3830_v4  ;;  %v4091_v4 = vld [vmem:[%s6641_s6 + $0x224] sm:$0xf] }
 0x2de   : > { %2226 = vmatpush.bf16.msra.mxu2 %v3644_v8 }
 0x2e0   : > { %2264 = vmatpush.bf16.msrb.mxu0 %v3720_v11  ;;  %v3835_v11 = vor.u32 %v4101_v7, %v3832_v10  ;;  %v3782_v10 = vld [vmem:[%s6641_s6 + $0x210] sm:$0xf] }
 0x2e2   : > { %2227 = vmatpush.bf16.msra.mxu2 %v3636_v12  ;;  %v3886_v12 = vld [vmem:[%s6641_s6 + $0x2e0] sm:$0xf] }
 0x2e4   : > { %2265 = vmatpush.bf16.msrb.mxu0 %v3712_v45  ;;  %v3878_v45 = vld [vmem:[%s6641_s6 + $0x2d0] sm:$0xf] }
 0x2e5   : > { %v3879_v28 = vor.u32 %v4114_v26, %v3878_v45  ;;  %v3838_v45 = vld [vmem:[%s6641_s6 + $0x280] sm:$0xf]  ;;  %v4104_v26 = vld [vmem:[%s6641_s6 + $0x284] sm:$0xf0] }
 0x2e6   : > { %2228 = vmatpush.bf16.msra.mxu2 %v3628_v14  ;;  %v3887_v14 = vor.u32 %v4116_v19, %v3886_v12  ;;  %v4089_v12 = vld [vmem:[%s6641_s6 + $0x214] sm:$0xf] }
 0x2e8   : > { %2266 = vmatpush.bf16.msrb.mxu0 %v3704_v37  ;;  %v3870_v37 = vld [vmem:[%s6641_s6 + $0x2c0] sm:$0xf] }
 0x2e9   : > { %v3871_v41 = vor.u32 %v4112_v39, %v3870_v37 }
 0x2ea   : > { %2229 = vmatpush.bf16.msra.mxu2 %v3620_v17  ;;  %v4100_v17 = vld [vmem:[%s6641_s6 + $0x264] sm:$0xf0] }
 0x2eb   : > { %v3823_v23 = vor.u32 %v4100_v17, %v3822_v15  ;;  %v4106_v15 = vld [vmem:[%s6641_s6 + $0x294] sm:$0xf0] }
 0x2ec   : > { %2267 = vmatpush.bf16.msrb.mxu0 %v3696_v47  ;;  %v3875_v47 = vor.u32 %v4111_v40, %v3872_v42 }
 0x2ee   : > { %2230 = vmatpush.bf16.msra.mxu2 %v3612_v29  ;;  %v3880_v29 = vld [vmem:[%s6641_s6 + $0x2d8] sm:$0xf0] }
 0x2ef   : > { %v3883_v33 = vor.u32 %v4113_v27, %v3880_v29  ;;  %v4103_v27 = vld [vmem:[%s6641_s6 + $0x284] sm:$0xf]  ;;  %v3840_v29 = vld [vmem:[%s6641_s6 + $0x288] sm:$0xf0] }
 0x2f0   : > { %2268 = vmatpush.bf16.msrb.mxu0 %v3688_v55  ;;  %v3862_v55 = vld [vmem:[%s6641_s6 + $0x2b0] sm:$0xf] }
 0x2f1   : > { %v3863_v59 = vor.u32 %v4110_v56, %v3862_v55  ;;  %v6189_v55 = vld [vmem:[%s6639_s4 + $0xe8] sm:$0xff] }
 0x2f2   : > { %v6195_v56 = vld [vmem:[%s6639_s4 + $0x1e8] sm:$0xff] }
 0x2f4   : > { %2269 = vmatpush.bf16.msrb.mxu0 %v3680_v63  ;;  %v4094_v63 = vld [vmem:[%s6641_s6 + $0x234] sm:$0xf0] }
 0x334   : > { %v1800_v0 = vpop.f32.mrf.mxu2  ;;  %v1813_v1 = vpop.f32.mrf.mxu0 }
 0x335   : > { %v1817_v48 = vpack.c.bf16 %v1800_v0, %v1800_v0  ;;  %v1818_v49 = vpack.c.bf16 %v1813_v1, %v1813_v1  ;;  %v4093_v0 = vld [vmem:[%s6641_s6 + $0x234] sm:$0xf]  ;;  %v3867_v1 = vor.u32 %v4109_v58, %v3864_v61 }
 0x336   : > { %v6201_v58 = vld [vmem:[%s6639_s4 + $0xd0] sm:$0xff] }
 0x337   : > { %2019 = vmatmul.bf16.vlgmr.msrb.gmra.mxu2 %v1817_v48  ;;  %2032 = vmatmul.bf16.vlgmr.msrb.gmra.mxu1 %v1818_v49  ;;  %v6207_v61 = vld [vmem:[%s6639_s4 + $0x1d0] sm:$0xff] }
 0x338   : > { %2045 = vmatmul.bf16.vlgmr.msrb.gmra.mxu3 %v1817_v48  ;;  %2058 = vmatmul.bf16.vlgmr.msra.gmra.mxu0 %v1818_v49  ;;  %v3799_v48 = vor.u32 %v4094_v63, %v3798_v62  ;;  %v3800_v49 = vld [vmem:[%s6641_s6 + $0x238] sm:$0xf0] }
 0x339   : > { %2287 = vmatpush.bf16.msrb.mxu2 %v5628_v13  ;;  %2300 = vmatpush.bf16.msrb.mxu1 %v5675_v36  ;;  %v3894_v13 = vld [vmem:[%s6641_s6 + $0x2f0] sm:$0xf]  ;;  %v4118_v36 = vld [vmem:[%s6641_s6 + $0x2f4] sm:$0xf0] }
 0x33a   : > { %2501 = vmatpush.bf16.msrb.mxu3 %v3831_v9  ;;  %v6213_v62 = vld [vmem:[%s6639_s4 + $0xd8] sm:$0xff] }
 0x33c   : > { %v1802_v50 = vpop.f32.mrf.mxu2  ;;  %v1815_v51 = vpop.f32.mrf.mxu0 }
 0x33d   : > { %v3803_v50 = vor.u32 %v4093_v0, %v3800_v49  ;;  %v3854_v51 = vld [vmem:[%s6641_s6 + $0x2a0] sm:$0xf]  ;;  %v6219_v0 = vld [vmem:[%s6639_s4 + $0x1d8] sm:$0xff] }
 0x33e   : > { %2502 = vmatpush.bf16.msrb.mxu3 %v3823_v23  ;;  %v4105_v23 = vld [vmem:[%s6641_s6 + $0x294] sm:$0xf]  ;;  %v6231_v49 = vld [vmem:[%s6639_s4 + $0x1c0] sm:$0xff] }
 0x342   : > { %2503 = vmatpush.bf16.msrb.mxu3 %v3815_v34 }
 0x346   : > { %2504 = vmatpush.bf16.msrb.mxu3 %v3807_v52  ;;  %v6171_v52 = vld [vmem:[%s6639_s4 + $0x1f8] sm:$0xff] }
 0x347   : > { %2231 = vmatmul.bf16.vlgmr.msra.gmra.mxu2 %v5606_v5  ;;  %2244 = vmatmul.bf16.vlgmr.msra.gmra.mxu1 %v5653_v20 }
 0x348   : > { %2257 = vmatmul.bf16.vlgmr.msra.gmra.mxu3 %v5606_v5  ;;  %2270 = vmatmul.bf16.vlgmr.msrb.gmra.mxu0 %v5653_v20  ;;  %v4117_v5 = vld [vmem:[%s6641_s6 + $0x2f4] sm:$0xf]  ;;  %v3895_v20 = vor.u32 %v4118_v36, %v3894_v13  ;;  %v4107_v13 = vld [vmem:[%s6641_s6 + $0x2a4] sm:$0xf] }
 0x349   : > { %v3899_v8 = vor.u32 %v4117_v5, %v3896_v3  ;;  %2527 = vmatpush.bf16.msra.mxu2 %v3835_v11  ;;  %v3856_v5 = vld [vmem:[%s6641_s6 + $0x2a8] sm:$0xf0]  ;;  %v4092_v3 = vld [vmem:[%s6641_s6 + $0x224] sm:$0xf0]  ;;  %v4090_v11 = vld [vmem:[%s6641_s6 + $0x214] sm:$0xf0] }
 0x34a   : > { %2514 = vmatpush.bf16.msra.mxu0 %v3895_v20  ;;  %2505 = vmatpush.bf16.msrb.mxu3 %v3799_v48  ;;  %v3790_v20 = vld [vmem:[%s6641_s6 + $0x220] sm:$0xf]  ;;  %v3859_v60 = vor.u32 %v4107_v13, %v3856_v5  ;;  %v3783_v16 = vor.u32 %v4090_v11, %v3782_v10  ;;  %v6249_v13 = vld [vmem:[%s6639_s4 + $0xb0] sm:$0xff]  ;;  %v6261_v5 = vld [vmem:[%s6639_s4 + $0xb8] sm:$0xff] }
 0x34b   : > { %2540 = vmatpush.bf16.msra.mxu1 %v3899_v8  ;;  %v3791_v7 = vor.u32 %v4092_v3, %v3790_v20  ;;  %v3792_v8 = vld [vmem:[%s6641_s6 + $0x228] sm:$0xf0]  ;;  %v6267_v20 = vld [vmem:[%s6639_s4 + $0x1b8] sm:$0xff]  ;;  %v6273_v3 = vld [vmem:[%s6639_s4 + $0xa0] sm:$0xff] }
 0x34c   : > { %v3795_v9 = vor.u32 %v4091_v4, %v3792_v8  ;;  %v6279_v4 = vld [vmem:[%s6639_s4 + $0x1a0] sm:$0xff]  ;;  %v6297_v8 = vld [vmem:[%s6639_s4 + $0x90] sm:$0xff]  ;;  %v6309_v11 = vld [vmem:[%s6639_s4 + $0x98] sm:$0xff] }
 0x34d   : > { %2528 = vmatpush.bf16.msra.mxu2 %v3827_v25  ;;  %v3851_v25 = vor.u32 %v4105_v23, %v3848_v24  ;;  %v6303_v10 = vld [vmem:[%s6639_s4 + $0x190] sm:$0xff]  ;;  %v6343_v24 = vld [vmem:[%s6639_s4 + $0x188] sm:$0xff] }
 0x34e   : > { %2515 = vmatpush.bf16.msra.mxu0 %v3887_v14  ;;  %2506 = vmatpush.bf16.msrb.mxu3 %v3791_v7  ;;  %v3784_v14 = vld [vmem:[%s6641_s6 + $0x218] sm:$0xf0]  ;;  %v6291_v7 = vld [vmem:[%s6639_s4 + $0x1a8] sm:$0xff] }
 0x34f   : > { %2541 = vmatpush.bf16.msra.mxu1 %v3891_v22  ;;  %v3787_v18 = vor.u32 %v4089_v12, %v3784_v14  ;;  %v3847_v22 = vor.u32 %v4106_v15, %v3846_v38  ;;  %v6322_v14 = vld [vmem:[%s6639_s4 + $0x80] sm:$0xff] }
 0x351   : > { %2529 = vmatpush.bf16.msra.mxu2 %v3819_v57  ;;  %v3776_v57 = vld [vmem:[%s6641_s6 + $0x208] sm:$0xf0] }
 0x352   : > { %2516 = vmatpush.bf16.msra.mxu0 %v3879_v28  ;;  %2507 = vmatpush.bf16.msrb.mxu3 %v3783_v16  ;;  %v3839_v28 = vor.u32 %v4104_v26, %v3838_v45  ;;  %v3779_v40 = vor.u32 %v4087_v32, %v3776_v57  ;;  %v6316_v16 = vld [vmem:[%s6639_s4 + $0x198] sm:$0xff]  ;;  %v6357_v26 = vld [vmem:[%s6639_s4 + $0x170] sm:$0xff]  ;;  %v6393_v32 = vld [vmem:[%s6639_s4 + $0x168] sm:$0xff] }
 0x353   : > { %2542 = vmatpush.bf16.msra.mxu1 %v3883_v33  ;;  %v3843_v33 = vor.u32 %v4103_v27, %v3840_v29  ;;  %v6363_v27 = vld [vmem:[%s6639_s4 + $0x78] sm:$0xff]  ;;  %v6375_v29 = vld [vmem:[%s6639_s4 + $0x60] sm:$0xff] }
 0x354   : > { %v6411_v57 = vld [vmem:[%s6639_s4 + $0x58] sm:$0xff] }
 0x355   : > { %2530 = vmatpush.bf16.msra.mxu2 %v3811_v54  ;;  %v6183_v54 = vld [vmem:[%s6639_s4 + $0x1e0] sm:$0xff] }
 0x356   : > { %2517 = vmatpush.bf16.msra.mxu0 %v3871_v41  ;;  %2508 = vmatpush.bf16.msrb.mxu3 %v3775_v35  ;;  %v6405_v35 = vld [vmem:[%s6639_s4 + $0x150] sm:$0xff] }
 0x357   : > { %3738 = vmatmul.msk.bf16.vlgmr.msrb.gmra.mxu2 %vm1780_vm12, %v3737_v2  ;;  %3739 = vmatmul.msk.bf16.vlgmr.msrb.gmra.mxu1 %vm1780_vm12, %v3737_v2  ;;  %v4108_v2 = vld [vmem:[%s6641_s6 + $0x2a4] sm:$0xf0] }
 0x358   : > { %2543 = vmatpush.bf16.msra.mxu1 %v3875_v47  ;;  %v3855_v36 = vor.u32 %v4108_v2, %v3854_v51  ;;  %v6165_v47 = vld [vmem:[%s6639_s4 + $0xf8] sm:$0xff]  ;;  %v6243_v2 = vld [vmem:[%s6639_s4 + $0x1c8] sm:$0xff] }
 0x359   : > { %2531 = vmatpush.bf16.msra.mxu2 %v3803_v50  ;;  %v6237_v50 = vld [vmem:[%s6639_s4 + $0xc8] sm:$0xff] }
 0x35a   : > { %2518 = vmatpush.bf16.msra.mxu0 %v3863_v59  ;;  %2595 = vmatpush.msra.mxu3 %v6153_v44 }
 0x35c   : > { %2544 = vmatpush.bf16.msra.mxu1 %v3867_v1  ;;  %2596 = vmatpush.msra.mxu3 %v6177_v53  ;;  %v6225_v1 = vld [vmem:[%s6639_s4 + $0xc0] sm:$0xff] }
 0x35d   : > { %2532 = vmatpush.bf16.msra.mxu2 %v3795_v9 }
 0x35e   : > { %2519 = vmatpush.bf16.msra.mxu0 %v3855_v36  ;;  %2597 = vmatpush.msra.mxu3 %v6201_v58  ;;  %v6255_v36 = vld [vmem:[%s6639_s4 + $0x1b0] sm:$0xff] }
 0x360   : > { %2545 = vmatpush.bf16.msra.mxu1 %v3859_v60  ;;  %2598 = vmatpush.msra.mxu3 %v6225_v1  ;;  %v6285_v60 = vld [vmem:[%s6639_s4 + $0xa8] sm:$0xff] }
 0x361   : > { %2533 = vmatpush.bf16.msra.mxu2 %v3787_v18  ;;  %v6335_v18 = vld [vmem:[%s6639_s4 + $0x88] sm:$0xff] }
 0x362   : > { %2520 = vmatpush.bf16.msra.mxu0 %v3847_v22  ;;  %2599 = vmatpush.msra.mxu3 %v6249_v13 }
 0x364   : > { %2546 = vmatpush.bf16.msra.mxu1 %v3851_v25  ;;  %2600 = vmatpush.msra.mxu3 %v6273_v3  ;;  %v6349_v25 = vld [vmem:[%s6639_s4 + $0x70] sm:$0xff] }
 0x365   : > { %2534 = vmatpush.bf16.msra.mxu2 %v3779_v40  ;;  %v6423_v40 = vld [vmem:[%s6639_s4 + $0x40] sm:$0xff] }
 0x366   : > { %2521 = vmatpush.bf16.msra.mxu0 %v3839_v28  ;;  %2601 = vmatpush.msra.mxu3 %v6297_v8  ;;  %v6369_v28 = vld [vmem:[%s6639_s4 + $0x178] sm:$0xff] }
 0x368   : > { %2547 = vmatpush.bf16.msra.mxu1 %v3843_v33  ;;  %2602 = vmatpush.msra.mxu3 %v6322_v14  ;;  %v6399_v33 = vld [vmem:[%s6639_s4 + $0x50] sm:$0xff] }
 0x369   : > { %2635 = vmatpush.msrb.mxu2 %v6165_v47 }
 0x36a   : > { %2615 = vmatpush.msrb.mxu0 %v6159_v46  ;;  %2603 = vmatpush.msra.mxu3 %v6349_v25 }
 0x36b   : > { %2636 = vmatpush.msrb.mxu2 %v6189_v55 }
 0x36c   : > { %2655 = vmatpush.msrb.mxu1 %v6171_v52  ;;  %2616 = vmatpush.msrb.mxu0 %v6183_v54 }
 0x36d   : > { %2637 = vmatpush.msrb.mxu2 %v6213_v62  ;;  %2604 = vmatpush.msra.mxu3 %v6375_v29 }
 0x36e   : > { %2656 = vmatpush.msrb.mxu1 %v6195_v56  ;;  %2617 = vmatpush.msrb.mxu0 %v6207_v61 }
 0x36f   : > { %2638 = vmatpush.msrb.mxu2 %v6237_v50  ;;  %2605 = vmatpush.msra.mxu3 %v6399_v33 }
 0x370   : > { %2657 = vmatpush.msrb.mxu1 %v6219_v0  ;;  %2618 = vmatpush.msrb.mxu0 %v6231_v49 }
 0x371   : > { %2639 = vmatpush.msrb.mxu2 %v6261_v5  ;;  %2606 = vmatpush.msra.mxu3 %v6423_v40 }
 0x372   : > { %2658 = vmatpush.msrb.mxu1 %v6243_v2  ;;  %2619 = vmatpush.msrb.mxu0 %v6255_v36 }
 0x373   : > { %2640 = vmatpush.msrb.mxu2 %v6285_v60 }
 0x374   : > { %2659 = vmatpush.msrb.mxu1 %v6267_v20  ;;  %2620 = vmatpush.msrb.mxu0 %v6279_v4 }
 0x375   : > { %2641 = vmatpush.msrb.mxu2 %v6309_v11 }
 0x376   : > { %2660 = vmatpush.msrb.mxu1 %v6291_v7  ;;  %2621 = vmatpush.msrb.mxu0 %v6303_v10 }
 0x377   : > { %2642 = vmatpush.msrb.mxu2 %v6335_v18 }
 0x378   : > { %2661 = vmatpush.msrb.mxu1 %v6316_v16 }
 0x379   : > { %2643 = vmatpush.msrb.mxu2 %v6363_v27 }
 0x37a   : > { %2662 = vmatpush.msrb.mxu1 %v6343_v24 }
 0x37b   : > { %2644 = vmatpush.msrb.mxu2 %v6387_v31 }
 0x37c   : > { %2663 = vmatpush.msrb.mxu1 %v6369_v28 }
 0x37d   : > { %2645 = vmatpush.msrb.mxu2 %v6411_v57 }
 0x37e   : > { %2664 = vmatpush.msrb.mxu1 %v6393_v32 }
 0x3b4   : > { %v2033_v19 = vpop.f32.mrf.mxu1 }
 0x3b5   : > { %v2059_v17 = vpop.f32.mrf.mxu0 }
 0x3ba   : > { %v2020_v34 = vpop.f32.mrf.mxu2 }
 0x3bb   : > { %v6146_v37 = vadd.f32 %v2033_v19, %v2020_v34  ;;  %v2046_v39 = vpop.f32.mrf.mxu3 }
 0x3bc   : > { %v6148_v41 = vadd.f32 %v2059_v17, %v2046_v39  ;;  %v2035_v42 = vpop.f32.mrf.mxu1  ;;  %v6329_v17 = vld [vmem:[%s6639_s4 + $0x180] sm:$0xff]  ;;  %v6417_v39 = vld [vmem:[%s6639_s4 + $0x158] sm:$0xff] }
 0x3bd   : > { %v2061_v43 = vpop.f32.mrf.mxu0  ;;  %2622 = vmatpush.msrb.mxu0 %v6329_v17  ;;  %2665 = vmatpush.msrb.mxu1 %v6417_v39  ;;  %v6429_v42 = vld [vmem:[%s6639_s4 + $0x140] sm:$0xff] }
 0x3be   : > { %v6435_v43 = vld [vmem:[%s6639_s4 + $0x48] sm:$0xff] }
 0x3bf   : > { %2623 = vmatpush.msrb.mxu0 %v6357_v26  ;;  %2646 = vmatpush.msrb.mxu2 %v6435_v43 }
 0x3c1   : > { %2624 = vmatpush.msrb.mxu0 %v6381_v30 }
 0x3c2   : > { %v2022_v59 = vpop.f32.mrf.mxu2 }
 0x3c3   : > { %v2048_v63 = vpop.f32.mrf.mxu3  ;;  %2625 = vmatpush.msrb.mxu0 %v6405_v35 }
 0x3c4   : > { %v2245_v48 = vpop.f32.mrf.mxu1  ;;  %v6441_v63 = vld [vmem:[%s6639_s4 + $0x148] sm:$0xff] }
 0x3c5   : > { %v2271_v51 = vpop.f32.mrf.mxu0  ;;  %2626 = vmatpush.msrb.mxu0 %v6429_v42  ;;  %2666 = vmatpush.msrb.mxu1 %v6441_v63 }
 0x3ca   : > { %v2232_v9 = vpop.f32.mrf.mxu2 }
 0x3cb   : > { %v2233_v12 = vadd.f32 %v2232_v9, %v6146_v37  ;;  %v2258_v19 = vpop.f32.mrf.mxu3  ;;  %v6459_v9 = vld [vmem:[%s6639_s4 + $0x38] sm:$0xff] }
 0x3cc   : > { %v2259_v38 = vadd.f32 %v2258_v19, %v6148_v41  ;;  %v2247_v15 = vpop.f32.mrf.mxu1  ;;  %2647 = vmatpush.msrb.mxu2 %v6459_v9  ;;  %v6471_v19 = vld [vmem:[%s6639_s4 + $0x20] sm:$0xff] }
 0x3cd   : > { %v6338_v22 = vadd.f32 %v2245_v48, %v2233_v12  ;;  %v2273_v23 = vpop.f32.mrf.mxu0  ;;  %v6447_v48 = vld [vmem:[%s6639_s4 + $0x30] sm:$0xff]  ;;  %v6465_v12 = vld [vmem:[%s6639_s4 + $0x138] sm:$0xff]  ;;  %v6483_v15 = vld [vmem:[%s6639_s4 + $0x28] sm:$0xff] }
 0x3ce   : > { %v6352_v45 = vadd.f32 %v2271_v51, %v2259_v38  ;;  %2607 = vmatpush.msra.mxu3 %v6447_v48  ;;  %v6453_v51 = vld [vmem:[%s6639_s4 + $0x130] sm:$0xff]  ;;  %2667 = vmatpush.msrb.mxu1 %v6465_v12  ;;  %v6477_v38 = vld [vmem:[%s6639_s4 + $0x120] sm:$0xff] }
 0x3cf   : > { %6649 = vst [vmem:[#allocation4_spill] sm:$0xff] %v6338_v22  ;;  %2627 = vmatpush.msrb.mxu0 %v6453_v51  ;;  %2648 = vmatpush.msrb.mxu2 %v6483_v15  ;;  %v6531_v22 = vld [vmem:[%s6639_s4 + $0x8] sm:$0xff] }
 0x3d0   : > { %6650 = vst [vmem:[#allocation5_spill] sm:$0xff] %v6352_v45  ;;  %2608 = vmatpush.msra.mxu3 %v6471_v19  ;;  %v6513_v45 = vld [vmem:[%s6639_s4 + $0x118] sm:$0xff] }
 0x3d1   : > { %2628 = vmatpush.msrb.mxu0 %v6477_v38  ;;  %2649 = vmatpush.msrb.mxu2 %v6507_v21 }
 0x3d2   : > { %v2234_v34 = vpop.f32.mrf.mxu2 }
 0x3d3   : > { %v2260_v37 = vpop.f32.mrf.mxu3  ;;  %v6489_v34 = vld [vmem:[%s6639_s4 + $0x128] sm:$0xff]  ;;  %2650 = vmatpush.msrb.mxu2 %v6531_v22 }
 0x3d4   : > { %v2302_v41 = vpop.f32.mrf.mxu1  ;;  %2668 = vmatpush.msrb.mxu1 %v6489_v34  ;;  %v6495_v37 = vld [vmem:[%s6639_s4 + $0x10] sm:$0xff] }
 0x3d5   : > { %v2307_v59 = vpack.c.bf16 %v2302_v41, %v2302_v41  ;;  %2609 = vmatpush.msra.mxu3 %v6495_v37 }
 0x3d6   : > { %2669 = vmatpush.msrb.mxu1 %v6513_v45 }
 0x3d7   : > { %2522 = vmatmul.bf16.vlgmr.msra.gmra.mxu0 %v2307_v59  ;;  %2548 = vmatmul.bf16.vlgmr.msra.gmra.mxu1 %v2307_v59  ;;  %v6501_v59 = vld [vmem:[%s6639_s4 + $0x110] sm:$0xff] }
 0x3d8   : > { %2629 = vmatpush.msrb.mxu0 %v6501_v59 }
 0x3da   : > { %v2289_v23 = vpop.f32.mrf.mxu2 }
 0x3db   : > { %v2306_v41 = vpack.c.bf16 %v2289_v23, %v2289_v23  ;;  %v6519_v23 = vld [vmem:[%s6639_s4] sm:$0xff] }
 0x3dc   : > { %v2304_v6 = vpop.f32.mrf.mxu1  ;;  %6651 = vst [vmem:[#allocation6_spill] sm:$0xff] %v6519_v23  ;;  %2610 = vmatpush.msra.mxu3 %v6519_v23  ;;  %v6537_v23 = vld [vmem:[%s6639_s4 + $0x108] sm:$0xff] }
 0x3dd   : > { %2509 = vmatmul.bf16.vlgmr.msrb.gmra.mxu3 %v2306_v41  ;;  %2535 = vmatmul.bf16.vlgmr.msra.gmra.mxu2 %v2306_v41  ;;  %v6525_v6 = vld [vmem:[%s6639_s4 + $0x100] sm:$0xff] }
 0x3de   : > { %2630 = vmatpush.msrb.mxu0 %v6525_v6  ;;  %2670 = vmatpush.msrb.mxu1 %v6537_v23 }
 0x3df   : > { %2677 = vmatpush.msrb.mxu3 %v6153_v44  ;;  %2717 = vmatpush.msra.mxu2 %v6165_v47 }
 0x3e0   : > { %2697 = vmatpush.msra.mxu0 %v6159_v46  ;;  %2737 = vmatpush.msra.mxu1 %v6171_v52 }
 0x3e1   : > { %2678 = vmatpush.msrb.mxu3 %v6177_v53  ;;  %2718 = vmatpush.msra.mxu2 %v6189_v55 }
 0x3e2   : > { %v2291_v41 = vpop.f32.mrf.mxu2  ;;  %2698 = vmatpush.msra.mxu0 %v6183_v54  ;;  %2738 = vmatpush.msra.mxu1 %v6195_v56  ;;  %v2555_v54 = vld [vmem:[%s6642_s7] sm:$0x3] }
 0x3e3   : > { %2679 = vmatpush.msrb.mxu3 %v6201_v58  ;;  %2719 = vmatpush.msra.mxu2 %v6213_v62  ;;  %v6652_v44 = vld [vmem:[#allocation6_spill] sm:$0xff]  ;;  %v2557_v58 = vperm.slane %v2555_v54, 0  ;;  %v2558_v62 = vperm.slane %v2555_v54, 1 }
 0x3e4   : > { %2699 = vmatpush.msra.mxu0 %v6207_v61  ;;  %2739 = vmatpush.msra.mxu1 %v6219_v0  ;;  %v6653_v0 = vld [vmem:[#allocation4_spill] sm:$0xff] }
 0x3e5   : > { %2680 = vmatpush.msrb.mxu3 %v6225_v1  ;;  %2720 = vmatpush.msra.mxu2 %v6237_v50 }
 0x3e6   : > { %2700 = vmatpush.msra.mxu0 %v6231_v49  ;;  %2740 = vmatpush.msra.mxu1 %v6243_v2  ;;  %v6654_v49 = vld [vmem:[#allocation5_spill] sm:$0xff] }
 0x3e7   : > { %2681 = vmatpush.msrb.mxu3 %v6249_v13  ;;  %2721 = vmatpush.msra.mxu2 %v6261_v5 }
 0x3e8   : > { %2701 = vmatpush.msra.mxu0 %v6255_v36  ;;  %2741 = vmatpush.msra.mxu1 %v6267_v20  ;;  %v6655_v36 = vld [vmem:[#allocation2_spill] sm:$0xff]  ;;  %v6656_v20 = vld [vmem:[#allocation3_spill] sm:$0xff] }
 0x3e9   : > { %2682 = vmatpush.msrb.mxu3 %v6273_v3  ;;  %2722 = vmatpush.msra.mxu2 %v6285_v60 }
 0x3ea   : > { %2702 = vmatpush.msra.mxu0 %v6279_v4  ;;  %2742 = vmatpush.msra.mxu1 %v6291_v7 }
 0x3eb   : > { %2683 = vmatpush.msrb.mxu3 %v6297_v8  ;;  %2723 = vmatpush.msra.mxu2 %v6309_v11 }
 0x3ec   : > { %2703 = vmatpush.msra.mxu0 %v6303_v10  ;;  %2743 = vmatpush.msra.mxu1 %v6316_v16 }
 0x3ed   : > { %2684 = vmatpush.msrb.mxu3 %v6322_v14  ;;  %2724 = vmatpush.msra.mxu2 %v6335_v18 }
 0x3ee   : > { %2704 = vmatpush.msra.mxu0 %v6329_v17  ;;  %2744 = vmatpush.msra.mxu1 %v6343_v24 }
 0x3ef   : > { %2685 = vmatpush.msrb.mxu3 %v6349_v25  ;;  %2725 = vmatpush.msra.mxu2 %v6363_v27 }
 0x3f0   : > { %2705 = vmatpush.msra.mxu0 %v6357_v26  ;;  %2745 = vmatpush.msra.mxu1 %v6369_v28 }
 0x3f1   : > { %2686 = vmatpush.msrb.mxu3 %v6375_v29  ;;  %2726 = vmatpush.msra.mxu2 %v6387_v31 }
 0x3f2   : > { %2706 = vmatpush.msra.mxu0 %v6381_v30  ;;  %2746 = vmatpush.msra.mxu1 %v6393_v32 }
 0x3f3   : > { %2687 = vmatpush.msrb.mxu3 %v6399_v33  ;;  %2727 = vmatpush.msra.mxu2 %v6411_v57 }
 0x3f4   : > { %2707 = vmatpush.msra.mxu0 %v6405_v35  ;;  %2747 = vmatpush.msra.mxu1 %v6417_v39 }
 0x3f5   : > { %2688 = vmatpush.msrb.mxu3 %v6423_v40  ;;  %2728 = vmatpush.msra.mxu2 %v6435_v43 }
 0x3f6   : > { %2708 = vmatpush.msra.mxu0 %v6429_v42  ;;  %2748 = vmatpush.msra.mxu1 %v6441_v63 }
 0x3f7   : > { %2689 = vmatpush.msrb.mxu3 %v6447_v48  ;;  %2729 = vmatpush.msra.mxu2 %v6459_v9 }
 0x3f8   : > { %2709 = vmatpush.msra.mxu0 %v6453_v51  ;;  %2749 = vmatpush.msra.mxu1 %v6465_v12 }
 0x3f9   : > { %2690 = vmatpush.msrb.mxu3 %v6471_v19  ;;  %2730 = vmatpush.msra.mxu2 %v6483_v15 }
 0x3fa   : > { %2710 = vmatpush.msra.mxu0 %v6477_v38  ;;  %2750 = vmatpush.msra.mxu1 %v6489_v34 }
 0x3fb   : > { %2691 = vmatpush.msrb.mxu3 %v6495_v37  ;;  %2731 = vmatpush.msra.mxu2 %v6507_v21 }
 0x3fc   : > { %2711 = vmatpush.msra.mxu0 %v6501_v59  ;;  %2751 = vmatpush.msra.mxu1 %v6513_v45 }
 0x3fd   : > { %2692 = vmatpush.msrb.mxu3 %v6652_v44  ;;  %2732 = vmatpush.msra.mxu2 %v6531_v22 }
 0x3fe   : > { %2712 = vmatpush.msra.mxu0 %v6525_v6  ;;  %2752 = vmatpush.msra.mxu1 %v6537_v23 }
 0x454   : > { %v2523_v46 = vpop.f32.mrf.mxu0  ;;  %v2549_v47 = vpop.f32.mrf.mxu1 }
 0x45c   : > { %v2525_v52 = vpop.f32.mrf.mxu0  ;;  %v2551_v53 = vpop.f32.mrf.mxu1 }
 0x460   : > { %v2510_v55 = vpop.f32.mrf.mxu3  ;;  %v2536_v21 = vpop.f32.mrf.mxu2 }
 0x461   : > { %v2524_v56 = vadd.f32 %v2523_v46, %v2510_v55  ;;  %v2550_v61 = vadd.f32 %v2549_v47, %v2536_v21 }
 0x463   : > { %v2553_v1 = vadd.f32 %v2524_v56, %v6653_v0  ;;  %v2554_v50 = vadd.f32 %v2550_v61, %v6654_v49 }
 0x465   : > { %v2561_v2 = vadd.f32 %v2557_v58, %v2553_v1  ;;  %v2562_v13 = vadd.f32 %v2558_v62, %v2554_v50 }
 0x467   : > { %v6610_v5 = vadd.f32 %v2561_v2, %v6655_v36  ;;  %v6613_v3 = vadd.f32 %v2562_v13, %v6656_v20 }
 0x468   : > { %v2512_v4 = vpop.f32.mrf.mxu3  ;;  %v2538_v60 = vpop.f32.mrf.mxu2 }
 0x469   : > { %v2565_v7 = vsel %vm1507_vm3, %v6610_v5, 0.0  ;;  %v2579_v8 = vmul.f32 %v6610_v5, %v6610_v5  ;;  %v2572_v10 = vsel %vm1507_vm3, %v6613_v3, 0.0  ;;  %v2580_v11 = vmul.f32 %v6613_v3, %v6613_v3 }
 0x46a   : > { %v2566_v16 = vrot.slane %v2565_v7, 4  ;;  %v2573_v14 = vrot.slane %v2572_v10, 4 }
 0x46b   : > { %v2588_v17 = vsel %vm1507_vm3, %v2580_v11, 0.0  ;;  %v2581_v18 = vsel %vm1507_vm3, %v2579_v8, 0.0 }
 0x46c   : > { %v2574_v22 = vadd.f32 %v2573_v14, %v2572_v10  ;;  %v2589_v24 = vrot.slane %v2588_v17, 4  ;;  %v2567_v25 = vadd.f32 %v2566_v16, %v2565_v7  ;;  %v2582_v45 = vrot.slane %v2581_v18, 4 }
 0x46e   : > { %v2575_v26 = vrot.slane %v2574_v22, 2  ;;  %v2590_v27 = vadd.f32 %v2589_v24, %v2588_v17  ;;  %v2568_v28 = vrot.slane %v2567_v25, 2  ;;  %v2583_v29 = vadd.f32 %v2582_v45, %v2581_v18 }
 0x470   : > { %v2569_v30 = vadd.f32 %v2568_v28, %v2567_v25  ;;  %v2576_v31 = vadd.f32 %v2575_v26, %v2574_v22  ;;  %v2584_v32 = vrot.slane %v2583_v29, 2  ;;  %v2591_v33 = vrot.slane %v2590_v27, 2 }
 0x472   : > { %v2570_v35 = vrot.slane %v2569_v30, 1  ;;  %v2577_v57 = vrot.slane %v2576_v31, 1  ;;  %v2585_v42 = vadd.f32 %v2584_v32, %v2583_v29  ;;  %v2592_v43 = vadd.f32 %v2591_v33, %v2590_v27 }
 0x474   : > { %v2571_v39 = vadd.f32 %v2570_v35, %v2569_v30  ;;  %v2578_v40 = vadd.f32 %v2577_v57, %v2576_v31  ;;  %v2586_v63 = vrot.slane %v2585_v42, 1  ;;  %v2593_v48 = vrot.slane %v2592_v43, 1 }
 0x476   : > { %2611 = vmatmul.f32.vlgmr.msra.gmra.mxu3 %v2571_v39  ;;  %2631 = vmatmul.f32.vlgmr.msrb.gmra.mxu0 %v2578_v40  ;;  %v2587_v51 = vadd.f32 %v2586_v63, %v2585_v42  ;;  %v2594_v9 = vadd.f32 %v2593_v48, %v2592_v43 }
 0x477   : > { %2651 = vmatmul.f32.vlgmr.msrb.gmra.mxu2 %v2571_v39  ;;  %2671 = vmatmul.f32.vlgmr.msrb.gmra.mxu1 %v2578_v40 }
 0x47e   : > { %2693 = vmatmul.f32.vlgmr.msrb.gmra.mxu3 %v2587_v51  ;;  %2713 = vmatmul.f32.vlgmr.msra.gmra.mxu0 %v2594_v9 }
 0x47f   : > { %2733 = vmatmul.f32.vlgmr.msra.gmra.mxu2 %v2587_v51  ;;  %2753 = vmatmul.f32.vlgmr.msra.gmra.mxu1 %v2594_v9 }
 0x4f3   : > { %v2632_v12 = vpop.f32.mrf.mxu0 }
 0x4f4   : > { %v2672_v19 = vpop.f32.mrf.mxu1 }
 0x4f9   : > { %v2612_v38 = vpop.f32.mrf.mxu3 }
 0x4fa   : > { %v2652_v15 = vpop.f32.mrf.mxu2  ;;  %v2633_v34 = vadd.f32 %v2632_v12, %v2612_v38 }
 0x4fb   : > { %v2673_v37 = vadd.f32 %v2672_v19, %v2652_v15  ;;  %v2714_v6 = vpop.f32.mrf.mxu0 }
 0x4fc   : > { %v2675_v59 = vmul.f32 0.0625, %v2633_v34  ;;  %v2754_v44 = vpop.f32.mrf.mxu1 }
 0x4fd   : > { %v2676_v23 = vmul.f32 0.0625, %v2673_v37 }
 0x4fe   : > { %v2759_v53 = vmul.f32 %v2675_v59, %v2675_v59  ;;  %v2765_v8 = vperm.slane %v2675_v59, 0 }
 0x4ff   : > { %v2760_v55 = vmul.f32 %v2676_v23, %v2676_v23  ;;  %v2766_v11 = vperm.slane %v2676_v23, 0 }
 0x500   : > { %v2767_v18 = vsub.f32 %v6610_v5, %v2765_v8 }
 0x501   : > { %v2694_v41 = vpop.f32.mrf.mxu3  ;;  %v2768_v25 = vsub.f32 %v6613_v3, %v2766_v11 }
 0x502   : > { %v2715_v46 = vadd.f32 %v2714_v6, %v2694_v41  ;;  %v2734_v47 = vpop.f32.mrf.mxu2 }
 0x503   : > { %v2755_v52 = vadd.f32 %v2754_v44, %v2734_v47 }
 0x504   : > { %v2757_v54 = vmul.f32 0.0625, %v2715_v46 }
 0x505   : > { %v2758_v21 = vmul.f32 0.0625, %v2755_v52 }
 0x506   : > { %v2761_v56 = vsub.f32 %v2757_v54, %v2759_v53 }
 0x507   : > { %v2762_v58 = vsub.f32 %v2758_v21, %v2760_v55 }
 0x508   : > { %v2763_v61 = vmax.f32 %v2761_v56, 0.0 }
 0x509   : > { %v2764_v62 = vmax.f32 %v2762_v58, 0.0 }
 0x50a   : > { %v2769_v0 = vadd.f32 1e-05, %v2763_v61 }
 0x50b   : > { %v2770_v1 = vadd.f32 1e-05, %v2764_v62 }
 0x50c   : > { %4132 = vrsqrt.f32 %v2769_v0  ;;  %vm2777_vm0 = vweird.f32 %v2769_v0 }
 0x50d   : > { %4134 = vrsqrt.f32 %v2770_v1  ;;  %vm2787_vm2 = vweird.f32 %v2770_v1 }
 0x512   : > { %v4133_v49 = vpop.eup %4132 }
 0x513   : > { %v4135_v50 = vpop.eup %4134  ;;  %v2772_v2 = vmul.f32 %v4133_v49, %v2769_v0  ;;  %vm2778_vm14 = vweird.f32 %v4133_v49 }
 0x514   : > { %v2782_v13 = vmul.f32 %v4135_v50, %v2770_v1  ;;  %vm2788_vm15 = vweird.f32 %v4135_v50  ;;  %vm2779_vm1 = vmor %vm2777_vm0, %vm2778_vm14 }
 0x515   : > { %v2773_v36 = vmul.f32 %v4133_v49, %v2772_v2  ;;  %vm2789_vm4 = vmor %vm2787_vm2, %vm2788_vm15 }
 0x516   : > { %v2783_v20 = vmul.f32 %v4135_v50, %v2782_v13 }
 0x517   : > { %v2774_v4 = vmul.f32 0.5, %v2773_v36 }
 0x518   : > { %v2784_v60 = vmul.f32 0.5, %v2783_v20 }
 0x519   : > { %v2775_v7 = vsub.f32 1.5, %v2774_v4 }
 0x51a   : > { %v2785_v10 = vsub.f32 1.5, %v2784_v60 }
 0x51b   : > { %v2776_v16 = vmul.f32 %v4133_v49, %v2775_v7 }
 0x51c   : > { %v2786_v14 = vmul.f32 %v4135_v50, %v2785_v10 }
 0x51d   : > { %v2780_v17 = vsel %vm2779_vm1, %v4133_v49, %v2776_v16 }
 0x51e   : > { %v2791_v22 = vperm.slane %v2780_v17, 0  ;;  %v2790_v24 = vsel %vm2789_vm4, %v4135_v50, %v2786_v14 }
 0x51f   : > { %v2792_v45 = vperm.slane %v2790_v24, 0 }
 0x520   : > { %v2793_v26 = vmul.f32 %v2791_v22, %v2767_v18 }
 0x521   : > { %v2794_v27 = vmul.f32 %v2792_v45, %v2768_v25 }
 0x522   : > { %v2797_v28 = vmul.f32 0.1, %v2793_v26  ;;  %vm2795_vm6 = vcmp.ge.f32.partialorder %v2793_v26, 0.0 }
 0x523   : > { %vm2796_vm5 = vcmp.ge.f32.partialorder %v2794_v27, 0.0  ;;  %v2798_v29 = vmul.f32 0.1, %v2794_v27 }
 0x524   : > { %v2799_v32 = vsel %vm2795_vm6, %v2793_v26, %v2797_v28 }
 0x525   : > { %v2800_v30 = vsel %vm2796_vm5, %v2794_v27, %v2798_v29 }
 0x526   : > { %v2803_v31 = vrot.slane %v2800_v30, 4 }
 0x528   : > { %v2804_v5 = vsel %vm1507_vm3, %v2799_v32, %v2803_v31 }
 0x529   : > { %2806 = vst [vmem:[%s305_s30] sm:$0xff] %v2804_v5 }
 0x52a PF: > { %s18_s27 = sadd.s32 1, %s4206_s27  }
 0x52b   : > { %p15_p4 = scmp.ge.s32.totalorder %s18_s27, 4  }
 0x52d   :  { %17 = sbr.rel (!%p15_p4) target bundleno = 1 (0x1), region = 89 }

// kernel: tile.63
= control target key start
LH: loop header
LB: loop body
LE: loop exit
PB: predicated region body
PF: predicated region fallthrough
CT: control target
= control target key end

     0   :  { %s22_s0 = inlined_call_operand.vmem [shape: f32[128], index: 0, kind: input, shape index: {}]   ;;  %s23_s1 = inlined_call_operand.vmem [shape: f32[2,128], index: 1, kind: output, shape index: {}]  }
   0x1   :  { %v4_v0 = vld [vmem:[%s22_s0] ss:$0 sm:$0xff] }
   0x2   :  { %5 = vst [vmem:[%s23_s1] sm:$0x3] %v4_v0 }

// kernel: encoder_forward.7
= control target key start
LH: loop header
LB: loop body
LE: loop exit
PB: predicated region body
PF: predicated region fallthrough
CT: control target
= control target key end

     0   :  { %s4514_s27 = smov 0   ;;  %s7032_s0 = inlined_call_operand.vmem [shape: f32[2,6,384], index: 0, kind: input, shape index: {}]   ;;  %s7033_s1 = inlined_call_operand.vmem [shape: bf16[3,2,6], index: 1, kind: input, shape index: {}]   ;;  %s7034_s2 = inlined_call_operand.vmem [shape: bf16[3,384,256], index: 2, kind: input, shape index: {}]   ;;  %s7035_s3 = inlined_call_operand.vmem [shape: f32[1,256], index: 3, kind: input, shape index: {}]   ;;  %s7036_s4 = inlined_call_operand.vmem [shape: f32[256,256], index: 4, kind: input, shape index: {}]   ;;  %s7037_s5 = inlined_call_operand.vmem [shape: bf16[2,2,2], index: 5, kind: input, shape index: {}]   ;;  %s7038_s6 = inlined_call_operand.vmem [shape: bf16[3,256,256], index: 6, kind: input, shape index: {}]   ;;  %s7039_s7 = inlined_call_operand.vmem [shape: f32[1,256], index: 7, kind: input, shape index: {}]   ;;  %s7040_s8 = inlined_call_operand.vmem [shape: f32[2,2,256], index: 8, kind: output, shape index: {}]  }
   0x1 LB: > { %s2993_s28 = sadd.s32 4294967295, %s4467_s27   ;;  %p2997_p0 = scmp.ge.s32.totalorder %s4467_s27, 1  ;;  %s4467_s27 = sphi %s4514_s27, %s18_s27  }
   0x2   : > { %p262_p1 = scmp.lt.s32.totalorder %s4467_s27, 3 }
   0x4   : > { %p263_p2 = pnand %p2997_p0, %p262_p1 }
   0x6   : > { %266 = sbr.rel (%p263_p2) target bundleno = 1326 (0x52e), region = 52 }
   0xb   : > { %p296_p3 = scmp.lt.s32.totalorder %s2993_s28, 1  ;;  %vm382_vm0 = vcmask 1042432   ;;  %v3114_v0 = vld [vmem:[%s7034_s2 + $0x1f0] sm:$0xf]  ;;  %v4203_v7 = vld [vmem:[%s7034_s2 + $0x1f4] sm:$0xf0] }
   0xc   : > { %v4202_v8 = vld [vmem:[%s7034_s2 + $0x1f4] sm:$0xf]  ;;  %v3116_v9 = vld [vmem:[%s7034_s2 + $0x1f8] sm:$0xf0]  ;;  %v3178_v10 = vld [vmem:[%s7034_s2 + $0x270] sm:$0xf]  ;;  %v3115_v18 = vor.u32 %v4203_v7, %v3114_v0 }
   0xd   : > { %s7055_s28 = smov (!%p296_p3, %s2993_s28), 1  ;;  %v4219_v11 = vld [vmem:[%s7034_s2 + $0x274] sm:$0xf0]  ;;  %v3242_v12 = vld [vmem:[%s7034_s2 + $0x2f0] sm:$0xf]  ;;  %vm378_vm1 = vcmask 48128   ;;  %v3119_v22 = vor.u32 %v4202_v8, %v3116_v9 }
   0xe   : > { %s4380_s29 = smul.u32 24, %s7055_s28  ;;  %v4235_v16 = vld [vmem:[%s7034_s2 + $0x2f4] sm:$0xf0]  ;;  %v377_v17 = vld [vmem:[%s7033_s1] sm:$0x1]  ;;  %v3179_v23 = vor.u32 %v4219_v11, %v3178_v10  ;;  %vm1638_vm2 = vcmask 1041408  }
   0xf   : > { %v4570_v19 = vld [vmem:[%s7033_s1 + $0x1] sm:$0x1]  ;;  %v4201_v21 = vld [vmem:[%s7034_s2 + $0x1e4] sm:$0xf0]  ;;  %v3243_v24 = vor.u32 %v4235_v16, %v3242_v12  ;;  %v4200_v25 = vld [vmem:[%s7034_s2 + $0x1e4] sm:$0xf] }
  0x10   : > { %s300_s10 = scalar_lea.vmem %s7032_s0, %s4380_s29  ;;  %v3106_v20 = vld [vmem:[%s7034_s2 + $0x1e0] sm:$0xf]  ;;  %v3108_v26 = vld [vmem:[%s7034_s2 + $0x1e8] sm:$0xf0]  ;;  %v4217_v28 = vld [vmem:[%s7034_s2 + $0x264] sm:$0xf0] }
  0x11   : > { %v371_v1 = vld [vmem:[%s300_s10] sm:$0x3f]  ;;  %v372_v2 = vld [vmem:[%s300_s10 + $0x8] sm:$0x3f]  ;;  %v373_v3 = vld [vmem:[%s300_s10 + $0x10] sm:$0x3f]  ;;  %v3107_v31 = vor.u32 %v4201_v21, %v3106_v20  ;;  %v3111_v34 = vor.u32 %v4200_v25, %v3108_v26 }
  0x12   : > { %v374_v4 = vpack.c.bf16 %v371_v1, %v371_v1  ;;  %v375_v5 = vpack.c.bf16 %v372_v2, %v372_v2  ;;  %v376_v6 = vpack.c.bf16 %v373_v3, %v373_v3  ;;  %v3170_v27 = vld [vmem:[%s7034_s2 + $0x260] sm:$0xf]  ;;  %v4233_v30 = vld [vmem:[%s7034_s2 + $0x2e4] sm:$0xf0]  ;;  %v3098_v32 = vld [vmem:[%s7034_s2 + $0x1d0] sm:$0xf] }
  0x13   : > { %v3234_v29 = vld [vmem:[%s7034_s2 + $0x2e0] sm:$0xf]  ;;  %v4199_v33 = vld [vmem:[%s7034_s2 + $0x1d4] sm:$0xf0]  ;;  %v3171_v35 = vor.u32 %v4217_v28, %v3170_v27  ;;  %v4198_v37 = vld [vmem:[%s7034_s2 + $0x1d4] sm:$0xf] }
  0x14   : > { %v4550_v13 = vsel %vm382_vm0, %v374_v4, 0  ;;  %v4553_v14 = vsel %vm382_vm0, %v375_v5, 0  ;;  %v4556_v15 = vsel %vm382_vm0, %v376_v6, 0  ;;  %v3235_v36 = vor.u32 %v4233_v30, %v3234_v29  ;;  %v3100_v38 = vld [vmem:[%s7034_s2 + $0x1d8] sm:$0xf0]  ;;  %s4139_s21 = sshll.u32 %s7055_s28, 2 }
  0x15   : > { %399 = vmatpush.bf16.msra.mxu0 %v4550_v13  ;;  %412 = vmatpush.bf16.msra.mxu1 %v4553_v14  ;;  %v3162_v39 = vld [vmem:[%s7034_s2 + $0x250] sm:$0xf]  ;;  %v4215_v40 = vld [vmem:[%s7034_s2 + $0x254] sm:$0xf0]  ;;  %v3099_v43 = vor.u32 %v4199_v33, %v3098_v32  ;;  %v3090_v44 = vld [vmem:[%s7034_s2 + $0x1c0] sm:$0xf]  ;;  %v3103_v46 = vor.u32 %v4198_v37, %v3100_v38  ;;  %s305_s24 = scalar_lea.vmem %s7040_s8, %s4139_s21 }
  0x16   : > { %494 = vmatpush.bf16.msra.mxu3 %v4550_v13  ;;  %425 = vmatpush.bf16.msra.mxu2 %v4556_v15  ;;  %v3226_v41 = vld [vmem:[%s7034_s2 + $0x2d0] sm:$0xf]  ;;  %v4231_v42 = vld [vmem:[%s7034_s2 + $0x2d4] sm:$0xf0]  ;;  %v4197_v45 = vld [vmem:[%s7034_s2 + $0x1c4] sm:$0xf0]  ;;  %v3163_v47 = vor.u32 %v4215_v40, %v3162_v39 }
  0x17   : > { %v3227_v48 = vor.u32 %v4231_v42, %v3226_v41  ;;  %v4196_v49 = vld [vmem:[%s7034_s2 + $0x1c4] sm:$0xf]  ;;  %v3092_v50 = vld [vmem:[%s7034_s2 + $0x1c8] sm:$0xf0]  ;;  %v3154_v51 = vld [vmem:[%s7034_s2 + $0x240] sm:$0xf]  ;;  %v3091_v55 = vor.u32 %v4197_v45, %v3090_v44 }
  0x18   : > { %3001 = vmatmul.msk.bf16.vlgmr.msra.gmra.mxu0 %vm378_vm1, %v377_v17  ;;  %3002 = vmatmul.msk.bf16.vlgmr.msra.gmra.mxu1 %vm378_vm1, %v377_v17  ;;  %v4213_v52 = vld [vmem:[%s7034_s2 + $0x244] sm:$0xf0]  ;;  %v3218_v53 = vld [vmem:[%s7034_s2 + $0x2c0] sm:$0xf]  ;;  %v3082_v56 = vld [vmem:[%s7034_s2 + $0x1b0] sm:$0xf]  ;;  %v3095_v58 = vor.u32 %v4196_v49, %v3092_v50 }
  0x19   : > { %507 = vmatpush.bf16.msrb.mxu0 %v4553_v14  ;;  %520 = vmatpush.bf16.msrb.mxu1 %v4556_v15  ;;  %v4229_v54 = vld [vmem:[%s7034_s2 + $0x2c4] sm:$0xf0]  ;;  %v4195_v57 = vld [vmem:[%s7034_s2 + $0x1b4] sm:$0xf0]  ;;  %v3155_v59 = vor.u32 %v4213_v52, %v3154_v51  ;;  %v4194_v61 = vld [vmem:[%s7034_s2 + $0x1b4] sm:$0xf] }
  0x1a   : > { %3005 = vmatmul.msk.bf16.vlgmr.msra.gmra.mxu3 %vm378_vm1, %v4570_v19  ;;  %818 = vmatpush.bf16.msrb.mxu2 %v3115_v18  ;;  %v3219_v60 = vor.u32 %v4229_v54, %v3218_v53  ;;  %v3084_v62 = vld [vmem:[%s7034_s2 + $0x1b8] sm:$0xf0]  ;;  %v3146_v63 = vld [vmem:[%s7034_s2 + $0x230] sm:$0xf]  ;;  %v4211_v0 = vld [vmem:[%s7034_s2 + $0x234] sm:$0xf0]  ;;  %v3083_v3 = vor.u32 %v4195_v57, %v3082_v56 }
  0x1b   : > { %3003 = vmatmul.msk.bf16.vlgmr.msra.gmra.mxu2 %vm378_vm1, %v377_v17  ;;  %831 = vmatpush.bf16.msrb.mxu3 %v3179_v23  ;;  %v3210_v1 = vld [vmem:[%s7034_s2 + $0x2b0] sm:$0xf]  ;;  %v4227_v2 = vld [vmem:[%s7034_s2 + $0x2b4] sm:$0xf0]  ;;  %v3074_v4 = vld [vmem:[%s7034_s2 + $0x1a0] sm:$0xf]  ;;  %v3087_v6 = vor.u32 %v4194_v61, %v3084_v62  ;;  %v3147_v7 = vor.u32 %v4211_v0, %v3146_v63 }
  0x1c   : > { %v4193_v5 = vld [vmem:[%s7034_s2 + $0x1a4] sm:$0xf0]  ;;  %v3211_v8 = vor.u32 %v4227_v2, %v3210_v1  ;;  %v4192_v9 = vld [vmem:[%s7034_s2 + $0x1a4] sm:$0xf]  ;;  %v3076_v10 = vld [vmem:[%s7034_s2 + $0x1a8] sm:$0xf0] }
  0x1d   : > { %857 = vmatpush.bf16.msra.mxu1 %v3119_v22  ;;  %844 = vmatpush.bf16.msra.mxu0 %v3243_v24  ;;  %v3138_v11 = vld [vmem:[%s7034_s2 + $0x220] sm:$0xf]  ;;  %v4209_v12 = vld [vmem:[%s7034_s2 + $0x224] sm:$0xf0]  ;;  %v3075_v18 = vor.u32 %v4193_v5, %v3074_v4  ;;  %v3066_v20 = vld [vmem:[%s7034_s2 + $0x190] sm:$0xf]  ;;  %v3079_v21 = vor.u32 %v4192_v9, %v3076_v10 }
  0x1e   : > { %819 = vmatpush.bf16.msrb.mxu2 %v3107_v31  ;;  %v3202_v16 = vld [vmem:[%s7034_s2 + $0x2a0] sm:$0xf]  ;;  %v4225_v17 = vld [vmem:[%s7034_s2 + $0x2a4] sm:$0xf0]  ;;  %v3139_v22 = vor.u32 %v4209_v12, %v3138_v11  ;;  %v4190_v24 = vld [vmem:[%s7034_s2 + $0x194] sm:$0xf] }
  0x1f   : > { %832 = vmatpush.bf16.msrb.mxu3 %v3171_v35  ;;  %v3203_v23 = vor.u32 %v4225_v17, %v3202_v16  ;;  %v3068_v25 = vld [vmem:[%s7034_s2 + $0x198] sm:$0xf0]  ;;  %v3130_v26 = vld [vmem:[%s7034_s2 + $0x210] sm:$0xf]  ;;  %v4207_v27 = vld [vmem:[%s7034_s2 + $0x214] sm:$0xf0] }
  0x20   : > { %v3194_v28 = vld [vmem:[%s7034_s2 + $0x290] sm:$0xf]  ;;  %v4223_v29 = vld [vmem:[%s7034_s2 + $0x294] sm:$0xf0]  ;;  %v3058_v31 = vld [vmem:[%s7034_s2 + $0x180] sm:$0xf]  ;;  %v3071_v35 = vor.u32 %v4190_v24, %v3068_v25  ;;  %v3131_v37 = vor.u32 %v4207_v27, %v3130_v26 }
  0x21   : > { %858 = vmatpush.bf16.msra.mxu1 %v3111_v34  ;;  %845 = vmatpush.bf16.msra.mxu0 %v3235_v36  ;;  %v4189_v32 = vld [vmem:[%s7034_s2 + $0x184] sm:$0xf0]  ;;  %v4218_v33 = vld [vmem:[%s7034_s2 + $0x274] sm:$0xf]  ;;  %v3180_v34 = vld [vmem:[%s7034_s2 + $0x278] sm:$0xf0]  ;;  %v3195_v38 = vor.u32 %v4223_v29, %v3194_v28 }
  0x22   : > { %820 = vmatpush.bf16.msrb.mxu2 %v3099_v43  ;;  %v4188_v36 = vld [vmem:[%s7034_s2 + $0x184] sm:$0xf]  ;;  %v3060_v39 = vld [vmem:[%s7034_s2 + $0x188] sm:$0xf0]  ;;  %v3370_v40 = vld [vmem:[%s7034_s2 + $0xf0] sm:$0xf]  ;;  %v3059_v45 = vor.u32 %v4189_v32, %v3058_v31  ;;  %v3183_v49 = vor.u32 %v4218_v33, %v3180_v34 }
  0x23   : > { %833 = vmatpush.bf16.msrb.mxu3 %v3163_v47  ;;  %v4171_v41 = vld [vmem:[%s7034_s2 + $0xf4] sm:$0xf0]  ;;  %v3122_v42 = vld [vmem:[%s7034_s2 + $0x200] sm:$0xf]  ;;  %v4205_v43 = vld [vmem:[%s7034_s2 + $0x204] sm:$0xf0]  ;;  %v3063_v50 = vor.u32 %v4188_v36, %v3060_v39 }
  0x24   : > { %v3186_v44 = vld [vmem:[%s7034_s2 + $0x280] sm:$0xf]  ;;  %v4234_v47 = vld [vmem:[%s7034_s2 + $0x2f4] sm:$0xf]  ;;  %v3306_v51 = vld [vmem:[%s7034_s2 + $0x70] sm:$0xf]  ;;  %v3123_v56 = vor.u32 %v4205_v43, %v3122_v42 }
  0x25   : > { %859 = vmatpush.bf16.msra.mxu1 %v3103_v46  ;;  %846 = vmatpush.bf16.msra.mxu0 %v3227_v48  ;;  %v4221_v46 = vld [vmem:[%s7034_s2 + $0x284] sm:$0xf0]  ;;  %v3244_v48 = vld [vmem:[%s7034_s2 + $0x2f8] sm:$0xf0]  ;;  %v4155_v52 = vld [vmem:[%s7034_s2 + $0x74] sm:$0xf0] }
  0x26   : > { %821 = vmatpush.bf16.msrb.mxu2 %v3091_v55  ;;  %v4216_v53 = vld [vmem:[%s7034_s2 + $0x264] sm:$0xf]  ;;  %v3172_v54 = vld [vmem:[%s7034_s2 + $0x268] sm:$0xf0]  ;;  %v3371_v55 = vor.u32 %v4171_v41, %v3370_v40  ;;  %v3187_v57 = vor.u32 %v4221_v46, %v3186_v44  ;;  %v3307_v61 = vor.u32 %v4155_v52, %v3306_v51  ;;  %v3298_v1 = vld [vmem:[%s7034_s2 + $0x60] sm:$0xf] }
  0x27   : > { %834 = vmatpush.bf16.msrb.mxu3 %v3155_v59  ;;  %v3362_v59 = vld [vmem:[%s7034_s2 + $0xe0] sm:$0xf]  ;;  %v4232_v62 = vld [vmem:[%s7034_s2 + $0x2e4] sm:$0xf]  ;;  %v3236_v63 = vld [vmem:[%s7034_s2 + $0x2e8] sm:$0xf0]  ;;  %v3175_v0 = vor.u32 %v4216_v53, %v3172_v54 }
  0x28   : > { %3006 = vmatmul.msk.bf16.vlgmr.msrb.gmra.mxu0 %vm378_vm1, %v4570_v19  ;;  %3007 = vmatmul.msk.bf16.vlgmr.msrb.gmra.mxu1 %vm378_vm1, %v4570_v19  ;;  %v4191_v19 = vld [vmem:[%s7034_s2 + $0x194] sm:$0xf0]  ;;  %v4153_v2 = vld [vmem:[%s7034_s2 + $0x64] sm:$0xf0]  ;;  %v3164_v4 = vld [vmem:[%s7034_s2 + $0x258] sm:$0xf0] }
  0x29   : > { %860 = vmatpush.bf16.msra.mxu1 %v3095_v58  ;;  %847 = vmatpush.bf16.msra.mxu0 %v3219_v60  ;;  %v3067_v30 = vor.u32 %v4191_v19, %v3066_v20  ;;  %v3247_v58 = vor.u32 %v4234_v47, %v3244_v48  ;;  %v4169_v60 = vld [vmem:[%s7034_s2 + $0xe4] sm:$0xf0]  ;;  %v3299_v9 = vor.u32 %v4153_v2, %v3298_v1  ;;  %v4230_v10 = vld [vmem:[%s7034_s2 + $0x2d4] sm:$0xf]  ;;  %v3228_v11 = vld [vmem:[%s7034_s2 + $0x2d8] sm:$0xf0] }
  0x2a   : > { %822 = vmatpush.bf16.msrb.mxu2 %v3083_v3  ;;  %v4214_v3 = vld [vmem:[%s7034_s2 + $0x254] sm:$0xf]  ;;  %v3363_v5 = vor.u32 %v4169_v60, %v3362_v59  ;;  %v3290_v16 = vld [vmem:[%s7034_s2 + $0x50] sm:$0xf]  ;;  %v4151_v17 = vld [vmem:[%s7034_s2 + $0x54] sm:$0xf0] }
  0x2b   : > { %835 = vmatpush.bf16.msrb.mxu3 %v3147_v7  ;;  %v3354_v7 = vld [vmem:[%s7034_s2 + $0xd0] sm:$0xf]  ;;  %v3167_v12 = vor.u32 %v4214_v3, %v3164_v4  ;;  %v3156_v20 = vld [vmem:[%s7034_s2 + $0x248] sm:$0xf0]  ;;  %v3291_v24 = vor.u32 %v4151_v17, %v3290_v16  ;;  %v4210_v26 = vld [vmem:[%s7034_s2 + $0x234] sm:$0xf] }
  0x2c   : > { %v3148_v27 = vld [vmem:[%s7034_s2 + $0x238] sm:$0xf0]  ;;  %v3140_v31 = vld [vmem:[%s7034_s2 + $0x228] sm:$0xf0]  ;;  %v4228_v33 = vld [vmem:[%s7034_s2 + $0x2c4] sm:$0xf] }
  0x2d   : > { %861 = vmatpush.bf16.msra.mxu1 %v3087_v6  ;;  %848 = vmatpush.bf16.msra.mxu0 %v3211_v8  ;;  %v3239_v6 = vor.u32 %v4232_v62, %v3236_v63  ;;  %v4167_v8 = vld [vmem:[%s7034_s2 + $0xd4] sm:$0xf0]  ;;  %v3151_v29 = vor.u32 %v4210_v26, %v3148_v27  ;;  %v3220_v34 = vld [vmem:[%s7034_s2 + $0x2c8] sm:$0xf0]  ;;  %v4206_v42 = vld [vmem:[%s7034_s2 + $0x214] sm:$0xf] }
  0x2e   : > { %823 = vmatpush.bf16.msrb.mxu2 %v3075_v18  ;;  %v4212_v18 = vld [vmem:[%s7034_s2 + $0x244] sm:$0xf]  ;;  %v3355_v19 = vor.u32 %v4167_v8, %v3354_v7  ;;  %v3223_v36 = vor.u32 %v4228_v33, %v3220_v34  ;;  %v4163_v39 = vld [vmem:[%s7034_s2 + $0xb4] sm:$0xf0]  ;;  %v3132_v43 = vld [vmem:[%s7034_s2 + $0x218] sm:$0xf0] }
  0x2f   : > { %836 = vmatpush.bf16.msrb.mxu3 %v3139_v22  ;;  %v3346_v22 = vld [vmem:[%s7034_s2 + $0xc0] sm:$0xf]  ;;  %v3159_v25 = vor.u32 %v4212_v18, %v3156_v20  ;;  %v3135_v44 = vor.u32 %v4206_v42, %v3132_v43  ;;  %v3212_v46 = vld [vmem:[%s7034_s2 + $0x2b8] sm:$0xf0]  ;;  %v3274_v47 = vld [vmem:[%s7034_s2 + $0x30] sm:$0xf] }
  0x30   : > { %v4161_v51 = vld [vmem:[%s7034_s2 + $0xa4] sm:$0xf0]  ;;  %v4204_v54 = vld [vmem:[%s7034_s2 + $0x204] sm:$0xf]  ;;  %v3266_v59 = vld [vmem:[%s7034_s2 + $0x20] sm:$0xf] }
  0x31   : > { %862 = vmatpush.bf16.msra.mxu1 %v3079_v21  ;;  %849 = vmatpush.bf16.msra.mxu0 %v3203_v23  ;;  %v3231_v21 = vor.u32 %v4230_v10, %v3228_v11  ;;  %v4165_v23 = vld [vmem:[%s7034_s2 + $0xc4] sm:$0xf0]  ;;  %v3322_v62 = vld [vmem:[%s7034_s2 + $0x90] sm:$0xf]  ;;  %v4159_v63 = vld [vmem:[%s7034_s2 + $0x94] sm:$0xf0] }
  0x32   : > { %824 = vmatpush.bf16.msrb.mxu2 %v3067_v30  ;;  %v3347_v28 = vor.u32 %v4165_v23, %v3346_v22  ;;  %v4208_v30 = vld [vmem:[%s7034_s2 + $0x224] sm:$0xf]  ;;  %v3323_v1 = vor.u32 %v4159_v63, %v3322_v62  ;;  %v4222_v2 = vld [vmem:[%s7034_s2 + $0x294] sm:$0xf]  ;;  %v3196_v3 = vld [vmem:[%s7034_s2 + $0x298] sm:$0xf0] }
  0x33   : > { %837 = vmatpush.bf16.msrb.mxu3 %v3131_v37  ;;  %v3143_v32 = vor.u32 %v4208_v30, %v3140_v31  ;;  %v4149_v37 = vld [vmem:[%s7034_s2 + $0x44] sm:$0xf0]  ;;  %v3258_v4 = vld [vmem:[%s7034_s2 + $0x10] sm:$0xf]  ;;  %v3314_v7 = vld [vmem:[%s7034_s2 + $0x80] sm:$0xf] }
  0x34   : > { %v4157_v8 = vld [vmem:[%s7034_s2 + $0x84] sm:$0xf0]  ;;  %v4220_v11 = vld [vmem:[%s7034_s2 + $0x284] sm:$0xf]  ;;  %v3250_v16 = vld [vmem:[%s7034_s2] sm:$0xf] }
  0x35   : > { %863 = vmatpush.bf16.msra.mxu1 %v3071_v35  ;;  %850 = vmatpush.bf16.msra.mxu0 %v3195_v38  ;;  %v3282_v35 = vld [vmem:[%s7034_s2 + $0x40] sm:$0xf]  ;;  %v3338_v38 = vld [vmem:[%s7034_s2 + $0xb0] sm:$0xf]  ;;  %v3315_v10 = vor.u32 %v4157_v8, %v3314_v7  ;;  %v4141_v18 = vld [vmem:[%s7034_s2 + $0x4] sm:$0xf0] }
  0x36   : > { %825 = vmatpush.bf16.msrb.mxu2 %v3059_v45  ;;  %v3283_v40 = vor.u32 %v4149_v37, %v3282_v35  ;;  %v3339_v41 = vor.u32 %v4163_v39, %v3338_v38  ;;  %v4226_v45 = vld [vmem:[%s7034_s2 + $0x2b4] sm:$0xf]  ;;  %v3251_v20 = vor.u32 %v4141_v18, %v3250_v16  ;;  %v3434_v22 = vld [vmem:[%s7034_s2 + $0x170] sm:$0xf]  ;;  %v4187_v23 = vld [vmem:[%s7034_s2 + $0x174] sm:$0xf0] }
  0x37   : > { %838 = vmatpush.bf16.msrb.mxu3 %v3123_v56  ;;  %v3215_v48 = vor.u32 %v4226_v45, %v3212_v46  ;;  %v3435_v27 = vor.u32 %v4187_v23, %v3434_v22  ;;  %v4185_v33 = vld [vmem:[%s7034_s2 + $0x164] sm:$0xf0]  ;;  %v4184_v34 = vld [vmem:[%s7034_s2 + $0x164] sm:$0xf]  ;;  %v3428_v35 = vld [vmem:[%s7034_s2 + $0x168] sm:$0xf0] }
  0x38   : > { %v3431_v38 = vor.u32 %v4184_v34, %v3428_v35  ;;  %v3418_v39 = vld [vmem:[%s7034_s2 + $0x150] sm:$0xf]  ;;  %v3308_v42 = vld [vmem:[%s7034_s2 + $0x78] sm:$0xf0]  ;;  %v4170_v43 = vld [vmem:[%s7034_s2 + $0xf4] sm:$0xf] }
  0x39   : > { %864 = vmatpush.bf16.msra.mxu1 %v3063_v50  ;;  %851 = vmatpush.bf16.msra.mxu0 %v3187_v57  ;;  %v3330_v50 = vld [vmem:[%s7034_s2 + $0xa0] sm:$0xf]  ;;  %v4224_v57 = vld [vmem:[%s7034_s2 + $0x2a4] sm:$0xf]  ;;  %v4182_v45 = vld [vmem:[%s7034_s2 + $0x154] sm:$0xf] }
  0x3a   : > { %870 = vmatpush.bf16.msra.mxu2 %v3183_v49  ;;  %v4147_v49 = vld [vmem:[%s7034_s2 + $0x34] sm:$0xf0]  ;;  %v3331_v53 = vor.u32 %v4161_v51, %v3330_v50  ;;  %v3420_v46 = vld [vmem:[%s7034_s2 + $0x158] sm:$0xf0]  ;;  %v3364_v62 = vld [vmem:[%s7034_s2 + $0xe8] sm:$0xf0] }
  0x3b   : > { %883 = vmatpush.bf16.msra.mxu3 %v3247_v58  ;;  %v3275_v52 = vor.u32 %v4147_v49, %v3274_v47  ;;  %v3204_v58 = vld [vmem:[%s7034_s2 + $0x2a8] sm:$0xf0]  ;;  %v4180_v63 = vld [vmem:[%s7034_s2 + $0x144] sm:$0xf]  ;;  %v3292_v7 = vld [vmem:[%s7034_s2 + $0x58] sm:$0xf0] }
  0x3c   : > { %v3207_v60 = vor.u32 %v4224_v57, %v3204_v58  ;;  %v4152_v57 = vld [vmem:[%s7034_s2 + $0x64] sm:$0xf]  ;;  %v3300_v58 = vld [vmem:[%s7034_s2 + $0x68] sm:$0xf0]  ;;  %v4166_v8 = vld [vmem:[%s7034_s2 + $0xd4] sm:$0xf] }
  0x3d   : > { %1149 = vmatpush.bf16.msrb.mxu1 %v3371_v55  ;;  %1136 = vmatpush.bf16.msrb.mxu0 %v3307_v61  ;;  %v3124_v55 = vld [vmem:[%s7034_s2 + $0x208] sm:$0xf0]  ;;  %v4145_v61 = vld [vmem:[%s7034_s2 + $0x24] sm:$0xf0]  ;;  %v3394_v22 = vld [vmem:[%s7034_s2 + $0x120] sm:$0xf] }
  0x3e   : > { %871 = vmatpush.bf16.msra.mxu2 %v3175_v0  ;;  %v3127_v56 = vor.u32 %v4204_v54, %v3124_v55  ;;  %v3267_v0 = vor.u32 %v4145_v61, %v3266_v59  ;;  %v4168_v59 = vld [vmem:[%s7034_s2 + $0xe4] sm:$0xf]  ;;  %v4177_v23 = vld [vmem:[%s7034_s2 + $0x124] sm:$0xf0]  ;;  %v3386_v34 = vld [vmem:[%s7034_s2 + $0x110] sm:$0xf] }
  0x3f   : > { %884 = vmatpush.bf16.msra.mxu3 %v3239_v6  ;;  %v4143_v6 = vld [vmem:[%s7034_s2 + $0x14] sm:$0xf0]  ;;  %vm1915_vm10 = vcmask 1040384   ;;  %vm1911_vm11 = vcmask 15360  }
  0x40   : > { %v4175_v35 = vld [vmem:[%s7034_s2 + $0x114] sm:$0xf0] }
  0x41   : > { %1150 = vmatpush.bf16.msrb.mxu1 %v3363_v5  ;;  %1137 = vmatpush.bf16.msrb.mxu0 %v3299_v9  ;;  %v3199_v5 = vor.u32 %v4222_v2, %v3196_v3  ;;  %v3259_v9 = vor.u32 %v4143_v6, %v3258_v4  ;;  %v3303_v2 = vor.u32 %v4152_v57, %v3300_v58  ;;  %v3402_v3 = vld [vmem:[%s7034_s2 + $0x130] sm:$0xf]  ;;  %v4179_v4 = vld [vmem:[%s7034_s2 + $0x134] sm:$0xf0]  ;;  %v4150_v6 = vld [vmem:[%s7034_s2 + $0x54] sm:$0xf] }
  0x42   : > { %872 = vmatpush.bf16.msra.mxu2 %v3167_v12  ;;  %v3188_v12 = vld [vmem:[%s7034_s2 + $0x288] sm:$0xf0]  ;;  %v3403_v16 = vor.u32 %v4179_v4, %v3402_v3  ;;  %v4172_v57 = vld [vmem:[%s7034_s2 + $0x104] sm:$0xf] }
  0x43   : > { %885 = vmatpush.bf16.msra.mxu3 %v3231_v21  ;;  %v3191_v17 = vor.u32 %v4220_v11, %v3188_v12  ;;  %v4178_v11 = vld [vmem:[%s7034_s2 + $0x134] sm:$0xf]  ;;  %v3404_v12 = vld [vmem:[%s7034_s2 + $0x138] sm:$0xf0]  ;;  %v3380_v58 = vld [vmem:[%s7034_s2 + $0x108] sm:$0xf0] }
  0x44   : > { %v3252_v4 = vld [vmem:[%s7034_s2 + $0x8] sm:$0xf0] }
  0x45   : > { %1151 = vmatpush.bf16.msrb.mxu1 %v3355_v19  ;;  %1138 = vmatpush.bf16.msrb.mxu0 %v3291_v24  ;;  %v4186_v24 = vld [vmem:[%s7034_s2 + $0x174] sm:$0xf] }
  0x46   : > { %873 = vmatpush.bf16.msra.mxu2 %v3159_v25  ;;  %v3436_v25 = vld [vmem:[%s7034_s2 + $0x178] sm:$0xf0] }
  0x47   : > { %886 = vmatpush.bf16.msra.mxu3 %v3223_v36 }
  0x49   : > { %1152 = vmatpush.bf16.msrb.mxu1 %v3347_v28  ;;  %1139 = vmatpush.bf16.msrb.mxu0 %v3283_v40  ;;  %v3426_v28 = vld [vmem:[%s7034_s2 + $0x160] sm:$0xf]  ;;  %v4183_v40 = vld [vmem:[%s7034_s2 + $0x154] sm:$0xf0] }
  0x4a   : > { %874 = vmatpush.bf16.msra.mxu2 %v3151_v29  ;;  %v3439_v29 = vor.u32 %v4186_v24, %v3436_v25  ;;  %v3427_v37 = vor.u32 %v4185_v33, %v3426_v28  ;;  %v3419_v47 = vor.u32 %v4183_v40, %v3418_v39  ;;  %v3407_v28 = vor.u32 %v4178_v11, %v3404_v12  ;;  %v3276_v39 = vld [vmem:[%s7034_s2 + $0x38] sm:$0xf0]  ;;  %v4162_v40 = vld [vmem:[%s7034_s2 + $0xb4] sm:$0xf]  ;;  %v4249_v11 = vld [vmem:[%s7034_s2 + $0x364] sm:$0xf0] }
  0x4b   : > { %887 = vmatpush.bf16.msra.mxu3 %v3215_v48 }
  0x4d   : > { %1153 = vmatpush.bf16.msrb.mxu1 %v3339_v41  ;;  %1140 = vmatpush.bf16.msrb.mxu0 %v3275_v52  ;;  %v4154_v41 = vld [vmem:[%s7034_s2 + $0x74] sm:$0xf]  ;;  %v3410_v52 = vld [vmem:[%s7034_s2 + $0x140] sm:$0xf] }
  0x4e   : > { %875 = vmatpush.bf16.msra.mxu2 %v3143_v32  ;;  %v3311_v51 = vor.u32 %v4154_v41, %v3308_v42  ;;  %v3340_v42 = vld [vmem:[%s7034_s2 + $0xb8] sm:$0xf0] }
  0x4f   : > { %888 = vmatpush.bf16.msra.mxu3 %v3207_v60  ;;  %v3423_v60 = vor.u32 %v4182_v45, %v3420_v46  ;;  %v3387_v45 = vor.u32 %v4175_v35, %v3386_v34  ;;  %v4250_v35 = vld [vmem:[%s7034_s2 + $0x374] sm:$0xf] }
  0x51   : > { %1154 = vmatpush.bf16.msrb.mxu1 %v3331_v53  ;;  %1141 = vmatpush.bf16.msrb.mxu0 %v3267_v0  ;;  %v4181_v53 = vld [vmem:[%s7034_s2 + $0x144] sm:$0xf0]  ;;  %v3412_v0 = vld [vmem:[%s7034_s2 + $0x148] sm:$0xf0] }
  0x52   : > { %876 = vmatpush.bf16.msra.mxu2 %v3135_v44  ;;  %v3372_v44 = vld [vmem:[%s7034_s2 + $0xf8] sm:$0xf0] }
  0x53   : > { %889 = vmatpush.bf16.msra.mxu3 %v3199_v5  ;;  %v3367_v5 = vor.u32 %v4168_v59, %v3364_v62  ;;  %v3260_v62 = vld [vmem:[%s7034_s2 + $0x18] sm:$0xf0] }
  0x55   : > { %1155 = vmatpush.bf16.msrb.mxu1 %v3323_v1  ;;  %1142 = vmatpush.bf16.msrb.mxu0 %v3259_v9  ;;  %v3411_v1 = vor.u32 %v4181_v53, %v3410_v52  ;;  %v3415_v9 = vor.u32 %v4180_v63, %v3412_v0  ;;  %v4160_v52 = vld [vmem:[%s7034_s2 + $0xa4] sm:$0xf]  ;;  %v3383_v63 = vor.u32 %v4172_v57, %v3380_v58  ;;  %v4259_v57 = vld [vmem:[%s7034_s2 + $0x3b4] sm:$0xf0] }
  0x56   : > { %877 = vmatpush.bf16.msra.mxu2 %v3127_v56  ;;  %v3375_v56 = vor.u32 %v4170_v43, %v3372_v44  ;;  %v4174_v43 = vld [vmem:[%s7034_s2 + $0x114] sm:$0xf]  ;;  %v3388_v44 = vld [vmem:[%s7034_s2 + $0x118] sm:$0xf0] }
  0x57   : > { %890 = vmatpush.bf16.msra.mxu3 %v3191_v17  ;;  %v3391_v53 = vor.u32 %v4174_v43, %v3388_v44  ;;  %v3590_v43 = vld [vmem:[%s7034_s2 + $0x3c0] sm:$0xf]  ;;  %v4261_v44 = vld [vmem:[%s7034_s2 + $0x3c4] sm:$0xf0] }
  0x59   : > { %1156 = vmatpush.bf16.msrb.mxu1 %v3315_v10  ;;  %1143 = vmatpush.bf16.msrb.mxu0 %v3251_v20  ;;  %v3356_v10 = vld [vmem:[%s7034_s2 + $0xd8] sm:$0xf0]  ;;  %v3295_v20 = vor.u32 %v4150_v6, %v3292_v7 }
  0x5a   : > { %v3359_v25 = vor.u32 %v4166_v8, %v3356_v10  ;;  %v3440_v8 = vld [vmem:[%s7033_s1 + $0x2] sm:$0x1] }
  0x5b   : > { %v3542_v10 = vld [vmem:[%s7034_s2 + $0x360] sm:$0xf] }
  0x5c   : > { %v3543_v12 = vor.u32 %v4249_v11, %v3542_v10  ;;  %v3662_v10 = vld [vmem:[%s7034_s2 + $0x450] sm:$0xf]  ;;  %v4279_v11 = vld [vmem:[%s7034_s2 + $0x454] sm:$0xf0] }
  0x95   : > { %v4944_v19 = vpop.f32.mrf.mxu0  ;;  %v4946_v21 = vpop.f32.mrf.mxu1 }
  0x96   : > { %v5051_v17 = vpack.c.bf16 %v4946_v21, %v4946_v21  ;;  %v4148_v21 = vld [vmem:[%s7034_s2 + $0x44] sm:$0xf] }
  0x9d   : > { %v496_v26 = vpop.f32.mrf.mxu3  ;;  %v403_v31 = vpop.f32.mrf.mxu0 }
  0x9e   : > { %v526_v30 = vpack.c.bf16 %v496_v26, %v496_v26  ;;  %v416_v32 = vpop.f32.mrf.mxu1  ;;  %v4972_v36 = vpop.f32.mrf.mxu2  ;;  %v3284_v26 = vld [vmem:[%s7034_s2 + $0x48] sm:$0xf0] }
  0x9f   : > { %v3396_v31 = vld [vmem:[%s7034_s2 + $0x128] sm:$0xf0]  ;;  %v3395_v32 = vor.u32 %v4177_v23, %v3394_v22  ;;  %v3287_v33 = vor.u32 %v4148_v21, %v3284_v26  ;;  %v433_v0 = vpack.c.bf16 %v4972_v36, %v4972_v36  ;;  %v4140_v36 = vld [vmem:[%s7034_s2 + $0x4] sm:$0xf]  ;;  %v4267_v22 = vld [vmem:[%s7034_s2 + $0x3f4] sm:$0xf0] }
  0xa0   : > { %826 = vmatmul.bf16.vlgmr.msrb.gmra.mxu2 %v526_v30  ;;  %865 = vmatmul.bf16.vlgmr.msra.gmra.mxu1 %v526_v30  ;;  %v4176_v30 = vld [vmem:[%s7034_s2 + $0x124] sm:$0xf]  ;;  %v3255_v6 = vor.u32 %v4140_v36, %v3252_v4  ;;  %v3606_v26 = vld [vmem:[%s7034_s2 + $0x3e0] sm:$0xf]  ;;  %v3616_v4 = vld [vmem:[%s7034_s2 + $0x3f8] sm:$0xf0] }
  0xa1   : > { %1162 = vmatpush.bf16.msrb.mxu2 %v3435_v27  ;;  %1201 = vmatpush.bf16.msra.mxu1 %v3439_v29  ;;  %v4164_v27 = vld [vmem:[%s7034_s2 + $0xc4] sm:$0xf]  ;;  %v3348_v29 = vld [vmem:[%s7034_s2 + $0xc8] sm:$0xf0]  ;;  %v3399_v41 = vor.u32 %v4176_v30, %v3396_v31  ;;  %v4243_v30 = vld [vmem:[%s7034_s2 + $0x334] sm:$0xf0] }
  0xa5   : > { %1163 = vmatpush.bf16.msrb.mxu2 %v3427_v37  ;;  %v498_v48 = vpop.f32.mrf.mxu3  ;;  %1202 = vmatpush.bf16.msra.mxu1 %v3431_v38  ;;  %v509_v49 = vpop.f32.mrf.mxu0  ;;  %v3351_v37 = vor.u32 %v4164_v27, %v3348_v29  ;;  %v4146_v38 = vld [vmem:[%s7034_s2 + $0x34] sm:$0xf]  ;;  %v4265_v27 = vld [vmem:[%s7034_s2 + $0x3e4] sm:$0xf0]  ;;  %v3518_v29 = vld [vmem:[%s7034_s2 + $0x330] sm:$0xf] }
  0xa6   : > { %v522_v50 = vpop.f32.mrf.mxu1  ;;  %v527_v54 = vpack.c.bf16 %v509_v49, %v509_v49  ;;  %v429_v61 = vpop.f32.mrf.mxu2  ;;  %v3279_v46 = vor.u32 %v4146_v38, %v3276_v39  ;;  %v4173_v48 = vld [vmem:[%s7034_s2 + $0x104] sm:$0xf0]  ;;  %v3343_v49 = vor.u32 %v4162_v40, %v3340_v42  ;;  %v3519_v31 = vor.u32 %v4243_v30, %v3518_v29  ;;  %v3510_v39 = vld [vmem:[%s7034_s2 + $0x320] sm:$0xf]  ;;  %v4262_v30 = vld [vmem:[%s7034_s2 + $0x3d4] sm:$0xf] }
  0xa7   : > { %v5004_v55 = vpack.c.bf16 %v522_v50, %v522_v50  ;;  %v4144_v50 = vld [vmem:[%s7034_s2 + $0x24] sm:$0xf]  ;;  %v4142_v61 = vld [vmem:[%s7034_s2 + $0x14] sm:$0xf]  ;;  %v4241_v40 = vld [vmem:[%s7034_s2 + $0x324] sm:$0xf0] }
  0xa8   : > { %839 = vmatmul.bf16.vlgmr.msrb.gmra.mxu3 %v527_v54  ;;  %v4277_v29 = vld [vmem:[%s7034_s2 + $0x444] sm:$0xf0] }
  0xa9   : > { %1164 = vmatpush.bf16.msrb.mxu2 %v3419_v47  ;;  %852 = vmatmul.bf16.vlgmr.msra.gmra.mxu0 %v5004_v55  ;;  %v3378_v47 = vld [vmem:[%s7034_s2 + $0x100] sm:$0xf] }
  0xaa   : > { %1175 = vmatpush.bf16.msrb.mxu3 %v3311_v51  ;;  %1188 = vmatpush.bf16.msra.mxu0 %v3375_v56  ;;  %v3268_v51 = vld [vmem:[%s7034_s2 + $0x28] sm:$0xf0]  ;;  %v3379_v59 = vor.u32 %v4173_v48, %v3378_v47 }
  0xab   : > { %1203 = vmatpush.bf16.msra.mxu1 %v3423_v60  ;;  %v3332_v56 = vld [vmem:[%s7034_s2 + $0xa8] sm:$0xf0]  ;;  %v3271_v60 = vor.u32 %v4144_v50, %v3268_v51  ;;  %v4239_v50 = vld [vmem:[%s7034_s2 + $0x314] sm:$0xf0] }
  0xac   : > { %v3544_v47 = vld [vmem:[%s7034_s2 + $0x368] sm:$0xf0] }
  0xad   : > { %1165 = vmatpush.bf16.msrb.mxu2 %v3411_v1  ;;  %v511_v18 = vpop.f32.mrf.mxu0  ;;  %v3324_v1 = vld [vmem:[%s7034_s2 + $0x98] sm:$0xf0] }
  0xae   : > { %1176 = vmatpush.bf16.msrb.mxu3 %v3303_v2  ;;  %v524_v24 = vpop.f32.mrf.mxu1  ;;  %1189 = vmatpush.bf16.msra.mxu0 %v3367_v5  ;;  %v3263_v2 = vor.u32 %v4142_v61, %v3260_v62  ;;  %v4156_v5 = vld [vmem:[%s7034_s2 + $0x84] sm:$0xf]  ;;  %v3494_v62 = vld [vmem:[%s7034_s2 + $0x300] sm:$0xf] }
  0xaf   : > { %1204 = vmatpush.bf16.msra.mxu1 %v3415_v9  ;;  %v3550_v9 = vld [vmem:[%s7034_s2 + $0x370] sm:$0xf]  ;;  %v3526_v24 = vld [vmem:[%s7034_s2 + $0x340] sm:$0xf] }
  0xb0   : > { %878 = vmatmul.bf16.vlgmr.msra.gmra.mxu2 %v527_v54  ;;  %1157 = vmatmul.bf16.vlgmr.msrb.gmra.mxu1 %v5051_v17  ;;  %v431_v54 = vpack.c.bf16 %v4944_v19, %v4944_v19  ;;  %v3335_v19 = vor.u32 %v4160_v52, %v3332_v56  ;;  %v3678_v52 = vld [vmem:[%s7034_s2 + $0x470] sm:$0xf] }
  0xb1   : > { %1166 = vmatpush.bf16.msrb.mxu2 %v3403_v16  ;;  %v3534_v16 = vld [vmem:[%s7034_s2 + $0x350] sm:$0xf] }
  0xb2   : > { %1177 = vmatpush.bf16.msrb.mxu3 %v3295_v20  ;;  %1190 = vmatpush.bf16.msra.mxu0 %v3359_v25  ;;  %v3614_v20 = vld [vmem:[%s7034_s2 + $0x3f0] sm:$0xf]  ;;  %v4245_v25 = vld [vmem:[%s7034_s2 + $0x344] sm:$0xf0] }
  0xb3   : > { %1205 = vmatpush.bf16.msra.mxu1 %v3407_v28  ;;  %v3615_v23 = vor.u32 %v4267_v22, %v3614_v20  ;;  %v3527_v21 = vor.u32 %v4245_v25, %v3526_v24  ;;  %v3607_v28 = vor.u32 %v4265_v27, %v3606_v26  ;;  %v3582_v56 = vld [vmem:[%s7034_s2 + $0x3b0] sm:$0xf]  ;;  %v4255_v20 = vld [vmem:[%s7034_s2 + $0x394] sm:$0xf0]  ;;  %v4242_v24 = vld [vmem:[%s7034_s2 + $0x334] sm:$0xf] }
  0xb4   : > { %v3583_v58 = vor.u32 %v4259_v57, %v3582_v56  ;;  %v3520_v25 = vld [vmem:[%s7034_s2 + $0x338] sm:$0xf0]  ;;  %v4238_v56 = vld [vmem:[%s7034_s2 + $0x314] sm:$0xf] }
  0xb5   : > { %1167 = vmatpush.bf16.msrb.mxu2 %v3395_v32  ;;  %v3598_v32 = vld [vmem:[%s7034_s2 + $0x3d0] sm:$0xf]  ;;  %v3523_v26 = vor.u32 %v4242_v24, %v3520_v25  ;;  %v3504_v57 = vld [vmem:[%s7034_s2 + $0x318] sm:$0xf0] }
  0xb6   : > { %1178 = vmatpush.bf16.msrb.mxu3 %v3287_v33  ;;  %1191 = vmatpush.bf16.msra.mxu0 %v3351_v37  ;;  %v4263_v33 = vld [vmem:[%s7034_s2 + $0x3d4] sm:$0xf0]  ;;  %v3552_v37 = vld [vmem:[%s7034_s2 + $0x378] sm:$0xf0] }
  0xb7   : > { %1206 = vmatpush.bf16.msra.mxu1 %v3399_v41  ;;  %v3599_v34 = vor.u32 %v4263_v33, %v3598_v32  ;;  %v3555_v38 = vor.u32 %v4250_v35, %v3552_v37  ;;  %v3511_v41 = vor.u32 %v4241_v40, %v3510_v39  ;;  %v3558_v35 = vld [vmem:[%s7034_s2 + $0x380] sm:$0xf]  ;;  %v4253_v37 = vld [vmem:[%s7034_s2 + $0x384] sm:$0xf0]  ;;  %v4240_v40 = vld [vmem:[%s7034_s2 + $0x324] sm:$0xf] }
  0xb8   : > { %891 = vmatmul.bf16.vlgmr.msra.gmra.mxu3 %v5004_v55  ;;  %v4158_v55 = vld [vmem:[%s7034_s2 + $0x94] sm:$0xf]  ;;  %v3559_v39 = vor.u32 %v4253_v37, %v3558_v35 }
  0xb9   : > { %1168 = vmatpush.bf16.msrb.mxu2 %v3387_v45  ;;  %1144 = vmatmul.bf16.vlgmr.msrb.gmra.mxu0 %v431_v54  ;;  %v3327_v3 = vor.u32 %v4158_v55, %v3324_v1  ;;  %v3591_v45 = vor.u32 %v4261_v44, %v3590_v43  ;;  %v3670_v55 = vld [vmem:[%s7034_s2 + $0x460] sm:$0xf]  ;;  %v4281_v1 = vld [vmem:[%s7034_s2 + $0x464] sm:$0xf0]  ;;  %v4282_v43 = vld [vmem:[%s7034_s2 + $0x474] sm:$0xf] }
  0xba   : > { %1179 = vmatpush.bf16.msrb.mxu3 %v3279_v46  ;;  %1192 = vmatpush.bf16.msra.mxu0 %v3343_v49  ;;  %v4248_v46 = vld [vmem:[%s7034_s2 + $0x364] sm:$0xf]  ;;  %v3502_v49 = vld [vmem:[%s7034_s2 + $0x310] sm:$0xf]  ;;  %v3671_v36 = vor.u32 %v4281_v1, %v3670_v55  ;;  %v4273_v55 = vld [vmem:[%s7034_s2 + $0x424] sm:$0xf0] }
  0xbb   : > { %1207 = vmatpush.bf16.msra.mxu1 %v3391_v53  ;;  %v3547_v48 = vor.u32 %v4248_v46, %v3544_v47  ;;  %v3503_v51 = vor.u32 %v4239_v50, %v3502_v49  ;;  %v4283_v53 = vld [vmem:[%s7034_s2 + $0x474] sm:$0xf0]  ;;  %v3680_v47 = vld [vmem:[%s7034_s2 + $0x478] sm:$0xf0]  ;;  %v3646_v49 = vld [vmem:[%s7034_s2 + $0x430] sm:$0xf] }
  0xbc   : > { %v4275_v50 = vld [vmem:[%s7034_s2 + $0x434] sm:$0xf0]  ;;  %v4258_v1 = vld [vmem:[%s7034_s2 + $0x3b4] sm:$0xf] }
  0xbd   : > { %1169 = vmatpush.bf16.msrb.mxu2 %v3379_v59  ;;  %v4246_v59 = vld [vmem:[%s7034_s2 + $0x354] sm:$0xf] }
  0xbe   : > { %1180 = vmatpush.bf16.msrb.mxu3 %v3271_v60  ;;  %1193 = vmatpush.bf16.msra.mxu0 %v3335_v19  ;;  %v3536_v60 = vld [vmem:[%s7034_s2 + $0x358] sm:$0xf0] }
  0xbf   : > { %1208 = vmatpush.bf16.msra.mxu1 %v3383_v63  ;;  %v3539_v61 = vor.u32 %v4246_v59, %v3536_v60  ;;  %v4237_v63 = vld [vmem:[%s7034_s2 + $0x304] sm:$0xf0]  ;;  %v3507_v60 = vor.u32 %v4238_v56, %v3504_v57 }
  0xc0   : > { %1170 = vmatmul.bf16.vlgmr.msrb.gmra.mxu2 %v433_v0 }
  0xc1   : > { %1226 = vmatpush.bf16.msra.mxu2 %v4550_v13  ;;  %v3316_v13 = vld [vmem:[%s7034_s2 + $0x88] sm:$0xf0] }
  0xc2   : > { %1181 = vmatpush.bf16.msrb.mxu3 %v3263_v2  ;;  %1209 = vmatmul.bf16.vlgmr.msra.gmra.mxu1 %v433_v0  ;;  %v3319_v7 = vor.u32 %v4156_v5, %v3316_v13  ;;  %v3495_v0 = vor.u32 %v4237_v63, %v3494_v62  ;;  %v4266_v2 = vld [vmem:[%s7034_s2 + $0x3f4] sm:$0xf]  ;;  %v3574_v5 = vld [vmem:[%s7034_s2 + $0x3a0] sm:$0xf]  ;;  %v4257_v13 = vld [vmem:[%s7034_s2 + $0x3a4] sm:$0xf0] }
  0xc3   : > { %1194 = vmatpush.bf16.msra.mxu0 %v3327_v3 }
  0xc5   : > { %1563 = vmatpush.bf16.msrb.mxu2 %v3615_v23 }
  0xc6   : > { %1182 = vmatpush.bf16.msrb.mxu3 %v3255_v6  ;;  %v3619_v6 = vor.u32 %v4266_v2, %v3616_v4  ;;  %v4236_v4 = vld [vmem:[%s7034_s2 + $0x304] sm:$0xf] }
  0xc7   : > { %1195 = vmatpush.bf16.msra.mxu0 %v3319_v7  ;;  %v3575_v7 = vor.u32 %v4257_v13, %v3574_v5  ;;  %v3496_v5 = vld [vmem:[%s7034_s2 + $0x308] sm:$0xf0]  ;;  %v4278_v13 = vld [vmem:[%s7034_s2 + $0x454] sm:$0xf] }
  0xc9   : > { %1183 = vmatmul.bf16.vlgmr.msrb.gmra.mxu3 %v431_v54  ;;  %1564 = vmatpush.bf16.msrb.mxu2 %v3607_v28  ;;  %v3679_v54 = vor.u32 %v4283_v53, %v3678_v52  ;;  %v3654_v28 = vld [vmem:[%s7034_s2 + $0x440] sm:$0xf]  ;;  %v3647_v52 = vor.u32 %v4275_v50, %v3646_v49  ;;  %v3592_v53 = vld [vmem:[%s7034_s2 + $0x3c8] sm:$0xf0]  ;;  %v3632_v49 = vld [vmem:[%s7034_s2 + $0x418] sm:$0xf0] }
  0xca   : > { %1239 = vmatpush.bf16.msra.mxu3 %v4553_v14  ;;  %1196 = vmatmul.bf16.vlgmr.msra.gmra.mxu0 %v5051_v17  ;;  %v4251_v14 = vld [vmem:[%s7034_s2 + $0x374] sm:$0xf0]  ;;  %v3655_v33 = vor.u32 %v4277_v29, %v3654_v28 }
  0xcb   : > { %1252 = vmatpush.bf16.msrb.mxu0 %v4556_v15  ;;  %v3551_v15 = vor.u32 %v4251_v14, %v3550_v9  ;;  %v4247_v17 = vld [vmem:[%s7034_s2 + $0x354] sm:$0xf0]  ;;  %v3528_v9 = vld [vmem:[%s7034_s2 + $0x348] sm:$0xf0] }
  0xcc   : > { %v3535_v18 = vor.u32 %v4247_v17, %v3534_v16  ;;  %v3663_v16 = vor.u32 %v4279_v11, %v3662_v10  ;;  %v3608_v17 = vld [vmem:[%s7034_s2 + $0x3e8] sm:$0xf0] }
  0xcd   : > { %1550 = vmatpush.bf16.msrb.mxu1 %v3551_v15  ;;  %1565 = vmatpush.bf16.msrb.mxu2 %v3599_v34  ;;  %v3600_v34 = vld [vmem:[%s7034_s2 + $0x3d8] sm:$0xf0] }
  0xce   : > { %1576 = vmatpush.bf16.msrb.mxu3 %v3679_v54 }
  0xcf   : > { %1589 = vmatpush.bf16.msra.mxu0 %v3555_v38  ;;  %v3603_v38 = vor.u32 %v4262_v30, %v3600_v34  ;;  %v3568_v30 = vld [vmem:[%s7034_s2 + $0x398] sm:$0xf0] }
  0xd0   : > { %3441 = vmatmul.msk.bf16.vlgmr.msra.gmra.mxu2 %vm378_vm1, %v3440_v8 }
  0xd1   : > { %1551 = vmatpush.bf16.msrb.mxu1 %v3543_v12  ;;  %1566 = vmatpush.bf16.msrb.mxu2 %v3591_v45  ;;  %v4264_v12 = vld [vmem:[%s7034_s2 + $0x3e4] sm:$0xf] }
  0xd2   : > { %1577 = vmatpush.bf16.msrb.mxu3 %v3671_v36  ;;  %v3611_v22 = vor.u32 %v4264_v12, %v3608_v17  ;;  %v4256_v12 = vld [vmem:[%s7034_s2 + $0x3a4] sm:$0xf] }
  0xd3   : > { %1590 = vmatpush.bf16.msra.mxu0 %v3547_v48  ;;  %v3683_v48 = vor.u32 %v4282_v43, %v3680_v47  ;;  %v3640_v43 = vld [vmem:[%s7034_s2 + $0x428] sm:$0xf0] }
  0xd5   : > { %1552 = vmatpush.bf16.msrb.mxu1 %v3535_v18  ;;  %1567 = vmatpush.bf16.msrb.mxu2 %v3583_v58  ;;  %v3566_v18 = vld [vmem:[%s7034_s2 + $0x390] sm:$0xf]  ;;  %v4280_v58 = vld [vmem:[%s7034_s2 + $0x464] sm:$0xf] }
  0xd6   : > { %v3567_v23 = vor.u32 %v4255_v20, %v3566_v18  ;;  %1578 = vmatpush.bf16.msrb.mxu3 %v3663_v16  ;;  %v3576_v16 = vld [vmem:[%s7034_s2 + $0x3a8] sm:$0xf0]  ;;  %v4276_v20 = vld [vmem:[%s7034_s2 + $0x444] sm:$0xf] }
  0xd7   : > { %1591 = vmatpush.bf16.msra.mxu0 %v3539_v61  ;;  %v3579_v17 = vor.u32 %v4256_v12, %v3576_v16  ;;  %v5543_v16 = vld [vmem:[%s7036_s4 + $0x80] sm:$0xff] }
  0xd9   : > { %3442 = vmatmul.msk.bf16.vlgmr.msra.gmra.mxu3 %vm378_vm1, %v3440_v8  ;;  %1553 = vmatpush.bf16.msrb.mxu1 %v3527_v21 }
  0xda   : > { %3443 = vmatmul.msk.bf16.vlgmr.msrb.gmra.mxu0 %vm378_vm1, %v3440_v8  ;;  %v4244_v8 = vld [vmem:[%s7034_s2 + $0x344] sm:$0xf]  ;;  %1568 = vmatpush.bf16.msrb.mxu2 %v3575_v7  ;;  %v3499_v7 = vor.u32 %v4236_v4, %v3496_v5  ;;  %v5500_v4 = vld [vmem:[%s7036_s4 + $0xe8] sm:$0xff]  ;;  %v5505_v5 = vld [vmem:[%s7036_s4 + $0xb0] sm:$0xff] }
  0xdb   : > { %v3531_v15 = vor.u32 %v4244_v8, %v3528_v9  ;;  %1579 = vmatpush.bf16.msrb.mxu3 %v3655_v33  ;;  %v3664_v8 = vld [vmem:[%s7034_s2 + $0x458] sm:$0xf0]  ;;  %v3630_v9 = vld [vmem:[%s7034_s2 + $0x410] sm:$0xf] }
  0xdc   : > { %v3667_v10 = vor.u32 %v4278_v13, %v3664_v8  ;;  %v3648_v33 = vld [vmem:[%s7034_s2 + $0x438] sm:$0xf0]  ;;  %v5517_v8 = vld [vmem:[%s7036_s4 + $0xa0] sm:$0xff] }
  0xdd   : > { %1554 = vmatpush.bf16.msrb.mxu1 %v3519_v31  ;;  %1592 = vmatpush.bf16.msra.mxu0 %v3531_v15 }
  0xde   : > { %1569 = vmatpush.bf16.msrb.mxu2 %v3567_v23 }
  0xdf   : > { %1580 = vmatpush.bf16.msrb.mxu3 %v3647_v52 }
  0xe1   : > { %1555 = vmatpush.bf16.msrb.mxu1 %v3511_v41  ;;  %1593 = vmatpush.bf16.msra.mxu0 %v3523_v26  ;;  %v3512_v41 = vld [vmem:[%s7034_s2 + $0x328] sm:$0xf0]  ;;  %v4269_v26 = vld [vmem:[%s7034_s2 + $0x404] sm:$0xf0] }
  0xe2   : > { %v3515_v46 = vor.u32 %v4240_v40, %v3512_v41  ;;  %1570 = vmatpush.bf16.msrb.mxu2 %v3559_v39  ;;  %v3560_v39 = vld [vmem:[%s7034_s2 + $0x388] sm:$0xf0]  ;;  %v4272_v41 = vld [vmem:[%s7034_s2 + $0x424] sm:$0xf] }
  0xe5   : > { %1556 = vmatpush.bf16.msrb.mxu1 %v3503_v51  ;;  %v4260_v51 = vld [vmem:[%s7034_s2 + $0x3c4] sm:$0xf]  ;;  %1594 = vmatpush.bf16.msra.mxu0 %v3515_v46 }
  0xe6   : > { %1615 = vmatpush.bf16.msra.mxu2 %v3683_v48  ;;  %v3595_v54 = vor.u32 %v4260_v51, %v3592_v53  ;;  %v4270_v48 = vld [vmem:[%s7034_s2 + $0x414] sm:$0xf]  ;;  %v4268_v53 = vld [vmem:[%s7034_s2 + $0x404] sm:$0xf] }
  0xe7   : > { %v3635_v52 = vor.u32 %v4270_v48, %v3632_v49  ;;  %v5697_v48 = vld [vmem:[%s7036_s4 + $0x190] sm:$0xff]  ;;  %v5704_v49 = vld [vmem:[%s7036_s4 + $0x28] sm:$0xff] }
  0xe9   : > { %1557 = vmatpush.bf16.msrb.mxu1 %v3495_v0  ;;  %v3638_v0 = vld [vmem:[%s7034_s2 + $0x420] sm:$0xf]  ;;  %1595 = vmatpush.bf16.msra.mxu0 %v3507_v60 }
  0xed   : > { %1602 = vmatpush.bf16.msra.mxu1 %v3619_v6  ;;  %1596 = vmatpush.bf16.msra.mxu0 %v3499_v7  ;;  %v5512_v7 = vld [vmem:[%s7036_s4 + $0xd8] sm:$0xff] }
  0xf1   : > { %1603 = vmatpush.bf16.msra.mxu1 %v3611_v22  ;;  %v3656_v22 = vld [vmem:[%s7034_s2 + $0x448] sm:$0xf0] }
  0xf2   : > { %v3659_v24 = vor.u32 %v4276_v20, %v3656_v22  ;;  %v5559_v22 = vld [vmem:[%s7036_s4 + $0x98] sm:$0xff] }
  0xf5   : > { %1604 = vmatpush.bf16.msra.mxu1 %v3603_v38  ;;  %v4252_v38 = vld [vmem:[%s7034_s2 + $0x384] sm:$0xf] }
  0xf6   : > { %v3563_v40 = vor.u32 %v4252_v38, %v3560_v39  ;;  %v5647_v38 = vld [vmem:[%s7036_s4 + $0x1b0] sm:$0xff]  ;;  %v5654_v39 = vld [vmem:[%s7036_s4 + $0x48] sm:$0xff] }
  0xf9   : > { %1605 = vmatpush.bf16.msra.mxu1 %v3595_v54  ;;  %v3624_v54 = vld [vmem:[%s7034_s2 + $0x408] sm:$0xf0] }
  0xfa   : > { %v3627_v56 = vor.u32 %v4268_v53, %v3624_v54  ;;  %v5726_v53 = vld [vmem:[%s7036_s4 + $0x18] sm:$0xff]  ;;  %v5731_v54 = vld [vmem:[%s7036_s4 + $0x188] sm:$0xff] }
 0x11d   : > { %v5225_v42 = vpop.f32.mrf.mxu1 }
 0x123   : > { %v827_v19 = vpop.f32.mrf.mxu2 }
 0x125   : > { %v868_v3 = vpop.f32.mrf.mxu1 }
 0x126   : > { %v853_v14 = vpop.f32.mrf.mxu0  ;;  %v3639_v3 = vor.u32 %v4273_v55, %v3638_v0 }
 0x128   : > { %1581 = vmatpush.bf16.msrb.mxu3 %v3639_v3  ;;  %v5483_v3 = vld [vmem:[%s7036_s4 + $0xf8] sm:$0xff] }
 0x12b   : > { %v829_v21 = vpop.f32.mrf.mxu2  ;;  %v840_v27 = vpop.f32.mrf.mxu3 }
 0x12c   : > { %v841_v31 = vadd.f32 %v840_v27, %v827_v19  ;;  %v3672_v19 = vld [vmem:[%s7034_s2 + $0x468] sm:$0xf0]  ;;  %v3622_v21 = vld [vmem:[%s7034_s2 + $0x400] sm:$0xf]  ;;  %v4254_v27 = vld [vmem:[%s7034_s2 + $0x394] sm:$0xf] }
 0x12d   : > { %v5326_v32 = vpop.f32.mrf.mxu1  ;;  %v3675_v63 = vor.u32 %v4280_v58, %v3672_v19  ;;  %v3623_v29 = vor.u32 %v4269_v26, %v3622_v21  ;;  %v5579_v21 = vld [vmem:[%s7036_s4 + $0x1e0] sm:$0xff]  ;;  %v5584_v26 = vld [vmem:[%s7036_s4 + $0x78] sm:$0xff] }
 0x12e   : > { %v855_v44 = vpop.f32.mrf.mxu0  ;;  %v854_v45 = vadd.f32 %v853_v14, %v841_v31  ;;  %v4271_v14 = vld [vmem:[%s7034_s2 + $0x414] sm:$0xf0]  ;;  %v3571_v31 = vor.u32 %v4254_v27, %v3568_v30  ;;  %v5591_v27 = vld [vmem:[%s7036_s4 + $0x1e8] sm:$0xff] }
 0x12f   : > { %1616 = vmatpush.bf16.msra.mxu2 %v3675_v63  ;;  %v3631_v11 = vor.u32 %v4271_v14, %v3630_v9  ;;  %v5475_v63 = vld [vmem:[%s7036_s4 + $0xd0] sm:$0xff]  ;;  %v5524_v9 = vld [vmem:[%s7036_s4 + $0xc8] sm:$0xff] }
 0x130   : > { %v5529_v14 = vld [vmem:[%s7036_s4 + $0x90] sm:$0xff]  ;;  %v5608_v30 = vld [vmem:[%s7036_s4 + $0x68] sm:$0xff] }
 0x131   : > { %1582 = vmatpush.bf16.msrb.mxu3 %v3631_v11  ;;  %v5536_v11 = vld [vmem:[%s7036_s4 + $0xb8] sm:$0xff] }
 0x133   : > { %v879_v59 = vpop.f32.mrf.mxu2  ;;  %v842_v62 = vpop.f32.mrf.mxu3  ;;  %1617 = vmatpush.bf16.msra.mxu2 %v3667_v10 }
 0x134   : > { %v880_v61 = vadd.f32 %v879_v59, %v5225_v42  ;;  %v3584_v42 = vld [vmem:[%s7034_s2 + $0x3b8] sm:$0xf0]  ;;  %v5469_v62 = vld [vmem:[%s7036_s4 + $0xe0] sm:$0xff] }
 0x135   : > { %v1160_v2 = vpop.f32.mrf.mxu1  ;;  %v3587_v36 = vor.u32 %v4258_v1, %v3584_v42  ;;  %1583 = vmatpush.bf16.msrb.mxu3 %v3623_v29  ;;  %v5489_v42 = vld [vmem:[%s7036_s4 + $0xc0] sm:$0xff]  ;;  %v5601_v29 = vld [vmem:[%s7036_s4 + $0x1d0] sm:$0xff] }
 0x136   : > { %v1145_v6 = vpop.f32.mrf.mxu0 }
 0x137   : > { %v1146_v15 = vadd.f32 %v1145_v6, %v854_v45  ;;  %1606 = vmatpush.bf16.msra.mxu1 %v3587_v36  ;;  %1618 = vmatpush.bf16.msra.mxu2 %v3659_v24  ;;  %v3643_v45 = vor.u32 %v4272_v41, %v3640_v43  ;;  %v5494_v36 = vld [vmem:[%s7036_s4 + $0x1f0] sm:$0xff]  ;;  %v5675_v43 = vld [vmem:[%s7036_s4 + $0x1a0] sm:$0xff] }
 0x138   : > { %1689 = vmatpush.msrb.mxu0 %v5494_v36  ;;  %v5670_v41 = vld [vmem:[%s7036_s4 + $0x30] sm:$0xff] }
 0x139   : > { %v1159_v18 = vadd.f32 %v5326_v32, %v1146_v15  ;;  %v4274_v32 = vld [vmem:[%s7034_s2 + $0x434] sm:$0xf] }
 0x13a   : > { %v3651_v37 = vor.u32 %v4274_v32, %v3648_v33  ;;  %1690 = vmatpush.msrb.mxu0 %v5579_v21  ;;  %v5618_v32 = vld [vmem:[%s7036_s4 + $0x50] sm:$0xff]  ;;  %v5625_v33 = vld [vmem:[%s7036_s4 + $0x1c0] sm:$0xff] }
 0x13b   : > { %v881_v23 = vpop.f32.mrf.mxu2  ;;  %v892_v25 = vpop.f32.mrf.mxu3  ;;  %1607 = vmatpush.bf16.msra.mxu1 %v3579_v17  ;;  %v5548_v17 = vld [vmem:[%s7036_s4 + $0x1f8] sm:$0xff] }
 0x13c   : > { %v893_v28 = vadd.f32 %v892_v25, %v880_v61  ;;  %1619 = vmatpush.bf16.msra.mxu2 %v3651_v37  ;;  %v5464_v61 = vld [vmem:[%s7036_s4 + $0xf0] sm:$0xff]  ;;  %v5567_v23 = vld [vmem:[%s7036_s4 + $0x88] sm:$0xff]  ;;  %1691 = vmatpush.msrb.mxu0 %v5601_v29  ;;  %v5642_v37 = vld [vmem:[%s7036_s4 + $0x40] sm:$0xff] }
 0x13d   : > { %1669 = vmatpush.msra.mxu3 %v5464_v61  ;;  %v5574_v25 = vld [vmem:[%s7036_s4 + $0x70] sm:$0xff] }
 0x13e   : > { %v1147_v34 = vpop.f32.mrf.mxu0  ;;  %1692 = vmatpush.msrb.mxu0 %v5625_v33 }
 0x13f   : > { %v1210_v35 = vpop.f32.mrf.mxu1  ;;  %1608 = vmatpush.bf16.msra.mxu1 %v3571_v31  ;;  %1670 = vmatpush.msra.mxu3 %v5469_v62  ;;  %v5613_v31 = vld [vmem:[%s7036_s4 + $0x1d8] sm:$0xff] }
 0x140   : > { %1620 = vmatpush.bf16.msra.mxu2 %v3643_v45  ;;  %v5630_v34 = vld [vmem:[%s7036_s4 + $0x58] sm:$0xff]  ;;  %1693 = vmatpush.msrb.mxu0 %v5647_v38  ;;  %v5687_v45 = vld [vmem:[%s7036_s4 + $0x1a8] sm:$0xff] }
 0x141   : > { %1671 = vmatpush.msra.mxu3 %v5475_v63 }
 0x142   : > { %1694 = vmatpush.msrb.mxu0 %v5675_v43 }
 0x143   : > { %v1171_v44 = vpop.f32.mrf.mxu2  ;;  %v894_v47 = vpop.f32.mrf.mxu3  ;;  %1609 = vmatpush.bf16.msra.mxu1 %v3563_v40  ;;  %1672 = vmatpush.msra.mxu3 %v5489_v42  ;;  %v5659_v40 = vld [vmem:[%s7036_s4 + $0x1b8] sm:$0xff] }
 0x144   : > { %v5447_v46 = vadd.f32 %v1171_v44, %v1159_v18  ;;  %1621 = vmatpush.bf16.msra.mxu2 %v3635_v52  ;;  %v5553_v18 = vld [vmem:[%s7036_s4 + $0xa8] sm:$0xff]  ;;  %v5680_v44 = vld [vmem:[%s7036_s4 + $0x38] sm:$0xff]  ;;  %v5692_v47 = vld [vmem:[%s7036_s4 + $0x20] sm:$0xff]  ;;  %1695 = vmatpush.msrb.mxu0 %v5697_v48 }
 0x145   : > { %1673 = vmatpush.msra.mxu3 %v5505_v5  ;;  %v5721_v52 = vld [vmem:[%s7036_s4 + $0x180] sm:$0xff] }
 0x146   : > { %1696 = vmatpush.msrb.mxu0 %v5721_v52 }
 0x147   : > { %v1197_v50 = vpop.f32.mrf.mxu0  ;;  %v1212_v51 = vpop.f32.mrf.mxu1  ;;  %1674 = vmatpush.msra.mxu3 %v5517_v8 }
 0x148   : > { %1622 = vmatpush.bf16.msra.mxu2 %v3627_v56  ;;  %v5714_v51 = vld [vmem:[%s7036_s4 + $0x10] sm:$0xff]  ;;  %v5738_v56 = vld [vmem:[%s7036_s4] sm:$0xff] }
 0x149   : > { %1675 = vmatpush.msra.mxu3 %v5529_v14 }
 0x14b   : > { %v1173_v57 = vpop.f32.mrf.mxu2  ;;  %1676 = vmatpush.msra.mxu3 %v5543_v16 }
 0x14c   : > { %v1184_v58 = vpop.f32.mrf.mxu3  ;;  %v5743_v57 = vld [vmem:[%s7036_s4 + $0x170] sm:$0xff] }
 0x14d   : > { %v1185_v59 = vadd.f32 %v1184_v58, %v893_v28  ;;  %1677 = vmatpush.msra.mxu3 %v5574_v25  ;;  %v5596_v28 = vld [vmem:[%s7036_s4 + $0x60] sm:$0xff]  ;;  %v5750_v58 = vld [vmem:[%s7036_s4 + $0x8] sm:$0xff]  ;;  %1697 = vmatpush.msrb.mxu0 %v5743_v57 }
 0x14f   : > { %v1198_v60 = vadd.f32 %v1197_v50, %v1185_v59  ;;  %v1199_v19 = vpop.f32.mrf.mxu0  ;;  %1678 = vmatpush.msra.mxu3 %v5596_v28  ;;  %v5709_v50 = vld [vmem:[%s7036_s4 + $0x198] sm:$0xff] }
 0x150   : > { %v5755_v59 = vld [vmem:[%s7036_s4 + $0x178] sm:$0xff]  ;;  %v5771_v19 = vld [vmem:[%s7036_s4 + $0x168] sm:$0xff] }
 0x151   : > { %v5477_v0 = vadd.f32 %v1210_v35, %v1198_v60  ;;  %v5635_v35 = vld [vmem:[%s7036_s4 + $0x1c8] sm:$0xff]  ;;  %1679 = vmatpush.msra.mxu3 %v5618_v32  ;;  %v5766_v60 = vld [vmem:[%s7036_s4 + $0x160] sm:$0xff] }
 0x152   : > { %1698 = vmatpush.msrb.mxu0 %v5766_v60 }
 0x153   : > { %v1228_v55 = vpop.f32.mrf.mxu2  ;;  %1680 = vmatpush.msra.mxu3 %v5642_v37 }
 0x154   : > { %v1258_v1 = vpack.c.bf16 %v1228_v55, %v1228_v55  ;;  %v1186_v2 = vpop.f32.mrf.mxu3  ;;  %v5780_v55 = vld [vmem:[%s7036_s4 + $0x150] sm:$0xff] }
 0x155   : > { %1681 = vmatpush.msra.mxu3 %v5670_v41  ;;  %1699 = vmatpush.msrb.mxu0 %v5780_v55  ;;  %v5799_v2 = vld [vmem:[%s7036_s4 + $0x148] sm:$0xff] }
 0x156   : > { %1558 = vmatmul.bf16.vlgmr.msrb.gmra.mxu1 %v1258_v1  ;;  %1597 = vmatmul.bf16.vlgmr.msra.gmra.mxu0 %v1258_v1  ;;  %v5785_v1 = vld [vmem:[%s7036_s4 + $0x158] sm:$0xff] }
 0x157   : > { %v1254_v13 = vpop.f32.mrf.mxu0  ;;  %1709 = vmatpush.msrb.mxu1 %v5483_v3  ;;  %1682 = vmatpush.msra.mxu3 %v5692_v47 }
 0x158   : > { %v1260_v6 = vpack.c.bf16 %v1254_v13, %v1254_v13  ;;  %v5839_v13 = vld [vmem:[%s7036_s4 + $0x118] sm:$0xff] }
 0x159   : > { %1710 = vmatpush.msrb.mxu1 %v5500_v4  ;;  %1683 = vmatpush.msra.mxu3 %v5714_v51 }
 0x15a   : > { %1584 = vmatmul.bf16.vlgmr.msrb.gmra.mxu3 %v1260_v6 }
 0x15b   : > { %v1230_v15 = vpop.f32.mrf.mxu2  ;;  %1711 = vmatpush.msrb.mxu1 %v5512_v7  ;;  %1684 = vmatpush.msra.mxu3 %v5738_v56 }
 0x15c   : > { %v1241_v10 = vpop.f32.mrf.mxu3 }
 0x15d   : > { %v1259_v12 = vpack.c.bf16 %v1241_v10, %v1241_v10  ;;  %1712 = vmatpush.msrb.mxu1 %v5524_v9  ;;  %1751 = vmatpush.msrb.mxu3 %v5464_v61  ;;  %v5794_v61 = vld [vmem:[%s7036_s4 + $0x140] sm:$0xff] }
 0x15e   : > { %1700 = vmatpush.msrb.mxu0 %v5794_v61  ;;  %v1630_v10 = vld [vmem:[%s7035_s3] sm:$0x3] }
 0x15f   : > { %1571 = vmatmul.bf16.vlgmr.msrb.gmra.mxu2 %v1259_v12  ;;  %v1256_v20 = vpop.f32.mrf.mxu0  ;;  %1713 = vmatpush.msrb.mxu1 %v5536_v11 }
 0x160   : > { %1729 = vmatpush.msrb.mxu2 %v5548_v17  ;;  %1752 = vmatpush.msrb.mxu3 %v5469_v62  ;;  %v5808_v62 = vld [vmem:[%s7036_s4 + $0x130] sm:$0xff] }
 0x161   : > { %1714 = vmatpush.msrb.mxu1 %v5553_v18  ;;  %1701 = vmatpush.msrb.mxu0 %v5808_v62 }
 0x162   : > { %1730 = vmatpush.msrb.mxu2 %v5591_v27  ;;  %1753 = vmatpush.msrb.mxu3 %v5475_v63  ;;  %v5822_v63 = vld [vmem:[%s7036_s4 + $0x120] sm:$0xff] }
 0x163   : > { %1715 = vmatpush.msrb.mxu1 %v5559_v22  ;;  %1702 = vmatpush.msrb.mxu0 %v5822_v63 }
 0x164   : > { %v1243_v24 = vpop.f32.mrf.mxu3  ;;  %1731 = vmatpush.msrb.mxu2 %v5613_v31  ;;  %1754 = vmatpush.msrb.mxu3 %v5489_v42  ;;  %v5834_v42 = vld [vmem:[%s7036_s4 + $0x110] sm:$0xff] }
 0x165   : > { %1716 = vmatpush.msrb.mxu1 %v5567_v23  ;;  %1703 = vmatpush.msrb.mxu0 %v5834_v42 }
 0x166   : > { %1610 = vmatmul.bf16.vlgmr.msra.gmra.mxu1 %v1259_v12  ;;  %1732 = vmatpush.msrb.mxu2 %v5635_v35 }
 0x167   : > { %1717 = vmatpush.msrb.mxu1 %v5584_v26  ;;  %1755 = vmatpush.msrb.mxu3 %v5505_v5  ;;  %v5848_v5 = vld [vmem:[%s7036_s4 + $0x100] sm:$0xff] }
 0x168   : > { %1733 = vmatpush.msrb.mxu2 %v5659_v40  ;;  %1704 = vmatpush.msrb.mxu0 %v5848_v5 }
 0x169   : > { %1718 = vmatpush.msrb.mxu1 %v5608_v30  ;;  %1756 = vmatpush.msrb.mxu3 %v5517_v8 }
 0x16a   : > { %1734 = vmatpush.msrb.mxu2 %v5687_v45  ;;  %1771 = vmatpush.msra.mxu0 %v5494_v36 }
 0x16b   : > { %1719 = vmatpush.msrb.mxu1 %v5630_v34  ;;  %1757 = vmatpush.msrb.mxu3 %v5529_v14 }
 0x16c   : > { %1735 = vmatpush.msrb.mxu2 %v5709_v50  ;;  %1772 = vmatpush.msra.mxu0 %v5579_v21 }
 0x16d   : > { %1720 = vmatpush.msrb.mxu1 %v5654_v39  ;;  %1758 = vmatpush.msrb.mxu3 %v5543_v16 }
 0x16e   : > { %1736 = vmatpush.msrb.mxu2 %v5731_v54  ;;  %1773 = vmatpush.msra.mxu0 %v5601_v29 }
 0x16f   : > { %1623 = vmatmul.bf16.vlgmr.msra.gmra.mxu2 %v1260_v6  ;;  %1721 = vmatpush.msrb.mxu1 %v5680_v44  ;;  %v5853_v6 = vld [vmem:[%s7036_s4 + $0x108] sm:$0xff] }
 0x170   : > { %1737 = vmatpush.msrb.mxu2 %v5755_v59  ;;  %1759 = vmatpush.msrb.mxu3 %v5574_v25 }
 0x171   : > { %1722 = vmatpush.msrb.mxu1 %v5704_v49  ;;  %1774 = vmatpush.msra.mxu0 %v5625_v33 }
 0x172   : > { %1738 = vmatpush.msrb.mxu2 %v5771_v19  ;;  %1760 = vmatpush.msrb.mxu3 %v5596_v28 }
 0x173   : > { %1723 = vmatpush.msrb.mxu1 %v5726_v53  ;;  %1775 = vmatpush.msra.mxu0 %v5647_v38 }
 0x174   : > { %1739 = vmatpush.msrb.mxu2 %v5785_v1  ;;  %1761 = vmatpush.msrb.mxu3 %v5618_v32 }
 0x175   : > { %1724 = vmatpush.msrb.mxu1 %v5750_v58  ;;  %1776 = vmatpush.msra.mxu0 %v5675_v43 }
 0x176   : > { %1740 = vmatpush.msrb.mxu2 %v5799_v2  ;;  %1762 = vmatpush.msrb.mxu3 %v5642_v37  ;;  %v1633_v37 = vperm.slane %v1630_v10, 1 }
 0x177   : > { %1791 = vmatpush.msra.mxu1 %v5483_v3  ;;  %v5813_v3 = vld [vmem:[%s7036_s4 + $0x138] sm:$0xff]  ;;  %1777 = vmatpush.msra.mxu0 %v5697_v48 }
 0x178   : > { %1741 = vmatpush.msrb.mxu2 %v5813_v3  ;;  %1763 = vmatpush.msrb.mxu3 %v5670_v41 }
 0x179   : > { %1792 = vmatpush.msra.mxu1 %v5500_v4  ;;  %v5827_v4 = vld [vmem:[%s7036_s4 + $0x128] sm:$0xff]  ;;  %1778 = vmatpush.msra.mxu0 %v5721_v52 }
 0x17a   : > { %1742 = vmatpush.msrb.mxu2 %v5827_v4  ;;  %1764 = vmatpush.msrb.mxu3 %v5692_v47 }
 0x17b   : > { %1793 = vmatpush.msra.mxu1 %v5512_v7  ;;  %1779 = vmatpush.msra.mxu0 %v5743_v57 }
 0x17c   : > { %1743 = vmatpush.msrb.mxu2 %v5839_v13  ;;  %1765 = vmatpush.msrb.mxu3 %v5714_v51 }
 0x17d   : > { %1794 = vmatpush.msra.mxu1 %v5524_v9  ;;  %1780 = vmatpush.msra.mxu0 %v5766_v60 }
 0x17e   : > { %1744 = vmatpush.msrb.mxu2 %v5853_v6  ;;  %1766 = vmatpush.msrb.mxu3 %v5738_v56 }
 0x17f   : > { %1795 = vmatpush.msra.mxu1 %v5536_v11  ;;  %1781 = vmatpush.msra.mxu0 %v5780_v55 }
 0x180   : > { %1811 = vmatpush.msra.mxu2 %v5548_v17  ;;  %v1632_v17 = vperm.slane %v1630_v10, 0 }
 0x181   : > { %1796 = vmatpush.msra.mxu1 %v5553_v18  ;;  %1782 = vmatpush.msra.mxu0 %v5794_v61 }
 0x182   : > { %1812 = vmatpush.msra.mxu2 %v5591_v27 }
 0x183   : > { %1797 = vmatpush.msra.mxu1 %v5559_v22  ;;  %1783 = vmatpush.msra.mxu0 %v5808_v62 }
 0x184   : > { %1813 = vmatpush.msra.mxu2 %v5613_v31 }
 0x185   : > { %1798 = vmatpush.msra.mxu1 %v5567_v23  ;;  %1784 = vmatpush.msra.mxu0 %v5822_v63 }
 0x186   : > { %1814 = vmatpush.msra.mxu2 %v5635_v35 }
 0x187   : > { %1799 = vmatpush.msra.mxu1 %v5584_v26  ;;  %1785 = vmatpush.msra.mxu0 %v5834_v42 }
 0x188   : > { %1815 = vmatpush.msra.mxu2 %v5659_v40 }
 0x189   : > { %1800 = vmatpush.msra.mxu1 %v5608_v30  ;;  %1786 = vmatpush.msra.mxu0 %v5848_v5 }
 0x18a   : > { %1816 = vmatpush.msra.mxu2 %v5687_v45 }
 0x18b   : > { %1801 = vmatpush.msra.mxu1 %v5630_v34 }
 0x18c   : > { %1817 = vmatpush.msra.mxu2 %v5709_v50 }
 0x18d   : > { %1802 = vmatpush.msra.mxu1 %v5654_v39 }
 0x18e   : > { %1818 = vmatpush.msra.mxu2 %v5731_v54 }
 0x18f   : > { %1803 = vmatpush.msra.mxu1 %v5680_v44 }
 0x190   : > { %1819 = vmatpush.msra.mxu2 %v5755_v59 }
 0x191   : > { %1804 = vmatpush.msra.mxu1 %v5704_v49 }
 0x192   : > { %1820 = vmatpush.msra.mxu2 %v5771_v19 }
 0x193   : > { %1805 = vmatpush.msra.mxu1 %v5726_v53 }
 0x194   : > { %1821 = vmatpush.msra.mxu2 %v5785_v1 }
 0x195   : > { %1806 = vmatpush.msra.mxu1 %v5750_v58 }
 0x196   : > { %1822 = vmatpush.msra.mxu2 %v5799_v2 }
 0x198   : > { %1823 = vmatpush.msra.mxu2 %v5813_v3 }
 0x19a   : > { %1824 = vmatpush.msra.mxu2 %v5827_v4 }
 0x19c   : > { %1825 = vmatpush.msra.mxu2 %v5839_v13 }
 0x19e   : > { %1826 = vmatpush.msra.mxu2 %v5853_v6 }
 0x1d3   : > { %v1559_v7 = vpop.f32.mrf.mxu1  ;;  %v5865_v8 = vpop.f32.mrf.mxu0 }
 0x1db   : > { %v1561_v36 = vpop.f32.mrf.mxu1  ;;  %v1600_v9 = vpop.f32.mrf.mxu0 }
 0x1dd   : > { %v1585_v14 = vpop.f32.mrf.mxu3 }
 0x1e2   : > { %v1572_v15 = vpop.f32.mrf.mxu2 }
 0x1e3   : > { %v1573_v11 = vadd.f32 %v1572_v15, %v1559_v7  ;;  %v1611_v12 = vpop.f32.mrf.mxu1 }
 0x1e4   : > { %v1612_v31 = vadd.f32 %v1611_v12, %v5865_v8 }
 0x1e5   : > { %v1586_v16 = vadd.f32 %v1585_v14, %v1573_v11  ;;  %v1587_v18 = vpop.f32.mrf.mxu3 }
 0x1e7   : > { %v1628_v20 = vadd.f32 %v1586_v16, %v5447_v46 }
 0x1e9   : > { %v5909_v22 = vadd.f32 %v1632_v17, %v1628_v20 }
 0x1ea   : > { %v1574_v23 = vpop.f32.mrf.mxu2 }
 0x1eb   : > { %7044 = vst [vmem:[#allocation2_spill] sm:$0xff] %v5909_v22  ;;  %v1653_v24 = vmul.f32 %v5909_v22, %v5909_v22  ;;  %v1613_v25 = vpop.f32.mrf.mxu1  ;;  %v1639_v21 = vsel %vm1638_vm2, %v5909_v22, 0.0 }
 0x1ec   : > { %v1640_v46 = vrot.slane %v1639_v21, 4 }
 0x1ed   : > { %v1655_v26 = vsel %vm1638_vm2, %v1653_v24, 0.0 }
 0x1ee   : > { %v1641_v27 = vadd.f32 %v1640_v46, %v1639_v21  ;;  %v1656_v28 = vrot.slane %v1655_v26, 4 }
 0x1f0   : > { %v1642_v29 = vrot.slane %v1641_v27, 2  ;;  %v1657_v30 = vadd.f32 %v1656_v28, %v1655_v26 }
 0x1f2   : > { %v1624_v32 = vpop.f32.mrf.mxu2  ;;  %v1643_v33 = vadd.f32 %v1642_v29, %v1641_v27  ;;  %v1658_v34 = vrot.slane %v1657_v30, 2 }
 0x1f3   : > { %v1625_v35 = vadd.f32 %v1624_v32, %v1612_v31  ;;  %v4330_v31 = vld [vmem:[%s7038_s6 + $0x74] sm:$0xf]  ;;  %v3778_v32 = vld [vmem:[%s7038_s6 + $0x78] sm:$0xf0] }
 0x1f4   : > { %v1644_v38 = vrot.slane %v1643_v33, 1  ;;  %v1659_v41 = vadd.f32 %v1658_v34, %v1657_v30  ;;  %v3781_v34 = vor.u32 %v4330_v31, %v3778_v32  ;;  %v4338_v31 = vld [vmem:[%s7038_s6 + $0xb4] sm:$0xf]  ;;  %v3810_v32 = vld [vmem:[%s7038_s6 + $0xb8] sm:$0xf0] }
 0x1f5   : > { %v1629_v39 = vadd.f32 %v1625_v35, %v5477_v0  ;;  %v3842_v35 = vld [vmem:[%s7038_s6 + $0xf8] sm:$0xf0] }
 0x1f6   : > { %v1645_v40 = vadd.f32 %v1644_v38, %v1643_v33  ;;  %v1660_v48 = vrot.slane %v1659_v41, 1  ;;  %v4346_v33 = vld [vmem:[%s7038_s6 + $0xf4] sm:$0xf] }
 0x1f7   : > { %v5926_v43 = vadd.f32 %v1633_v37, %v1629_v39  ;;  %v3845_v39 = vor.u32 %v4346_v33, %v3842_v35  ;;  %v3752_v33 = vld [vmem:[%s7038_s6 + $0x40] sm:$0xf]  ;;  %v3813_v35 = vor.u32 %v4338_v31, %v3810_v32  ;;  %v4317_v31 = vld [vmem:[%s7038_s6 + $0x4] sm:$0xf0] }
 0x1f8   : > { %1685 = vmatmul.f32.vlgmr.msra.gmra.mxu3 %v1645_v40  ;;  %1725 = vmatmul.f32.vlgmr.msrb.gmra.mxu1 %v1645_v40  ;;  %v1661_v0 = vadd.f32 %v1660_v48, %v1659_v41 }
 0x1f9   : > { %7045 = vst [vmem:[#allocation3_spill] sm:$0xff] %v5926_v43  ;;  %v1654_v44 = vmul.f32 %v5926_v43, %v5926_v43  ;;  %v1646_v45 = vsel %vm1638_vm2, %v5926_v43, 0.0  ;;  %2168 = vmatpush.bf16.msrb.mxu1 %v3781_v34  ;;  %v4325_v34 = vld [vmem:[%s7038_s6 + $0x44] sm:$0xf0] }
 0x1fa   : > { %v1626_v47 = vpop.f32.mrf.mxu2  ;;  %v1647_v49 = vrot.slane %v1646_v45, 4 }
 0x1fb   : > { %v1662_v50 = vsel %vm1638_vm2, %v1654_v44, 0.0  ;;  %v3770_v47 = vld [vmem:[%s7038_s6 + $0x68] sm:$0xf0] }
 0x1fc   : > { %v1648_v51 = vadd.f32 %v1647_v49, %v1646_v45  ;;  %v1663_v52 = vrot.slane %v1662_v50, 4  ;;  %v4328_v45 = vld [vmem:[%s7038_s6 + $0x64] sm:$0xf] }
 0x1fe   : > { %v1649_v53 = vrot.slane %v1648_v51, 2  ;;  %v1664_v54 = vadd.f32 %v1663_v52, %v1662_v50  ;;  %v3773_v50 = vor.u32 %v4328_v45, %v3770_v47  ;;  %v3834_v52 = vld [vmem:[%s7038_s6 + $0xe8] sm:$0xf0]  ;;  %v3753_v45 = vor.u32 %v4325_v34, %v3752_v33  ;;  %v4335_v34 = vld [vmem:[%s7038_s6 + $0x94] sm:$0xf0] }
 0x200   : > { %1767 = vmatmul.f32.vlgmr.msrb.gmra.mxu3 %v1661_v0  ;;  %1807 = vmatmul.f32.vlgmr.msra.gmra.mxu1 %v1661_v0  ;;  %v1650_v56 = vadd.f32 %v1649_v53, %v1648_v51  ;;  %v1665_v57 = vrot.slane %v1664_v54, 2  ;;  %v4344_v51 = vld [vmem:[%s7038_s6 + $0xe4] sm:$0xf]  ;;  %v3776_v53 = vld [vmem:[%s7038_s6 + $0x70] sm:$0xf] }
 0x201   : > { %2169 = vmatpush.bf16.msrb.mxu1 %v3773_v50  ;;  %v4323_v50 = vld [vmem:[%s7038_s6 + $0x34] sm:$0xf0] }
 0x202   : > { %v1651_v58 = vrot.slane %v1650_v56, 1  ;;  %v1666_v60 = vadd.f32 %v1665_v57, %v1664_v54  ;;  %v3837_v54 = vor.u32 %v4344_v51, %v3834_v52  ;;  %v4331_v57 = vld [vmem:[%s7038_s6 + $0x74] sm:$0xf0] }
 0x204   : > { %v1652_v59 = vadd.f32 %v1651_v58, %v1650_v56  ;;  %v1667_v19 = vrot.slane %v1666_v60, 1 }
 0x206   : > { %1705 = vmatmul.f32.vlgmr.msrb.gmra.mxu0 %v1652_v59  ;;  %1745 = vmatmul.f32.vlgmr.msrb.gmra.mxu2 %v1652_v59  ;;  %v1668_v55 = vadd.f32 %v1667_v19, %v1666_v60  ;;  %v4326_v59 = vld [vmem:[%s7038_s6 + $0x54] sm:$0xf]  ;;  %v3762_v60 = vld [vmem:[%s7038_s6 + $0x58] sm:$0xf0] }
 0x207   : > { %2181 = vmatpush.bf16.msrb.mxu2 %v3845_v39  ;;  %v4342_v19 = vld [vmem:[%s7038_s6 + $0xd4] sm:$0xf]  ;;  %v4343_v39 = vld [vmem:[%s7038_s6 + $0xd4] sm:$0xf0] }
 0x20b   : > { %2182 = vmatpush.bf16.msrb.mxu2 %v3837_v54  ;;  %v4318_v54 = vld [vmem:[%s7038_s6 + $0x14] sm:$0xf] }
 0x20e   : > { %1787 = vmatmul.f32.vlgmr.msra.gmra.mxu0 %v1668_v55  ;;  %1827 = vmatmul.f32.vlgmr.msra.gmra.mxu2 %v1668_v55 }
 0x275   : > { %v1726_v62 = vpop.f32.mrf.mxu1 }
 0x27b   : > { %v1686_v1 = vpop.f32.mrf.mxu3 }
 0x27d   : > { %v1808_v9 = vpop.f32.mrf.mxu1 }
 0x283   : > { %v1706_v61 = vpop.f32.mrf.mxu0  ;;  %v1768_v4 = vpop.f32.mrf.mxu3 }
 0x284   : > { %v1707_v2 = vadd.f32 %v1706_v61, %v1686_v1 }
 0x286   : > { %v1749_v63 = vmul.f32 0.25, %v1707_v2  ;;  %v3765_v2 = vor.u32 %v4326_v59, %v3762_v60  ;;  %v3794_v60 = vld [vmem:[%s7038_s6 + $0x98] sm:$0xf0] }
 0x288   : > { %v1833_v6 = vmul.f32 %v1749_v63, %v1749_v63  ;;  %v1839_v28 = vperm.slane %v1749_v63, 0  ;;  %v3777_v63 = vor.u32 %v4331_v57, %v3776_v53  ;;  %2170 = vmatpush.bf16.msrb.mxu1 %v3765_v2  ;;  %v4341_v53 = vld [vmem:[%s7038_s6 + $0xc4] sm:$0xf0]  ;;  %v4334_v57 = vld [vmem:[%s7038_s6 + $0x94] sm:$0xf] }
 0x289   : > { %v1746_v3 = vpop.f32.mrf.mxu2  ;;  %v3808_v2 = vld [vmem:[%s7038_s6 + $0xb0] sm:$0xf] }
 0x28a   : > { %v1747_v13 = vadd.f32 %v1746_v3, %v1726_v62  ;;  %v1841_v40 = vsub.f32 %v5909_v22, %v1839_v28  ;;  %v3826_v62 = vld [vmem:[%s7038_s6 + $0xd8] sm:$0xf0] }
 0x28b   : > { %v1788_v42 = vpop.f32.mrf.mxu0 }
 0x28c   : > { %v1789_v5 = vadd.f32 %v1788_v42, %v1768_v4  ;;  %v5933_v8 = vmul.f32 0.25, %v1747_v13  ;;  %v3829_v4 = vor.u32 %v4342_v19, %v3826_v62  ;;  %v1910_v42 = vld [vmem:[%s7037_s5] sm:$0x1]  ;;  %v4339_v62 = vld [vmem:[%s7038_s6 + $0xb4] sm:$0xf0] }
 0x28d   : > { %v3736_v19 = vld [vmem:[%s7038_s6 + $0x20] sm:$0xf] }
 0x28e   : > { %v1831_v7 = vmul.f32 0.25, %v1789_v5  ;;  %v1834_v11 = vmul.f32 %v5933_v8, %v5933_v8  ;;  %v1840_v48 = vperm.slane %v5933_v8, 0  ;;  %v3840_v5 = vld [vmem:[%s7038_s6 + $0xf0] sm:$0xf]  ;;  %v4329_v8 = vld [vmem:[%s7038_s6 + $0x64] sm:$0xf0]  ;;  %2183 = vmatpush.bf16.msrb.mxu2 %v3829_v4 }
 0x28f   : > { %v4316_v4 = vld [vmem:[%s7038_s6 + $0x4] sm:$0xf] }
 0x290   : > { %v1835_v36 = vsub.f32 %v1831_v7, %v1833_v6  ;;  %v1842_v55 = vsub.f32 %v5926_v43, %v1840_v48  ;;  %v4347_v6 = vld [vmem:[%s7038_s6 + $0xf4] sm:$0xf0]  ;;  %v3768_v7 = vld [vmem:[%s7038_s6 + $0x60] sm:$0xf]  ;;  %v3802_v48 = vld [vmem:[%s7038_s6 + $0xa8] sm:$0xf0] }
 0x291   : > { %v1828_v14 = vpop.f32.mrf.mxu2  ;;  %v6904_v43 = vld [vmem:[%s7036_s4 + $0x18] sm:$0xff] }
 0x292   : > { %v1837_v15 = vmax.f32 %v1835_v36, 0.0  ;;  %v1829_v10 = vadd.f32 %v1828_v14, %v1808_v9  ;;  %v4324_v9 = vld [vmem:[%s7038_s6 + $0x44] sm:$0xf]  ;;  %v3754_v14 = vld [vmem:[%s7038_s6 + $0x48] sm:$0xf0] }
 0x294   : > { %v1843_v12 = vadd.f32 1e-05, %v1837_v15  ;;  %v1832_v16 = vmul.f32 0.25, %v1829_v10  ;;  %v3757_v10 = vor.u32 %v4324_v9, %v3754_v14  ;;  %v3906_v9 = vld [vmem:[%s7038_s6 + $0x178] sm:$0xf0] }
 0x295   : > { %v4319_v14 = vld [vmem:[%s7038_s6 + $0x14] sm:$0xf0] }
 0x296   : > { %4389 = vrsqrt.f32 %v1843_v12  ;;  %v1836_v17 = vsub.f32 %v1832_v16, %v1834_v11  ;;  %vm1851_vm4 = vweird.f32 %v1843_v12  ;;  %v4340_v11 = vld [vmem:[%s7038_s6 + $0xc4] sm:$0xf]  ;;  %v3818_v16 = vld [vmem:[%s7038_s6 + $0xc8] sm:$0xf0]  ;;  %2171 = vmatpush.bf16.msrb.mxu1 %v3757_v10 }
 0x298   : > { %v1838_v18 = vmax.f32 %v1836_v17, 0.0 }
 0x29a   : > { %v1844_v20 = vadd.f32 1e-05, %v1838_v18  ;;  %v3760_v18 = vld [vmem:[%s7038_s6 + $0x50] sm:$0xf] }
 0x29c   : > { %v4390_v23 = vpop.eup %4389  ;;  %4391 = vrsqrt.f32 %v1844_v20  ;;  %vm1861_vm7 = vweird.f32 %v1844_v20 }
 0x29d   : > { %v1846_v24 = vmul.f32 %v4390_v23, %v1843_v12  ;;  %vm1852_vm3 = vweird.f32 %v4390_v23  ;;  %v3769_v12 = vor.u32 %v4329_v8, %v3768_v7  ;;  %v3786_v7 = vld [vmem:[%s7038_s6 + $0x88] sm:$0xf0]  ;;  %v4298_v8 = vld [vmem:[%s7038_s6 + $0x174] sm:$0xf] }
 0x29e   : > { %vm1853_vm5 = vmor %vm1851_vm4, %vm1852_vm3  ;;  %v3909_v10 = vor.u32 %v4298_v8, %v3906_v9  ;;  %v4309_v8 = vld [vmem:[%s7038_s6 + $0x1c4] sm:$0xf0] }
 0x29f   : > { %v1847_v25 = vmul.f32 %v4390_v23, %v1846_v24 }
 0x2a1   : > { %v1848_v21 = vmul.f32 0.5, %v1847_v25  ;;  %v3841_v25 = vor.u32 %v4347_v6, %v3840_v5 }
 0x2a2   : > { %v4392_v46 = vpop.eup %4391 }
 0x2a3   : > { %v1849_v26 = vsub.f32 1.5, %v1848_v21  ;;  %v1856_v27 = vmul.f32 %v4392_v46, %v1844_v20  ;;  %vm1862_vm6 = vweird.f32 %v4392_v46  ;;  %v4327_v20 = vld [vmem:[%s7038_s6 + $0x54] sm:$0xf0]  ;;  %v3832_v21 = vld [vmem:[%s7038_s6 + $0xe0] sm:$0xf] }
 0x2a4   : > { %vm1863_vm8 = vmor %vm1861_vm7, %vm1862_vm6 }
 0x2a5   : > { %v1850_v29 = vmul.f32 %v4390_v23, %v1849_v26  ;;  %v1857_v30 = vmul.f32 %v4392_v46, %v1856_v27  ;;  %v4322_v26 = vld [vmem:[%s7038_s6 + $0x34] sm:$0xf]  ;;  %v3746_v27 = vld [vmem:[%s7038_s6 + $0x38] sm:$0xf0] }
 0x2a7   : > { %v1854_v37 = vsel %vm1853_vm5, %v4390_v23, %v1850_v29  ;;  %v1858_v38 = vmul.f32 0.5, %v1857_v30  ;;  %v3821_v23 = vor.u32 %v4340_v11, %v3818_v16  ;;  %v3761_v29 = vor.u32 %v4327_v20, %v3760_v18  ;;  %v4314_v11 = vld [vmem:[%s7038_s6 + $0x1f4] sm:$0xf]  ;;  %v4337_v18 = vld [vmem:[%s7038_s6 + $0xa4] sm:$0xf0] }
 0x2a8   : > { %v1865_v41 = vperm.slane %v1854_v37, 0  ;;  %v3749_v30 = vor.u32 %v4322_v26, %v3746_v27  ;;  %v3809_v16 = vor.u32 %v4339_v62, %v3808_v2  ;;  %v3962_v27 = vld [vmem:[%s7038_s6 + $0x1e8] sm:$0xf0]  ;;  %v4293_v2 = vld [vmem:[%s7038_s6 + $0x144] sm:$0xf0] }
 0x2a9   : > { %v1859_v44 = vsub.f32 1.5, %v1858_v38  ;;  %2184 = vmatpush.bf16.msrb.mxu2 %v3821_v23  ;;  %v3824_v38 = vld [vmem:[%s7038_s6 + $0xd0] sm:$0xf]  ;;  %v4296_v23 = vld [vmem:[%s7038_s6 + $0x164] sm:$0xf] }
 0x2aa   : > { %v1867_v49 = vmul.f32 %v1865_v41, %v1841_v40  ;;  %2172 = vmatpush.bf16.msrb.mxu1 %v3749_v30  ;;  %v4320_v40 = vld [vmem:[%s7038_s6 + $0x24] sm:$0xf]  ;;  %v3738_v41 = vld [vmem:[%s7038_s6 + $0x28] sm:$0xf0]  ;;  %v3825_v52 = vor.u32 %v4343_v39, %v3824_v38  ;;  %v3720_v30 = vld [vmem:[%s7038_s6] sm:$0xf] }
 0x2ab   : > { %v1860_v0 = vmul.f32 %v4392_v46, %v1859_v44  ;;  %v4336_v44 = vld [vmem:[%s7038_s6 + $0xa4] sm:$0xf]  ;;  %v3741_v47 = vor.u32 %v4320_v40, %v3738_v41  ;;  %v4294_v38 = vld [vmem:[%s7038_s6 + $0x154] sm:$0xf]  ;;  %v3890_v39 = vld [vmem:[%s7038_s6 + $0x158] sm:$0xf0]  ;;  %v3721_v41 = vor.u32 %v4317_v31, %v3720_v30 }
 0x2ac   : > { %vm1869_vm9 = vcmp.ge.f32.partialorder %v1867_v49, 0.0  ;;  %v1871_v56 = vmul.f32 0.1, %v1867_v49  ;;  %v3805_v51 = vor.u32 %v4336_v44, %v3802_v48  ;;  %v4310_v40 = vld [vmem:[%s7038_s6 + $0x1d4] sm:$0xf]  ;;  %v3893_v44 = vor.u32 %v4294_v38, %v3890_v39 }
 0x2ad   : > { %v1864_v58 = vsel %vm1863_vm8, %v4392_v46, %v1860_v0  ;;  %v4345_v46 = vld [vmem:[%s7038_s6 + $0xe4] sm:$0xf0]  ;;  %2185 = vmatpush.bf16.msrb.mxu2 %v3813_v35  ;;  %v3816_v0 = vld [vmem:[%s7038_s6 + $0xc0] sm:$0xf]  ;;  %v3904_v35 = vld [vmem:[%s7038_s6 + $0x170] sm:$0xf] }
 0x2ae   : > { %v1866_v1 = vperm.slane %v1864_v58, 0  ;;  %v1873_v61 = vsel %vm1869_vm9, %v1867_v49, %v1871_v56  ;;  %v3833_v37 = vor.u32 %v4345_v46, %v3832_v21  ;;  %v3744_v49 = vld [vmem:[%s7038_s6 + $0x30] sm:$0xf]  ;;  %2173 = vmatpush.bf16.msrb.mxu1 %v3741_v47  ;;  %v3730_v56 = vld [vmem:[%s7038_s6 + $0x18] sm:$0xf0] }
 0x2af   : > { %v5982_v3 = vpack.c.bf16 %v1873_v61, %v1873_v61  ;;  %v3745_v58 = vor.u32 %v4323_v50, %v3744_v49  ;;  %v3733_v59 = vor.u32 %v4318_v54, %v3730_v56  ;;  %v3817_v61 = vor.u32 %v4341_v53, %v3816_v0  ;;  %v4312_v21 = vld [vmem:[%s7038_s6 + $0x1e4] sm:$0xf]  ;;  %v3896_v50 = vld [vmem:[%s7038_s6 + $0x160] sm:$0xf]  ;;  %v4333_v0 = vld [vmem:[%s7038_s6 + $0x84] sm:$0xf0] }
 0x2b0   : > { %v1868_v13 = vmul.f32 %v1866_v1, %v1842_v55  ;;  %v4321_v55 = vld [vmem:[%s7038_s6 + $0x24] sm:$0xf0]  ;;  %v3797_v1 = vor.u32 %v4334_v57, %v3794_v60  ;;  %v3965_v32 = vor.u32 %v4312_v21, %v3962_v27  ;;  %v3968_v53 = vld [vmem:[%s7038_s6 + $0x1f0] sm:$0xf]  ;;  %v4315_v54 = vld [vmem:[%s7038_s6 + $0x1f4] sm:$0xf0] }
 0x2b1   : > { %v6001_v36 = vsel %vm1915_vm10, %v5982_v3, 0  ;;  %2186 = vmatpush.bf16.msrb.mxu2 %v3805_v51  ;;  %v3737_v5 = vor.u32 %v4321_v55, %v3736_v19  ;;  %v4297_v51 = vld [vmem:[%s7038_s6 + $0x164] sm:$0xf0]  ;;  %v3969_v60 = vor.u32 %v4315_v54, %v3968_v53  ;;  %v3960_v19 = vld [vmem:[%s7038_s6 + $0x1e0] sm:$0xf] }
 0x2b2   : > { %1929 = vmatpush.bf16.msra.mxu3 %v6001_v36  ;;  %vm1870_vm12 = vcmp.ge.f32.partialorder %v1868_v13, 0.0  ;;  %v1872_v15 = vmul.f32 0.1, %v1868_v13  ;;  %2174 = vmatpush.bf16.msrb.mxu1 %v3733_v59  ;;  %v3897_v56 = vor.u32 %v4297_v51, %v3896_v50  ;;  %v4295_v59 = vld [vmem:[%s7038_s6 + $0x154] sm:$0xf0] }
 0x2b3   : > { %v4313_v55 = vld [vmem:[%s7038_s6 + $0x1e4] sm:$0xf0]  ;;  %v4303_v27 = vld [vmem:[%s7038_s6 + $0x194] sm:$0xf0]  ;;  %v4292_v30 = vld [vmem:[%s7038_s6 + $0x144] sm:$0xf] }
 0x2b4   : > { %v1874_v17 = vsel %vm1870_vm12, %v1868_v13, %v1872_v15  ;;  %v4332_v13 = vld [vmem:[%s7038_s6 + $0x84] sm:$0xf]  ;;  %v3961_v62 = vor.u32 %v4313_v55, %v3960_v19  ;;  %v3882_v31 = vld [vmem:[%s7038_s6 + $0x148] sm:$0xf0]  ;;  %v4285_v38 = vld [vmem:[%s7038_s6 + $0x104] sm:$0xf0] }
 0x2b5   : > { %3716 = vmatmul.msk.bf16.vlgmr.msra.gmra.mxu3 %vm1911_vm11, %v1910_v42  ;;  %v6023_v24 = vpack.c.bf16 %v1874_v17, %v1874_v17  ;;  %2187 = vmatpush.bf16.msrb.mxu2 %v3797_v1  ;;  %v3789_v15 = vor.u32 %v4332_v13, %v3786_v7  ;;  %v3800_v17 = vld [vmem:[%s7038_s6 + $0xa0] sm:$0xf]  ;;  %v3872_v13 = vld [vmem:[%s7038_s6 + $0x130] sm:$0xf]  ;;  %v3938_v50 = vld [vmem:[%s7038_s6 + $0x1b8] sm:$0xf0] }
 0x2b6   : > { %2142 = vmatpush.bf16.msrb.mxu3 %v3777_v63  ;;  %v3728_v63 = vld [vmem:[%s7038_s6 + $0x10] sm:$0xf]  ;;  %v3801_v33 = vor.u32 %v4337_v18, %v3800_v17  ;;  %v3944_v7 = vld [vmem:[%s7038_s6 + $0x1c0] sm:$0xf]  ;;  %v4287_v18 = vld [vmem:[%s7038_s6 + $0x114] sm:$0xf0] }
 0x2b7   : > { %v6039_v28 = vsel %vm1915_vm10, %v6023_v24, 0  ;;  %v3729_v46 = vor.u32 %v4319_v14, %v3728_v63  ;;  %v3952_v63 = vld [vmem:[%s7038_s6 + $0x1d0] sm:$0xf]  ;;  %v3864_v14 = vld [vmem:[%s7038_s6 + $0x120] sm:$0xf] }
 0x2b8   : > { %1942 = vmatpush.bf16.msrb.mxu0 %v6039_v28  ;;  %v3856_v17 = vld [vmem:[%s7038_s6 + $0x110] sm:$0xf]  ;;  %v3912_v39 = vld [vmem:[%s7038_s6 + $0x180] sm:$0xf]  ;;  %v4304_v53 = vld [vmem:[%s7038_s6 + $0x1a4] sm:$0xf] }
 0x2b9   : > { %2188 = vmatpush.bf16.msrb.mxu2 %v3789_v15  ;;  %v4289_v15 = vld [vmem:[%s7038_s6 + $0x124] sm:$0xf0]  ;;  %v3857_v21 = vor.u32 %v4287_v18, %v3856_v17  ;;  %v3922_v19 = vld [vmem:[%s7038_s6 + $0x198] sm:$0xf0] }
 0x2ba   : > { %2143 = vmatpush.bf16.msrb.mxu3 %v3769_v12  ;;  %v3970_v12 = vld [vmem:[%s7038_s6 + $0x1f8] sm:$0xf0] }
 0x2bb   : > { %3717 = vmatmul.msk.bf16.vlgmr.msrb.gmra.mxu0 %vm1911_vm11, %v1910_v42  ;;  %v3722_v42 = vld [vmem:[%s7038_s6 + $0x8] sm:$0xf0]  ;;  %v3973_v20 = vor.u32 %v4314_v11, %v3970_v12  ;;  %v3936_v11 = vld [vmem:[%s7038_s6 + $0x1b0] sm:$0xf]  ;;  %v4307_v12 = vld [vmem:[%s7038_s6 + $0x1b4] sm:$0xf0] }
 0x2bc   : > { %2155 = vmatpush.bf16.msra.mxu0 %v3841_v25  ;;  %v3725_v6 = vor.u32 %v4316_v4, %v3722_v42  ;;  %v3898_v25 = vld [vmem:[%s7038_s6 + $0x168] sm:$0xf0]  ;;  %v4311_v4 = vld [vmem:[%s7038_s6 + $0x1d4] sm:$0xf0]  ;;  %v4069_v18 = vld [vmem:[%s7038_s6 + $0x278] sm:$0xf0] }
 0x2bd   : > { %2393 = vmatpush.bf16.msra.mxu2 %v3973_v20  ;;  %v3901_v26 = vor.u32 %v4296_v23, %v3898_v25  ;;  %v3937_v20 = vor.u32 %v4307_v12, %v3936_v11  ;;  %v3928_v23 = vld [vmem:[%s7038_s6 + $0x1a0] sm:$0xf]  ;;  %v4305_v25 = vld [vmem:[%s7038_s6 + $0x1a4] sm:$0xf0]  ;;  %v4363_v11 = vld [vmem:[%s7038_s6 + $0x274] sm:$0xf0] }
 0x2be   : > { %2144 = vmatpush.bf16.msrb.mxu3 %v3761_v29  ;;  %2175 = vmatpush.bf16.msrb.mxu1 %v3725_v6  ;;  %v3792_v29 = vld [vmem:[%s7038_s6 + $0x90] sm:$0xf]  ;;  %v3953_v6 = vor.u32 %v4311_v4, %v3952_v63  ;;  %v3914_v63 = vld [vmem:[%s7038_s6 + $0x188] sm:$0xf0]  ;;  %v4362_v12 = vld [vmem:[%s7038_s6 + $0x274] sm:$0xf] }
 0x2bf   : > { %v3793_v49 = vor.u32 %v4335_v34, %v3792_v29  ;;  %v3946_v34 = vld [vmem:[%s7038_s6 + $0x1c8] sm:$0xf0] }
 0x2c0   : > { %2156 = vmatpush.bf16.msra.mxu0 %v3833_v37  ;;  %v4299_v37 = vld [vmem:[%s7038_s6 + $0x174] sm:$0xf0] }
 0x2c1   : > { %2394 = vmatpush.bf16.msra.mxu2 %v3965_v32  ;;  %v3905_v47 = vor.u32 %v4299_v37, %v3904_v35  ;;  %v4308_v32 = vld [vmem:[%s7038_s6 + $0x1c4] sm:$0xf]  ;;  %v3848_v37 = vld [vmem:[%s7038_s6 + $0x100] sm:$0xf] }
 0x2c2   : > { %2145 = vmatpush.bf16.msrb.mxu3 %v3753_v45  ;;  %2380 = vmatpush.bf16.msra.mxu1 %v3909_v10  ;;  %v3954_v45 = vld [vmem:[%s7038_s6 + $0x1d8] sm:$0xf0]  ;;  %v3945_v10 = vor.u32 %v4309_v8, %v3944_v7  ;;  %v3949_v35 = vor.u32 %v4308_v32, %v3946_v34 }
 0x2c3   : > { %v3957_v48 = vor.u32 %v4310_v40, %v3954_v45  ;;  %v3849_v40 = vor.u32 %v4285_v38, %v3848_v37  ;;  %v4290_v45 = vld [vmem:[%s7038_s6 + $0x134] sm:$0xf]  ;;  %v4375_v37 = vld [vmem:[%s7038_s6 + $0x2d4] sm:$0xf0] }
 0x2c4   : > { %2157 = vmatpush.bf16.msra.mxu0 %v3825_v52  ;;  %v3784_v52 = vld [vmem:[%s7038_s6 + $0x80] sm:$0xf]  ;;  %v4374_v38 = vld [vmem:[%s7038_s6 + $0x2d4] sm:$0xf] }
 0x2c5   : > { %2395 = vmatpush.bf16.msra.mxu2 %v3957_v48  ;;  %v3785_v57 = vor.u32 %v4333_v0, %v3784_v52  ;;  %v4306_v48 = vld [vmem:[%s7038_s6 + $0x1b4] sm:$0xf]  ;;  %v4288_v52 = vld [vmem:[%s7038_s6 + $0x124] sm:$0xf]  ;;  %v3866_v0 = vld [vmem:[%s7038_s6 + $0x128] sm:$0xf0] }
 0x2c6   : > { %2146 = vmatpush.bf16.msrb.mxu3 %v3745_v58  ;;  %2381 = vmatpush.bf16.msra.mxu1 %v3901_v26  ;;  %v3888_v58 = vld [vmem:[%s7038_s6 + $0x150] sm:$0xf]  ;;  %v3941_v51 = vor.u32 %v4306_v48, %v3938_v50  ;;  %v3869_v54 = vor.u32 %v4288_v52, %v3866_v0  ;;  %v4373_v52 = vld [vmem:[%s7038_s6 + $0x2c4] sm:$0xf0]  ;;  %v4372_v0 = vld [vmem:[%s7038_s6 + $0x2c4] sm:$0xf] }
 0x2c7   : > { %v3889_v1 = vor.u32 %v4295_v59, %v3888_v58  ;;  %v3920_v26 = vld [vmem:[%s7038_s6 + $0x190] sm:$0xf]  ;;  %v3858_v58 = vld [vmem:[%s7038_s6 + $0x118] sm:$0xf0] }
 0x2c8   : > { %2158 = vmatpush.bf16.msra.mxu0 %v3817_v61  ;;  %v3880_v61 = vld [vmem:[%s7038_s6 + $0x140] sm:$0xf]  ;;  %v3921_v29 = vor.u32 %v4303_v27, %v3920_v26  ;;  %v4125_v26 = vld [vmem:[%s7038_s6 + $0x2e8] sm:$0xf0] }
 0x2c9   : > { %v3881_v42 = vor.u32 %v4293_v2, %v3880_v61  ;;  %2396 = vmatpush.bf16.msra.mxu2 %v3949_v35  ;;  %v4284_v61 = vld [vmem:[%s7038_s6 + $0x104] sm:$0xf]  ;;  %v3850_v2 = vld [vmem:[%s7038_s6 + $0x108] sm:$0xf0]  ;;  %v4059_v27 = vld [vmem:[%s7038_s6 + $0x260] sm:$0xf] }
 0x2ca   : > { %2147 = vmatpush.bf16.msrb.mxu3 %v3737_v5  ;;  %2382 = vmatpush.bf16.msra.mxu1 %v3893_v44  ;;  %v4291_v5 = vld [vmem:[%s7038_s6 + $0x134] sm:$0xf0]  ;;  %v3853_v4 = vor.u32 %v4284_v61, %v3850_v2  ;;  %v4115_v35 = vld [vmem:[%s7038_s6 + $0x2d0] sm:$0xf]  ;;  %v4370_v2 = vld [vmem:[%s7038_s6 + $0x2b4] sm:$0xf] }
 0x2cb   : > { %v3873_v9 = vor.u32 %v4291_v5, %v3872_v13  ;;  %v4371_v61 = vld [vmem:[%s7038_s6 + $0x2b4] sm:$0xf0] }
 0x2cc   : > { %2159 = vmatpush.bf16.msra.mxu0 %v3809_v16  ;;  %v3865_v16 = vor.u32 %v4289_v15, %v3864_v14  ;;  %v3974_v14 = vld [vmem:[%s7037_s5 + $0x1] sm:$0x1]  ;;  %v4133_v15 = vld [vmem:[%s7038_s6 + $0x2f8] sm:$0xf0] }
 0x2cd   : > { %2397 = vmatpush.bf16.msra.mxu2 %v3941_v51  ;;  %v4107_v51 = vld [vmem:[%s7038_s6 + $0x2c0] sm:$0xf] }
 0x2ce   : > { %2148 = vmatpush.bf16.msrb.mxu3 %v3729_v46  ;;  %v3929_v46 = vor.u32 %v4305_v25, %v3928_v23  ;;  %v4123_v23 = vld [vmem:[%s7038_s6 + $0x2e0] sm:$0xf]  ;;  %v4377_v25 = vld [vmem:[%s7038_s6 + $0x2e4] sm:$0xf0] }
 0x2d0   : > { %2160 = vmatpush.bf16.msra.mxu0 %v3801_v33  ;;  %v3885_v33 = vor.u32 %v4292_v30, %v3882_v31  ;;  %v4360_v30 = vld [vmem:[%s7038_s6 + $0x264] sm:$0xf] }
 0x2d2   : > { %2149 = vmatpush.bf16.msrb.mxu3 %v3721_v41  ;;  %2383 = vmatpush.bf16.msra.mxu1 %v3885_v33  ;;  %v4301_v41 = vld [vmem:[%s7038_s6 + $0x184] sm:$0xf0]  ;;  %v4061_v33 = vld [vmem:[%s7038_s6 + $0x268] sm:$0xf0] }
 0x2d3   : > { %v3913_v44 = vor.u32 %v4301_v41, %v3912_v39  ;;  %v4064_v34 = vor.u32 %v4360_v30, %v4061_v33  ;;  %v4116_v39 = vor.u32 %v4375_v37, %v4115_v35  ;;  %v4051_v41 = vld [vmem:[%s7038_s6 + $0x250] sm:$0xf]  ;;  %v4085_v33 = vld [vmem:[%s7038_s6 + $0x298] sm:$0xf0]  ;;  %v4075_v35 = vld [vmem:[%s7038_s6 + $0x280] sm:$0xf] }
 0x2d4   : > { %2161 = vmatpush.bf16.msra.mxu0 %v3793_v49  ;;  %v4365_v37 = vld [vmem:[%s7038_s6 + $0x284] sm:$0xf0] }
 0x2d6   : > { %2354 = vmatpush.bf16.msra.mxu3 %v3905_v47  ;;  %v3874_v47 = vld [vmem:[%s7038_s6 + $0x138] sm:$0xf0] }
 0x2d7   : > { %v3877_v49 = vor.u32 %v4290_v45, %v3874_v47  ;;  %v4358_v45 = vld [vmem:[%s7038_s6 + $0x254] sm:$0xf] }
 0x2d8   : > { %2162 = vmatpush.bf16.msra.mxu0 %v3785_v57  ;;  %v4286_v57 = vld [vmem:[%s7038_s6 + $0x114] sm:$0xf] }
 0x2d9   : > { %2384 = vmatpush.bf16.msra.mxu1 %v3877_v49  ;;  %v3861_v55 = vor.u32 %v4286_v57, %v3858_v58  ;;  %v4053_v49 = vld [vmem:[%s7038_s6 + $0x258] sm:$0xf0]  ;;  %v4357_v57 = vld [vmem:[%s7038_s6 + $0x244] sm:$0xf0]  ;;  %v4356_v58 = vld [vmem:[%s7038_s6 + $0x244] sm:$0xf] }
 0x2da   : > { %2355 = vmatpush.bf16.msra.mxu3 %v3897_v56  ;;  %v3930_v56 = vld [vmem:[%s7038_s6 + $0x1a8] sm:$0xf0]  ;;  %v4056_v50 = vor.u32 %v4358_v45, %v4053_v49  ;;  %v4348_v45 = vld [vmem:[%s7038_s6 + $0x204] sm:$0xf] }
 0x2db   : > { %v3933_v59 = vor.u32 %v4304_v53, %v3930_v56  ;;  %v4108_v53 = vor.u32 %v4373_v52, %v4107_v51  ;;  %v4043_v56 = vld [vmem:[%s7038_s6 + $0x240] sm:$0xf] }
 0x2dc   : > { %2367 = vmatpush.bf16.msrb.mxu0 %v3969_v60  ;;  %v4302_v60 = vld [vmem:[%s7038_s6 + $0x194] sm:$0xf] }
 0x2dd   : > { %2385 = vmatpush.bf16.msra.mxu1 %v3869_v54  ;;  %2398 = vmatpush.bf16.msra.mxu2 %v3933_v59  ;;  %v4109_v54 = vld [vmem:[%s7038_s6 + $0x2c8] sm:$0xf0] }
 0x2de   : > { %2356 = vmatpush.bf16.msra.mxu3 %v3889_v1  ;;  %v3925_v1 = vor.u32 %v4302_v60, %v3922_v19  ;;  %v4112_v59 = vor.u32 %v4372_v0, %v4109_v54  ;;  %v4044_v60 = vor.u32 %v4357_v57, %v4043_v56  ;;  %v4045_v19 = vld [vmem:[%s7038_s6 + $0x248] sm:$0xf0]  ;;  %v6551_v57 = vld [vmem:[%s7036_s4 + $0xf0] sm:$0xff] }
 0x2e0   : > { %2368 = vmatpush.bf16.msrb.mxu0 %v3961_v62  ;;  %v4300_v62 = vld [vmem:[%s7038_s6 + $0x184] sm:$0xf] }
 0x2e1   : > { %2386 = vmatpush.bf16.msra.mxu1 %v3861_v55  ;;  %2399 = vmatpush.bf16.msra.mxu2 %v3925_v1  ;;  %v4048_v55 = vor.u32 %v4356_v58, %v4045_v19  ;;  %v4099_v1 = vld [vmem:[%s7038_s6 + $0x2b0] sm:$0xf]  ;;  %v6575_v19 = vld [vmem:[%s7036_s4 + $0xe0] sm:$0xff] }
 0x2e2   : > { %2357 = vmatpush.bf16.msra.mxu3 %v3881_v42  ;;  %v3917_v42 = vor.u32 %v4300_v62, %v3914_v63  ;;  %v4100_v62 = vor.u32 %v4371_v61, %v4099_v1  ;;  %v4101_v63 = vld [vmem:[%s7038_s6 + $0x2b8] sm:$0xf0]  ;;  %v6557_v58 = vld [vmem:[%s7036_s4 + $0x1f0] sm:$0xff]  ;;  %v6587_v1 = vld [vmem:[%s7036_s4 + $0xe8] sm:$0xff] }
 0x2e3   : > { %v6593_v61 = vld [vmem:[%s7036_s4 + $0x1e8] sm:$0xff] }
 0x2e4   : > { %2369 = vmatpush.bf16.msrb.mxu0 %v3953_v6 }
 0x2e5   : > { %2387 = vmatpush.bf16.msra.mxu1 %v3853_v4  ;;  %2400 = vmatpush.bf16.msra.mxu2 %v3917_v42  ;;  %v4035_v4 = vld [vmem:[%s7038_s6 + $0x230] sm:$0xf]  ;;  %v4355_v42 = vld [vmem:[%s7038_s6 + $0x234] sm:$0xf0] }
 0x2e6   : > { %2358 = vmatpush.bf16.msra.mxu3 %v3873_v9 }
 0x2e8   : > { %2370 = vmatpush.bf16.msrb.mxu0 %v3945_v10  ;;  %v4067_v10 = vld [vmem:[%s7038_s6 + $0x270] sm:$0xf] }
 0x2e9   : > { %v4068_v17 = vor.u32 %v4363_v11, %v4067_v10  ;;  %v4352_v10 = vld [vmem:[%s7038_s6 + $0x224] sm:$0xf] }
 0x2ea   : > { %2359 = vmatpush.bf16.msra.mxu3 %v3865_v16 }
 0x2ec   : > { %2371 = vmatpush.bf16.msrb.mxu0 %v3937_v20  ;;  %v4072_v20 = vor.u32 %v4362_v12, %v4069_v18  ;;  %v4019_v18 = vld [vmem:[%s7038_s6 + $0x210] sm:$0xf] }
 0x2ee   : > { %2360 = vmatpush.bf16.msra.mxu3 %v3857_v21  ;;  %v4376_v21 = vld [vmem:[%s7038_s6 + $0x2e4] sm:$0xf] }
 0x2ef   : > { %v4128_v31 = vor.u32 %v4376_v21, %v4125_v26  ;;  %v4083_v26 = vld [vmem:[%s7038_s6 + $0x290] sm:$0xf] }
 0x2f0   : > { %2372 = vmatpush.bf16.msrb.mxu0 %v3929_v46  ;;  %v4124_v46 = vor.u32 %v4377_v25, %v4123_v23  ;;  %v4350_v23 = vld [vmem:[%s7038_s6 + $0x214] sm:$0xf] }
 0x2f2   : > { %2361 = vmatpush.bf16.msra.mxu3 %v3849_v40  ;;  %v4117_v40 = vld [vmem:[%s7038_s6 + $0x2d8] sm:$0xf0] }
 0x2f3   : > { %v4120_v47 = vor.u32 %v4374_v38, %v4117_v40  ;;  %v4364_v38 = vld [vmem:[%s7038_s6 + $0x284] sm:$0xf]  ;;  %v4077_v40 = vld [vmem:[%s7038_s6 + $0x288] sm:$0xf0] }
 0x2f4   : > { %2373 = vmatpush.bf16.msrb.mxu0 %v3921_v29  ;;  %v4361_v29 = vld [vmem:[%s7038_s6 + $0x264] sm:$0xf0] }
 0x2f5   : > { %v4060_v32 = vor.u32 %v4361_v29, %v4059_v27  ;;  %v4367_v27 = vld [vmem:[%s7038_s6 + $0x294] sm:$0xf0] }
 0x2f8   : > { %2374 = vmatpush.bf16.msrb.mxu0 %v3913_v44  ;;  %v4359_v44 = vld [vmem:[%s7038_s6 + $0x254] sm:$0xf0] }
 0x2f9   : > { %v4052_v48 = vor.u32 %v4359_v44, %v4051_v41  ;;  %v4011_v41 = vld [vmem:[%s7038_s6 + $0x200] sm:$0xf]  ;;  %v4349_v44 = vld [vmem:[%s7038_s6 + $0x204] sm:$0xf0] }
 0x2fa   : > { %v4012_v49 = vor.u32 %v4349_v44, %v4011_v41  ;;  %v6778_v41 = vld [vmem:[%s7036_s4 + $0x160] sm:$0xff]  ;;  %v6784_v44 = vld [vmem:[%s7036_s4 + $0x68] sm:$0xff] }
 0x338   : > { %v1931_v13 = vpop.f32.mrf.mxu3  ;;  %v1944_v5 = vpop.f32.mrf.mxu0 }
 0x339   : > { %v1948_v6 = vpack.c.bf16 %v1931_v13, %v1931_v13  ;;  %v1949_v7 = vpack.c.bf16 %v1944_v5, %v1944_v5  ;;  %v4354_v13 = vld [vmem:[%s7038_s6 + $0x234] sm:$0xf]  ;;  %v4104_v5 = vor.u32 %v4370_v2, %v4101_v63 }
 0x33a   : > { %v6599_v2 = vld [vmem:[%s7036_s4 + $0xd0] sm:$0xff] }
 0x33b   : > { %2150 = vmatmul.bf16.vlgmr.msrb.gmra.mxu3 %v1948_v6  ;;  %2163 = vmatmul.bf16.vlgmr.msra.gmra.mxu0 %v1949_v7  ;;  %v6605_v63 = vld [vmem:[%s7036_s4 + $0x1d0] sm:$0xff] }
 0x33c   : > { %2176 = vmatmul.bf16.vlgmr.msrb.gmra.mxu1 %v1948_v6  ;;  %2189 = vmatmul.bf16.vlgmr.msrb.gmra.mxu2 %v1949_v7  ;;  %v4036_v6 = vor.u32 %v4355_v42, %v4035_v4  ;;  %v4037_v7 = vld [vmem:[%s7038_s6 + $0x238] sm:$0xf0] }
 0x33d   : > { %2418 = vmatpush.bf16.msrb.mxu3 %v6001_v36  ;;  %2431 = vmatpush.bf16.msra.mxu0 %v6039_v28  ;;  %v4131_v36 = vld [vmem:[%s7038_s6 + $0x2f0] sm:$0xf]  ;;  %v4379_v28 = vld [vmem:[%s7038_s6 + $0x2f4] sm:$0xf0] }
 0x33e   : > { %2658 = vmatpush.bf16.msrb.mxu2 %v4072_v20  ;;  %v4351_v20 = vld [vmem:[%s7038_s6 + $0x214] sm:$0xf0] }
 0x33f   : > { %v4020_v21 = vor.u32 %v4351_v20, %v4019_v18  ;;  %v6611_v4 = vld [vmem:[%s7036_s4 + $0xd8] sm:$0xff]  ;;  %v6701_v20 = vld [vmem:[%s7036_s4 + $0x190] sm:$0xff] }
 0x340   : > { %v1933_v8 = vpop.f32.mrf.mxu3  ;;  %v1946_v9 = vpop.f32.mrf.mxu0 }
 0x341   : > { %v4040_v8 = vor.u32 %v4354_v13, %v4037_v7  ;;  %v4091_v9 = vld [vmem:[%s7038_s6 + $0x2a0] sm:$0xf]  ;;  %v6617_v13 = vld [vmem:[%s7036_s4 + $0x1d8] sm:$0xff] }
 0x342   : > { %2659 = vmatpush.bf16.msrb.mxu2 %v4064_v34  ;;  %v6629_v7 = vld [vmem:[%s7036_s4 + $0x1c0] sm:$0xff] }
 0x346   : > { %2660 = vmatpush.bf16.msrb.mxu2 %v4056_v50  ;;  %v4013_v50 = vld [vmem:[%s7038_s6 + $0x208] sm:$0xf0] }
 0x347   : > { %v4016_v0 = vor.u32 %v4348_v45, %v4013_v50  ;;  %v6790_v45 = vld [vmem:[%s7036_s4 + $0x168] sm:$0xff]  ;;  %v6808_v50 = vld [vmem:[%s7036_s4 + $0x58] sm:$0xff] }
 0x34a   : > { %2661 = vmatpush.bf16.msrb.mxu2 %v4048_v55  ;;  %v6581_v55 = vld [vmem:[%s7036_s4 + $0x1e0] sm:$0xff] }
 0x34b   : > { %2362 = vmatmul.bf16.vlgmr.msra.gmra.mxu3 %v5982_v3  ;;  %2375 = vmatmul.bf16.vlgmr.msrb.gmra.mxu0 %v6023_v24 }
 0x34c   : > { %2388 = vmatmul.bf16.vlgmr.msra.gmra.mxu1 %v5982_v3  ;;  %2401 = vmatmul.bf16.vlgmr.msra.gmra.mxu2 %v6023_v24  ;;  %v4378_v3 = vld [vmem:[%s7038_s6 + $0x2f4] sm:$0xf]  ;;  %v4132_v24 = vor.u32 %v4379_v28, %v4131_v36  ;;  %v4368_v36 = vld [vmem:[%s7038_s6 + $0x2a4] sm:$0xf] }
 0x34d   : > { %v4136_v16 = vor.u32 %v4378_v3, %v4133_v15  ;;  %2632 = vmatpush.bf16.msra.mxu3 %v4068_v17  ;;  %v4093_v3 = vld [vmem:[%s7038_s6 + $0x2a8] sm:$0xf0]  ;;  %v4353_v15 = vld [vmem:[%s7038_s6 + $0x224] sm:$0xf0] }
 0x34e   : > { %2645 = vmatpush.bf16.msrb.mxu1 %v4132_v24  ;;  %2662 = vmatpush.bf16.msrb.mxu2 %v4040_v8  ;;  %v4027_v24 = vld [vmem:[%s7038_s6 + $0x220] sm:$0xf]  ;;  %v4096_v11 = vor.u32 %v4368_v36, %v4093_v3  ;;  %v6635_v8 = vld [vmem:[%s7036_s4 + $0xc8] sm:$0xff]  ;;  %v6647_v36 = vld [vmem:[%s7036_s4 + $0xb0] sm:$0xff] }
 0x34f   : > { %2671 = vmatpush.bf16.msrb.mxu0 %v4136_v16  ;;  %v4028_v12 = vor.u32 %v4353_v15, %v4027_v24  ;;  %v4029_v16 = vld [vmem:[%s7038_s6 + $0x228] sm:$0xf0]  ;;  %v6653_v3 = vld [vmem:[%s7036_s4 + $0x1b0] sm:$0xff]  ;;  %v6659_v24 = vld [vmem:[%s7036_s4 + $0xb8] sm:$0xff] }
 0x350   : > { %v4032_v17 = vor.u32 %v4352_v10, %v4029_v16  ;;  %v6665_v15 = vld [vmem:[%s7036_s4 + $0x1b8] sm:$0xff]  ;;  %v6671_v10 = vld [vmem:[%s7036_s4 + $0xa0] sm:$0xff]  ;;  %v6689_v16 = vld [vmem:[%s7036_s4 + $0x1a8] sm:$0xff] }
 0x351   : > { %2633 = vmatpush.bf16.msra.mxu3 %v4060_v32  ;;  %v4366_v32 = vld [vmem:[%s7038_s6 + $0x294] sm:$0xf] }
 0x352   : > { %2646 = vmatpush.bf16.msrb.mxu1 %v4124_v46  ;;  %v4021_v46 = vld [vmem:[%s7038_s6 + $0x218] sm:$0xf0]  ;;  %2663 = vmatpush.bf16.msrb.mxu2 %v4032_v17  ;;  %v4088_v34 = vor.u32 %v4366_v32, %v4085_v33  ;;  %v6695_v17 = vld [vmem:[%s7036_s4 + $0x90] sm:$0xff] }
 0x353   : > { %2672 = vmatpush.bf16.msrb.mxu0 %v4128_v31  ;;  %v4024_v30 = vor.u32 %v4350_v23, %v4021_v46  ;;  %v4084_v31 = vor.u32 %v4367_v27, %v4083_v26  ;;  %v6707_v23 = vld [vmem:[%s7036_s4 + $0x98] sm:$0xff]  ;;  %v6720_v26 = vld [vmem:[%s7036_s4 + $0x80] sm:$0xff] }
 0x354   : > { %v6714_v46 = vld [vmem:[%s7036_s4 + $0x198] sm:$0xff] }
 0x355   : > { %2634 = vmatpush.bf16.msra.mxu3 %v4052_v48 }
 0x356   : > { %2647 = vmatpush.bf16.msrb.mxu1 %v4116_v39  ;;  %v4076_v39 = vor.u32 %v4365_v37, %v4075_v35  ;;  %2664 = vmatpush.bf16.msrb.mxu2 %v4024_v30  ;;  %v6728_v30 = vld [vmem:[%s7036_s4 + $0x180] sm:$0xff]  ;;  %v6748_v35 = vld [vmem:[%s7036_s4 + $0x70] sm:$0xff] }
 0x357   : > { %2673 = vmatpush.bf16.msrb.mxu0 %v4120_v47  ;;  %v4080_v47 = vor.u32 %v4364_v38, %v4077_v40  ;;  %v6754_v37 = vld [vmem:[%s7036_s4 + $0x170] sm:$0xff]  ;;  %v6760_v38 = vld [vmem:[%s7036_s4 + $0x78] sm:$0xff]  ;;  %v6772_v40 = vld [vmem:[%s7036_s4 + $0x60] sm:$0xff] }
 0x359   : > { %2635 = vmatpush.bf16.msra.mxu3 %v4044_v60  ;;  %v6569_v60 = vld [vmem:[%s7036_s4 + $0x1f8] sm:$0xff] }
 0x35a   : > { %2648 = vmatpush.bf16.msrb.mxu1 %v4108_v53  ;;  %2665 = vmatpush.bf16.msrb.mxu2 %v4016_v0  ;;  %v6820_v0 = vld [vmem:[%s7036_s4 + $0x40] sm:$0xff] }
 0x35b   : > { %3975 = vmatmul.msk.bf16.vlgmr.msrb.gmra.mxu3 %vm1911_vm11, %v3974_v14  ;;  %3976 = vmatmul.msk.bf16.vlgmr.msra.gmra.mxu0 %vm1911_vm11, %v3974_v14  ;;  %v4369_v14 = vld [vmem:[%s7038_s6 + $0x2a4] sm:$0xf0] }
 0x35c   : > { %2674 = vmatpush.bf16.msrb.mxu0 %v4112_v59  ;;  %v4092_v28 = vor.u32 %v4369_v14, %v4091_v9  ;;  %v6563_v59 = vld [vmem:[%s7036_s4 + $0xf8] sm:$0xff]  ;;  %v6641_v14 = vld [vmem:[%s7036_s4 + $0x1c8] sm:$0xff] }
 0x35d   : > { %2636 = vmatpush.bf16.msra.mxu3 %v4036_v6 }
 0x35e   : > { %2649 = vmatpush.bf16.msrb.mxu1 %v4100_v62  ;;  %2766 = vmatpush.msra.mxu2 %v6563_v59 }
 0x360   : > { %2675 = vmatpush.bf16.msrb.mxu0 %v4104_v5  ;;  %2767 = vmatpush.msra.mxu2 %v6587_v1  ;;  %v6623_v5 = vld [vmem:[%s7036_s4 + $0xc0] sm:$0xff] }
 0x361   : > { %2637 = vmatpush.bf16.msra.mxu3 %v4028_v12  ;;  %v6683_v12 = vld [vmem:[%s7036_s4 + $0xa8] sm:$0xff] }
 0x362   : > { %2650 = vmatpush.bf16.msrb.mxu1 %v4092_v28  ;;  %2768 = vmatpush.msra.mxu2 %v6611_v4 }
 0x364   : > { %2676 = vmatpush.bf16.msrb.mxu0 %v4096_v11  ;;  %2769 = vmatpush.msra.mxu2 %v6635_v8  ;;  %v6677_v11 = vld [vmem:[%s7036_s4 + $0x1a0] sm:$0xff] }
 0x365   : > { %2638 = vmatpush.bf16.msra.mxu3 %v4020_v21 }
 0x366   : > { %2651 = vmatpush.bf16.msrb.mxu1 %v4084_v31  ;;  %2770 = vmatpush.msra.mxu2 %v6659_v24  ;;  %v6734_v31 = vld [vmem:[%s7036_s4 + $0x88] sm:$0xff] }
 0x368   : > { %2677 = vmatpush.bf16.msrb.mxu0 %v4088_v34  ;;  %2771 = vmatpush.msra.mxu2 %v6683_v12  ;;  %v6742_v34 = vld [vmem:[%s7036_s4 + $0x188] sm:$0xff] }
 0x369   : > { %2639 = vmatpush.bf16.msra.mxu3 %v4012_v49  ;;  %v6802_v49 = vld [vmem:[%s7036_s4 + $0x150] sm:$0xff] }
 0x36a   : > { %2652 = vmatpush.bf16.msrb.mxu1 %v4076_v39  ;;  %2772 = vmatpush.msra.mxu2 %v6707_v23  ;;  %v6766_v39 = vld [vmem:[%s7036_s4 + $0x178] sm:$0xff] }
 0x36c   : > { %2678 = vmatpush.bf16.msrb.mxu0 %v4080_v47  ;;  %2773 = vmatpush.msra.mxu2 %v6734_v31  ;;  %v6796_v47 = vld [vmem:[%s7036_s4 + $0x50] sm:$0xff] }
 0x36d   : > { %2726 = vmatpush.msrb.mxu3 %v6551_v57 }
 0x36e   : > { %2746 = vmatpush.msra.mxu1 %v6557_v58  ;;  %2774 = vmatpush.msra.mxu2 %v6760_v38 }
 0x36f   : > { %2727 = vmatpush.msrb.mxu3 %v6575_v19 }
 0x370   : > { %2786 = vmatpush.msra.mxu0 %v6569_v60  ;;  %2747 = vmatpush.msra.mxu1 %v6581_v55 }
 0x371   : > { %2728 = vmatpush.msrb.mxu3 %v6599_v2  ;;  %2775 = vmatpush.msra.mxu2 %v6784_v44 }
 0x372   : > { %2787 = vmatpush.msra.mxu0 %v6593_v61  ;;  %2748 = vmatpush.msra.mxu1 %v6605_v63 }
 0x373   : > { %2729 = vmatpush.msrb.mxu3 %v6623_v5  ;;  %2776 = vmatpush.msra.mxu2 %v6808_v50 }
 0x374   : > { %2788 = vmatpush.msra.mxu0 %v6617_v13  ;;  %2749 = vmatpush.msra.mxu1 %v6629_v7 }
 0x375   : > { %2730 = vmatpush.msrb.mxu3 %v6647_v36 }
 0x376   : > { %2789 = vmatpush.msra.mxu0 %v6641_v14  ;;  %2750 = vmatpush.msra.mxu1 %v6653_v3 }
 0x377   : > { %2731 = vmatpush.msrb.mxu3 %v6671_v10 }
 0x378   : > { %2790 = vmatpush.msra.mxu0 %v6665_v15  ;;  %2751 = vmatpush.msra.mxu1 %v6677_v11 }
 0x379   : > { %2732 = vmatpush.msrb.mxu3 %v6695_v17 }
 0x37a   : > { %2791 = vmatpush.msra.mxu0 %v6689_v16  ;;  %2752 = vmatpush.msra.mxu1 %v6701_v20 }
 0x37b   : > { %2733 = vmatpush.msrb.mxu3 %v6720_v26 }
 0x37c   : > { %2792 = vmatpush.msra.mxu0 %v6714_v46  ;;  %2753 = vmatpush.msra.mxu1 %v6728_v30 }
 0x37d   : > { %2734 = vmatpush.msrb.mxu3 %v6748_v35 }
 0x37e   : > { %2793 = vmatpush.msra.mxu0 %v6742_v34  ;;  %2754 = vmatpush.msra.mxu1 %v6754_v37 }
 0x37f   : > { %2735 = vmatpush.msrb.mxu3 %v6772_v40 }
 0x380   : > { %2794 = vmatpush.msra.mxu0 %v6766_v39  ;;  %2755 = vmatpush.msra.mxu1 %v6778_v41 }
 0x381   : > { %2736 = vmatpush.msrb.mxu3 %v6796_v47 }
 0x382   : > { %2795 = vmatpush.msra.mxu0 %v6790_v45  ;;  %2756 = vmatpush.msra.mxu1 %v6802_v49 }
 0x383   : > { %2737 = vmatpush.msrb.mxu3 %v6820_v0 }
 0x3b8   : > { %v2164_v25 = vpop.f32.mrf.mxu0 }
 0x3b9   : > { %v2177_v29 = vpop.f32.mrf.mxu1 }
 0x3be   : > { %v2151_v48 = vpop.f32.mrf.mxu3 }
 0x3bf   : > { %v6546_v51 = vadd.f32 %v2164_v25, %v2151_v48  ;;  %v2190_v52 = vpop.f32.mrf.mxu2 }
 0x3c0   : > { %v2191_v53 = vadd.f32 %v2190_v52, %v2177_v29  ;;  %v2166_v54 = vpop.f32.mrf.mxu0  ;;  %v6814_v52 = vld [vmem:[%s7036_s4 + $0x158] sm:$0xff] }
 0x3c1   : > { %v2179_v56 = vpop.f32.mrf.mxu1  ;;  %2796 = vmatpush.msra.mxu0 %v6814_v52  ;;  %v6826_v54 = vld [vmem:[%s7036_s4 + $0x140] sm:$0xff] }
 0x3c2   : > { %2757 = vmatpush.msra.mxu1 %v6826_v54  ;;  %v6832_v56 = vld [vmem:[%s7036_s4 + $0x48] sm:$0xff] }
 0x3c3   : > { %2777 = vmatpush.msra.mxu2 %v6832_v56 }
 0x3c6   : > { %v2153_v62 = vpop.f32.mrf.mxu3 }
 0x3c7   : > { %v2192_v42 = vpop.f32.mrf.mxu2 }
 0x3c8   : > { %v2376_v6 = vpop.f32.mrf.mxu0  ;;  %v6838_v42 = vld [vmem:[%s7036_s4 + $0x148] sm:$0xff] }
 0x3c9   : > { %v2389_v9 = vpop.f32.mrf.mxu1  ;;  %2797 = vmatpush.msra.mxu0 %v6838_v42 }
 0x3ca   : > { %v2390_v28 = vadd.f32 %v2389_v9, %v2191_v53  ;;  %v6850_v9 = vld [vmem:[%s7036_s4 + $0x130] sm:$0xff] }
 0x3cb   : > { %2758 = vmatpush.msra.mxu1 %v6850_v9 }
 0x3ce   : > { %v2363_v18 = vpop.f32.mrf.mxu3 }
 0x3cf   : > { %v2364_v25 = vadd.f32 %v2363_v18, %v6546_v51  ;;  %v2402_v21 = vpop.f32.mrf.mxu2  ;;  %v6862_v18 = vld [vmem:[%s7036_s4 + $0x138] sm:$0xff] }
 0x3d0   : > { %v6723_v27 = vadd.f32 %v2402_v21, %v2390_v28  ;;  %v2378_v29 = vpop.f32.mrf.mxu0  ;;  %v6856_v28 = vld [vmem:[%s7036_s4 + $0x38] sm:$0xff]  ;;  %2798 = vmatpush.msra.mxu0 %v6862_v18  ;;  %v6874_v21 = vld [vmem:[%s7036_s4 + $0x120] sm:$0xff] }
 0x3d1   : > { %v6737_v32 = vadd.f32 %v2376_v6, %v2364_v25  ;;  %v2391_v33 = vpop.f32.mrf.mxu1  ;;  %v6844_v6 = vld [vmem:[%s7036_s4 + $0x30] sm:$0xff]  ;;  %2778 = vmatpush.msra.mxu2 %v6856_v28  ;;  %v6868_v25 = vld [vmem:[%s7036_s4 + $0x20] sm:$0xff]  ;;  %2759 = vmatpush.msra.mxu1 %v6874_v21  ;;  %v6880_v29 = vld [vmem:[%s7036_s4 + $0x28] sm:$0xff] }
 0x3d2   : > { %7046 = vst [vmem:[#allocation4_spill] sm:$0xff] %v6723_v27  ;;  %2738 = vmatpush.msrb.mxu3 %v6844_v6  ;;  %v6910_v27 = vld [vmem:[%s7036_s4 + $0x118] sm:$0xff] }
 0x3d3   : > { %7047 = vst [vmem:[#allocation5_spill] sm:$0xff] %v6737_v32  ;;  %2779 = vmatpush.msra.mxu2 %v6880_v29  ;;  %v6928_v32 = vld [vmem:[%s7036_s4 + $0x8] sm:$0xff] }
 0x3d4   : > { %2739 = vmatpush.msrb.mxu3 %v6868_v25 }
 0x3d5   : > { %2780 = vmatpush.msra.mxu2 %v6904_v43 }
 0x3d6   : > { %v2365_v48 = vpop.f32.mrf.mxu3 }
 0x3d7   : > { %v2404_v51 = vpop.f32.mrf.mxu2  ;;  %v6886_v48 = vld [vmem:[%s7036_s4 + $0x128] sm:$0xff]  ;;  %2781 = vmatpush.msra.mxu2 %v6928_v32 }
 0x3d8   : > { %v2433_v53 = vpop.f32.mrf.mxu0  ;;  %2799 = vmatpush.msra.mxu0 %v6886_v48  ;;  %v6892_v51 = vld [vmem:[%s7036_s4 + $0x10] sm:$0xff] }
 0x3d9   : > { %v2438_v62 = vpack.c.bf16 %v2433_v53, %v2433_v53  ;;  %2740 = vmatpush.msrb.mxu3 %v6892_v51 }
 0x3da   : > { %2800 = vmatpush.msra.mxu0 %v6910_v27 }
 0x3db   : > { %2653 = vmatmul.bf16.vlgmr.msrb.gmra.mxu1 %v2438_v62  ;;  %2679 = vmatmul.bf16.vlgmr.msrb.gmra.mxu0 %v2438_v62  ;;  %v6898_v62 = vld [vmem:[%s7036_s4 + $0x110] sm:$0xff] }
 0x3dc   : > { %2760 = vmatpush.msra.mxu1 %v6898_v62 }
 0x3de   : > { %v2420_v33 = vpop.f32.mrf.mxu3 }
 0x3df   : > { %v2437_v53 = vpack.c.bf16 %v2420_v33, %v2420_v33  ;;  %v6916_v33 = vld [vmem:[%s7036_s4] sm:$0xff] }
 0x3e0   : > { %v2435_v22 = vpop.f32.mrf.mxu0  ;;  %7048 = vst [vmem:[#allocation6_spill] sm:$0xff] %v6916_v33  ;;  %2741 = vmatpush.msrb.mxu3 %v6916_v33  ;;  %v6934_v33 = vld [vmem:[%s7036_s4 + $0x108] sm:$0xff] }
 0x3e1   : > { %2640 = vmatmul.bf16.vlgmr.msra.gmra.mxu3 %v2437_v53  ;;  %2666 = vmatmul.bf16.vlgmr.msrb.gmra.mxu2 %v2437_v53  ;;  %v6922_v22 = vld [vmem:[%s7036_s4 + $0x100] sm:$0xff] }
 0x3e2   : > { %2761 = vmatpush.msra.mxu1 %v6922_v22  ;;  %2801 = vmatpush.msra.mxu0 %v6934_v33 }
 0x3e3   : > { %2808 = vmatpush.msra.mxu3 %v6551_v57  ;;  %2848 = vmatpush.msrb.mxu2 %v6563_v59 }
 0x3e4   : > { %2828 = vmatpush.msrb.mxu1 %v6557_v58  ;;  %2868 = vmatpush.msrb.mxu0 %v6569_v60 }
 0x3e5   : > { %2809 = vmatpush.msra.mxu3 %v6575_v19  ;;  %2849 = vmatpush.msrb.mxu2 %v6587_v1 }
 0x3e6   : > { %v2422_v53 = vpop.f32.mrf.mxu3  ;;  %2829 = vmatpush.msrb.mxu1 %v6581_v55  ;;  %2869 = vmatpush.msrb.mxu0 %v6593_v61  ;;  %v2686_v55 = vld [vmem:[%s7039_s7] sm:$0x3] }
 0x3e7   : > { %2810 = vmatpush.msra.mxu3 %v6599_v2  ;;  %2850 = vmatpush.msrb.mxu2 %v6611_v4  ;;  %v7049_v57 = vld [vmem:[#allocation6_spill] sm:$0xff]  ;;  %v2688_v2 = vperm.slane %v2686_v55, 0  ;;  %v2689_v4 = vperm.slane %v2686_v55, 1 }
 0x3e8   : > { %2830 = vmatpush.msrb.mxu1 %v6605_v63  ;;  %2870 = vmatpush.msrb.mxu0 %v6617_v13  ;;  %v7050_v13 = vld [vmem:[#allocation5_spill] sm:$0xff] }
 0x3e9   : > { %2811 = vmatpush.msra.mxu3 %v6623_v5  ;;  %2851 = vmatpush.msrb.mxu2 %v6635_v8 }
 0x3ea   : > { %2831 = vmatpush.msrb.mxu1 %v6629_v7  ;;  %2871 = vmatpush.msrb.mxu0 %v6641_v14  ;;  %v7051_v7 = vld [vmem:[#allocation4_spill] sm:$0xff] }
 0x3eb   : > { %2812 = vmatpush.msra.mxu3 %v6647_v36  ;;  %2852 = vmatpush.msrb.mxu2 %v6659_v24 }
 0x3ec   : > { %2832 = vmatpush.msrb.mxu1 %v6653_v3  ;;  %2872 = vmatpush.msrb.mxu0 %v6665_v15  ;;  %v7052_v3 = vld [vmem:[#allocation2_spill] sm:$0xff]  ;;  %v7053_v15 = vld [vmem:[#allocation3_spill] sm:$0xff] }
 0x3ed   : > { %2813 = vmatpush.msra.mxu3 %v6671_v10  ;;  %2853 = vmatpush.msrb.mxu2 %v6683_v12 }
 0x3ee   : > { %2833 = vmatpush.msrb.mxu1 %v6677_v11  ;;  %2873 = vmatpush.msrb.mxu0 %v6689_v16 }
 0x3ef   : > { %2814 = vmatpush.msra.mxu3 %v6695_v17  ;;  %2854 = vmatpush.msrb.mxu2 %v6707_v23 }
 0x3f0   : > { %2834 = vmatpush.msrb.mxu1 %v6701_v20  ;;  %2874 = vmatpush.msrb.mxu0 %v6714_v46 }
 0x3f1   : > { %2815 = vmatpush.msra.mxu3 %v6720_v26  ;;  %2855 = vmatpush.msrb.mxu2 %v6734_v31 }
 0x3f2   : > { %2835 = vmatpush.msrb.mxu1 %v6728_v30  ;;  %2875 = vmatpush.msrb.mxu0 %v6742_v34 }
 0x3f3   : > { %2816 = vmatpush.msra.mxu3 %v6748_v35  ;;  %2856 = vmatpush.msrb.mxu2 %v6760_v38 }
 0x3f4   : > { %2836 = vmatpush.msrb.mxu1 %v6754_v37  ;;  %2876 = vmatpush.msrb.mxu0 %v6766_v39 }
 0x3f5   : > { %2817 = vmatpush.msra.mxu3 %v6772_v40  ;;  %2857 = vmatpush.msrb.mxu2 %v6784_v44 }
 0x3f6   : > { %2837 = vmatpush.msrb.mxu1 %v6778_v41  ;;  %2877 = vmatpush.msrb.mxu0 %v6790_v45 }
 0x3f7   : > { %2818 = vmatpush.msra.mxu3 %v6796_v47  ;;  %2858 = vmatpush.msrb.mxu2 %v6808_v50 }
 0x3f8   : > { %2838 = vmatpush.msrb.mxu1 %v6802_v49  ;;  %2878 = vmatpush.msrb.mxu0 %v6814_v52 }
 0x3f9   : > { %2819 = vmatpush.msra.mxu3 %v6820_v0  ;;  %2859 = vmatpush.msrb.mxu2 %v6832_v56 }
 0x3fa   : > { %2839 = vmatpush.msrb.mxu1 %v6826_v54  ;;  %2879 = vmatpush.msrb.mxu0 %v6838_v42 }
 0x3fb   : > { %2820 = vmatpush.msra.mxu3 %v6844_v6  ;;  %2860 = vmatpush.msrb.mxu2 %v6856_v28 }
 0x3fc   : > { %2840 = vmatpush.msrb.mxu1 %v6850_v9  ;;  %2880 = vmatpush.msrb.mxu0 %v6862_v18 }
 0x3fd   : > { %2821 = vmatpush.msra.mxu3 %v6868_v25  ;;  %2861 = vmatpush.msrb.mxu2 %v6880_v29 }
 0x3fe   : > { %2841 = vmatpush.msrb.mxu1 %v6874_v21  ;;  %2881 = vmatpush.msrb.mxu0 %v6886_v48 }
 0x3ff   : > { %2822 = vmatpush.msra.mxu3 %v6892_v51  ;;  %2862 = vmatpush.msrb.mxu2 %v6904_v43 }
 0x400   : > { %2842 = vmatpush.msrb.mxu1 %v6898_v62  ;;  %2882 = vmatpush.msrb.mxu0 %v6910_v27 }
 0x401   : > { %2823 = vmatpush.msra.mxu3 %v7049_v57  ;;  %2863 = vmatpush.msrb.mxu2 %v6928_v32 }
 0x402   : > { %2843 = vmatpush.msrb.mxu1 %v6922_v22  ;;  %2883 = vmatpush.msrb.mxu0 %v6934_v33 }
 0x458   : > { %v2654_v58 = vpop.f32.mrf.mxu1  ;;  %v2680_v59 = vpop.f32.mrf.mxu0 }
 0x460   : > { %v2656_v60 = vpop.f32.mrf.mxu1  ;;  %v2682_v19 = vpop.f32.mrf.mxu0 }
 0x464   : > { %v2641_v1 = vpop.f32.mrf.mxu3  ;;  %v2667_v43 = vpop.f32.mrf.mxu2 }
 0x465   : > { %v2655_v61 = vadd.f32 %v2654_v58, %v2641_v1  ;;  %v2681_v63 = vadd.f32 %v2680_v59, %v2667_v43 }
 0x467   : > { %v2684_v5 = vadd.f32 %v2655_v61, %v7050_v13  ;;  %v2685_v8 = vadd.f32 %v2681_v63, %v7051_v7 }
 0x469   : > { %v2692_v14 = vadd.f32 %v2688_v2, %v2684_v5  ;;  %v2693_v36 = vadd.f32 %v2689_v4, %v2685_v8 }
 0x46b   : > { %v7007_v24 = vadd.f32 %v2692_v14, %v7052_v3  ;;  %v7010_v10 = vadd.f32 %v2693_v36, %v7053_v15 }
 0x46c   : > { %v2643_v11 = vpop.f32.mrf.mxu3  ;;  %v2669_v12 = vpop.f32.mrf.mxu2 }
 0x46d   : > { %v2696_v16 = vsel %vm1638_vm2, %v7007_v24, 0.0  ;;  %v2710_v17 = vmul.f32 %v7007_v24, %v7007_v24  ;;  %v2703_v20 = vsel %vm1638_vm2, %v7010_v10, 0.0  ;;  %v2711_v23 = vmul.f32 %v7010_v10, %v7010_v10 }
 0x46e   : > { %v2697_v46 = vrot.slane %v2696_v16, 4  ;;  %v2704_v26 = vrot.slane %v2703_v20, 4 }
 0x46f   : > { %v2712_v27 = vsel %vm1638_vm2, %v2710_v17, 0.0  ;;  %v2719_v30 = vsel %vm1638_vm2, %v2711_v23, 0.0 }
 0x470   : > { %v2698_v31 = vadd.f32 %v2697_v46, %v2696_v16  ;;  %v2713_v32 = vrot.slane %v2712_v27, 4  ;;  %v2705_v34 = vadd.f32 %v2704_v26, %v2703_v20  ;;  %v2720_v35 = vrot.slane %v2719_v30, 4 }
 0x472   : > { %v2699_v37 = vrot.slane %v2698_v31, 2  ;;  %v2714_v38 = vadd.f32 %v2713_v32, %v2712_v27  ;;  %v2706_v39 = vrot.slane %v2705_v34, 2  ;;  %v2721_v40 = vadd.f32 %v2720_v35, %v2719_v30 }
 0x474   : > { %v2700_v41 = vadd.f32 %v2699_v37, %v2698_v31  ;;  %v2707_v44 = vadd.f32 %v2706_v39, %v2705_v34  ;;  %v2715_v45 = vrot.slane %v2714_v38, 2  ;;  %v2722_v47 = vrot.slane %v2721_v40, 2 }
 0x476   : > { %v2701_v49 = vrot.slane %v2700_v41, 1  ;;  %v2708_v50 = vrot.slane %v2707_v44, 1  ;;  %v2716_v54 = vadd.f32 %v2715_v45, %v2714_v38  ;;  %v2723_v56 = vadd.f32 %v2722_v47, %v2721_v40 }
 0x478   : > { %v2702_v52 = vadd.f32 %v2701_v49, %v2700_v41  ;;  %v2709_v0 = vadd.f32 %v2708_v50, %v2707_v44  ;;  %v2717_v42 = vrot.slane %v2716_v54, 1  ;;  %v2724_v6 = vrot.slane %v2723_v56, 1 }
 0x47a   : > { %2742 = vmatmul.f32.vlgmr.msrb.gmra.mxu3 %v2702_v52  ;;  %2762 = vmatmul.f32.vlgmr.msra.gmra.mxu1 %v2709_v0  ;;  %v2718_v9 = vadd.f32 %v2717_v42, %v2716_v54  ;;  %v2725_v28 = vadd.f32 %v2724_v6, %v2723_v56 }
 0x47b   : > { %2782 = vmatmul.f32.vlgmr.msra.gmra.mxu2 %v2702_v52  ;;  %2802 = vmatmul.f32.vlgmr.msra.gmra.mxu0 %v2709_v0 }
 0x482   : > { %2824 = vmatmul.f32.vlgmr.msra.gmra.mxu3 %v2718_v9  ;;  %2844 = vmatmul.f32.vlgmr.msrb.gmra.mxu1 %v2725_v28 }
 0x483   : > { %2864 = vmatmul.f32.vlgmr.msrb.gmra.mxu2 %v2718_v9  ;;  %2884 = vmatmul.f32.vlgmr.msrb.gmra.mxu0 %v2725_v28 }
 0x4f7   : > { %v2763_v18 = vpop.f32.mrf.mxu1 }
 0x4f8   : > { %v2803_v25 = vpop.f32.mrf.mxu0 }
 0x4fd   : > { %v2743_v21 = vpop.f32.mrf.mxu3 }
 0x4fe   : > { %v2783_v29 = vpop.f32.mrf.mxu2  ;;  %v2764_v48 = vadd.f32 %v2763_v18, %v2743_v21 }
 0x4ff   : > { %v2804_v51 = vadd.f32 %v2803_v25, %v2783_v29  ;;  %v2845_v22 = vpop.f32.mrf.mxu1 }
 0x500   : > { %v2806_v62 = vmul.f32 0.25, %v2764_v48  ;;  %v2885_v57 = vpop.f32.mrf.mxu0 }
 0x501   : > { %v2807_v33 = vmul.f32 0.25, %v2804_v51 }
 0x502   : > { %v2890_v19 = vmul.f32 %v2806_v62, %v2806_v62  ;;  %v2896_v17 = vperm.slane %v2806_v62, 0 }
 0x503   : > { %v2891_v1 = vmul.f32 %v2807_v33, %v2807_v33  ;;  %v2897_v23 = vperm.slane %v2807_v33, 0 }
 0x504   : > { %v2898_v30 = vsub.f32 %v7007_v24, %v2896_v17 }
 0x505   : > { %v2825_v53 = vpop.f32.mrf.mxu3  ;;  %v2899_v34 = vsub.f32 %v7010_v10, %v2897_v23 }
 0x506   : > { %v2846_v58 = vadd.f32 %v2845_v22, %v2825_v53  ;;  %v2865_v59 = vpop.f32.mrf.mxu2 }
 0x507   : > { %v2886_v60 = vadd.f32 %v2885_v57, %v2865_v59 }
 0x508   : > { %v2888_v55 = vmul.f32 0.25, %v2846_v58 }
 0x509   : > { %v2889_v43 = vmul.f32 0.25, %v2886_v60 }
 0x50a   : > { %v2892_v61 = vsub.f32 %v2888_v55, %v2890_v19 }
 0x50b   : > { %v2893_v2 = vsub.f32 %v2889_v43, %v2891_v1 }
 0x50c   : > { %v2894_v63 = vmax.f32 %v2892_v61, 0.0 }
 0x50d   : > { %v2895_v4 = vmax.f32 %v2893_v2, 0.0 }
 0x50e   : > { %v2900_v13 = vadd.f32 1e-05, %v2894_v63 }
 0x50f   : > { %v2901_v5 = vadd.f32 1e-05, %v2895_v4 }
 0x510   : > { %4393 = vrsqrt.f32 %v2900_v13  ;;  %vm2908_vm15 = vweird.f32 %v2900_v13 }
 0x511   : > { %4395 = vrsqrt.f32 %v2901_v5  ;;  %vm2918_vm1 = vweird.f32 %v2901_v5 }
 0x516   : > { %v4394_v7 = vpop.eup %4393 }
 0x517   : > { %v4396_v8 = vpop.eup %4395  ;;  %v2903_v14 = vmul.f32 %v4394_v7, %v2900_v13  ;;  %vm2909_vm13 = vweird.f32 %v4394_v7 }
 0x518   : > { %v2913_v36 = vmul.f32 %v4396_v8, %v2901_v5  ;;  %vm2919_vm14 = vweird.f32 %v4396_v8  ;;  %vm2910_vm0 = vmor %vm2908_vm15, %vm2909_vm13 }
 0x519   : > { %v2904_v3 = vmul.f32 %v4394_v7, %v2903_v14  ;;  %vm2920_vm3 = vmor %vm2918_vm1, %vm2919_vm14 }
 0x51a   : > { %v2914_v15 = vmul.f32 %v4396_v8, %v2913_v36 }
 0x51b   : > { %v2905_v11 = vmul.f32 0.5, %v2904_v3 }
 0x51c   : > { %v2915_v12 = vmul.f32 0.5, %v2914_v15 }
 0x51d   : > { %v2906_v16 = vsub.f32 1.5, %v2905_v11 }
 0x51e   : > { %v2916_v20 = vsub.f32 1.5, %v2915_v12 }
 0x51f   : > { %v2907_v46 = vmul.f32 %v4394_v7, %v2906_v16 }
 0x520   : > { %v2917_v26 = vmul.f32 %v4396_v8, %v2916_v20 }
 0x521   : > { %v2911_v27 = vsel %vm2910_vm0, %v4394_v7, %v2907_v46 }
 0x522   : > { %v2922_v31 = vperm.slane %v2911_v27, 0  ;;  %v2921_v32 = vsel %vm2920_vm3, %v4396_v8, %v2917_v26 }
 0x523   : > { %v2923_v35 = vperm.slane %v2921_v32, 0 }
 0x524   : > { %v2924_v37 = vmul.f32 %v2922_v31, %v2898_v30 }
 0x525   : > { %v2925_v38 = vmul.f32 %v2923_v35, %v2899_v34 }
 0x526   : > { %v2928_v39 = vmul.f32 0.1, %v2924_v37  ;;  %vm2926_vm5 = vcmp.ge.f32.partialorder %v2924_v37, 0.0 }
 0x527   : > { %vm2927_vm4 = vcmp.ge.f32.partialorder %v2925_v38, 0.0  ;;  %v2929_v40 = vmul.f32 0.1, %v2925_v38 }
 0x528   : > { %v2930_v45 = vsel %vm2926_vm5, %v2924_v37, %v2928_v39 }
 0x529   : > { %v2931_v41 = vsel %vm2927_vm4, %v2925_v38, %v2929_v40 }
 0x52a   : > { %v2934_v44 = vrot.slane %v2931_v41, 6 }
 0x52c   : > { %v2935_v24 = vsel %vm1638_vm2, %v2930_v45, %v2934_v44 }
 0x52d   : > { %2937 = vst [vmem:[%s305_s24] sm:$0xf] %v2935_v24 }
 0x52e PF: > { %s18_s27 = sadd.s32 1, %s4467_s27  }
 0x52f   : > { %p15_p4 = scmp.ge.s32.totalorder %s18_s27, 4  }
 0x531   :  { %17 = sbr.rel (!%p15_p4) target bundleno = 1 (0x1), region = 89 }

</bundles_post_ra>
